<compile_context>
chip_gen: v7x
topology: tpu7x:2x2x1
jax: 0.10.0
libtpu: 0.0.40
codegen_flags: <defaults>
</compile_context>

<pallas_src>
from functools import partial

import jax
import jax.numpy as jnp
from jax.experimental import pallas as pl
from jax.experimental.pallas import tpu as pltpu

LANES = 128
FC1_IN = 128
BLOCK_B = 8          # samples per grid step (batch tile)

# (C_out, C_in, K, stride) for conv1..conv5
CONV_CFG = [
    (24, 1, 10, 4),
    (36, 24, 8, 4),
    (48, 36, 4, 2),
    (64, 48, 3, 1),
    (64, 64, 3, 1),
]
FC_CFG = [  # (name, out, in)
    ("fc1", 100, 128),
    ("fc2", 50, 100),
    ("fc3", 10, 50),
    ("fc_mu", 2, 10),
]


def _conv_lengths(state_dim):
    L, lens = state_dim, []
    for _, _, k, s in CONV_CFG:
        L = (L - k) // s + 1
        lens.append(L)
    return lens


# ----------------------------------------------------------------------------
# Fused kernel: all weights VMEM-resident, BLOCK_B samples per invocation.
# Activation layout: (L, BLOCK_B, 128) -- positions major, batch in sublanes,
# channels in lanes.
# ----------------------------------------------------------------------------
def _fused_kernel(x_ref, w1, w2, w3, w4, w5, fw1, fw2, fw3, fwm, b_ref,
                  out_ref, a1, a2, a3, a4, a5, *, conv_meta, block_b):
    f32 = jnp.float32
    bf16 = jnp.bfloat16

    def bias(row):
        return b_ref[pl.ds(row, 1), :]             # (1, 128), broadcasts

    # ---- conv1 (C_in == 1): VPU broadcast MAC over taps, all samples at once.
    # x_ref is (state_dim, block_b, 1); the lane broadcast to 128 happens here.
    k1, s1, l1 = conv_meta[0]
    c1_chunk = min(l1, 12)                         # keep accumulator in vregs
    for p0 in range(0, l1, c1_chunk):
        pc = min(c1_chunk, l1 - p0)
        acc = jnp.zeros((pc, block_b, LANES), f32)
        for t in range(k1):
            xt = x_ref[pl.ds(p0 * s1 + t, pc, stride=s1)]   # (pc, Bb, 1)
            acc = acc + xt * w1[pl.ds(t, 1), :]              # * (1, 128)
        a1[pl.ds(p0, pc)] = jnp.maximum(acc + bias(0), 0.0)

    # ---- conv2..conv5: MXU tap accumulation with M = block_b * L_out ---------
    layers = ((w2, a1, a2, 1), (w3, a2, a3, 2), (w4, a3, a4, 3), (w5, a4, a5, 4))
    for w_ref, a_in, a_out, idx in layers:
        k, s, lo = conv_meta[idx]
        m = lo * block_b
        acc = jnp.zeros((m, LANES), f32)
        for t in range(k):
            if s > 1:
                tap = a_in[pl.ds(t, lo, stride=s)]           # (lo, Bb, 128)
            else:
                tap = a_in[pl.ds(t, lo)]
            tap2 = tap.reshape(m, LANES).astype(bf16)
            acc = acc + jnp.dot(tap2, w_ref[t], preferred_element_type=f32)
        a_out[...] = jnp.maximum(acc.reshape(lo, block_b, LANES) + bias(idx), 0.0)

    # ---- FC head: fc1 as per-position taps (absorbs channel-major flatten) ---
    l5 = conv_meta[-1][2]                           # = 2 positions
    h = jnp.zeros((block_b, LANES), f32)
    for l in range(l5):
        h = h + jnp.dot(a5[l].astype(bf16), fw1[l], preferred_element_type=f32)
    h = jnp.maximum(h + bias(5), 0.0)
    h = jnp.maximum(jnp.dot(h.astype(bf16), fw2[...], preferred_element_type=f32)
                    + bias(6), 0.0)
    h = jnp.maximum(jnp.dot(h.astype(bf16), fw3[...], preferred_element_type=f32)
                    + bias(7), 0.0)
    mu = jnp.tanh(jnp.dot(h.astype(bf16), fwm[...], preferred_element_type=f32)
                  + bias(8))

    out_ref[...] = mu.astype(out_ref.dtype)        # one lane-dense row per sample


def _resident_spec(arr):
    nd = arr.ndim
    return pl.BlockSpec(arr.shape, lambda i, _nd=nd: (0,) * _nd)


def tiny_policy_net_forward(packed, x, *, block_b=BLOCK_B):
    """x: (B, 1, state_dim) float32 (PyTorch NCW layout) -> (B, 2)."""
    B, c_in, state_dim = x.shape
    assert c_in == 1
    lens = _conv_lengths(state_dim)
    assert lens[-1] * CONV_CFG[-1][0] == FC1_IN, "state_dim inconsistent with fc1"
    conv_meta = tuple((k, s, lo) for (_, _, k, s), lo in zip(CONV_CFG, lens))

    # Position-major compact scan (state_dim, B_pad, 1): batch in sublanes,
    # single lane -> lane broadcast happens inside the kernel (no 128x DMA).
    bp = ((B + block_b - 1) // block_b) * block_b
    x_pm = jnp.transpose(x.astype(jnp.float32)[:, 0, :], (1, 0))     # (S, B)
    x_pm = jnp.pad(x_pm, ((0, 0), (0, bp - B)))[:, :, None]          # (S, bp, 1)

    operands = (x_pm, packed["w1"], packed["w2"], packed["w3"], packed["w4"],
                packed["w5"], packed["fw1"], packed["fw2"], packed["fw3"],
                packed["fwm"], packed["b"])

    in_specs = [pl.BlockSpec((state_dim, block_b, 1), lambda i: (0, i, 0))]
    in_specs += [_resident_spec(op) for op in operands[1:]]

    out = pl.pallas_call(
        partial(_fused_kernel, conv_meta=conv_meta, block_b=block_b),
        out_shape=jax.ShapeDtypeStruct((bp, LANES), jnp.float32),
        grid=(bp // block_b,),
        in_specs=in_specs,
        out_specs=pl.BlockSpec((block_b, LANES), lambda i: (i, 0)),
        scratch_shapes=[pltpu.VMEM((lo, block_b, LANES), jnp.float32)
                        for lo in lens],
        compiler_params=pltpu.CompilerParams(
            dimension_semantics=("parallel",)),
    )(*operands)
    return out[:B, :2]


# ----------------------------------------------------------------------------
# Parameter init (PyTorch default uniform) and one-time packing for the kernel.
# ----------------------------------------------------------------------------
def _uniform(key, shape, fan_in):
    bound = 1.0 / jnp.sqrt(jnp.float32(fan_in))
    return jax.random.uniform(key, shape, jnp.float32, -bound, bound)


def init_params(key):
    params = {}
    keys = jax.random.split(key, 2 * (len(CONV_CFG) + len(FC_CFG)))
    ki = 0
    for i, (c_out, c_in, k, _) in enumerate(CONV_CFG, start=1):
        fan_in = c_in * k
        params[f"conv{i}_w"] = _uniform(keys[ki], (c_out, c_in, k), fan_in); ki += 1
        params[f"conv{i}_b"] = _uniform(keys[ki], (c_out,), fan_in); ki += 1
    for name, n_out, n_in in FC_CFG:
        params[name + "_w"] = _uniform(keys[ki], (n_out, n_in), n_in); ki += 1
        params[name + "_b"] = _uniform(keys[ki], (n_out,), n_in); ki += 1
    return params


def pack_params(params):
    """Pre-transpose / zero-pad weights into lane-dense kernel operands.
    conv2..5 + FC weights are stored bf16 for the MXU; conv1/bias stay f32."""
    f32, bf16 = jnp.float32, jnp.bfloat16
    packed = {}

    # conv1: (24, 1, 10) -> per-tap rows (10, 128) f32 (used on the VPU)
    w1 = jnp.transpose(params["conv1_w"].astype(f32)[:, 0, :], (1, 0))  # (K, Cout)
    packed["w1"] = jnp.pad(w1, ((0, 0), (0, LANES - w1.shape[1])))

    # conv2..conv5: (Cout, Cin, K) -> tap matrices (K, 128, 128) = [t, ci, co]
    for i in range(2, 6):
        w = params[f"conv{i}_w"].astype(f32)
        wt = jnp.transpose(w, (2, 1, 0))                                # (K, Cin, Cout)
        packed[f"w{i}"] = jnp.pad(
            wt, ((0, 0), (0, LANES - wt.shape[1]),
                 (0, LANES - wt.shape[2]))).astype(bf16)

    # fc1: torch flat index = c*2 + l  ->  taps (2, 128, 128) = [l, c, o]
    c5, l5 = CONV_CFG[-1][0], FC1_IN // CONV_CFG[-1][0]
    fw1 = params["fc1_w"].astype(f32).reshape(-1, c5, l5)               # (O, c, l)
    fw1 = jnp.transpose(fw1, (2, 1, 0))                                 # (l, c, O)
    packed["fw1"] = jnp.pad(
        fw1, ((0, 0), (0, LANES - fw1.shape[1]),
              (0, LANES - fw1.shape[2]))).astype(bf16)

    # fc2 / fc3 / fc_mu: (out, in) -> padded (in, out) 128x128
    for name, key in (("fc2", "fw2"), ("fc3", "fw3"), ("fc_mu", "fwm")):
        w = params[name + "_w"].astype(f32).T
        packed[key] = jnp.pad(
            w, ((0, LANES - w.shape[0]), (0, LANES - w.shape[1]))).astype(bf16)

    # all biases stacked into (9, 128) f32
    rows = []
    for name in ("conv1", "conv2", "conv3", "conv4", "conv5",
                 "fc1", "fc2", "fc3", "fc_mu"):
        b = params[name + "_b"].astype(f32)
        rows.append(jnp.pad(b, (0, LANES - b.shape[0])))
    packed["b"] = jnp.stack(rows, axis=0)
    return packed


# ----------------------------------------------------------------------------
# Pure-JAX reference (mirrors the PyTorch module) for correctness checking.
# ----------------------------------------------------------------------------
def _reference_forward(params, x):
    hi = jax.lax.Precision.HIGHEST

    def conv_relu(h, w, b, stride):
        B, c_in, L = h.shape
        c_out, _, k = w.shape
        lo = (L - k) // stride + 1
        idx = jnp.arange(lo)[:, None] * stride + jnp.arange(k)[None, :]
        p = h[:, :, idx]                                     # (B, Cin, Lo, K)
        p = jnp.transpose(p, (0, 2, 1, 3)).reshape(B * lo, c_in * k)
        y = jnp.dot(p, w.reshape(c_out, c_in * k).T, precision=hi) + b
        y = jnp.maximum(y, 0.0)
        return jnp.transpose(y.reshape(B, lo, c_out), (0, 2, 1))

    h = x
    for i, (_, _, _, s) in enumerate(CONV_CFG, start=1):
        h = conv_relu(h, params[f"conv{i}_w"], params[f"conv{i}_b"], s)
    h = h.reshape(h.shape[0], -1)                            # channel-major flatten
    h = jnp.maximum(jnp.dot(h, params["fc1_w"].T, precision=hi) + params["fc1_b"], 0.0)
    h = jnp.maximum(jnp.dot(h, params["fc2_w"].T, precision=hi) + params["fc2_b"], 0.0)
    h = jnp.maximum(jnp.dot(h, params["fc3_w"].T, precision=hi) + params["fc3_b"], 0.0)
    return jnp.tanh(jnp.dot(h, params["fc_mu_w"].T, precision=hi) + params["fc_mu_b"])


if __name__ == "__main__":
    key = jax.random.PRNGKey(0)
    k_in, k_params = jax.random.split(key)

    B, STATE_DIM = 16, 246  # smallest length consistent with fc1 in_features=128
    x = jax.random.normal(k_in, (B, 1, STATE_DIM), dtype=jnp.float32)

    params = init_params(k_params)
    packed = pack_params(params)

    fwd = jax.jit(tiny_policy_net_forward)
    out = jax.block_until_ready(fwd(packed, x))
    ref = jax.block_until_ready(_reference_forward(params, x))

    assert out.shape == (B, 2), out.shape
    assert bool(jnp.all(jnp.isfinite(out)))
    assert bool(jnp.all(jnp.abs(out) <= 1.0))  # tanh range
    # bf16 MXU operands vs HIGHEST-precision f32 reference -> relaxed tolerance.
    max_err = float(jnp.max(jnp.abs(out - ref)))
    assert max_err < 5e-2, f"mismatch vs pure-JAX reference: {max_err}"
    print("KERNEL_OK")
</pallas_src>

<mosaic_0001>
module attributes {stable_mosaic.version = 11 : i64} {
  func.func @_fused_kernel(%arg0: i32, %arg1: memref<246x8x1xf32, #tpu.memory_space<vmem>>, %arg2: memref<10x128xf32, #tpu.memory_space<vmem>>, %arg3: memref<8x128x128xbf16, #tpu.memory_space<vmem>>, %arg4: memref<4x128x128xbf16, #tpu.memory_space<vmem>>, %arg5: memref<3x128x128xbf16, #tpu.memory_space<vmem>>, %arg6: memref<3x128x128xbf16, #tpu.memory_space<vmem>>, %arg7: memref<2x128x128xbf16, #tpu.memory_space<vmem>>, %arg8: memref<128x128xbf16, #tpu.memory_space<vmem>>, %arg9: memref<128x128xbf16, #tpu.memory_space<vmem>>, %arg10: memref<128x128xbf16, #tpu.memory_space<vmem>>, %arg11: memref<9x128xf32, #tpu.memory_space<vmem>>, %arg12: memref<8x128xf32, #tpu.memory_space<vmem>>, %arg13: memref<60x8x128xf32, #tpu.memory_space<vmem>>, %arg14: memref<14x8x128xf32, #tpu.memory_space<vmem>>, %arg15: memref<6x8x128xf32, #tpu.memory_space<vmem>>, %arg16: memref<4x8x128xf32, #tpu.memory_space<vmem>>, %arg17: memref<2x8x128xf32, #tpu.memory_space<vmem>>) attributes {dimension_semantics = [#tpu.dimension_semantics<parallel>], iteration_bounds = array<i64: 2>, scalar_prefetch = 0 : i64, scratch_operands = 5 : i64, tpu.core_type = #tpu.core_type<tc>, window_params = [{transform_indices = @transform_0, window_bounds = array<i64: 246, 8, 1>}, {pipeline_mode = #tpu.pipeline_mode<synchronous>, transform_indices = @transform_1, window_bounds = array<i64: 10, 128>}, {pipeline_mode = #tpu.pipeline_mode<synchronous>, transform_indices = @transform_2, window_bounds = array<i64: 8, 128, 128>}, {pipeline_mode = #tpu.pipeline_mode<synchronous>, transform_indices = @transform_3, window_bounds = array<i64: 4, 128, 128>}, {pipeline_mode = #tpu.pipeline_mode<synchronous>, transform_indices = @transform_4, window_bounds = array<i64: 3, 128, 128>}, {pipeline_mode = #tpu.pipeline_mode<synchronous>, transform_indices = @transform_5, window_bounds = array<i64: 3, 128, 128>}, {pipeline_mode = #tpu.pipeline_mode<synchronous>, transform_indices = @transform_6, window_bounds = array<i64: 2, 128, 128>}, {pipeline_mode = #tpu.pipeline_mode<synchronous>, transform_indices = @transform_7, window_bounds = array<i64: 128, 128>}, {pipeline_mode = #tpu.pipeline_mode<synchronous>, transform_indices = @transform_8, window_bounds = array<i64: 128, 128>}, {pipeline_mode = #tpu.pipeline_mode<synchronous>, transform_indices = @transform_9, window_bounds = array<i64: 128, 128>}, {pipeline_mode = #tpu.pipeline_mode<synchronous>, transform_indices = @transform_10, window_bounds = array<i64: 9, 128>}, {transform_indices = @transform_11, window_bounds = array<i64: 8, 128>}]} {
    %cst = arith.constant 0.000000e+00 : f32
    %0 = vector.broadcast %cst : f32 to vector<12x8x128xf32>
    %c0 = arith.constant 0 : index
    %c0_0 = arith.constant 0 : index
    %c0_1 = arith.constant 0 : index
    %1 = tpu.strided_load %arg1[%c0, %c0_0, %c0_1] {strides = array<i32: 4, 1, 1>} : memref<246x8x1xf32, #tpu.memory_space<vmem>>, vector<12x8x1xf32>
    %c0_2 = arith.constant 0 : index
    %c0_3 = arith.constant 0 : index
    %2 = vector.load %arg2[%c0_2, %c0_3] : memref<10x128xf32, #tpu.memory_space<vmem>>, vector<1x128xf32>
    %3 = vector.shape_cast %2 : vector<1x128xf32> to vector<1x1x128xf32>
    %4 = vector.broadcast %1 : vector<12x8x1xf32> to vector<12x8x128xf32>
    %5 = vector.broadcast %3 : vector<1x1x128xf32> to vector<12x8x128xf32>
    %6 = arith.mulf %4, %5 : vector<12x8x128xf32>
    %7 = arith.addf %0, %6 : vector<12x8x128xf32>
    %c1 = arith.constant 1 : index
    %c0_4 = arith.constant 0 : index
    %c0_5 = arith.constant 0 : index
    %8 = tpu.strided_load %arg1[%c1, %c0_4, %c0_5] {strides = array<i32: 4, 1, 1>} : memref<246x8x1xf32, #tpu.memory_space<vmem>>, vector<12x8x1xf32>
    %c1_6 = arith.constant 1 : index
    %c0_7 = arith.constant 0 : index
    %9 = vector.load %arg2[%c1_6, %c0_7] : memref<10x128xf32, #tpu.memory_space<vmem>>, vector<1x128xf32>
    %10 = vector.shape_cast %9 : vector<1x128xf32> to vector<1x1x128xf32>
    %11 = vector.broadcast %8 : vector<12x8x1xf32> to vector<12x8x128xf32>
    %12 = vector.broadcast %10 : vector<1x1x128xf32> to vector<12x8x128xf32>
    %13 = arith.mulf %11, %12 : vector<12x8x128xf32>
    %14 = arith.addf %7, %13 : vector<12x8x128xf32>
    %c2 = arith.constant 2 : index
    %c0_8 = arith.constant 0 : index
    %c0_9 = arith.constant 0 : index
    %15 = tpu.strided_load %arg1[%c2, %c0_8, %c0_9] {strides = array<i32: 4, 1, 1>} : memref<246x8x1xf32, #tpu.memory_space<vmem>>, vector<12x8x1xf32>
    %c2_10 = arith.constant 2 : index
    %c0_11 = arith.constant 0 : index
    %16 = vector.load %arg2[%c2_10, %c0_11] : memref<10x128xf32, #tpu.memory_space<vmem>>, vector<1x128xf32>
    %17 = vector.shape_cast %16 : vector<1x128xf32> to vector<1x1x128xf32>
    %18 = vector.broadcast %15 : vector<12x8x1xf32> to vector<12x8x128xf32>
    %19 = vector.broadcast %17 : vector<1x1x128xf32> to vector<12x8x128xf32>
    %20 = arith.mulf %18, %19 : vector<12x8x128xf32>
    %21 = arith.addf %14, %20 : vector<12x8x128xf32>
    %c3 = arith.constant 3 : index
    %c0_12 = arith.constant 0 : index
    %c0_13 = arith.constant 0 : index
    %22 = tpu.strided_load %arg1[%c3, %c0_12, %c0_13] {strides = array<i32: 4, 1, 1>} : memref<246x8x1xf32, #tpu.memory_space<vmem>>, vector<12x8x1xf32>
    %c3_14 = arith.constant 3 : index
    %c0_15 = arith.constant 0 : index
    %23 = vector.load %arg2[%c3_14, %c0_15] : memref<10x128xf32, #tpu.memory_space<vmem>>, vector<1x128xf32>
    %24 = vector.shape_cast %23 : vector<1x128xf32> to vector<1x1x128xf32>
    %25 = vector.broadcast %22 : vector<12x8x1xf32> to vector<12x8x128xf32>
    %26 = vector.broadcast %24 : vector<1x1x128xf32> to vector<12x8x128xf32>
    %27 = arith.mulf %25, %26 : vector<12x8x128xf32>
    %28 = arith.addf %21, %27 : vector<12x8x128xf32>
    %c4 = arith.constant 4 : index
    %c0_16 = arith.constant 0 : index
    %c0_17 = arith.constant 0 : index
    %29 = tpu.strided_load %arg1[%c4, %c0_16, %c0_17] {strides = array<i32: 4, 1, 1>} : memref<246x8x1xf32, #tpu.memory_space<vmem>>, vector<12x8x1xf32>
    %c4_18 = arith.constant 4 : index
    %c0_19 = arith.constant 0 : index
    %30 = vector.load %arg2[%c4_18, %c0_19] : memref<10x128xf32, #tpu.memory_space<vmem>>, vector<1x128xf32>
    %31 = vector.shape_cast %30 : vector<1x128xf32> to vector<1x1x128xf32>
    %32 = vector.broadcast %29 : vector<12x8x1xf32> to vector<12x8x128xf32>
    %33 = vector.broadcast %31 : vector<1x1x128xf32> to vector<12x8x128xf32>
    %34 = arith.mulf %32, %33 : vector<12x8x128xf32>
    %35 = arith.addf %28, %34 : vector<12x8x128xf32>
    %c5 = arith.constant 5 : index
    %c0_20 = arith.constant 0 : index
    %c0_21 = arith.constant 0 : index
    %36 = tpu.strided_load %arg1[%c5, %c0_20, %c0_21] {strides = array<i32: 4, 1, 1>} : memref<246x8x1xf32, #tpu.memory_space<vmem>>, vector<12x8x1xf32>
    %c5_22 = arith.constant 5 : index
    %c0_23 = arith.constant 0 : index
    %37 = vector.load %arg2[%c5_22, %c0_23] : memref<10x128xf32, #tpu.memory_space<vmem>>, vector<1x128xf32>
    %38 = vector.shape_cast %37 : vector<1x128xf32> to vector<1x1x128xf32>
    %39 = vector.broadcast %36 : vector<12x8x1xf32> to vector<12x8x128xf32>
    %40 = vector.broadcast %38 : vector<1x1x128xf32> to vector<12x8x128xf32>
    %41 = arith.mulf %39, %40 : vector<12x8x128xf32>
    %42 = arith.addf %35, %41 : vector<12x8x128xf32>
    %c6 = arith.constant 6 : index
    %c0_24 = arith.constant 0 : index
    %c0_25 = arith.constant 0 : index
    %43 = tpu.strided_load %arg1[%c6, %c0_24, %c0_25] {strides = array<i32: 4, 1, 1>} : memref<246x8x1xf32, #tpu.memory_space<vmem>>, vector<12x8x1xf32>
    %c6_26 = arith.constant 6 : index
    %c0_27 = arith.constant 0 : index
    %44 = vector.load %arg2[%c6_26, %c0_27] : memref<10x128xf32, #tpu.memory_space<vmem>>, vector<1x128xf32>
    %45 = vector.shape_cast %44 : vector<1x128xf32> to vector<1x1x128xf32>
    %46 = vector.broadcast %43 : vector<12x8x1xf32> to vector<12x8x128xf32>
    %47 = vector.broadcast %45 : vector<1x1x128xf32> to vector<12x8x128xf32>
    %48 = arith.mulf %46, %47 : vector<12x8x128xf32>
    %49 = arith.addf %42, %48 : vector<12x8x128xf32>
    %c7 = arith.constant 7 : index
    %c0_28 = arith.constant 0 : index
    %c0_29 = arith.constant 0 : index
    %50 = tpu.strided_load %arg1[%c7, %c0_28, %c0_29] {strides = array<i32: 4, 1, 1>} : memref<246x8x1xf32, #tpu.memory_space<vmem>>, vector<12x8x1xf32>
    %c7_30 = arith.constant 7 : index
    %c0_31 = arith.constant 0 : index
    %51 = vector.load %arg2[%c7_30, %c0_31] : memref<10x128xf32, #tpu.memory_space<vmem>>, vector<1x128xf32>
    %52 = vector.shape_cast %51 : vector<1x128xf32> to vector<1x1x128xf32>
    %53 = vector.broadcast %50 : vector<12x8x1xf32> to vector<12x8x128xf32>
    %54 = vector.broadcast %52 : vector<1x1x128xf32> to vector<12x8x128xf32>
    %55 = arith.mulf %53, %54 : vector<12x8x128xf32>
    %56 = arith.addf %49, %55 : vector<12x8x128xf32>
    %c8 = arith.constant 8 : index
    %c0_32 = arith.constant 0 : index
    %c0_33 = arith.constant 0 : index
    %57 = tpu.strided_load %arg1[%c8, %c0_32, %c0_33] {strides = array<i32: 4, 1, 1>} : memref<246x8x1xf32, #tpu.memory_space<vmem>>, vector<12x8x1xf32>
    %c8_34 = arith.constant 8 : index
    %c0_35 = arith.constant 0 : index
    %58 = vector.load %arg2[%c8_34, %c0_35] : memref<10x128xf32, #tpu.memory_space<vmem>>, vector<1x128xf32>
    %59 = vector.shape_cast %58 : vector<1x128xf32> to vector<1x1x128xf32>
    %60 = vector.broadcast %57 : vector<12x8x1xf32> to vector<12x8x128xf32>
    %61 = vector.broadcast %59 : vector<1x1x128xf32> to vector<12x8x128xf32>
    %62 = arith.mulf %60, %61 : vector<12x8x128xf32>
    %63 = arith.addf %56, %62 : vector<12x8x128xf32>
    %c9 = arith.constant 9 : index
    %c0_36 = arith.constant 0 : index
    %c0_37 = arith.constant 0 : index
    %64 = tpu.strided_load %arg1[%c9, %c0_36, %c0_37] {strides = array<i32: 4, 1, 1>} : memref<246x8x1xf32, #tpu.memory_space<vmem>>, vector<12x8x1xf32>
    %c9_38 = arith.constant 9 : index
    %c0_39 = arith.constant 0 : index
    %65 = vector.load %arg2[%c9_38, %c0_39] : memref<10x128xf32, #tpu.memory_space<vmem>>, vector<1x128xf32>
    %66 = vector.shape_cast %65 : vector<1x128xf32> to vector<1x1x128xf32>
    %67 = vector.broadcast %64 : vector<12x8x1xf32> to vector<12x8x128xf32>
    %68 = vector.broadcast %66 : vector<1x1x128xf32> to vector<12x8x128xf32>
    %69 = arith.mulf %67, %68 : vector<12x8x128xf32>
    %70 = arith.addf %63, %69 : vector<12x8x128xf32>
    %c0_40 = arith.constant 0 : index
    %c0_41 = arith.constant 0 : index
    %71 = vector.load %arg11[%c0_40, %c0_41] : memref<9x128xf32, #tpu.memory_space<vmem>>, vector<1x128xf32>
    %72 = vector.shape_cast %71 : vector<1x128xf32> to vector<1x1x128xf32>
    %73 = vector.broadcast %72 : vector<1x1x128xf32> to vector<12x8x128xf32>
    %74 = arith.addf %70, %73 : vector<12x8x128xf32>
    %cst_42 = arith.constant 0.000000e+00 : f32
    %75 = vector.broadcast %cst_42 : f32 to vector<12x8x128xf32>
    %76 = arith.maximumf %74, %75 : vector<12x8x128xf32>
    %c0_43 = arith.constant 0 : index
    %c0_44 = arith.constant 0 : index
    %c0_45 = arith.constant 0 : index
    %77 = vector.load %arg13[%c0_43, %c0_44, %c0_45] : memref<60x8x128xf32, #tpu.memory_space<vmem>>, vector<12x8x128xf32>
    tpu.vector_store %arg13[%c0_43, %c0_44, %c0_45], %76 {strides = array<i32>} : memref<60x8x128xf32, #tpu.memory_space<vmem>>, vector<12x8x128xf32>,
    %cst_46 = arith.constant 0.000000e+00 : f32
    %78 = vector.broadcast %cst_46 : f32 to vector<12x8x128xf32>
    %c48 = arith.constant 48 : index
    %c0_47 = arith.constant 0 : index
    %c0_48 = arith.constant 0 : index
    %79 = tpu.strided_load %arg1[%c48, %c0_47, %c0_48] {strides = array<i32: 4, 1, 1>} : memref<246x8x1xf32, #tpu.memory_space<vmem>>, vector<12x8x1xf32>
    %c0_49 = arith.constant 0 : index
    %c0_50 = arith.constant 0 : index
    %80 = vector.load %arg2[%c0_49, %c0_50] : memref<10x128xf32, #tpu.memory_space<vmem>>, vector<1x128xf32>
    %81 = vector.shape_cast %80 : vector<1x128xf32> to vector<1x1x128xf32>
    %82 = vector.broadcast %79 : vector<12x8x1xf32> to vector<12x8x128xf32>
    %83 = vector.broadcast %81 : vector<1x1x128xf32> to vector<12x8x128xf32>
    %84 = arith.mulf %82, %83 : vector<12x8x128xf32>
    %85 = arith.addf %78, %84 : vector<12x8x128xf32>
    %c49 = arith.constant 49 : index
    %c0_51 = arith.constant 0 : index
    %c0_52 = arith.constant 0 : index
    %86 = tpu.strided_load %arg1[%c49, %c0_51, %c0_52] {strides = array<i32: 4, 1, 1>} : memref<246x8x1xf32, #tpu.memory_space<vmem>>, vector<12x8x1xf32>
    %c1_53 = arith.constant 1 : index
    %c0_54 = arith.constant 0 : index
    %87 = vector.load %arg2[%c1_53, %c0_54] : memref<10x128xf32, #tpu.memory_space<vmem>>, vector<1x128xf32>
    %88 = vector.shape_cast %87 : vector<1x128xf32> to vector<1x1x128xf32>
    %89 = vector.broadcast %86 : vector<12x8x1xf32> to vector<12x8x128xf32>
    %90 = vector.broadcast %88 : vector<1x1x128xf32> to vector<12x8x128xf32>
    %91 = arith.mulf %89, %90 : vector<12x8x128xf32>
    %92 = arith.addf %85, %91 : vector<12x8x128xf32>
    %c50 = arith.constant 50 : index
    %c0_55 = arith.constant 0 : index
    %c0_56 = arith.constant 0 : index
    %93 = tpu.strided_load %arg1[%c50, %c0_55, %c0_56] {strides = array<i32: 4, 1, 1>} : memref<246x8x1xf32, #tpu.memory_space<vmem>>, vector<12x8x1xf32>
    %c2_57 = arith.constant 2 : index
    %c0_58 = arith.constant 0 : index
    %94 = vector.load %arg2[%c2_57, %c0_58] : memref<10x128xf32, #tpu.memory_space<vmem>>, vector<1x128xf32>
    %95 = vector.shape_cast %94 : vector<1x128xf32> to vector<1x1x128xf32>
    %96 = vector.broadcast %93 : vector<12x8x1xf32> to vector<12x8x128xf32>
    %97 = vector.broadcast %95 : vector<1x1x128xf32> to vector<12x8x128xf32>
    %98 = arith.mulf %96, %97 : vector<12x8x128xf32>
    %99 = arith.addf %92, %98 : vector<12x8x128xf32>
    %c51 = arith.constant 51 : index
    %c0_59 = arith.constant 0 : index
    %c0_60 = arith.constant 0 : index
    %100 = tpu.strided_load %arg1[%c51, %c0_59, %c0_60] {strides = array<i32: 4, 1, 1>} : memref<246x8x1xf32, #tpu.memory_space<vmem>>, vector<12x8x1xf32>
    %c3_61 = arith.constant 3 : index
    %c0_62 = arith.constant 0 : index
    %101 = vector.load %arg2[%c3_61, %c0_62] : memref<10x128xf32, #tpu.memory_space<vmem>>, vector<1x128xf32>
    %102 = vector.shape_cast %101 : vector<1x128xf32> to vector<1x1x128xf32>
    %103 = vector.broadcast %100 : vector<12x8x1xf32> to vector<12x8x128xf32>
    %104 = vector.broadcast %102 : vector<1x1x128xf32> to vector<12x8x128xf32>
    %105 = arith.mulf %103, %104 : vector<12x8x128xf32>
    %106 = arith.addf %99, %105 : vector<12x8x128xf32>
    %c52 = arith.constant 52 : index
    %c0_63 = arith.constant 0 : index
    %c0_64 = arith.constant 0 : index
    %107 = tpu.strided_load %arg1[%c52, %c0_63, %c0_64] {strides = array<i32: 4, 1, 1>} : memref<246x8x1xf32, #tpu.memory_space<vmem>>, vector<12x8x1xf32>
    %c4_65 = arith.constant 4 : index
    %c0_66 = arith.constant 0 : index
    %108 = vector.load %arg2[%c4_65, %c0_66] : memref<10x128xf32, #tpu.memory_space<vmem>>, vector<1x128xf32>
    %109 = vector.shape_cast %108 : vector<1x128xf32> to vector<1x1x128xf32>
    %110 = vector.broadcast %107 : vector<12x8x1xf32> to vector<12x8x128xf32>
    %111 = vector.broadcast %109 : vector<1x1x128xf32> to vector<12x8x128xf32>
    %112 = arith.mulf %110, %111 : vector<12x8x128xf32>
    %113 = arith.addf %106, %112 : vector<12x8x128xf32>
    %c53 = arith.constant 53 : index
    %c0_67 = arith.constant 0 : index
    %c0_68 = arith.constant 0 : index
    %114 = tpu.strided_load %arg1[%c53, %c0_67, %c0_68] {strides = array<i32: 4, 1, 1>} : memref<246x8x1xf32, #tpu.memory_space<vmem>>, vector<12x8x1xf32>
    %c5_69 = arith.constant 5 : index
    %c0_70 = arith.constant 0 : index
    %115 = vector.load %arg2[%c5_69, %c0_70] : memref<10x128xf32, #tpu.memory_space<vmem>>, vector<1x128xf32>
    %116 = vector.shape_cast %115 : vector<1x128xf32> to vector<1x1x128xf32>
    %117 = vector.broadcast %114 : vector<12x8x1xf32> to vector<12x8x128xf32>
    %118 = vector.broadcast %116 : vector<1x1x128xf32> to vector<12x8x128xf32>
    %119 = arith.mulf %117, %118 : vector<12x8x128xf32>
    %120 = arith.addf %113, %119 : vector<12x8x128xf32>
    %c54 = arith.constant 54 : index
    %c0_71 = arith.constant 0 : index
    %c0_72 = arith.constant 0 : index
    %121 = tpu.strided_load %arg1[%c54, %c0_71, %c0_72] {strides = array<i32: 4, 1, 1>} : memref<246x8x1xf32, #tpu.memory_space<vmem>>, vector<12x8x1xf32>
    %c6_73 = arith.constant 6 : index
    %c0_74 = arith.constant 0 : index
    %122 = vector.load %arg2[%c6_73, %c0_74] : memref<10x128xf32, #tpu.memory_space<vmem>>, vector<1x128xf32>
    %123 = vector.shape_cast %122 : vector<1x128xf32> to vector<1x1x128xf32>
    %124 = vector.broadcast %121 : vector<12x8x1xf32> to vector<12x8x128xf32>
    %125 = vector.broadcast %123 : vector<1x1x128xf32> to vector<12x8x128xf32>
    %126 = arith.mulf %124, %125 : vector<12x8x128xf32>
    %127 = arith.addf %120, %126 : vector<12x8x128xf32>
    %c55 = arith.constant 55 : index
    %c0_75 = arith.constant 0 : index
    %c0_76 = arith.constant 0 : index
    %128 = tpu.strided_load %arg1[%c55, %c0_75, %c0_76] {strides = array<i32: 4, 1, 1>} : memref<246x8x1xf32, #tpu.memory_space<vmem>>, vector<12x8x1xf32>
    %c7_77 = arith.constant 7 : index
    %c0_78 = arith.constant 0 : index
    %129 = vector.load %arg2[%c7_77, %c0_78] : memref<10x128xf32, #tpu.memory_space<vmem>>, vector<1x128xf32>
    %130 = vector.shape_cast %129 : vector<1x128xf32> to vector<1x1x128xf32>
    %131 = vector.broadcast %128 : vector<12x8x1xf32> to vector<12x8x128xf32>
    %132 = vector.broadcast %130 : vector<1x1x128xf32> to vector<12x8x128xf32>
    %133 = arith.mulf %131, %132 : vector<12x8x128xf32>
    %134 = arith.addf %127, %133 : vector<12x8x128xf32>
    %c56 = arith.constant 56 : index
    %c0_79 = arith.constant 0 : index
    %c0_80 = arith.constant 0 : index
    %135 = tpu.strided_load %arg1[%c56, %c0_79, %c0_80] {strides = array<i32: 4, 1, 1>} : memref<246x8x1xf32, #tpu.memory_space<vmem>>, vector<12x8x1xf32>
    %c8_81 = arith.constant 8 : index
    %c0_82 = arith.constant 0 : index
    %136 = vector.load %arg2[%c8_81, %c0_82] : memref<10x128xf32, #tpu.memory_space<vmem>>, vector<1x128xf32>
    %137 = vector.shape_cast %136 : vector<1x128xf32> to vector<1x1x128xf32>
    %138 = vector.broadcast %135 : vector<12x8x1xf32> to vector<12x8x128xf32>
    %139 = vector.broadcast %137 : vector<1x1x128xf32> to vector<12x8x128xf32>
    %140 = arith.mulf %138, %139 : vector<12x8x128xf32>
    %141 = arith.addf %134, %140 : vector<12x8x128xf32>
    %c57 = arith.constant 57 : index
    %c0_83 = arith.constant 0 : index
    %c0_84 = arith.constant 0 : index
    %142 = tpu.strided_load %arg1[%c57, %c0_83, %c0_84] {strides = array<i32: 4, 1, 1>} : memref<246x8x1xf32, #tpu.memory_space<vmem>>, vector<12x8x1xf32>
    %c9_85 = arith.constant 9 : index
    %c0_86 = arith.constant 0 : index
    %143 = vector.load %arg2[%c9_85, %c0_86] : memref<10x128xf32, #tpu.memory_space<vmem>>, vector<1x128xf32>
    %144 = vector.shape_cast %143 : vector<1x128xf32> to vector<1x1x128xf32>
    %145 = vector.broadcast %142 : vector<12x8x1xf32> to vector<12x8x128xf32>
    %146 = vector.broadcast %144 : vector<1x1x128xf32> to vector<12x8x128xf32>
    %147 = arith.mulf %145, %146 : vector<12x8x128xf32>
    %148 = arith.addf %141, %147 : vector<12x8x128xf32>
    %c0_87 = arith.constant 0 : index
    %c0_88 = arith.constant 0 : index
    %149 = vector.load %arg11[%c0_87, %c0_88] : memref<9x128xf32, #tpu.memory_space<vmem>>, vector<1x128xf32>
    %150 = vector.shape_cast %149 : vector<1x128xf32> to vector<1x1x128xf32>
    %151 = vector.broadcast %150 : vector<1x1x128xf32> to vector<12x8x128xf32>
    %152 = arith.addf %148, %151 : vector<12x8x128xf32>
    %cst_89 = arith.constant 0.000000e+00 : f32
    %153 = vector.broadcast %cst_89 : f32 to vector<12x8x128xf32>
    %154 = arith.maximumf %152, %153 : vector<12x8x128xf32>
    %c12 = arith.constant 12 : index
    %c0_90 = arith.constant 0 : index
    %c0_91 = arith.constant 0 : index
    %155 = vector.load %arg13[%c12, %c0_90, %c0_91] : memref<60x8x128xf32, #tpu.memory_space<vmem>>, vector<12x8x128xf32>
    tpu.vector_store %arg13[%c12, %c0_90, %c0_91], %154 {strides = array<i32>} : memref<60x8x128xf32, #tpu.memory_space<vmem>>, vector<12x8x128xf32>,
    %cst_92 = arith.constant 0.000000e+00 : f32
    %156 = vector.broadcast %cst_92 : f32 to vector<12x8x128xf32>
    %c96 = arith.constant 96 : index
    %c0_93 = arith.constant 0 : index
    %c0_94 = arith.constant 0 : index
    %157 = tpu.strided_load %arg1[%c96, %c0_93, %c0_94] {strides = array<i32: 4, 1, 1>} : memref<246x8x1xf32, #tpu.memory_space<vmem>>, vector<12x8x1xf32>
    %c0_95 = arith.constant 0 : index
    %c0_96 = arith.constant 0 : index
    %158 = vector.load %arg2[%c0_95, %c0_96] : memref<10x128xf32, #tpu.memory_space<vmem>>, vector<1x128xf32>
    %159 = vector.shape_cast %158 : vector<1x128xf32> to vector<1x1x128xf32>
    %160 = vector.broadcast %157 : vector<12x8x1xf32> to vector<12x8x128xf32>
    %161 = vector.broadcast %159 : vector<1x1x128xf32> to vector<12x8x128xf32>
    %162 = arith.mulf %160, %161 : vector<12x8x128xf32>
    %163 = arith.addf %156, %162 : vector<12x8x128xf32>
    %c97 = arith.constant 97 : index
    %c0_97 = arith.constant 0 : index
    %c0_98 = arith.constant 0 : index
    %164 = tpu.strided_load %arg1[%c97, %c0_97, %c0_98] {strides = array<i32: 4, 1, 1>} : memref<246x8x1xf32, #tpu.memory_space<vmem>>, vector<12x8x1xf32>
    %c1_99 = arith.constant 1 : index
    %c0_100 = arith.constant 0 : index
    %165 = vector.load %arg2[%c1_99, %c0_100] : memref<10x128xf32, #tpu.memory_space<vmem>>, vector<1x128xf32>
    %166 = vector.shape_cast %165 : vector<1x128xf32> to vector<1x1x128xf32>
    %167 = vector.broadcast %164 : vector<12x8x1xf32> to vector<12x8x128xf32>
    %168 = vector.broadcast %166 : vector<1x1x128xf32> to vector<12x8x128xf32>
    %169 = arith.mulf %167, %168 : vector<12x8x128xf32>
    %170 = arith.addf %163, %169 : vector<12x8x128xf32>
    %c98 = arith.constant 98 : index
    %c0_101 = arith.constant 0 : index
    %c0_102 = arith.constant 0 : index
    %171 = tpu.strided_load %arg1[%c98, %c0_101, %c0_102] {strides = array<i32: 4, 1, 1>} : memref<246x8x1xf32, #tpu.memory_space<vmem>>, vector<12x8x1xf32>
    %c2_103 = arith.constant 2 : index
    %c0_104 = arith.constant 0 : index
    %172 = vector.load %arg2[%c2_103, %c0_104] : memref<10x128xf32, #tpu.memory_space<vmem>>, vector<1x128xf32>
    %173 = vector.shape_cast %172 : vector<1x128xf32> to vector<1x1x128xf32>
    %174 = vector.broadcast %171 : vector<12x8x1xf32> to vector<12x8x128xf32>
    %175 = vector.broadcast %173 : vector<1x1x128xf32> to vector<12x8x128xf32>
    %176 = arith.mulf %174, %175 : vector<12x8x128xf32>
    %177 = arith.addf %170, %176 : vector<12x8x128xf32>
    %c99 = arith.constant 99 : index
    %c0_105 = arith.constant 0 : index
    %c0_106 = arith.constant 0 : index
    %178 = tpu.strided_load %arg1[%c99, %c0_105, %c0_106] {strides = array<i32: 4, 1, 1>} : memref<246x8x1xf32, #tpu.memory_space<vmem>>, vector<12x8x1xf32>
    %c3_107 = arith.constant 3 : index
    %c0_108 = arith.constant 0 : index
    %179 = vector.load %arg2[%c3_107, %c0_108] : memref<10x128xf32, #tpu.memory_space<vmem>>, vector<1x128xf32>
    %180 = vector.shape_cast %179 : vector<1x128xf32> to vector<1x1x128xf32>
    %181 = vector.broadcast %178 : vector<12x8x1xf32> to vector<12x8x128xf32>
    %182 = vector.broadcast %180 : vector<1x1x128xf32> to vector<12x8x128xf32>
    %183 = arith.mulf %181, %182 : vector<12x8x128xf32>
    %184 = arith.addf %177, %183 : vector<12x8x128xf32>
    %c100 = arith.constant 100 : index
    %c0_109 = arith.constant 0 : index
    %c0_110 = arith.constant 0 : index
    %185 = tpu.strided_load %arg1[%c100, %c0_109, %c0_110] {strides = array<i32: 4, 1, 1>} : memref<246x8x1xf32, #tpu.memory_space<vmem>>, vector<12x8x1xf32>
    %c4_111 = arith.constant 4 : index
    %c0_112 = arith.constant 0 : index
    %186 = vector.load %arg2[%c4_111, %c0_112] : memref<10x128xf32, #tpu.memory_space<vmem>>, vector<1x128xf32>
    %187 = vector.shape_cast %186 : vector<1x128xf32> to vector<1x1x128xf32>
    %188 = vector.broadcast %185 : vector<12x8x1xf32> to vector<12x8x128xf32>
    %189 = vector.broadcast %187 : vector<1x1x128xf32> to vector<12x8x128xf32>
    %190 = arith.mulf %188, %189 : vector<12x8x128xf32>
    %191 = arith.addf %184, %190 : vector<12x8x128xf32>
    %c101 = arith.constant 101 : index
    %c0_113 = arith.constant 0 : index
    %c0_114 = arith.constant 0 : index
    %192 = tpu.strided_load %arg1[%c101, %c0_113, %c0_114] {strides = array<i32: 4, 1, 1>} : memref<246x8x1xf32, #tpu.memory_space<vmem>>, vector<12x8x1xf32>
    %c5_115 = arith.constant 5 : index
    %c0_116 = arith.constant 0 : index
    %193 = vector.load %arg2[%c5_115, %c0_116] : memref<10x128xf32, #tpu.memory_space<vmem>>, vector<1x128xf32>
    %194 = vector.shape_cast %193 : vector<1x128xf32> to vector<1x1x128xf32>
    %195 = vector.broadcast %192 : vector<12x8x1xf32> to vector<12x8x128xf32>
    %196 = vector.broadcast %194 : vector<1x1x128xf32> to vector<12x8x128xf32>
    %197 = arith.mulf %195, %196 : vector<12x8x128xf32>
    %198 = arith.addf %191, %197 : vector<12x8x128xf32>
    %c102 = arith.constant 102 : index
    %c0_117 = arith.constant 0 : index
    %c0_118 = arith.constant 0 : index
    %199 = tpu.strided_load %arg1[%c102, %c0_117, %c0_118] {strides = array<i32: 4, 1, 1>} : memref<246x8x1xf32, #tpu.memory_space<vmem>>, vector<12x8x1xf32>
    %c6_119 = arith.constant 6 : index
    %c0_120 = arith.constant 0 : index
    %200 = vector.load %arg2[%c6_119, %c0_120] : memref<10x128xf32, #tpu.memory_space<vmem>>, vector<1x128xf32>
    %201 = vector.shape_cast %200 : vector<1x128xf32> to vector<1x1x128xf32>
    %202 = vector.broadcast %199 : vector<12x8x1xf32> to vector<12x8x128xf32>
    %203 = vector.broadcast %201 : vector<1x1x128xf32> to vector<12x8x128xf32>
    %204 = arith.mulf %202, %203 : vector<12x8x128xf32>
    %205 = arith.addf %198, %204 : vector<12x8x128xf32>
    %c103 = arith.constant 103 : index
    %c0_121 = arith.constant 0 : index
    %c0_122 = arith.constant 0 : index
    %206 = tpu.strided_load %arg1[%c103, %c0_121, %c0_122] {strides = array<i32: 4, 1, 1>} : memref<246x8x1xf32, #tpu.memory_space<vmem>>, vector<12x8x1xf32>
    %c7_123 = arith.constant 7 : index
    %c0_124 = arith.constant 0 : index
    %207 = vector.load %arg2[%c7_123, %c0_124] : memref<10x128xf32, #tpu.memory_space<vmem>>, vector<1x128xf32>
    %208 = vector.shape_cast %207 : vector<1x128xf32> to vector<1x1x128xf32>
    %209 = vector.broadcast %206 : vector<12x8x1xf32> to vector<12x8x128xf32>
    %210 = vector.broadcast %208 : vector<1x1x128xf32> to vector<12x8x128xf32>
    %211 = arith.mulf %209, %210 : vector<12x8x128xf32>
    %212 = arith.addf %205, %211 : vector<12x8x128xf32>
    %c104 = arith.constant 104 : index
    %c0_125 = arith.constant 0 : index
    %c0_126 = arith.constant 0 : index
    %213 = tpu.strided_load %arg1[%c104, %c0_125, %c0_126] {strides = array<i32: 4, 1, 1>} : memref<246x8x1xf32, #tpu.memory_space<vmem>>, vector<12x8x1xf32>
    %c8_127 = arith.constant 8 : index
    %c0_128 = arith.constant 0 : index
    %214 = vector.load %arg2[%c8_127, %c0_128] : memref<10x128xf32, #tpu.memory_space<vmem>>, vector<1x128xf32>
    %215 = vector.shape_cast %214 : vector<1x128xf32> to vector<1x1x128xf32>
    %216 = vector.broadcast %213 : vector<12x8x1xf32> to vector<12x8x128xf32>
    %217 = vector.broadcast %215 : vector<1x1x128xf32> to vector<12x8x128xf32>
    %218 = arith.mulf %216, %217 : vector<12x8x128xf32>
    %219 = arith.addf %212, %218 : vector<12x8x128xf32>
    %c105 = arith.constant 105 : index
    %c0_129 = arith.constant 0 : index
    %c0_130 = arith.constant 0 : index
    %220 = tpu.strided_load %arg1[%c105, %c0_129, %c0_130] {strides = array<i32: 4, 1, 1>} : memref<246x8x1xf32, #tpu.memory_space<vmem>>, vector<12x8x1xf32>
    %c9_131 = arith.constant 9 : index
    %c0_132 = arith.constant 0 : index
    %221 = vector.load %arg2[%c9_131, %c0_132] : memref<10x128xf32, #tpu.memory_space<vmem>>, vector<1x128xf32>
    %222 = vector.shape_cast %221 : vector<1x128xf32> to vector<1x1x128xf32>
    %223 = vector.broadcast %220 : vector<12x8x1xf32> to vector<12x8x128xf32>
    %224 = vector.broadcast %222 : vector<1x1x128xf32> to vector<12x8x128xf32>
    %225 = arith.mulf %223, %224 : vector<12x8x128xf32>
    %226 = arith.addf %219, %225 : vector<12x8x128xf32>
    %c0_133 = arith.constant 0 : index
    %c0_134 = arith.constant 0 : index
    %227 = vector.load %arg11[%c0_133, %c0_134] : memref<9x128xf32, #tpu.memory_space<vmem>>, vector<1x128xf32>
    %228 = vector.shape_cast %227 : vector<1x128xf32> to vector<1x1x128xf32>
    %229 = vector.broadcast %228 : vector<1x1x128xf32> to vector<12x8x128xf32>
    %230 = arith.addf %226, %229 : vector<12x8x128xf32>
    %cst_135 = arith.constant 0.000000e+00 : f32
    %231 = vector.broadcast %cst_135 : f32 to vector<12x8x128xf32>
    %232 = arith.maximumf %230, %231 : vector<12x8x128xf32>
    %c24 = arith.constant 24 : index
    %c0_136 = arith.constant 0 : index
    %c0_137 = arith.constant 0 : index
    %233 = vector.load %arg13[%c24, %c0_136, %c0_137] : memref<60x8x128xf32, #tpu.memory_space<vmem>>, vector<12x8x128xf32>
    tpu.vector_store %arg13[%c24, %c0_136, %c0_137], %232 {strides = array<i32>} : memref<60x8x128xf32, #tpu.memory_space<vmem>>, vector<12x8x128xf32>,
    %cst_138 = arith.constant 0.000000e+00 : f32
    %234 = vector.broadcast %cst_138 : f32 to vector<12x8x128xf32>
    %c144 = arith.constant 144 : index
    %c0_139 = arith.constant 0 : index
    %c0_140 = arith.constant 0 : index
    %235 = tpu.strided_load %arg1[%c144, %c0_139, %c0_140] {strides = array<i32: 4, 1, 1>} : memref<246x8x1xf32, #tpu.memory_space<vmem>>, vector<12x8x1xf32>
    %c0_141 = arith.constant 0 : index
    %c0_142 = arith.constant 0 : index
    %236 = vector.load %arg2[%c0_141, %c0_142] : memref<10x128xf32, #tpu.memory_space<vmem>>, vector<1x128xf32>
    %237 = vector.shape_cast %236 : vector<1x128xf32> to vector<1x1x128xf32>
    %238 = vector.broadcast %235 : vector<12x8x1xf32> to vector<12x8x128xf32>
    %239 = vector.broadcast %237 : vector<1x1x128xf32> to vector<12x8x128xf32>
    %240 = arith.mulf %238, %239 : vector<12x8x128xf32>
    %241 = arith.addf %234, %240 : vector<12x8x128xf32>
    %c145 = arith.constant 145 : index
    %c0_143 = arith.constant 0 : index
    %c0_144 = arith.constant 0 : index
    %242 = tpu.strided_load %arg1[%c145, %c0_143, %c0_144] {strides = array<i32: 4, 1, 1>} : memref<246x8x1xf32, #tpu.memory_space<vmem>>, vector<12x8x1xf32>
    %c1_145 = arith.constant 1 : index
    %c0_146 = arith.constant 0 : index
    %243 = vector.load %arg2[%c1_145, %c0_146] : memref<10x128xf32, #tpu.memory_space<vmem>>, vector<1x128xf32>
    %244 = vector.shape_cast %243 : vector<1x128xf32> to vector<1x1x128xf32>
    %245 = vector.broadcast %242 : vector<12x8x1xf32> to vector<12x8x128xf32>
    %246 = vector.broadcast %244 : vector<1x1x128xf32> to vector<12x8x128xf32>
    %247 = arith.mulf %245, %246 : vector<12x8x128xf32>
    %248 = arith.addf %241, %247 : vector<12x8x128xf32>
    %c146 = arith.constant 146 : index
    %c0_147 = arith.constant 0 : index
    %c0_148 = arith.constant 0 : index
    %249 = tpu.strided_load %arg1[%c146, %c0_147, %c0_148] {strides = array<i32: 4, 1, 1>} : memref<246x8x1xf32, #tpu.memory_space<vmem>>, vector<12x8x1xf32>
    %c2_149 = arith.constant 2 : index
    %c0_150 = arith.constant 0 : index
    %250 = vector.load %arg2[%c2_149, %c0_150] : memref<10x128xf32, #tpu.memory_space<vmem>>, vector<1x128xf32>
    %251 = vector.shape_cast %250 : vector<1x128xf32> to vector<1x1x128xf32>
    %252 = vector.broadcast %249 : vector<12x8x1xf32> to vector<12x8x128xf32>
    %253 = vector.broadcast %251 : vector<1x1x128xf32> to vector<12x8x128xf32>
    %254 = arith.mulf %252, %253 : vector<12x8x128xf32>
    %255 = arith.addf %248, %254 : vector<12x8x128xf32>
    %c147 = arith.constant 147 : index
    %c0_151 = arith.constant 0 : index
    %c0_152 = arith.constant 0 : index
    %256 = tpu.strided_load %arg1[%c147, %c0_151, %c0_152] {strides = array<i32: 4, 1, 1>} : memref<246x8x1xf32, #tpu.memory_space<vmem>>, vector<12x8x1xf32>
    %c3_153 = arith.constant 3 : index
    %c0_154 = arith.constant 0 : index
    %257 = vector.load %arg2[%c3_153, %c0_154] : memref<10x128xf32, #tpu.memory_space<vmem>>, vector<1x128xf32>
    %258 = vector.shape_cast %257 : vector<1x128xf32> to vector<1x1x128xf32>
    %259 = vector.broadcast %256 : vector<12x8x1xf32> to vector<12x8x128xf32>
    %260 = vector.broadcast %258 : vector<1x1x128xf32> to vector<12x8x128xf32>
    %261 = arith.mulf %259, %260 : vector<12x8x128xf32>
    %262 = arith.addf %255, %261 : vector<12x8x128xf32>
    %c148 = arith.constant 148 : index
    %c0_155 = arith.constant 0 : index
    %c0_156 = arith.constant 0 : index
    %263 = tpu.strided_load %arg1[%c148, %c0_155, %c0_156] {strides = array<i32: 4, 1, 1>} : memref<246x8x1xf32, #tpu.memory_space<vmem>>, vector<12x8x1xf32>
    %c4_157 = arith.constant 4 : index
    %c0_158 = arith.constant 0 : index
    %264 = vector.load %arg2[%c4_157, %c0_158] : memref<10x128xf32, #tpu.memory_space<vmem>>, vector<1x128xf32>
    %265 = vector.shape_cast %264 : vector<1x128xf32> to vector<1x1x128xf32>
    %266 = vector.broadcast %263 : vector<12x8x1xf32> to vector<12x8x128xf32>
    %267 = vector.broadcast %265 : vector<1x1x128xf32> to vector<12x8x128xf32>
    %268 = arith.mulf %266, %267 : vector<12x8x128xf32>
    %269 = arith.addf %262, %268 : vector<12x8x128xf32>
    %c149 = arith.constant 149 : index
    %c0_159 = arith.constant 0 : index
    %c0_160 = arith.constant 0 : index
    %270 = tpu.strided_load %arg1[%c149, %c0_159, %c0_160] {strides = array<i32: 4, 1, 1>} : memref<246x8x1xf32, #tpu.memory_space<vmem>>, vector<12x8x1xf32>
    %c5_161 = arith.constant 5 : index
    %c0_162 = arith.constant 0 : index
    %271 = vector.load %arg2[%c5_161, %c0_162] : memref<10x128xf32, #tpu.memory_space<vmem>>, vector<1x128xf32>
    %272 = vector.shape_cast %271 : vector<1x128xf32> to vector<1x1x128xf32>
    %273 = vector.broadcast %270 : vector<12x8x1xf32> to vector<12x8x128xf32>
    %274 = vector.broadcast %272 : vector<1x1x128xf32> to vector<12x8x128xf32>
    %275 = arith.mulf %273, %274 : vector<12x8x128xf32>
    %276 = arith.addf %269, %275 : vector<12x8x128xf32>
    %c150 = arith.constant 150 : index
    %c0_163 = arith.constant 0 : index
    %c0_164 = arith.constant 0 : index
    %277 = tpu.strided_load %arg1[%c150, %c0_163, %c0_164] {strides = array<i32: 4, 1, 1>} : memref<246x8x1xf32, #tpu.memory_space<vmem>>, vector<12x8x1xf32>
    %c6_165 = arith.constant 6 : index
    %c0_166 = arith.constant 0 : index
    %278 = vector.load %arg2[%c6_165, %c0_166] : memref<10x128xf32, #tpu.memory_space<vmem>>, vector<1x128xf32>
    %279 = vector.shape_cast %278 : vector<1x128xf32> to vector<1x1x128xf32>
    %280 = vector.broadcast %277 : vector<12x8x1xf32> to vector<12x8x128xf32>
    %281 = vector.broadcast %279 : vector<1x1x128xf32> to vector<12x8x128xf32>
    %282 = arith.mulf %280, %281 : vector<12x8x128xf32>
    %283 = arith.addf %276, %282 : vector<12x8x128xf32>
    %c151 = arith.constant 151 : index
    %c0_167 = arith.constant 0 : index
    %c0_168 = arith.constant 0 : index
    %284 = tpu.strided_load %arg1[%c151, %c0_167, %c0_168] {strides = array<i32: 4, 1, 1>} : memref<246x8x1xf32, #tpu.memory_space<vmem>>, vector<12x8x1xf32>
    %c7_169 = arith.constant 7 : index
    %c0_170 = arith.constant 0 : index
    %285 = vector.load %arg2[%c7_169, %c0_170] : memref<10x128xf32, #tpu.memory_space<vmem>>, vector<1x128xf32>
    %286 = vector.shape_cast %285 : vector<1x128xf32> to vector<1x1x128xf32>
    %287 = vector.broadcast %284 : vector<12x8x1xf32> to vector<12x8x128xf32>
    %288 = vector.broadcast %286 : vector<1x1x128xf32> to vector<12x8x128xf32>
    %289 = arith.mulf %287, %288 : vector<12x8x128xf32>
    %290 = arith.addf %283, %289 : vector<12x8x128xf32>
    %c152 = arith.constant 152 : index
    %c0_171 = arith.constant 0 : index
    %c0_172 = arith.constant 0 : index
    %291 = tpu.strided_load %arg1[%c152, %c0_171, %c0_172] {strides = array<i32: 4, 1, 1>} : memref<246x8x1xf32, #tpu.memory_space<vmem>>, vector<12x8x1xf32>
    %c8_173 = arith.constant 8 : index
    %c0_174 = arith.constant 0 : index
    %292 = vector.load %arg2[%c8_173, %c0_174] : memref<10x128xf32, #tpu.memory_space<vmem>>, vector<1x128xf32>
    %293 = vector.shape_cast %292 : vector<1x128xf32> to vector<1x1x128xf32>
    %294 = vector.broadcast %291 : vector<12x8x1xf32> to vector<12x8x128xf32>
    %295 = vector.broadcast %293 : vector<1x1x128xf32> to vector<12x8x128xf32>
    %296 = arith.mulf %294, %295 : vector<12x8x128xf32>
    %297 = arith.addf %290, %296 : vector<12x8x128xf32>
    %c153 = arith.constant 153 : index
    %c0_175 = arith.constant 0 : index
    %c0_176 = arith.constant 0 : index
    %298 = tpu.strided_load %arg1[%c153, %c0_175, %c0_176] {strides = array<i32: 4, 1, 1>} : memref<246x8x1xf32, #tpu.memory_space<vmem>>, vector<12x8x1xf32>
    %c9_177 = arith.constant 9 : index
    %c0_178 = arith.constant 0 : index
    %299 = vector.load %arg2[%c9_177, %c0_178] : memref<10x128xf32, #tpu.memory_space<vmem>>, vector<1x128xf32>
    %300 = vector.shape_cast %299 : vector<1x128xf32> to vector<1x1x128xf32>
    %301 = vector.broadcast %298 : vector<12x8x1xf32> to vector<12x8x128xf32>
    %302 = vector.broadcast %300 : vector<1x1x128xf32> to vector<12x8x128xf32>
    %303 = arith.mulf %301, %302 : vector<12x8x128xf32>
    %304 = arith.addf %297, %303 : vector<12x8x128xf32>
    %c0_179 = arith.constant 0 : index
    %c0_180 = arith.constant 0 : index
    %305 = vector.load %arg11[%c0_179, %c0_180] : memref<9x128xf32, #tpu.memory_space<vmem>>, vector<1x128xf32>
    %306 = vector.shape_cast %305 : vector<1x128xf32> to vector<1x1x128xf32>
    %307 = vector.broadcast %306 : vector<1x1x128xf32> to vector<12x8x128xf32>
    %308 = arith.addf %304, %307 : vector<12x8x128xf32>
    %cst_181 = arith.constant 0.000000e+00 : f32
    %309 = vector.broadcast %cst_181 : f32 to vector<12x8x128xf32>
    %310 = arith.maximumf %308, %309 : vector<12x8x128xf32>
    %c36 = arith.constant 36 : index
    %c0_182 = arith.constant 0 : index
    %c0_183 = arith.constant 0 : index
    %311 = vector.load %arg13[%c36, %c0_182, %c0_183] : memref<60x8x128xf32, #tpu.memory_space<vmem>>, vector<12x8x128xf32>
    tpu.vector_store %arg13[%c36, %c0_182, %c0_183], %310 {strides = array<i32>} : memref<60x8x128xf32, #tpu.memory_space<vmem>>, vector<12x8x128xf32>,
    %cst_184 = arith.constant 0.000000e+00 : f32
    %312 = vector.broadcast %cst_184 : f32 to vector<12x8x128xf32>
    %c192 = arith.constant 192 : index
    %c0_185 = arith.constant 0 : index
    %c0_186 = arith.constant 0 : index
    %313 = tpu.strided_load %arg1[%c192, %c0_185, %c0_186] {strides = array<i32: 4, 1, 1>} : memref<246x8x1xf32, #tpu.memory_space<vmem>>, vector<12x8x1xf32>
    %c0_187 = arith.constant 0 : index
    %c0_188 = arith.constant 0 : index
    %314 = vector.load %arg2[%c0_187, %c0_188] : memref<10x128xf32, #tpu.memory_space<vmem>>, vector<1x128xf32>
    %315 = vector.shape_cast %314 : vector<1x128xf32> to vector<1x1x128xf32>
    %316 = vector.broadcast %313 : vector<12x8x1xf32> to vector<12x8x128xf32>
    %317 = vector.broadcast %315 : vector<1x1x128xf32> to vector<12x8x128xf32>
    %318 = arith.mulf %316, %317 : vector<12x8x128xf32>
    %319 = arith.addf %312, %318 : vector<12x8x128xf32>
    %c193 = arith.constant 193 : index
    %c0_189 = arith.constant 0 : index
    %c0_190 = arith.constant 0 : index
    %320 = tpu.strided_load %arg1[%c193, %c0_189, %c0_190] {strides = array<i32: 4, 1, 1>} : memref<246x8x1xf32, #tpu.memory_space<vmem>>, vector<12x8x1xf32>
    %c1_191 = arith.constant 1 : index
    %c0_192 = arith.constant 0 : index
    %321 = vector.load %arg2[%c1_191, %c0_192] : memref<10x128xf32, #tpu.memory_space<vmem>>, vector<1x128xf32>
    %322 = vector.shape_cast %321 : vector<1x128xf32> to vector<1x1x128xf32>
    %323 = vector.broadcast %320 : vector<12x8x1xf32> to vector<12x8x128xf32>
    %324 = vector.broadcast %322 : vector<1x1x128xf32> to vector<12x8x128xf32>
    %325 = arith.mulf %323, %324 : vector<12x8x128xf32>
    %326 = arith.addf %319, %325 : vector<12x8x128xf32>
    %c194 = arith.constant 194 : index
    %c0_193 = arith.constant 0 : index
    %c0_194 = arith.constant 0 : index
    %327 = tpu.strided_load %arg1[%c194, %c0_193, %c0_194] {strides = array<i32: 4, 1, 1>} : memref<246x8x1xf32, #tpu.memory_space<vmem>>, vector<12x8x1xf32>
    %c2_195 = arith.constant 2 : index
    %c0_196 = arith.constant 0 : index
    %328 = vector.load %arg2[%c2_195, %c0_196] : memref<10x128xf32, #tpu.memory_space<vmem>>, vector<1x128xf32>
    %329 = vector.shape_cast %328 : vector<1x128xf32> to vector<1x1x128xf32>
    %330 = vector.broadcast %327 : vector<12x8x1xf32> to vector<12x8x128xf32>
    %331 = vector.broadcast %329 : vector<1x1x128xf32> to vector<12x8x128xf32>
    %332 = arith.mulf %330, %331 : vector<12x8x128xf32>
    %333 = arith.addf %326, %332 : vector<12x8x128xf32>
    %c195 = arith.constant 195 : index
    %c0_197 = arith.constant 0 : index
    %c0_198 = arith.constant 0 : index
    %334 = tpu.strided_load %arg1[%c195, %c0_197, %c0_198] {strides = array<i32: 4, 1, 1>} : memref<246x8x1xf32, #tpu.memory_space<vmem>>, vector<12x8x1xf32>
    %c3_199 = arith.constant 3 : index
    %c0_200 = arith.constant 0 : index
    %335 = vector.load %arg2[%c3_199, %c0_200] : memref<10x128xf32, #tpu.memory_space<vmem>>, vector<1x128xf32>
    %336 = vector.shape_cast %335 : vector<1x128xf32> to vector<1x1x128xf32>
    %337 = vector.broadcast %334 : vector<12x8x1xf32> to vector<12x8x128xf32>
    %338 = vector.broadcast %336 : vector<1x1x128xf32> to vector<12x8x128xf32>
    %339 = arith.mulf %337, %338 : vector<12x8x128xf32>
    %340 = arith.addf %333, %339 : vector<12x8x128xf32>
    %c196 = arith.constant 196 : index
    %c0_201 = arith.constant 0 : index
    %c0_202 = arith.constant 0 : index
    %341 = tpu.strided_load %arg1[%c196, %c0_201, %c0_202] {strides = array<i32: 4, 1, 1>} : memref<246x8x1xf32, #tpu.memory_space<vmem>>, vector<12x8x1xf32>
    %c4_203 = arith.constant 4 : index
    %c0_204 = arith.constant 0 : index
    %342 = vector.load %arg2[%c4_203, %c0_204] : memref<10x128xf32, #tpu.memory_space<vmem>>, vector<1x128xf32>
    %343 = vector.shape_cast %342 : vector<1x128xf32> to vector<1x1x128xf32>
    %344 = vector.broadcast %341 : vector<12x8x1xf32> to vector<12x8x128xf32>
    %345 = vector.broadcast %343 : vector<1x1x128xf32> to vector<12x8x128xf32>
    %346 = arith.mulf %344, %345 : vector<12x8x128xf32>
    %347 = arith.addf %340, %346 : vector<12x8x128xf32>
    %c197 = arith.constant 197 : index
    %c0_205 = arith.constant 0 : index
    %c0_206 = arith.constant 0 : index
    %348 = tpu.strided_load %arg1[%c197, %c0_205, %c0_206] {strides = array<i32: 4, 1, 1>} : memref<246x8x1xf32, #tpu.memory_space<vmem>>, vector<12x8x1xf32>
    %c5_207 = arith.constant 5 : index
    %c0_208 = arith.constant 0 : index
    %349 = vector.load %arg2[%c5_207, %c0_208] : memref<10x128xf32, #tpu.memory_space<vmem>>, vector<1x128xf32>
    %350 = vector.shape_cast %349 : vector<1x128xf32> to vector<1x1x128xf32>
    %351 = vector.broadcast %348 : vector<12x8x1xf32> to vector<12x8x128xf32>
    %352 = vector.broadcast %350 : vector<1x1x128xf32> to vector<12x8x128xf32>
    %353 = arith.mulf %351, %352 : vector<12x8x128xf32>
    %354 = arith.addf %347, %353 : vector<12x8x128xf32>
    %c198 = arith.constant 198 : index
    %c0_209 = arith.constant 0 : index
    %c0_210 = arith.constant 0 : index
    %355 = tpu.strided_load %arg1[%c198, %c0_209, %c0_210] {strides = array<i32: 4, 1, 1>} : memref<246x8x1xf32, #tpu.memory_space<vmem>>, vector<12x8x1xf32>
    %c6_211 = arith.constant 6 : index
    %c0_212 = arith.constant 0 : index
    %356 = vector.load %arg2[%c6_211, %c0_212] : memref<10x128xf32, #tpu.memory_space<vmem>>, vector<1x128xf32>
    %357 = vector.shape_cast %356 : vector<1x128xf32> to vector<1x1x128xf32>
    %358 = vector.broadcast %355 : vector<12x8x1xf32> to vector<12x8x128xf32>
    %359 = vector.broadcast %357 : vector<1x1x128xf32> to vector<12x8x128xf32>
    %360 = arith.mulf %358, %359 : vector<12x8x128xf32>
    %361 = arith.addf %354, %360 : vector<12x8x128xf32>
    %c199 = arith.constant 199 : index
    %c0_213 = arith.constant 0 : index
    %c0_214 = arith.constant 0 : index
    %362 = tpu.strided_load %arg1[%c199, %c0_213, %c0_214] {strides = array<i32: 4, 1, 1>} : memref<246x8x1xf32, #tpu.memory_space<vmem>>, vector<12x8x1xf32>
    %c7_215 = arith.constant 7 : index
    %c0_216 = arith.constant 0 : index
    %363 = vector.load %arg2[%c7_215, %c0_216] : memref<10x128xf32, #tpu.memory_space<vmem>>, vector<1x128xf32>
    %364 = vector.shape_cast %363 : vector<1x128xf32> to vector<1x1x128xf32>
    %365 = vector.broadcast %362 : vector<12x8x1xf32> to vector<12x8x128xf32>
    %366 = vector.broadcast %364 : vector<1x1x128xf32> to vector<12x8x128xf32>
    %367 = arith.mulf %365, %366 : vector<12x8x128xf32>
    %368 = arith.addf %361, %367 : vector<12x8x128xf32>
    %c200 = arith.constant 200 : index
    %c0_217 = arith.constant 0 : index
    %c0_218 = arith.constant 0 : index
    %369 = tpu.strided_load %arg1[%c200, %c0_217, %c0_218] {strides = array<i32: 4, 1, 1>} : memref<246x8x1xf32, #tpu.memory_space<vmem>>, vector<12x8x1xf32>
    %c8_219 = arith.constant 8 : index
    %c0_220 = arith.constant 0 : index
    %370 = vector.load %arg2[%c8_219, %c0_220] : memref<10x128xf32, #tpu.memory_space<vmem>>, vector<1x128xf32>
    %371 = vector.shape_cast %370 : vector<1x128xf32> to vector<1x1x128xf32>
    %372 = vector.broadcast %369 : vector<12x8x1xf32> to vector<12x8x128xf32>
    %373 = vector.broadcast %371 : vector<1x1x128xf32> to vector<12x8x128xf32>
    %374 = arith.mulf %372, %373 : vector<12x8x128xf32>
    %375 = arith.addf %368, %374 : vector<12x8x128xf32>
    %c201 = arith.constant 201 : index
    %c0_221 = arith.constant 0 : index
    %c0_222 = arith.constant 0 : index
    %376 = tpu.strided_load %arg1[%c201, %c0_221, %c0_222] {strides = array<i32: 4, 1, 1>} : memref<246x8x1xf32, #tpu.memory_space<vmem>>, vector<12x8x1xf32>
    %c9_223 = arith.constant 9 : index
    %c0_224 = arith.constant 0 : index
    %377 = vector.load %arg2[%c9_223, %c0_224] : memref<10x128xf32, #tpu.memory_space<vmem>>, vector<1x128xf32>
    %378 = vector.shape_cast %377 : vector<1x128xf32> to vector<1x1x128xf32>
    %379 = vector.broadcast %376 : vector<12x8x1xf32> to vector<12x8x128xf32>
    %380 = vector.broadcast %378 : vector<1x1x128xf32> to vector<12x8x128xf32>
    %381 = arith.mulf %379, %380 : vector<12x8x128xf32>
    %382 = arith.addf %375, %381 : vector<12x8x128xf32>
    %c0_225 = arith.constant 0 : index
    %c0_226 = arith.constant 0 : index
    %383 = vector.load %arg11[%c0_225, %c0_226] : memref<9x128xf32, #tpu.memory_space<vmem>>, vector<1x128xf32>
    %384 = vector.shape_cast %383 : vector<1x128xf32> to vector<1x1x128xf32>
    %385 = vector.broadcast %384 : vector<1x1x128xf32> to vector<12x8x128xf32>
    %386 = arith.addf %382, %385 : vector<12x8x128xf32>
    %cst_227 = arith.constant 0.000000e+00 : f32
    %387 = vector.broadcast %cst_227 : f32 to vector<12x8x128xf32>
    %388 = arith.maximumf %386, %387 : vector<12x8x128xf32>
    %c48_228 = arith.constant 48 : index
    %c0_229 = arith.constant 0 : index
    %c0_230 = arith.constant 0 : index
    %389 = vector.load %arg13[%c48_228, %c0_229, %c0_230] : memref<60x8x128xf32, #tpu.memory_space<vmem>>, vector<12x8x128xf32>
    tpu.vector_store %arg13[%c48_228, %c0_229, %c0_230], %388 {strides = array<i32>} : memref<60x8x128xf32, #tpu.memory_space<vmem>>, vector<12x8x128xf32>,
    %cst_231 = arith.constant 0.000000e+00 : f32
    %390 = vector.broadcast %cst_231 : f32 to vector<112x128xf32>
    %c0_232 = arith.constant 0 : index
    %c0_233 = arith.constant 0 : index
    %c0_234 = arith.constant 0 : index
    %391 = tpu.strided_load %arg13[%c0_232, %c0_233, %c0_234] {strides = array<i32: 4, 1, 1>} : memref<60x8x128xf32, #tpu.memory_space<vmem>>, vector<14x8x128xf32>
    %392 = vector.shape_cast %391 : vector<14x8x128xf32> to vector<112x128xf32>
    %393 = arith.truncf %392 : vector<112x128xf32> to vector<112x128xbf16>
    %c0_235 = arith.constant 0 : index
    %c0_236 = arith.constant 0 : index
    %c0_237 = arith.constant 0 : index
    %394 = vector.load %arg3[%c0_235, %c0_236, %c0_237] : memref<8x128x128xbf16, #tpu.memory_space<vmem>>, vector<1x128x128xbf16>
    %395 = vector.shape_cast %394 : vector<1x128x128xbf16> to vector<128x128xbf16>
    %cst_238 = arith.constant dense<0.000000e+00> : vector<112x128xf32>
    %396 = tpu.matmul %393, %395, %cst_238 {dimension_numbers = #tpu.dot_dimension_numbers<[1], [0], [0], [1], [0, 0, 1, 1], [], []>} : vector<112x128xbf16>, vector<128x128xbf16>, vector<112x128xf32> -> vector<112x128xf32>
    %397 = arith.addf %390, %396 : vector<112x128xf32>
    %c1_239 = arith.constant 1 : index
    %c0_240 = arith.constant 0 : index
    %c0_241 = arith.constant 0 : index
    %398 = tpu.strided_load %arg13[%c1_239, %c0_240, %c0_241] {strides = array<i32: 4, 1, 1>} : memref<60x8x128xf32, #tpu.memory_space<vmem>>, vector<14x8x128xf32>
    %399 = vector.shape_cast %398 : vector<14x8x128xf32> to vector<112x128xf32>
    %400 = arith.truncf %399 : vector<112x128xf32> to vector<112x128xbf16>
    %c1_242 = arith.constant 1 : index
    %c0_243 = arith.constant 0 : index
    %c0_244 = arith.constant 0 : index
    %401 = vector.load %arg3[%c1_242, %c0_243, %c0_244] : memref<8x128x128xbf16, #tpu.memory_space<vmem>>, vector<1x128x128xbf16>
    %402 = vector.shape_cast %401 : vector<1x128x128xbf16> to vector<128x128xbf16>
    %cst_245 = arith.constant dense<0.000000e+00> : vector<112x128xf32>
    %403 = tpu.matmul %400, %402, %cst_245 {dimension_numbers = #tpu.dot_dimension_numbers<[1], [0], [0], [1], [0, 0, 1, 1], [], []>} : vector<112x128xbf16>, vector<128x128xbf16>, vector<112x128xf32> -> vector<112x128xf32>
    %404 = arith.addf %397, %403 : vector<112x128xf32>
    %c2_246 = arith.constant 2 : index
    %c0_247 = arith.constant 0 : index
    %c0_248 = arith.constant 0 : index
    %405 = tpu.strided_load %arg13[%c2_246, %c0_247, %c0_248] {strides = array<i32: 4, 1, 1>} : memref<60x8x128xf32, #tpu.memory_space<vmem>>, vector<14x8x128xf32>
    %406 = vector.shape_cast %405 : vector<14x8x128xf32> to vector<112x128xf32>
    %407 = arith.truncf %406 : vector<112x128xf32> to vector<112x128xbf16>
    %c2_249 = arith.constant 2 : index
    %c0_250 = arith.constant 0 : index
    %c0_251 = arith.constant 0 : index
    %408 = vector.load %arg3[%c2_249, %c0_250, %c0_251] : memref<8x128x128xbf16, #tpu.memory_space<vmem>>, vector<1x128x128xbf16>
    %409 = vector.shape_cast %408 : vector<1x128x128xbf16> to vector<128x128xbf16>
    %cst_252 = arith.constant dense<0.000000e+00> : vector<112x128xf32>
    %410 = tpu.matmul %407, %409, %cst_252 {dimension_numbers = #tpu.dot_dimension_numbers<[1], [0], [0], [1], [0, 0, 1, 1], [], []>} : vector<112x128xbf16>, vector<128x128xbf16>, vector<112x128xf32> -> vector<112x128xf32>
    %411 = arith.addf %404, %410 : vector<112x128xf32>
    %c3_253 = arith.constant 3 : index
    %c0_254 = arith.constant 0 : index
    %c0_255 = arith.constant 0 : index
    %412 = tpu.strided_load %arg13[%c3_253, %c0_254, %c0_255] {strides = array<i32: 4, 1, 1>} : memref<60x8x128xf32, #tpu.memory_space<vmem>>, vector<14x8x128xf32>
    %413 = vector.shape_cast %412 : vector<14x8x128xf32> to vector<112x128xf32>
    %414 = arith.truncf %413 : vector<112x128xf32> to vector<112x128xbf16>
    %c3_256 = arith.constant 3 : index
    %c0_257 = arith.constant 0 : index
    %c0_258 = arith.constant 0 : index
    %415 = vector.load %arg3[%c3_256, %c0_257, %c0_258] : memref<8x128x128xbf16, #tpu.memory_space<vmem>>, vector<1x128x128xbf16>
    %416 = vector.shape_cast %415 : vector<1x128x128xbf16> to vector<128x128xbf16>
    %cst_259 = arith.constant dense<0.000000e+00> : vector<112x128xf32>
    %417 = tpu.matmul %414, %416, %cst_259 {dimension_numbers = #tpu.dot_dimension_numbers<[1], [0], [0], [1], [0, 0, 1, 1], [], []>} : vector<112x128xbf16>, vector<128x128xbf16>, vector<112x128xf32> -> vector<112x128xf32>
    %418 = arith.addf %411, %417 : vector<112x128xf32>
    %c4_260 = arith.constant 4 : index
    %c0_261 = arith.constant 0 : index
    %c0_262 = arith.constant 0 : index
    %419 = tpu.strided_load %arg13[%c4_260, %c0_261, %c0_262] {strides = array<i32: 4, 1, 1>} : memref<60x8x128xf32, #tpu.memory_space<vmem>>, vector<14x8x128xf32>
    %420 = vector.shape_cast %419 : vector<14x8x128xf32> to vector<112x128xf32>
    %421 = arith.truncf %420 : vector<112x128xf32> to vector<112x128xbf16>
    %c4_263 = arith.constant 4 : index
    %c0_264 = arith.constant 0 : index
    %c0_265 = arith.constant 0 : index
    %422 = vector.load %arg3[%c4_263, %c0_264, %c0_265] : memref<8x128x128xbf16, #tpu.memory_space<vmem>>, vector<1x128x128xbf16>
    %423 = vector.shape_cast %422 : vector<1x128x128xbf16> to vector<128x128xbf16>
    %cst_266 = arith.constant dense<0.000000e+00> : vector<112x128xf32>
    %424 = tpu.matmul %421, %423, %cst_266 {dimension_numbers = #tpu.dot_dimension_numbers<[1], [0], [0], [1], [0, 0, 1, 1], [], []>} : vector<112x128xbf16>, vector<128x128xbf16>, vector<112x128xf32> -> vector<112x128xf32>
    %425 = arith.addf %418, %424 : vector<112x128xf32>
    %c5_267 = arith.constant 5 : index
    %c0_268 = arith.constant 0 : index
    %c0_269 = arith.constant 0 : index
    %426 = tpu.strided_load %arg13[%c5_267, %c0_268, %c0_269] {strides = array<i32: 4, 1, 1>} : memref<60x8x128xf32, #tpu.memory_space<vmem>>, vector<14x8x128xf32>
    %427 = vector.shape_cast %426 : vector<14x8x128xf32> to vector<112x128xf32>
    %428 = arith.truncf %427 : vector<112x128xf32> to vector<112x128xbf16>
    %c5_270 = arith.constant 5 : index
    %c0_271 = arith.constant 0 : index
    %c0_272 = arith.constant 0 : index
    %429 = vector.load %arg3[%c5_270, %c0_271, %c0_272] : memref<8x128x128xbf16, #tpu.memory_space<vmem>>, vector<1x128x128xbf16>
    %430 = vector.shape_cast %429 : vector<1x128x128xbf16> to vector<128x128xbf16>
    %cst_273 = arith.constant dense<0.000000e+00> : vector<112x128xf32>
    %431 = tpu.matmul %428, %430, %cst_273 {dimension_numbers = #tpu.dot_dimension_numbers<[1], [0], [0], [1], [0, 0, 1, 1], [], []>} : vector<112x128xbf16>, vector<128x128xbf16>, vector<112x128xf32> -> vector<112x128xf32>
    %432 = arith.addf %425, %431 : vector<112x128xf32>
    %c6_274 = arith.constant 6 : index
    %c0_275 = arith.constant 0 : index
    %c0_276 = arith.constant 0 : index
    %433 = tpu.strided_load %arg13[%c6_274, %c0_275, %c0_276] {strides = array<i32: 4, 1, 1>} : memref<60x8x128xf32, #tpu.memory_space<vmem>>, vector<14x8x128xf32>
    %434 = vector.shape_cast %433 : vector<14x8x128xf32> to vector<112x128xf32>
    %435 = arith.truncf %434 : vector<112x128xf32> to vector<112x128xbf16>
    %c6_277 = arith.constant 6 : index
    %c0_278 = arith.constant 0 : index
    %c0_279 = arith.constant 0 : index
    %436 = vector.load %arg3[%c6_277, %c0_278, %c0_279] : memref<8x128x128xbf16, #tpu.memory_space<vmem>>, vector<1x128x128xbf16>
    %437 = vector.shape_cast %436 : vector<1x128x128xbf16> to vector<128x128xbf16>
    %cst_280 = arith.constant dense<0.000000e+00> : vector<112x128xf32>
    %438 = tpu.matmul %435, %437, %cst_280 {dimension_numbers = #tpu.dot_dimension_numbers<[1], [0], [0], [1], [0, 0, 1, 1], [], []>} : vector<112x128xbf16>, vector<128x128xbf16>, vector<112x128xf32> -> vector<112x128xf32>
    %439 = arith.addf %432, %438 : vector<112x128xf32>
    %c7_281 = arith.constant 7 : index
    %c0_282 = arith.constant 0 : index
    %c0_283 = arith.constant 0 : index
    %440 = tpu.strided_load %arg13[%c7_281, %c0_282, %c0_283] {strides = array<i32: 4, 1, 1>} : memref<60x8x128xf32, #tpu.memory_space<vmem>>, vector<14x8x128xf32>
    %441 = vector.shape_cast %440 : vector<14x8x128xf32> to vector<112x128xf32>
    %442 = arith.truncf %441 : vector<112x128xf32> to vector<112x128xbf16>
    %c7_284 = arith.constant 7 : index
    %c0_285 = arith.constant 0 : index
    %c0_286 = arith.constant 0 : index
    %443 = vector.load %arg3[%c7_284, %c0_285, %c0_286] : memref<8x128x128xbf16, #tpu.memory_space<vmem>>, vector<1x128x128xbf16>
    %444 = vector.shape_cast %443 : vector<1x128x128xbf16> to vector<128x128xbf16>
    %cst_287 = arith.constant dense<0.000000e+00> : vector<112x128xf32>
    %445 = tpu.matmul %442, %444, %cst_287 {dimension_numbers = #tpu.dot_dimension_numbers<[1], [0], [0], [1], [0, 0, 1, 1], [], []>} : vector<112x128xbf16>, vector<128x128xbf16>, vector<112x128xf32> -> vector<112x128xf32>
    %446 = arith.addf %439, %445 : vector<112x128xf32>
    %447 = vector.shape_cast %446 : vector<112x128xf32> to vector<14x8x128xf32>
    %c1_288 = arith.constant 1 : index
    %c0_289 = arith.constant 0 : index
    %448 = vector.load %arg11[%c1_288, %c0_289] : memref<9x128xf32, #tpu.memory_space<vmem>>, vector<1x128xf32>
    %449 = vector.shape_cast %448 : vector<1x128xf32> to vector<1x1x128xf32>
    %450 = vector.broadcast %449 : vector<1x1x128xf32> to vector<14x8x128xf32>
    %451 = arith.addf %447, %450 : vector<14x8x128xf32>
    %cst_290 = arith.constant 0.000000e+00 : f32
    %452 = vector.broadcast %cst_290 : f32 to vector<14x8x128xf32>
    %453 = arith.maximumf %451, %452 : vector<14x8x128xf32>
    %c0_291 = arith.constant 0 : index
    %c0_292 = arith.constant 0 : index
    %c0_293 = arith.constant 0 : index
    %454 = vector.load %arg14[%c0_291, %c0_292, %c0_293] : memref<14x8x128xf32, #tpu.memory_space<vmem>>, vector<14x8x128xf32>
    tpu.vector_store %arg14[%c0_291, %c0_292, %c0_293], %453 {strides = array<i32>} : memref<14x8x128xf32, #tpu.memory_space<vmem>>, vector<14x8x128xf32>,
    %cst_294 = arith.constant 0.000000e+00 : f32
    %455 = vector.broadcast %cst_294 : f32 to vector<48x128xf32>
    %c0_295 = arith.constant 0 : index
    %c0_296 = arith.constant 0 : index
    %c0_297 = arith.constant 0 : index
    %456 = tpu.strided_load %arg14[%c0_295, %c0_296, %c0_297] {strides = array<i32: 2, 1, 1>} : memref<14x8x128xf32, #tpu.memory_space<vmem>>, vector<6x8x128xf32>
    %457 = vector.shape_cast %456 : vector<6x8x128xf32> to vector<48x128xf32>
    %458 = arith.truncf %457 : vector<48x128xf32> to vector<48x128xbf16>
    %c0_298 = arith.constant 0 : index
    %c0_299 = arith.constant 0 : index
    %c0_300 = arith.constant 0 : index
    %459 = vector.load %arg4[%c0_298, %c0_299, %c0_300] : memref<4x128x128xbf16, #tpu.memory_space<vmem>>, vector<1x128x128xbf16>
    %460 = vector.shape_cast %459 : vector<1x128x128xbf16> to vector<128x128xbf16>
    %cst_301 = arith.constant dense<0.000000e+00> : vector<48x128xf32>
    %461 = tpu.matmul %458, %460, %cst_301 {dimension_numbers = #tpu.dot_dimension_numbers<[1], [0], [0], [1], [0, 0, 1, 1], [], []>} : vector<48x128xbf16>, vector<128x128xbf16>, vector<48x128xf32> -> vector<48x128xf32>
    %462 = arith.addf %455, %461 : vector<48x128xf32>
    %c1_302 = arith.constant 1 : index
    %c0_303 = arith.constant 0 : index
    %c0_304 = arith.constant 0 : index
    %463 = tpu.strided_load %arg14[%c1_302, %c0_303, %c0_304] {strides = array<i32: 2, 1, 1>} : memref<14x8x128xf32, #tpu.memory_space<vmem>>, vector<6x8x128xf32>
    %464 = vector.shape_cast %463 : vector<6x8x128xf32> to vector<48x128xf32>
    %465 = arith.truncf %464 : vector<48x128xf32> to vector<48x128xbf16>
    %c1_305 = arith.constant 1 : index
    %c0_306 = arith.constant 0 : index
    %c0_307 = arith.constant 0 : index
    %466 = vector.load %arg4[%c1_305, %c0_306, %c0_307] : memref<4x128x128xbf16, #tpu.memory_space<vmem>>, vector<1x128x128xbf16>
    %467 = vector.shape_cast %466 : vector<1x128x128xbf16> to vector<128x128xbf16>
    %cst_308 = arith.constant dense<0.000000e+00> : vector<48x128xf32>
    %468 = tpu.matmul %465, %467, %cst_308 {dimension_numbers = #tpu.dot_dimension_numbers<[1], [0], [0], [1], [0, 0, 1, 1], [], []>} : vector<48x128xbf16>, vector<128x128xbf16>, vector<48x128xf32> -> vector<48x128xf32>
    %469 = arith.addf %462, %468 : vector<48x128xf32>
    %c2_309 = arith.constant 2 : index
    %c0_310 = arith.constant 0 : index
    %c0_311 = arith.constant 0 : index
    %470 = tpu.strided_load %arg14[%c2_309, %c0_310, %c0_311] {strides = array<i32: 2, 1, 1>} : memref<14x8x128xf32, #tpu.memory_space<vmem>>, vector<6x8x128xf32>
    %471 = vector.shape_cast %470 : vector<6x8x128xf32> to vector<48x128xf32>
    %472 = arith.truncf %471 : vector<48x128xf32> to vector<48x128xbf16>
    %c2_312 = arith.constant 2 : index
    %c0_313 = arith.constant 0 : index
    %c0_314 = arith.constant 0 : index
    %473 = vector.load %arg4[%c2_312, %c0_313, %c0_314] : memref<4x128x128xbf16, #tpu.memory_space<vmem>>, vector<1x128x128xbf16>
    %474 = vector.shape_cast %473 : vector<1x128x128xbf16> to vector<128x128xbf16>
    %cst_315 = arith.constant dense<0.000000e+00> : vector<48x128xf32>
    %475 = tpu.matmul %472, %474, %cst_315 {dimension_numbers = #tpu.dot_dimension_numbers<[1], [0], [0], [1], [0, 0, 1, 1], [], []>} : vector<48x128xbf16>, vector<128x128xbf16>, vector<48x128xf32> -> vector<48x128xf32>
    %476 = arith.addf %469, %475 : vector<48x128xf32>
    %c3_316 = arith.constant 3 : index
    %c0_317 = arith.constant 0 : index
    %c0_318 = arith.constant 0 : index
    %477 = tpu.strided_load %arg14[%c3_316, %c0_317, %c0_318] {strides = array<i32: 2, 1, 1>} : memref<14x8x128xf32, #tpu.memory_space<vmem>>, vector<6x8x128xf32>
    %478 = vector.shape_cast %477 : vector<6x8x128xf32> to vector<48x128xf32>
    %479 = arith.truncf %478 : vector<48x128xf32> to vector<48x128xbf16>
    %c3_319 = arith.constant 3 : index
    %c0_320 = arith.constant 0 : index
    %c0_321 = arith.constant 0 : index
    %480 = vector.load %arg4[%c3_319, %c0_320, %c0_321] : memref<4x128x128xbf16, #tpu.memory_space<vmem>>, vector<1x128x128xbf16>
    %481 = vector.shape_cast %480 : vector<1x128x128xbf16> to vector<128x128xbf16>
    %cst_322 = arith.constant dense<0.000000e+00> : vector<48x128xf32>
    %482 = tpu.matmul %479, %481, %cst_322 {dimension_numbers = #tpu.dot_dimension_numbers<[1], [0], [0], [1], [0, 0, 1, 1], [], []>} : vector<48x128xbf16>, vector<128x128xbf16>, vector<48x128xf32> -> vector<48x128xf32>
    %483 = arith.addf %476, %482 : vector<48x128xf32>
    %484 = vector.shape_cast %483 : vector<48x128xf32> to vector<6x8x128xf32>
    %c2_323 = arith.constant 2 : index
    %c0_324 = arith.constant 0 : index
    %485 = vector.load %arg11[%c2_323, %c0_324] : memref<9x128xf32, #tpu.memory_space<vmem>>, vector<1x128xf32>
    %486 = vector.shape_cast %485 : vector<1x128xf32> to vector<1x1x128xf32>
    %487 = vector.broadcast %486 : vector<1x1x128xf32> to vector<6x8x128xf32>
    %488 = arith.addf %484, %487 : vector<6x8x128xf32>
    %cst_325 = arith.constant 0.000000e+00 : f32
    %489 = vector.broadcast %cst_325 : f32 to vector<6x8x128xf32>
    %490 = arith.maximumf %488, %489 : vector<6x8x128xf32>
    %c0_326 = arith.constant 0 : index
    %c0_327 = arith.constant 0 : index
    %c0_328 = arith.constant 0 : index
    %491 = vector.load %arg15[%c0_326, %c0_327, %c0_328] : memref<6x8x128xf32, #tpu.memory_space<vmem>>, vector<6x8x128xf32>
    tpu.vector_store %arg15[%c0_326, %c0_327, %c0_328], %490 {strides = array<i32>} : memref<6x8x128xf32, #tpu.memory_space<vmem>>, vector<6x8x128xf32>,
    %cst_329 = arith.constant 0.000000e+00 : f32
    %492 = vector.broadcast %cst_329 : f32 to vector<32x128xf32>
    %c0_330 = arith.constant 0 : index
    %c0_331 = arith.constant 0 : index
    %c0_332 = arith.constant 0 : index
    %493 = vector.load %arg15[%c0_330, %c0_331, %c0_332] : memref<6x8x128xf32, #tpu.memory_space<vmem>>, vector<4x8x128xf32>
    %494 = vector.shape_cast %493 : vector<4x8x128xf32> to vector<32x128xf32>
    %495 = arith.truncf %494 : vector<32x128xf32> to vector<32x128xbf16>
    %c0_333 = arith.constant 0 : index
    %c0_334 = arith.constant 0 : index
    %c0_335 = arith.constant 0 : index
    %496 = vector.load %arg5[%c0_333, %c0_334, %c0_335] : memref<3x128x128xbf16, #tpu.memory_space<vmem>>, vector<1x128x128xbf16>
    %497 = vector.shape_cast %496 : vector<1x128x128xbf16> to vector<128x128xbf16>
    %cst_336 = arith.constant dense<0.000000e+00> : vector<32x128xf32>
    %498 = tpu.matmul %495, %497, %cst_336 {dimension_numbers = #tpu.dot_dimension_numbers<[1], [0], [0], [1], [0, 0, 1, 1], [], []>} : vector<32x128xbf16>, vector<128x128xbf16>, vector<32x128xf32> -> vector<32x128xf32>
    %499 = arith.addf %492, %498 : vector<32x128xf32>
    %c1_337 = arith.constant 1 : index
    %c0_338 = arith.constant 0 : index
    %c0_339 = arith.constant 0 : index
    %500 = vector.load %arg15[%c1_337, %c0_338, %c0_339] : memref<6x8x128xf32, #tpu.memory_space<vmem>>, vector<4x8x128xf32>
    %501 = vector.shape_cast %500 : vector<4x8x128xf32> to vector<32x128xf32>
    %502 = arith.truncf %501 : vector<32x128xf32> to vector<32x128xbf16>
    %c1_340 = arith.constant 1 : index
    %c0_341 = arith.constant 0 : index
    %c0_342 = arith.constant 0 : index
    %503 = vector.load %arg5[%c1_340, %c0_341, %c0_342] : memref<3x128x128xbf16, #tpu.memory_space<vmem>>, vector<1x128x128xbf16>
    %504 = vector.shape_cast %503 : vector<1x128x128xbf16> to vector<128x128xbf16>
    %cst_343 = arith.constant dense<0.000000e+00> : vector<32x128xf32>
    %505 = tpu.matmul %502, %504, %cst_343 {dimension_numbers = #tpu.dot_dimension_numbers<[1], [0], [0], [1], [0, 0, 1, 1], [], []>} : vector<32x128xbf16>, vector<128x128xbf16>, vector<32x128xf32> -> vector<32x128xf32>
    %506 = arith.addf %499, %505 : vector<32x128xf32>
    %c2_344 = arith.constant 2 : index
    %c0_345 = arith.constant 0 : index
    %c0_346 = arith.constant 0 : index
    %507 = vector.load %arg15[%c2_344, %c0_345, %c0_346] : memref<6x8x128xf32, #tpu.memory_space<vmem>>, vector<4x8x128xf32>
    %508 = vector.shape_cast %507 : vector<4x8x128xf32> to vector<32x128xf32>
    %509 = arith.truncf %508 : vector<32x128xf32> to vector<32x128xbf16>
    %c2_347 = arith.constant 2 : index
    %c0_348 = arith.constant 0 : index
    %c0_349 = arith.constant 0 : index
    %510 = vector.load %arg5[%c2_347, %c0_348, %c0_349] : memref<3x128x128xbf16, #tpu.memory_space<vmem>>, vector<1x128x128xbf16>
    %511 = vector.shape_cast %510 : vector<1x128x128xbf16> to vector<128x128xbf16>
    %cst_350 = arith.constant dense<0.000000e+00> : vector<32x128xf32>
    %512 = tpu.matmul %509, %511, %cst_350 {dimension_numbers = #tpu.dot_dimension_numbers<[1], [0], [0], [1], [0, 0, 1, 1], [], []>} : vector<32x128xbf16>, vector<128x128xbf16>, vector<32x128xf32> -> vector<32x128xf32>
    %513 = arith.addf %506, %512 : vector<32x128xf32>
    %514 = vector.shape_cast %513 : vector<32x128xf32> to vector<4x8x128xf32>
    %c3_351 = arith.constant 3 : index
    %c0_352 = arith.constant 0 : index
    %515 = vector.load %arg11[%c3_351, %c0_352] : memref<9x128xf32, #tpu.memory_space<vmem>>, vector<1x128xf32>
    %516 = vector.shape_cast %515 : vector<1x128xf32> to vector<1x1x128xf32>
    %517 = vector.broadcast %516 : vector<1x1x128xf32> to vector<4x8x128xf32>
    %518 = arith.addf %514, %517 : vector<4x8x128xf32>
    %cst_353 = arith.constant 0.000000e+00 : f32
    %519 = vector.broadcast %cst_353 : f32 to vector<4x8x128xf32>
    %520 = arith.maximumf %518, %519 : vector<4x8x128xf32>
    %c0_354 = arith.constant 0 : index
    %c0_355 = arith.constant 0 : index
    %c0_356 = arith.constant 0 : index
    %521 = vector.load %arg16[%c0_354, %c0_355, %c0_356] : memref<4x8x128xf32, #tpu.memory_space<vmem>>, vector<4x8x128xf32>
    tpu.vector_store %arg16[%c0_354, %c0_355, %c0_356], %520 {strides = array<i32>} : memref<4x8x128xf32, #tpu.memory_space<vmem>>, vector<4x8x128xf32>,
    %cst_357 = arith.constant 0.000000e+00 : f32
    %522 = vector.broadcast %cst_357 : f32 to vector<16x128xf32>
    %c0_358 = arith.constant 0 : index
    %c0_359 = arith.constant 0 : index
    %c0_360 = arith.constant 0 : index
    %523 = vector.load %arg16[%c0_358, %c0_359, %c0_360] : memref<4x8x128xf32, #tpu.memory_space<vmem>>, vector<2x8x128xf32>
    %524 = vector.shape_cast %523 : vector<2x8x128xf32> to vector<16x128xf32>
    %525 = arith.truncf %524 : vector<16x128xf32> to vector<16x128xbf16>
    %c0_361 = arith.constant 0 : index
    %c0_362 = arith.constant 0 : index
    %c0_363 = arith.constant 0 : index
    %526 = vector.load %arg6[%c0_361, %c0_362, %c0_363] : memref<3x128x128xbf16, #tpu.memory_space<vmem>>, vector<1x128x128xbf16>
    %527 = vector.shape_cast %526 : vector<1x128x128xbf16> to vector<128x128xbf16>
    %cst_364 = arith.constant dense<0.000000e+00> : vector<16x128xf32>
    %528 = tpu.matmul %525, %527, %cst_364 {dimension_numbers = #tpu.dot_dimension_numbers<[1], [0], [0], [1], [0, 0, 1, 1], [], []>} : vector<16x128xbf16>, vector<128x128xbf16>, vector<16x128xf32> -> vector<16x128xf32>
    %529 = arith.addf %522, %528 : vector<16x128xf32>
    %c1_365 = arith.constant 1 : index
    %c0_366 = arith.constant 0 : index
    %c0_367 = arith.constant 0 : index
    %530 = vector.load %arg16[%c1_365, %c0_366, %c0_367] : memref<4x8x128xf32, #tpu.memory_space<vmem>>, vector<2x8x128xf32>
    %531 = vector.shape_cast %530 : vector<2x8x128xf32> to vector<16x128xf32>
    %532 = arith.truncf %531 : vector<16x128xf32> to vector<16x128xbf16>
    %c1_368 = arith.constant 1 : index
    %c0_369 = arith.constant 0 : index
    %c0_370 = arith.constant 0 : index
    %533 = vector.load %arg6[%c1_368, %c0_369, %c0_370] : memref<3x128x128xbf16, #tpu.memory_space<vmem>>, vector<1x128x128xbf16>
    %534 = vector.shape_cast %533 : vector<1x128x128xbf16> to vector<128x128xbf16>
    %cst_371 = arith.constant dense<0.000000e+00> : vector<16x128xf32>
    %535 = tpu.matmul %532, %534, %cst_371 {dimension_numbers = #tpu.dot_dimension_numbers<[1], [0], [0], [1], [0, 0, 1, 1], [], []>} : vector<16x128xbf16>, vector<128x128xbf16>, vector<16x128xf32> -> vector<16x128xf32>
    %536 = arith.addf %529, %535 : vector<16x128xf32>
    %c2_372 = arith.constant 2 : index
    %c0_373 = arith.constant 0 : index
    %c0_374 = arith.constant 0 : index
    %537 = vector.load %arg16[%c2_372, %c0_373, %c0_374] : memref<4x8x128xf32, #tpu.memory_space<vmem>>, vector<2x8x128xf32>
    %538 = vector.shape_cast %537 : vector<2x8x128xf32> to vector<16x128xf32>
    %539 = arith.truncf %538 : vector<16x128xf32> to vector<16x128xbf16>
    %c2_375 = arith.constant 2 : index
    %c0_376 = arith.constant 0 : index
    %c0_377 = arith.constant 0 : index
    %540 = vector.load %arg6[%c2_375, %c0_376, %c0_377] : memref<3x128x128xbf16, #tpu.memory_space<vmem>>, vector<1x128x128xbf16>
    %541 = vector.shape_cast %540 : vector<1x128x128xbf16> to vector<128x128xbf16>
    %cst_378 = arith.constant dense<0.000000e+00> : vector<16x128xf32>
    %542 = tpu.matmul %539, %541, %cst_378 {dimension_numbers = #tpu.dot_dimension_numbers<[1], [0], [0], [1], [0, 0, 1, 1], [], []>} : vector<16x128xbf16>, vector<128x128xbf16>, vector<16x128xf32> -> vector<16x128xf32>
    %543 = arith.addf %536, %542 : vector<16x128xf32>
    %544 = vector.shape_cast %543 : vector<16x128xf32> to vector<2x8x128xf32>
    %c4_379 = arith.constant 4 : index
    %c0_380 = arith.constant 0 : index
    %545 = vector.load %arg11[%c4_379, %c0_380] : memref<9x128xf32, #tpu.memory_space<vmem>>, vector<1x128xf32>
    %546 = vector.shape_cast %545 : vector<1x128xf32> to vector<1x1x128xf32>
    %547 = vector.broadcast %546 : vector<1x1x128xf32> to vector<2x8x128xf32>
    %548 = arith.addf %544, %547 : vector<2x8x128xf32>
    %cst_381 = arith.constant 0.000000e+00 : f32
    %549 = vector.broadcast %cst_381 : f32 to vector<2x8x128xf32>
    %550 = arith.maximumf %548, %549 : vector<2x8x128xf32>
    %c0_382 = arith.constant 0 : index
    %c0_383 = arith.constant 0 : index
    %c0_384 = arith.constant 0 : index
    %551 = vector.load %arg17[%c0_382, %c0_383, %c0_384] : memref<2x8x128xf32, #tpu.memory_space<vmem>>, vector<2x8x128xf32>
    tpu.vector_store %arg17[%c0_382, %c0_383, %c0_384], %550 {strides = array<i32>} : memref<2x8x128xf32, #tpu.memory_space<vmem>>, vector<2x8x128xf32>,
    %cst_385 = arith.constant 0.000000e+00 : f32
    %552 = vector.broadcast %cst_385 : f32 to vector<8x128xf32>
    %c0_386 = arith.constant 0 : index
    %c0_387 = arith.constant 0 : index
    %c0_388 = arith.constant 0 : index
    %553 = vector.load %arg17[%c0_386, %c0_387, %c0_388] : memref<2x8x128xf32, #tpu.memory_space<vmem>>, vector<1x8x128xf32>
    %554 = vector.shape_cast %553 : vector<1x8x128xf32> to vector<8x128xf32>
    %555 = arith.truncf %554 : vector<8x128xf32> to vector<8x128xbf16>
    %c0_389 = arith.constant 0 : index
    %c0_390 = arith.constant 0 : index
    %c0_391 = arith.constant 0 : index
    %556 = vector.load %arg7[%c0_389, %c0_390, %c0_391] : memref<2x128x128xbf16, #tpu.memory_space<vmem>>, vector<1x128x128xbf16>
    %557 = vector.shape_cast %556 : vector<1x128x128xbf16> to vector<128x128xbf16>
    %cst_392 = arith.constant dense<0.000000e+00> : vector<8x128xf32>
    %558 = tpu.matmul %555, %557, %cst_392 {dimension_numbers = #tpu.dot_dimension_numbers<[1], [0], [0], [1], [0, 0, 1, 1], [], []>} : vector<8x128xbf16>, vector<128x128xbf16>, vector<8x128xf32> -> vector<8x128xf32>
    %559 = arith.addf %552, %558 : vector<8x128xf32>
    %c1_393 = arith.constant 1 : index
    %c0_394 = arith.constant 0 : index
    %c0_395 = arith.constant 0 : index
    %560 = vector.load %arg17[%c1_393, %c0_394, %c0_395] : memref<2x8x128xf32, #tpu.memory_space<vmem>>, vector<1x8x128xf32>
    %561 = vector.shape_cast %560 : vector<1x8x128xf32> to vector<8x128xf32>
    %562 = arith.truncf %561 : vector<8x128xf32> to vector<8x128xbf16>
    %c1_396 = arith.constant 1 : index
    %c0_397 = arith.constant 0 : index
    %c0_398 = arith.constant 0 : index
    %563 = vector.load %arg7[%c1_396, %c0_397, %c0_398] : memref<2x128x128xbf16, #tpu.memory_space<vmem>>, vector<1x128x128xbf16>
    %564 = vector.shape_cast %563 : vector<1x128x128xbf16> to vector<128x128xbf16>
    %cst_399 = arith.constant dense<0.000000e+00> : vector<8x128xf32>
    %565 = tpu.matmul %562, %564, %cst_399 {dimension_numbers = #tpu.dot_dimension_numbers<[1], [0], [0], [1], [0, 0, 1, 1], [], []>} : vector<8x128xbf16>, vector<128x128xbf16>, vector<8x128xf32> -> vector<8x128xf32>
    %566 = arith.addf %559, %565 : vector<8x128xf32>
    %c5_400 = arith.constant 5 : index
    %c0_401 = arith.constant 0 : index
    %567 = vector.load %arg11[%c5_400, %c0_401] : memref<9x128xf32, #tpu.memory_space<vmem>>, vector<1x128xf32>
    %568 = vector.broadcast %567 : vector<1x128xf32> to vector<8x128xf32>
    %569 = arith.addf %566, %568 : vector<8x128xf32>
    %cst_402 = arith.constant 0.000000e+00 : f32
    %570 = vector.broadcast %cst_402 : f32 to vector<8x128xf32>
    %571 = arith.maximumf %569, %570 : vector<8x128xf32>
    %572 = arith.truncf %571 : vector<8x128xf32> to vector<8x128xbf16>
    %c0_403 = arith.constant 0 : index
    %c0_404 = arith.constant 0 : index
    %573 = vector.load %arg8[%c0_403, %c0_404] : memref<128x128xbf16, #tpu.memory_space<vmem>>, vector<128x128xbf16>
    %cst_405 = arith.constant dense<0.000000e+00> : vector<8x128xf32>
    %574 = tpu.matmul %572, %573, %cst_405 {dimension_numbers = #tpu.dot_dimension_numbers<[1], [0], [0], [1], [0, 0, 1, 1], [], []>} : vector<8x128xbf16>, vector<128x128xbf16>, vector<8x128xf32> -> vector<8x128xf32>
    %c6_406 = arith.constant 6 : index
    %c0_407 = arith.constant 0 : index
    %575 = vector.load %arg11[%c6_406, %c0_407] : memref<9x128xf32, #tpu.memory_space<vmem>>, vector<1x128xf32>
    %576 = vector.broadcast %575 : vector<1x128xf32> to vector<8x128xf32>
    %577 = arith.addf %574, %576 : vector<8x128xf32>
    %cst_408 = arith.constant 0.000000e+00 : f32
    %578 = vector.broadcast %cst_408 : f32 to vector<8x128xf32>
    %579 = arith.maximumf %577, %578 : vector<8x128xf32>
    %580 = arith.truncf %579 : vector<8x128xf32> to vector<8x128xbf16>
    %c0_409 = arith.constant 0 : index
    %c0_410 = arith.constant 0 : index
    %581 = vector.load %arg9[%c0_409, %c0_410] : memref<128x128xbf16, #tpu.memory_space<vmem>>, vector<128x128xbf16>
    %cst_411 = arith.constant dense<0.000000e+00> : vector<8x128xf32>
    %582 = tpu.matmul %580, %581, %cst_411 {dimension_numbers = #tpu.dot_dimension_numbers<[1], [0], [0], [1], [0, 0, 1, 1], [], []>} : vector<8x128xbf16>, vector<128x128xbf16>, vector<8x128xf32> -> vector<8x128xf32>
    %c7_412 = arith.constant 7 : index
    %c0_413 = arith.constant 0 : index
    %583 = vector.load %arg11[%c7_412, %c0_413] : memref<9x128xf32, #tpu.memory_space<vmem>>, vector<1x128xf32>
    %584 = vector.broadcast %583 : vector<1x128xf32> to vector<8x128xf32>
    %585 = arith.addf %582, %584 : vector<8x128xf32>
    %cst_414 = arith.constant 0.000000e+00 : f32
    %586 = vector.broadcast %cst_414 : f32 to vector<8x128xf32>
    %587 = arith.maximumf %585, %586 : vector<8x128xf32>
    %588 = arith.truncf %587 : vector<8x128xf32> to vector<8x128xbf16>
    %c0_415 = arith.constant 0 : index
    %c0_416 = arith.constant 0 : index
    %589 = vector.load %arg10[%c0_415, %c0_416] : memref<128x128xbf16, #tpu.memory_space<vmem>>, vector<128x128xbf16>
    %cst_417 = arith.constant dense<0.000000e+00> : vector<8x128xf32>
    %590 = tpu.matmul %588, %589, %cst_417 {dimension_numbers = #tpu.dot_dimension_numbers<[1], [0], [0], [1], [0, 0, 1, 1], [], []>} : vector<8x128xbf16>, vector<128x128xbf16>, vector<8x128xf32> -> vector<8x128xf32>
    %c8_418 = arith.constant 8 : index
    %c0_419 = arith.constant 0 : index
    %591 = vector.load %arg11[%c8_418, %c0_419] : memref<9x128xf32, #tpu.memory_space<vmem>>, vector<1x128xf32>
    %592 = vector.broadcast %591 : vector<1x128xf32> to vector<8x128xf32>
    %593 = arith.addf %590, %592 : vector<8x128xf32>
    %594 = math.tanh %593 : vector<8x128xf32>
    %c0_420 = arith.constant 0 : index
    %c0_421 = arith.constant 0 : index
    %595 = vector.load %arg12[%c0_420, %c0_421] : memref<8x128xf32, #tpu.memory_space<vmem>>, vector<8x128xf32>
    tpu.vector_store %arg12[%c0_420, %c0_421], %594 {strides = array<i32>} : memref<8x128xf32, #tpu.memory_space<vmem>>, vector<8x128xf32>,
    return
  }
  func.func @transform_0(%arg0: i32) -> (i32, i32, i32) {
    %c0_i32 = arith.constant 0 : i32
    %c0_i32_0 = arith.constant 0 : i32
    %c0_i32_1 = arith.constant 0 : i32
    return %c0_i32, %arg0, %c0_i32_0 : i32, i32, i32
  }
  func.func @transform_1(%arg0: i32) -> (i32, i32) {
    %c0_i32 = arith.constant 0 : i32
    %c0_i32_0 = arith.constant 0 : i32
    %c0_i32_1 = arith.constant 0 : i32
    return %c0_i32, %c0_i32_0 : i32, i32
  }
  func.func @transform_2(%arg0: i32) -> (i32, i32, i32) {
    %c0_i32 = arith.constant 0 : i32
    %c0_i32_0 = arith.constant 0 : i32
    %c0_i32_1 = arith.constant 0 : i32
    %c0_i32_2 = arith.constant 0 : i32
    return %c0_i32, %c0_i32_0, %c0_i32_1 : i32, i32, i32
  }
  func.func @transform_3(%arg0: i32) -> (i32, i32, i32) {
    %c0_i32 = arith.constant 0 : i32
    %c0_i32_0 = arith.constant 0 : i32
    %c0_i32_1 = arith.constant 0 : i32
    %c0_i32_2 = arith.constant 0 : i32
    return %c0_i32, %c0_i32_0, %c0_i32_1 : i32, i32, i32
  }
  func.func @transform_4(%arg0: i32) -> (i32, i32, i32) {
    %c0_i32 = arith.constant 0 : i32
    %c0_i32_0 = arith.constant 0 : i32
    %c0_i32_1 = arith.constant 0 : i32
    %c0_i32_2 = arith.constant 0 : i32
    return %c0_i32, %c0_i32_0, %c0_i32_1 : i32, i32, i32
  }
  func.func @transform_5(%arg0: i32) -> (i32, i32, i32) {
    %c0_i32 = arith.constant 0 : i32
    %c0_i32_0 = arith.constant 0 : i32
    %c0_i32_1 = arith.constant 0 : i32
    %c0_i32_2 = arith.constant 0 : i32
    return %c0_i32, %c0_i32_0, %c0_i32_1 : i32, i32, i32
  }
  func.func @transform_6(%arg0: i32) -> (i32, i32, i32) {
    %c0_i32 = arith.constant 0 : i32
    %c0_i32_0 = arith.constant 0 : i32
    %c0_i32_1 = arith.constant 0 : i32
    %c0_i32_2 = arith.constant 0 : i32
    return %c0_i32, %c0_i32_0, %c0_i32_1 : i32, i32, i32
  }
  func.func @transform_7(%arg0: i32) -> (i32, i32) {
    %c0_i32 = arith.constant 0 : i32
    %c0_i32_0 = arith.constant 0 : i32
    %c0_i32_1 = arith.constant 0 : i32
    return %c0_i32, %c0_i32_0 : i32, i32
  }
  func.func @transform_8(%arg0: i32) -> (i32, i32) {
    %c0_i32 = arith.constant 0 : i32
    %c0_i32_0 = arith.constant 0 : i32
    %c0_i32_1 = arith.constant 0 : i32
    return %c0_i32, %c0_i32_0 : i32, i32
  }
  func.func @transform_9(%arg0: i32) -> (i32, i32) {
    %c0_i32 = arith.constant 0 : i32
    %c0_i32_0 = arith.constant 0 : i32
    %c0_i32_1 = arith.constant 0 : i32
    return %c0_i32, %c0_i32_0 : i32, i32
  }
  func.func @transform_10(%arg0: i32) -> (i32, i32) {
    %c0_i32 = arith.constant 0 : i32
    %c0_i32_0 = arith.constant 0 : i32
    %c0_i32_1 = arith.constant 0 : i32
    return %c0_i32, %c0_i32_0 : i32, i32
  }
  func.func @transform_11(%arg0: i32) -> (i32, i32) {
    %c0_i32 = arith.constant 0 : i32
    %c0_i32_0 = arith.constant 0 : i32
    return %arg0, %c0_i32 : i32, i32
  }
}

</mosaic_0001>

<bundles_post_ra>
// kernel: tiny_policy_net_forward.1
= control target key start
LH: loop header
LB: loop body
LE: loop exit
PB: predicated region body
PF: predicated region fallthrough
CT: control target
= control target key end

     0   :  { %s12548_s17 = smov 0   ;;  %s12550_s18 = smov 0   ;;  %s18040_s0 = inlined_call_operand.vmem [shape: f32[246,16,1], index: 0, kind: input, shape index: {}]   ;;  %s18041_s1 = inlined_call_operand.vmem [shape: f32[10,128], index: 1, kind: input, shape index: {}]   ;;  %s18042_s2 = inlined_call_operand.vmem [shape: bf16[8,128,128], index: 2, kind: input, shape index: {}]   ;;  %s18043_s3 = inlined_call_operand.vmem [shape: bf16[4,128,128], index: 3, kind: input, shape index: {}]   ;;  %s18044_s4 = inlined_call_operand.vmem [shape: bf16[3,128,128], index: 4, kind: input, shape index: {}]   ;;  %s18045_s5 = inlined_call_operand.vmem [shape: bf16[3,128,128], index: 5, kind: input, shape index: {}]   ;;  %s18046_s6 = inlined_call_operand.vmem [shape: bf16[2,128,128], index: 6, kind: input, shape index: {}]   ;;  %s18047_s7 = inlined_call_operand.vmem [shape: bf16[128,128], index: 7, kind: input, shape index: {}]   ;;  %s18048_s8 = inlined_call_operand.vmem [shape: bf16[128,128], index: 8, kind: input, shape index: {}]   ;;  %s18049_s9 = inlined_call_operand.vmem [shape: bf16[128,128], index: 9, kind: input, shape index: {}]   ;;  %s18050_s10 = inlined_call_operand.vmem [shape: f32[9,128], index: 10, kind: input, shape index: {}]   ;;  %s18051_s11 = inlined_call_operand.vmem [shape: f32[16,128], index: 11, kind: output, shape index: {}]  }
   0x1   :  { %s12552_s19 = smov 0  }
   0x2 LB: > { %s10143_s20 = sadd.s32 4294967295, %s12483_s19   ;;  %s12565_s21 = sadd.s32 1, %s12483_s19   ;;  %s12483_s19 = sphi %s12552_s19, %s18585_s19   ;;  %s12479_s18 = sphi %s12550_s18, %s18584_s18   ;;  %s12475_s17 = sphi %s12548_s17, %s18583_s17  }
   0x3   : > { %s25_s22 = ssub.s32 %s12483_s19, %s12565_s21  ;;  %s28_s23 = sadd.s32 1, %s12479_s18 }
   0x4   : > { %p26_p0 = scmp.eq.s32.totalorder %s25_s22, 0  ;;  %p35_p1 = scmp.ne.s32.totalorder %s12479_s18, %s12475_s17 }
   0x5   : > { %p36_p2 = scmp.eq.s32.totalorder %s12483_s19, 0  ;;  %p10146_p4 = scmp.ge.s32.totalorder %s12483_s19, 2 }
   0x6   : > { %s12574_s24 = scalar_select %p26_p0, %s12479_s18, %s28_s23  }
   0x7   : > { %p37_p3 = por %p36_p2, %p35_p1  ;;  %327 = sbr.rel (%p10146_p4) target bundleno = 141 (0x8d), region = 56 }
   0xe   : > { %330 = sbr.rel (!%p37_p3) target bundleno = 141 (0x8d), region = 60  ;;  %s332_s25 = sand.u32 (%p37_p3), 1, %s12479_s18  }
   0xf   : > { %s10147_s26 = sshll.u32 (%p37_p3), %s12483_s19, 3  ;;  %s12185_s27 = smul.u32 (%p37_p3), 1968, %s332_s25 }
  0x10   : > { %s12582_s30 = scalar_lea.vmem (%p37_p3), %s18040_s0, %s10147_s26 }
  0x11   : > { %v854_v0 = vld [vmem:[%s12582_s30] sm:$0xff] (%p37_p3)  ;;  %v856_v1 = vld [vmem:[%s12582_s30 + $0x10] sm:$0xff] (%p37_p3)  ;;  %s12590_s12 = scalar_lea.vmem (%p37_p3), [#allocation7], %s12185_s27 }
  0x12   : > { %v858_v2 = vld [vmem:[%s12582_s30 + $0x20] sm:$0xff] (%p37_p3)  ;;  %v860_v3 = vld [vmem:[%s12582_s30 + $0x30] sm:$0xff] (%p37_p3)  ;;  %855 = vst [vmem:[%s12590_s12] sm:$0xff] (%p37_p3), %v854_v0  ;;  %857 = vst [vmem:[%s12590_s12 + $0x8] sm:$0xff] (%p37_p3), %v856_v1 }
  0x13   : > { %v862_v4 = vld [vmem:[%s12582_s30 + $0x40] sm:$0xff] (%p37_p3)  ;;  %v864_v5 = vld [vmem:[%s12582_s30 + $0x50] sm:$0xff] (%p37_p3)  ;;  %859 = vst [vmem:[%s12590_s12 + $0x10] sm:$0xff] (%p37_p3), %v858_v2  ;;  %861 = vst [vmem:[%s12590_s12 + $0x18] sm:$0xff] (%p37_p3), %v860_v3 }
  0x14   : > { %863 = vst [vmem:[%s12590_s12 + $0x20] sm:$0xff] (%p37_p3), %v862_v4  ;;  %865 = vst [vmem:[%s12590_s12 + $0x28] sm:$0xff] (%p37_p3), %v864_v5  ;;  %v866_v6 = vld [vmem:[%s12582_s30 + $0x60] sm:$0xff] (%p37_p3)  ;;  %v868_v7 = vld [vmem:[%s12582_s30 + $0x70] sm:$0xff] (%p37_p3) }
  0x15   : > { %v870_v8 = vld [vmem:[%s12582_s30 + $0x80] sm:$0xff]  ;;  %867 = vst [vmem:[%s12590_s12 + $0x30] sm:$0xff] %v866_v6  ;;  %869 = vst [vmem:[%s12590_s12 + $0x38] sm:$0xff] %v868_v7  ;;  %v872_v9 = vld [vmem:[%s12582_s30 + $0x90] sm:$0xff] }
  0x16   : > { %871 = vst [vmem:[%s12590_s12 + $0x40] sm:$0xff] %v870_v8  ;;  %v874_v10 = vld [vmem:[%s12582_s30 + $0xa0] sm:$0xff]  ;;  %v876_v11 = vld [vmem:[%s12582_s30 + $0xb0] sm:$0xff]  ;;  %873 = vst [vmem:[%s12590_s12 + $0x48] sm:$0xff] %v872_v9 }
  0x17   : > { %875 = vst [vmem:[%s12590_s12 + $0x50] sm:$0xff] %v874_v10  ;;  %877 = vst [vmem:[%s12590_s12 + $0x58] sm:$0xff] %v876_v11  ;;  %v878_v12 = vld [vmem:[%s12582_s30 + $0xc0] sm:$0xff]  ;;  %v880_v13 = vld [vmem:[%s12582_s30 + $0xd0] sm:$0xff] }
  0x18   : > { %v882_v14 = vld [vmem:[%s12582_s30 + $0xe0] sm:$0xff]  ;;  %879 = vst [vmem:[%s12590_s12 + $0x60] sm:$0xff] %v878_v12  ;;  %881 = vst [vmem:[%s12590_s12 + $0x68] sm:$0xff] %v880_v13  ;;  %v884_v15 = vld [vmem:[%s12582_s30 + $0xf0] sm:$0xff] }
  0x19   : > { %883 = vst [vmem:[%s12590_s12 + $0x70] sm:$0xff] %v882_v14  ;;  %v886_v16 = vld [vmem:[%s12582_s30 + $0x100] sm:$0xff]  ;;  %v888_v17 = vld [vmem:[%s12582_s30 + $0x110] sm:$0xff]  ;;  %885 = vst [vmem:[%s12590_s12 + $0x78] sm:$0xff] %v884_v15 }
  0x1a   : > { %887 = vst [vmem:[%s12590_s12 + $0x80] sm:$0xff] %v886_v16  ;;  %889 = vst [vmem:[%s12590_s12 + $0x88] sm:$0xff] %v888_v17  ;;  %v890_v18 = vld [vmem:[%s12582_s30 + $0x120] sm:$0xff]  ;;  %v892_v19 = vld [vmem:[%s12582_s30 + $0x130] sm:$0xff] }
  0x1b   : > { %v894_v20 = vld [vmem:[%s12582_s30 + $0x140] sm:$0xff]  ;;  %891 = vst [vmem:[%s12590_s12 + $0x90] sm:$0xff] %v890_v18  ;;  %893 = vst [vmem:[%s12590_s12 + $0x98] sm:$0xff] %v892_v19  ;;  %v896_v21 = vld [vmem:[%s12582_s30 + $0x150] sm:$0xff] }
  0x1c   : > { %895 = vst [vmem:[%s12590_s12 + $0xa0] sm:$0xff] %v894_v20  ;;  %v898_v22 = vld [vmem:[%s12582_s30 + $0x160] sm:$0xff]  ;;  %v900_v23 = vld [vmem:[%s12582_s30 + $0x170] sm:$0xff]  ;;  %897 = vst [vmem:[%s12590_s12 + $0xa8] sm:$0xff] %v896_v21 }
  0x1d   : > { %899 = vst [vmem:[%s12590_s12 + $0xb0] sm:$0xff] %v898_v22  ;;  %901 = vst [vmem:[%s12590_s12 + $0xb8] sm:$0xff] %v900_v23  ;;  %v902_v24 = vld [vmem:[%s12582_s30 + $0x180] sm:$0xff]  ;;  %v904_v25 = vld [vmem:[%s12582_s30 + $0x190] sm:$0xff] }
  0x1e   : > { %v906_v26 = vld [vmem:[%s12582_s30 + $0x1a0] sm:$0xff]  ;;  %903 = vst [vmem:[%s12590_s12 + $0xc0] sm:$0xff] %v902_v24  ;;  %905 = vst [vmem:[%s12590_s12 + $0xc8] sm:$0xff] %v904_v25  ;;  %v908_v27 = vld [vmem:[%s12582_s30 + $0x1b0] sm:$0xff] }
  0x1f   : > { %907 = vst [vmem:[%s12590_s12 + $0xd0] sm:$0xff] %v906_v26  ;;  %v910_v28 = vld [vmem:[%s12582_s30 + $0x1c0] sm:$0xff]  ;;  %v912_v29 = vld [vmem:[%s12582_s30 + $0x1d0] sm:$0xff]  ;;  %909 = vst [vmem:[%s12590_s12 + $0xd8] sm:$0xff] %v908_v27 }
  0x20   : > { %911 = vst [vmem:[%s12590_s12 + $0xe0] sm:$0xff] %v910_v28  ;;  %913 = vst [vmem:[%s12590_s12 + $0xe8] sm:$0xff] %v912_v29  ;;  %v914_v30 = vld [vmem:[%s12582_s30 + $0x1e0] sm:$0xff]  ;;  %v916_v31 = vld [vmem:[%s12582_s30 + $0x1f0] sm:$0xff] }
  0x21   : > { %v918_v32 = vld [vmem:[%s12582_s30 + $0x200] sm:$0xff]  ;;  %915 = vst [vmem:[%s12590_s12 + $0xf0] sm:$0xff] %v914_v30  ;;  %917 = vst [vmem:[%s12590_s12 + $0xf8] sm:$0xff] %v916_v31  ;;  %v920_v33 = vld [vmem:[%s12582_s30 + $0x210] sm:$0xff] }
  0x22   : > { %919 = vst [vmem:[%s12590_s12 + $0x100] sm:$0xff] %v918_v32  ;;  %v922_v34 = vld [vmem:[%s12582_s30 + $0x220] sm:$0xff]  ;;  %v924_v35 = vld [vmem:[%s12582_s30 + $0x230] sm:$0xff]  ;;  %921 = vst [vmem:[%s12590_s12 + $0x108] sm:$0xff] %v920_v33 }
  0x23   : > { %923 = vst [vmem:[%s12590_s12 + $0x110] sm:$0xff] %v922_v34  ;;  %925 = vst [vmem:[%s12590_s12 + $0x118] sm:$0xff] %v924_v35  ;;  %v926_v36 = vld [vmem:[%s12582_s30 + $0x240] sm:$0xff]  ;;  %v928_v37 = vld [vmem:[%s12582_s30 + $0x250] sm:$0xff] }
  0x24   : > { %v930_v38 = vld [vmem:[%s12582_s30 + $0x260] sm:$0xff]  ;;  %927 = vst [vmem:[%s12590_s12 + $0x120] sm:$0xff] %v926_v36  ;;  %929 = vst [vmem:[%s12590_s12 + $0x128] sm:$0xff] %v928_v37  ;;  %v932_v39 = vld [vmem:[%s12582_s30 + $0x270] sm:$0xff] }
  0x25   : > { %931 = vst [vmem:[%s12590_s12 + $0x130] sm:$0xff] %v930_v38  ;;  %v934_v40 = vld [vmem:[%s12582_s30 + $0x280] sm:$0xff]  ;;  %v936_v41 = vld [vmem:[%s12582_s30 + $0x290] sm:$0xff]  ;;  %933 = vst [vmem:[%s12590_s12 + $0x138] sm:$0xff] %v932_v39 }
  0x26   : > { %935 = vst [vmem:[%s12590_s12 + $0x140] sm:$0xff] %v934_v40  ;;  %937 = vst [vmem:[%s12590_s12 + $0x148] sm:$0xff] %v936_v41  ;;  %v938_v42 = vld [vmem:[%s12582_s30 + $0x2a0] sm:$0xff]  ;;  %v940_v43 = vld [vmem:[%s12582_s30 + $0x2b0] sm:$0xff] }
  0x27   : > { %v942_v44 = vld [vmem:[%s12582_s30 + $0x2c0] sm:$0xff]  ;;  %939 = vst [vmem:[%s12590_s12 + $0x150] sm:$0xff] %v938_v42  ;;  %941 = vst [vmem:[%s12590_s12 + $0x158] sm:$0xff] %v940_v43  ;;  %v944_v45 = vld [vmem:[%s12582_s30 + $0x2d0] sm:$0xff] }
  0x28   : > { %943 = vst [vmem:[%s12590_s12 + $0x160] sm:$0xff] %v942_v44  ;;  %v946_v46 = vld [vmem:[%s12582_s30 + $0x2e0] sm:$0xff]  ;;  %v948_v47 = vld [vmem:[%s12582_s30 + $0x2f0] sm:$0xff]  ;;  %945 = vst [vmem:[%s12590_s12 + $0x168] sm:$0xff] %v944_v45 }
  0x29   : > { %947 = vst [vmem:[%s12590_s12 + $0x170] sm:$0xff] %v946_v46  ;;  %949 = vst [vmem:[%s12590_s12 + $0x178] sm:$0xff] %v948_v47  ;;  %v950_v48 = vld [vmem:[%s12582_s30 + $0x300] sm:$0xff]  ;;  %v952_v49 = vld [vmem:[%s12582_s30 + $0x310] sm:$0xff] }
  0x2a   : > { %v954_v50 = vld [vmem:[%s12582_s30 + $0x320] sm:$0xff]  ;;  %951 = vst [vmem:[%s12590_s12 + $0x180] sm:$0xff] %v950_v48  ;;  %953 = vst [vmem:[%s12590_s12 + $0x188] sm:$0xff] %v952_v49  ;;  %v956_v51 = vld [vmem:[%s12582_s30 + $0x330] sm:$0xff] }
  0x2b   : > { %955 = vst [vmem:[%s12590_s12 + $0x190] sm:$0xff] %v954_v50  ;;  %v958_v52 = vld [vmem:[%s12582_s30 + $0x340] sm:$0xff]  ;;  %v960_v53 = vld [vmem:[%s12582_s30 + $0x350] sm:$0xff]  ;;  %957 = vst [vmem:[%s12590_s12 + $0x198] sm:$0xff] %v956_v51 }
  0x2c   : > { %959 = vst [vmem:[%s12590_s12 + $0x1a0] sm:$0xff] %v958_v52  ;;  %961 = vst [vmem:[%s12590_s12 + $0x1a8] sm:$0xff] %v960_v53  ;;  %v962_v54 = vld [vmem:[%s12582_s30 + $0x360] sm:$0xff]  ;;  %v964_v55 = vld [vmem:[%s12582_s30 + $0x370] sm:$0xff] }
  0x2d   : > { %v966_v56 = vld [vmem:[%s12582_s30 + $0x380] sm:$0xff]  ;;  %963 = vst [vmem:[%s12590_s12 + $0x1b0] sm:$0xff] %v962_v54  ;;  %965 = vst [vmem:[%s12590_s12 + $0x1b8] sm:$0xff] %v964_v55  ;;  %v968_v57 = vld [vmem:[%s12582_s30 + $0x390] sm:$0xff] }
  0x2e   : > { %967 = vst [vmem:[%s12590_s12 + $0x1c0] sm:$0xff] %v966_v56  ;;  %v970_v58 = vld [vmem:[%s12582_s30 + $0x3a0] sm:$0xff]  ;;  %v972_v59 = vld [vmem:[%s12582_s30 + $0x3b0] sm:$0xff]  ;;  %969 = vst [vmem:[%s12590_s12 + $0x1c8] sm:$0xff] %v968_v57 }
  0x2f   : > { %971 = vst [vmem:[%s12590_s12 + $0x1d0] sm:$0xff] %v970_v58  ;;  %973 = vst [vmem:[%s12590_s12 + $0x1d8] sm:$0xff] %v972_v59  ;;  %v974_v60 = vld [vmem:[%s12582_s30 + $0x3c0] sm:$0xff]  ;;  %v976_v61 = vld [vmem:[%s12582_s30 + $0x3d0] sm:$0xff] }
  0x30   : > { %v978_v62 = vld [vmem:[%s12582_s30 + $0x3e0] sm:$0xff]  ;;  %975 = vst [vmem:[%s12590_s12 + $0x1e0] sm:$0xff] %v974_v60  ;;  %977 = vst [vmem:[%s12590_s12 + $0x1e8] sm:$0xff] %v976_v61  ;;  %v980_v63 = vld [vmem:[%s12582_s30 + $0x3f0] sm:$0xff] }
  0x31   : > { %979 = vst [vmem:[%s12590_s12 + $0x1f0] sm:$0xff] %v978_v62  ;;  %v982_v0 = vld [vmem:[%s12582_s30 + $0x400] sm:$0xff]  ;;  %v984_v1 = vld [vmem:[%s12582_s30 + $0x410] sm:$0xff]  ;;  %981 = vst [vmem:[%s12590_s12 + $0x1f8] sm:$0xff] %v980_v63 }
  0x32   : > { %983 = vst [vmem:[%s12590_s12 + $0x200] sm:$0xff] %v982_v0  ;;  %985 = vst [vmem:[%s12590_s12 + $0x208] sm:$0xff] %v984_v1  ;;  %v986_v2 = vld [vmem:[%s12582_s30 + $0x420] sm:$0xff]  ;;  %v988_v3 = vld [vmem:[%s12582_s30 + $0x430] sm:$0xff] }
  0x33   : > { %v990_v4 = vld [vmem:[%s12582_s30 + $0x440] sm:$0xff]  ;;  %987 = vst [vmem:[%s12590_s12 + $0x210] sm:$0xff] %v986_v2  ;;  %989 = vst [vmem:[%s12590_s12 + $0x218] sm:$0xff] %v988_v3  ;;  %v992_v5 = vld [vmem:[%s12582_s30 + $0x450] sm:$0xff] }
  0x34   : > { %991 = vst [vmem:[%s12590_s12 + $0x220] sm:$0xff] %v990_v4  ;;  %v994_v6 = vld [vmem:[%s12582_s30 + $0x460] sm:$0xff]  ;;  %v996_v7 = vld [vmem:[%s12582_s30 + $0x470] sm:$0xff]  ;;  %993 = vst [vmem:[%s12590_s12 + $0x228] sm:$0xff] %v992_v5 }
  0x35   : > { %995 = vst [vmem:[%s12590_s12 + $0x230] sm:$0xff] %v994_v6  ;;  %997 = vst [vmem:[%s12590_s12 + $0x238] sm:$0xff] %v996_v7  ;;  %v998_v8 = vld [vmem:[%s12582_s30 + $0x480] sm:$0xff]  ;;  %v1000_v9 = vld [vmem:[%s12582_s30 + $0x490] sm:$0xff] }
  0x36   : > { %v1002_v10 = vld [vmem:[%s12582_s30 + $0x4a0] sm:$0xff]  ;;  %999 = vst [vmem:[%s12590_s12 + $0x240] sm:$0xff] %v998_v8  ;;  %1001 = vst [vmem:[%s12590_s12 + $0x248] sm:$0xff] %v1000_v9  ;;  %v1004_v11 = vld [vmem:[%s12582_s30 + $0x4b0] sm:$0xff] }
  0x37   : > { %1003 = vst [vmem:[%s12590_s12 + $0x250] sm:$0xff] %v1002_v10  ;;  %v1006_v12 = vld [vmem:[%s12582_s30 + $0x4c0] sm:$0xff]  ;;  %v1008_v13 = vld [vmem:[%s12582_s30 + $0x4d0] sm:$0xff]  ;;  %1005 = vst [vmem:[%s12590_s12 + $0x258] sm:$0xff] %v1004_v11 }
  0x38   : > { %1007 = vst [vmem:[%s12590_s12 + $0x260] sm:$0xff] %v1006_v12  ;;  %1009 = vst [vmem:[%s12590_s12 + $0x268] sm:$0xff] %v1008_v13  ;;  %v1010_v14 = vld [vmem:[%s12582_s30 + $0x4e0] sm:$0xff]  ;;  %v1012_v15 = vld [vmem:[%s12582_s30 + $0x4f0] sm:$0xff] }
  0x39   : > { %v1014_v16 = vld [vmem:[%s12582_s30 + $0x500] sm:$0xff]  ;;  %1011 = vst [vmem:[%s12590_s12 + $0x270] sm:$0xff] %v1010_v14  ;;  %1013 = vst [vmem:[%s12590_s12 + $0x278] sm:$0xff] %v1012_v15  ;;  %v1016_v17 = vld [vmem:[%s12582_s30 + $0x510] sm:$0xff] }
  0x3a   : > { %1015 = vst [vmem:[%s12590_s12 + $0x280] sm:$0xff] %v1014_v16  ;;  %v1018_v18 = vld [vmem:[%s12582_s30 + $0x520] sm:$0xff]  ;;  %v1020_v19 = vld [vmem:[%s12582_s30 + $0x530] sm:$0xff]  ;;  %1017 = vst [vmem:[%s12590_s12 + $0x288] sm:$0xff] %v1016_v17 }
  0x3b   : > { %1019 = vst [vmem:[%s12590_s12 + $0x290] sm:$0xff] %v1018_v18  ;;  %1021 = vst [vmem:[%s12590_s12 + $0x298] sm:$0xff] %v1020_v19  ;;  %v1022_v20 = vld [vmem:[%s12582_s30 + $0x540] sm:$0xff]  ;;  %v1024_v21 = vld [vmem:[%s12582_s30 + $0x550] sm:$0xff] }
  0x3c   : > { %v1026_v22 = vld [vmem:[%s12582_s30 + $0x560] sm:$0xff]  ;;  %1023 = vst [vmem:[%s12590_s12 + $0x2a0] sm:$0xff] %v1022_v20  ;;  %1025 = vst [vmem:[%s12590_s12 + $0x2a8] sm:$0xff] %v1024_v21  ;;  %v1028_v23 = vld [vmem:[%s12582_s30 + $0x570] sm:$0xff] }
  0x3d   : > { %1027 = vst [vmem:[%s12590_s12 + $0x2b0] sm:$0xff] %v1026_v22  ;;  %v1030_v24 = vld [vmem:[%s12582_s30 + $0x580] sm:$0xff]  ;;  %v1032_v25 = vld [vmem:[%s12582_s30 + $0x590] sm:$0xff]  ;;  %1029 = vst [vmem:[%s12590_s12 + $0x2b8] sm:$0xff] %v1028_v23 }
  0x3e   : > { %1031 = vst [vmem:[%s12590_s12 + $0x2c0] sm:$0xff] %v1030_v24  ;;  %1033 = vst [vmem:[%s12590_s12 + $0x2c8] sm:$0xff] %v1032_v25  ;;  %v1034_v26 = vld [vmem:[%s12582_s30 + $0x5a0] sm:$0xff]  ;;  %v1036_v27 = vld [vmem:[%s12582_s30 + $0x5b0] sm:$0xff] }
  0x3f   : > { %v1038_v28 = vld [vmem:[%s12582_s30 + $0x5c0] sm:$0xff]  ;;  %1035 = vst [vmem:[%s12590_s12 + $0x2d0] sm:$0xff] %v1034_v26  ;;  %1037 = vst [vmem:[%s12590_s12 + $0x2d8] sm:$0xff] %v1036_v27  ;;  %v1040_v29 = vld [vmem:[%s12582_s30 + $0x5d0] sm:$0xff] }
  0x40   : > { %1039 = vst [vmem:[%s12590_s12 + $0x2e0] sm:$0xff] %v1038_v28  ;;  %v1042_v30 = vld [vmem:[%s12582_s30 + $0x5e0] sm:$0xff]  ;;  %v1044_v31 = vld [vmem:[%s12582_s30 + $0x5f0] sm:$0xff]  ;;  %1041 = vst [vmem:[%s12590_s12 + $0x2e8] sm:$0xff] %v1040_v29 }
  0x41   : > { %1043 = vst [vmem:[%s12590_s12 + $0x2f0] sm:$0xff] %v1042_v30  ;;  %1045 = vst [vmem:[%s12590_s12 + $0x2f8] sm:$0xff] %v1044_v31  ;;  %v1046_v32 = vld [vmem:[%s12582_s30 + $0x600] sm:$0xff]  ;;  %v1048_v33 = vld [vmem:[%s12582_s30 + $0x610] sm:$0xff] }
  0x42   : > { %v1050_v34 = vld [vmem:[%s12582_s30 + $0x620] sm:$0xff]  ;;  %1047 = vst [vmem:[%s12590_s12 + $0x300] sm:$0xff] %v1046_v32  ;;  %1049 = vst [vmem:[%s12590_s12 + $0x308] sm:$0xff] %v1048_v33  ;;  %v1052_v35 = vld [vmem:[%s12582_s30 + $0x630] sm:$0xff] }
  0x43   : > { %1051 = vst [vmem:[%s12590_s12 + $0x310] sm:$0xff] %v1050_v34  ;;  %v1054_v36 = vld [vmem:[%s12582_s30 + $0x640] sm:$0xff]  ;;  %v1056_v37 = vld [vmem:[%s12582_s30 + $0x650] sm:$0xff]  ;;  %1053 = vst [vmem:[%s12590_s12 + $0x318] sm:$0xff] %v1052_v35 }
  0x44   : > { %1055 = vst [vmem:[%s12590_s12 + $0x320] sm:$0xff] %v1054_v36  ;;  %1057 = vst [vmem:[%s12590_s12 + $0x328] sm:$0xff] %v1056_v37  ;;  %v1058_v38 = vld [vmem:[%s12582_s30 + $0x660] sm:$0xff]  ;;  %v1060_v39 = vld [vmem:[%s12582_s30 + $0x670] sm:$0xff] }
  0x45   : > { %v1062_v40 = vld [vmem:[%s12582_s30 + $0x680] sm:$0xff]  ;;  %1059 = vst [vmem:[%s12590_s12 + $0x330] sm:$0xff] %v1058_v38  ;;  %1061 = vst [vmem:[%s12590_s12 + $0x338] sm:$0xff] %v1060_v39  ;;  %v1064_v41 = vld [vmem:[%s12582_s30 + $0x690] sm:$0xff] }
  0x46   : > { %1063 = vst [vmem:[%s12590_s12 + $0x340] sm:$0xff] %v1062_v40  ;;  %v1066_v42 = vld [vmem:[%s12582_s30 + $0x6a0] sm:$0xff]  ;;  %v1068_v43 = vld [vmem:[%s12582_s30 + $0x6b0] sm:$0xff]  ;;  %1065 = vst [vmem:[%s12590_s12 + $0x348] sm:$0xff] %v1064_v41 }
  0x47   : > { %1067 = vst [vmem:[%s12590_s12 + $0x350] sm:$0xff] %v1066_v42  ;;  %1069 = vst [vmem:[%s12590_s12 + $0x358] sm:$0xff] %v1068_v43  ;;  %v1070_v44 = vld [vmem:[%s12582_s30 + $0x6c0] sm:$0xff]  ;;  %v1072_v45 = vld [vmem:[%s12582_s30 + $0x6d0] sm:$0xff] }
  0x48   : > { %v1074_v46 = vld [vmem:[%s12582_s30 + $0x6e0] sm:$0xff]  ;;  %1071 = vst [vmem:[%s12590_s12 + $0x360] sm:$0xff] %v1070_v44  ;;  %1073 = vst [vmem:[%s12590_s12 + $0x368] sm:$0xff] %v1072_v45  ;;  %v1076_v47 = vld [vmem:[%s12582_s30 + $0x6f0] sm:$0xff] }
  0x49   : > { %1075 = vst [vmem:[%s12590_s12 + $0x370] sm:$0xff] %v1074_v46  ;;  %v1078_v48 = vld [vmem:[%s12582_s30 + $0x700] sm:$0xff]  ;;  %v1080_v49 = vld [vmem:[%s12582_s30 + $0x710] sm:$0xff]  ;;  %1077 = vst [vmem:[%s12590_s12 + $0x378] sm:$0xff] %v1076_v47 }
  0x4a   : > { %1079 = vst [vmem:[%s12590_s12 + $0x380] sm:$0xff] %v1078_v48  ;;  %1081 = vst [vmem:[%s12590_s12 + $0x388] sm:$0xff] %v1080_v49  ;;  %v1082_v50 = vld [vmem:[%s12582_s30 + $0x720] sm:$0xff]  ;;  %v1084_v51 = vld [vmem:[%s12582_s30 + $0x730] sm:$0xff] }
  0x4b   : > { %v1086_v52 = vld [vmem:[%s12582_s30 + $0x740] sm:$0xff]  ;;  %1083 = vst [vmem:[%s12590_s12 + $0x390] sm:$0xff] %v1082_v50  ;;  %1085 = vst [vmem:[%s12590_s12 + $0x398] sm:$0xff] %v1084_v51  ;;  %v1088_v53 = vld [vmem:[%s12582_s30 + $0x750] sm:$0xff] }
  0x4c   : > { %1087 = vst [vmem:[%s12590_s12 + $0x3a0] sm:$0xff] %v1086_v52  ;;  %v1090_v54 = vld [vmem:[%s12582_s30 + $0x760] sm:$0xff]  ;;  %v1092_v55 = vld [vmem:[%s12582_s30 + $0x770] sm:$0xff]  ;;  %1089 = vst [vmem:[%s12590_s12 + $0x3a8] sm:$0xff] %v1088_v53 }
  0x4d   : > { %1091 = vst [vmem:[%s12590_s12 + $0x3b0] sm:$0xff] %v1090_v54  ;;  %1093 = vst [vmem:[%s12590_s12 + $0x3b8] sm:$0xff] %v1092_v55  ;;  %v1094_v56 = vld [vmem:[%s12582_s30 + $0x780] sm:$0xff]  ;;  %v1096_v57 = vld [vmem:[%s12582_s30 + $0x790] sm:$0xff] }
  0x4e   : > { %v1098_v58 = vld [vmem:[%s12582_s30 + $0x7a0] sm:$0xff]  ;;  %1095 = vst [vmem:[%s12590_s12 + $0x3c0] sm:$0xff] %v1094_v56  ;;  %1097 = vst [vmem:[%s12590_s12 + $0x3c8] sm:$0xff] %v1096_v57  ;;  %v1100_v59 = vld [vmem:[%s12582_s30 + $0x7b0] sm:$0xff] }
  0x4f   : > { %1099 = vst [vmem:[%s12590_s12 + $0x3d0] sm:$0xff] %v1098_v58  ;;  %v1102_v60 = vld [vmem:[%s12582_s30 + $0x7c0] sm:$0xff]  ;;  %v1104_v61 = vld [vmem:[%s12582_s30 + $0x7d0] sm:$0xff]  ;;  %1101 = vst [vmem:[%s12590_s12 + $0x3d8] sm:$0xff] %v1100_v59 }
  0x50   : > { %1103 = vst [vmem:[%s12590_s12 + $0x3e0] sm:$0xff] %v1102_v60  ;;  %1105 = vst [vmem:[%s12590_s12 + $0x3e8] sm:$0xff] %v1104_v61  ;;  %v1106_v62 = vld [vmem:[%s12582_s30 + $0x7e0] sm:$0xff]  ;;  %v1108_v63 = vld [vmem:[%s12582_s30 + $0x7f0] sm:$0xff] }
  0x51   : > { %v1110_v0 = vld [vmem:[%s12582_s30 + $0x800] sm:$0xff]  ;;  %1107 = vst [vmem:[%s12590_s12 + $0x3f0] sm:$0xff] %v1106_v62  ;;  %1109 = vst [vmem:[%s12590_s12 + $0x3f8] sm:$0xff] %v1108_v63  ;;  %v1112_v1 = vld [vmem:[%s12582_s30 + $0x810] sm:$0xff] }
  0x52   : > { %1111 = vst [vmem:[%s12590_s12 + $0x400] sm:$0xff] %v1110_v0  ;;  %v1114_v2 = vld [vmem:[%s12582_s30 + $0x820] sm:$0xff]  ;;  %v1116_v3 = vld [vmem:[%s12582_s30 + $0x830] sm:$0xff]  ;;  %1113 = vst [vmem:[%s12590_s12 + $0x408] sm:$0xff] %v1112_v1 }
  0x53   : > { %1115 = vst [vmem:[%s12590_s12 + $0x410] sm:$0xff] %v1114_v2  ;;  %1117 = vst [vmem:[%s12590_s12 + $0x418] sm:$0xff] %v1116_v3  ;;  %v1118_v4 = vld [vmem:[%s12582_s30 + $0x840] sm:$0xff]  ;;  %v1120_v5 = vld [vmem:[%s12582_s30 + $0x850] sm:$0xff] }
  0x54   : > { %v1122_v6 = vld [vmem:[%s12582_s30 + $0x860] sm:$0xff]  ;;  %1119 = vst [vmem:[%s12590_s12 + $0x420] sm:$0xff] %v1118_v4  ;;  %1121 = vst [vmem:[%s12590_s12 + $0x428] sm:$0xff] %v1120_v5  ;;  %v1124_v7 = vld [vmem:[%s12582_s30 + $0x870] sm:$0xff] }
  0x55   : > { %1123 = vst [vmem:[%s12590_s12 + $0x430] sm:$0xff] %v1122_v6  ;;  %v1126_v8 = vld [vmem:[%s12582_s30 + $0x880] sm:$0xff]  ;;  %v1128_v9 = vld [vmem:[%s12582_s30 + $0x890] sm:$0xff]  ;;  %1125 = vst [vmem:[%s12590_s12 + $0x438] sm:$0xff] %v1124_v7 }
  0x56   : > { %1127 = vst [vmem:[%s12590_s12 + $0x440] sm:$0xff] %v1126_v8  ;;  %1129 = vst [vmem:[%s12590_s12 + $0x448] sm:$0xff] %v1128_v9  ;;  %v1130_v10 = vld [vmem:[%s12582_s30 + $0x8a0] sm:$0xff]  ;;  %v1132_v11 = vld [vmem:[%s12582_s30 + $0x8b0] sm:$0xff] }
  0x57   : > { %v1134_v12 = vld [vmem:[%s12582_s30 + $0x8c0] sm:$0xff]  ;;  %1131 = vst [vmem:[%s12590_s12 + $0x450] sm:$0xff] %v1130_v10  ;;  %1133 = vst [vmem:[%s12590_s12 + $0x458] sm:$0xff] %v1132_v11  ;;  %v1136_v13 = vld [vmem:[%s12582_s30 + $0x8d0] sm:$0xff] }
  0x58   : > { %1135 = vst [vmem:[%s12590_s12 + $0x460] sm:$0xff] %v1134_v12  ;;  %v1138_v14 = vld [vmem:[%s12582_s30 + $0x8e0] sm:$0xff]  ;;  %v1140_v15 = vld [vmem:[%s12582_s30 + $0x8f0] sm:$0xff]  ;;  %1137 = vst [vmem:[%s12590_s12 + $0x468] sm:$0xff] %v1136_v13 }
  0x59   : > { %1139 = vst [vmem:[%s12590_s12 + $0x470] sm:$0xff] %v1138_v14  ;;  %1141 = vst [vmem:[%s12590_s12 + $0x478] sm:$0xff] %v1140_v15  ;;  %v1142_v16 = vld [vmem:[%s12582_s30 + $0x900] sm:$0xff]  ;;  %v1144_v17 = vld [vmem:[%s12582_s30 + $0x910] sm:$0xff] }
  0x5a   : > { %v1146_v18 = vld [vmem:[%s12582_s30 + $0x920] sm:$0xff]  ;;  %1143 = vst [vmem:[%s12590_s12 + $0x480] sm:$0xff] %v1142_v16  ;;  %1145 = vst [vmem:[%s12590_s12 + $0x488] sm:$0xff] %v1144_v17  ;;  %v1148_v19 = vld [vmem:[%s12582_s30 + $0x930] sm:$0xff] }
  0x5b   : > { %1147 = vst [vmem:[%s12590_s12 + $0x490] sm:$0xff] %v1146_v18  ;;  %v1150_v20 = vld [vmem:[%s12582_s30 + $0x940] sm:$0xff]  ;;  %v1152_v21 = vld [vmem:[%s12582_s30 + $0x950] sm:$0xff]  ;;  %1149 = vst [vmem:[%s12590_s12 + $0x498] sm:$0xff] %v1148_v19 }
  0x5c   : > { %1151 = vst [vmem:[%s12590_s12 + $0x4a0] sm:$0xff] %v1150_v20  ;;  %1153 = vst [vmem:[%s12590_s12 + $0x4a8] sm:$0xff] %v1152_v21  ;;  %v1154_v22 = vld [vmem:[%s12582_s30 + $0x960] sm:$0xff]  ;;  %v1156_v23 = vld [vmem:[%s12582_s30 + $0x970] sm:$0xff] }
  0x5d   : > { %v1158_v24 = vld [vmem:[%s12582_s30 + $0x980] sm:$0xff]  ;;  %1155 = vst [vmem:[%s12590_s12 + $0x4b0] sm:$0xff] %v1154_v22  ;;  %1157 = vst [vmem:[%s12590_s12 + $0x4b8] sm:$0xff] %v1156_v23  ;;  %v1160_v25 = vld [vmem:[%s12582_s30 + $0x990] sm:$0xff] }
  0x5e   : > { %1159 = vst [vmem:[%s12590_s12 + $0x4c0] sm:$0xff] %v1158_v24  ;;  %v1162_v26 = vld [vmem:[%s12582_s30 + $0x9a0] sm:$0xff]  ;;  %v1164_v27 = vld [vmem:[%s12582_s30 + $0x9b0] sm:$0xff]  ;;  %1161 = vst [vmem:[%s12590_s12 + $0x4c8] sm:$0xff] %v1160_v25 }
  0x5f   : > { %1163 = vst [vmem:[%s12590_s12 + $0x4d0] sm:$0xff] %v1162_v26  ;;  %1165 = vst [vmem:[%s12590_s12 + $0x4d8] sm:$0xff] %v1164_v27  ;;  %v1166_v28 = vld [vmem:[%s12582_s30 + $0x9c0] sm:$0xff]  ;;  %v1168_v29 = vld [vmem:[%s12582_s30 + $0x9d0] sm:$0xff] }
  0x60   : > { %v1170_v30 = vld [vmem:[%s12582_s30 + $0x9e0] sm:$0xff]  ;;  %1167 = vst [vmem:[%s12590_s12 + $0x4e0] sm:$0xff] %v1166_v28  ;;  %1169 = vst [vmem:[%s12590_s12 + $0x4e8] sm:$0xff] %v1168_v29  ;;  %v1172_v31 = vld [vmem:[%s12582_s30 + $0x9f0] sm:$0xff] }
  0x61   : > { %1171 = vst [vmem:[%s12590_s12 + $0x4f0] sm:$0xff] %v1170_v30  ;;  %v1174_v32 = vld [vmem:[%s12582_s30 + $0xa00] sm:$0xff]  ;;  %v1176_v33 = vld [vmem:[%s12582_s30 + $0xa10] sm:$0xff]  ;;  %1173 = vst [vmem:[%s12590_s12 + $0x4f8] sm:$0xff] %v1172_v31 }
  0x62   : > { %1175 = vst [vmem:[%s12590_s12 + $0x500] sm:$0xff] %v1174_v32  ;;  %1177 = vst [vmem:[%s12590_s12 + $0x508] sm:$0xff] %v1176_v33  ;;  %v1178_v34 = vld [vmem:[%s12582_s30 + $0xa20] sm:$0xff]  ;;  %v1180_v35 = vld [vmem:[%s12582_s30 + $0xa30] sm:$0xff] }
  0x63   : > { %v1182_v36 = vld [vmem:[%s12582_s30 + $0xa40] sm:$0xff]  ;;  %1179 = vst [vmem:[%s12590_s12 + $0x510] sm:$0xff] %v1178_v34  ;;  %1181 = vst [vmem:[%s12590_s12 + $0x518] sm:$0xff] %v1180_v35  ;;  %v1184_v37 = vld [vmem:[%s12582_s30 + $0xa50] sm:$0xff] }
  0x64   : > { %1183 = vst [vmem:[%s12590_s12 + $0x520] sm:$0xff] %v1182_v36  ;;  %v1186_v38 = vld [vmem:[%s12582_s30 + $0xa60] sm:$0xff]  ;;  %v1188_v39 = vld [vmem:[%s12582_s30 + $0xa70] sm:$0xff]  ;;  %1185 = vst [vmem:[%s12590_s12 + $0x528] sm:$0xff] %v1184_v37 }
  0x65   : > { %1187 = vst [vmem:[%s12590_s12 + $0x530] sm:$0xff] %v1186_v38  ;;  %1189 = vst [vmem:[%s12590_s12 + $0x538] sm:$0xff] %v1188_v39  ;;  %v1190_v40 = vld [vmem:[%s12582_s30 + $0xa80] sm:$0xff]  ;;  %v1192_v41 = vld [vmem:[%s12582_s30 + $0xa90] sm:$0xff] }
  0x66   : > { %v1194_v42 = vld [vmem:[%s12582_s30 + $0xaa0] sm:$0xff]  ;;  %1191 = vst [vmem:[%s12590_s12 + $0x540] sm:$0xff] %v1190_v40  ;;  %1193 = vst [vmem:[%s12590_s12 + $0x548] sm:$0xff] %v1192_v41  ;;  %v1196_v43 = vld [vmem:[%s12582_s30 + $0xab0] sm:$0xff] }
  0x67   : > { %1195 = vst [vmem:[%s12590_s12 + $0x550] sm:$0xff] %v1194_v42  ;;  %v1198_v44 = vld [vmem:[%s12582_s30 + $0xac0] sm:$0xff]  ;;  %v1200_v45 = vld [vmem:[%s12582_s30 + $0xad0] sm:$0xff]  ;;  %1197 = vst [vmem:[%s12590_s12 + $0x558] sm:$0xff] %v1196_v43 }
  0x68   : > { %1199 = vst [vmem:[%s12590_s12 + $0x560] sm:$0xff] %v1198_v44  ;;  %1201 = vst [vmem:[%s12590_s12 + $0x568] sm:$0xff] %v1200_v45  ;;  %v1202_v46 = vld [vmem:[%s12582_s30 + $0xae0] sm:$0xff]  ;;  %v1204_v47 = vld [vmem:[%s12582_s30 + $0xaf0] sm:$0xff] }
  0x69   : > { %v1206_v48 = vld [vmem:[%s12582_s30 + $0xb00] sm:$0xff]  ;;  %1203 = vst [vmem:[%s12590_s12 + $0x570] sm:$0xff] %v1202_v46  ;;  %1205 = vst [vmem:[%s12590_s12 + $0x578] sm:$0xff] %v1204_v47  ;;  %v1208_v49 = vld [vmem:[%s12582_s30 + $0xb10] sm:$0xff] }
  0x6a   : > { %1207 = vst [vmem:[%s12590_s12 + $0x580] sm:$0xff] %v1206_v48  ;;  %v1210_v50 = vld [vmem:[%s12582_s30 + $0xb20] sm:$0xff]  ;;  %v1212_v51 = vld [vmem:[%s12582_s30 + $0xb30] sm:$0xff]  ;;  %1209 = vst [vmem:[%s12590_s12 + $0x588] sm:$0xff] %v1208_v49 }
  0x6b   : > { %1211 = vst [vmem:[%s12590_s12 + $0x590] sm:$0xff] %v1210_v50  ;;  %1213 = vst [vmem:[%s12590_s12 + $0x598] sm:$0xff] %v1212_v51  ;;  %v1214_v52 = vld [vmem:[%s12582_s30 + $0xb40] sm:$0xff]  ;;  %v1216_v53 = vld [vmem:[%s12582_s30 + $0xb50] sm:$0xff] }
  0x6c   : > { %v1218_v54 = vld [vmem:[%s12582_s30 + $0xb60] sm:$0xff]  ;;  %1215 = vst [vmem:[%s12590_s12 + $0x5a0] sm:$0xff] %v1214_v52  ;;  %1217 = vst [vmem:[%s12590_s12 + $0x5a8] sm:$0xff] %v1216_v53  ;;  %v1220_v55 = vld [vmem:[%s12582_s30 + $0xb70] sm:$0xff] }
  0x6d   : > { %1219 = vst [vmem:[%s12590_s12 + $0x5b0] sm:$0xff] %v1218_v54  ;;  %v1222_v56 = vld [vmem:[%s12582_s30 + $0xb80] sm:$0xff]  ;;  %v1224_v57 = vld [vmem:[%s12582_s30 + $0xb90] sm:$0xff]  ;;  %1221 = vst [vmem:[%s12590_s12 + $0x5b8] sm:$0xff] %v1220_v55 }
  0x6e   : > { %1223 = vst [vmem:[%s12590_s12 + $0x5c0] sm:$0xff] %v1222_v56  ;;  %1225 = vst [vmem:[%s12590_s12 + $0x5c8] sm:$0xff] %v1224_v57  ;;  %v1226_v58 = vld [vmem:[%s12582_s30 + $0xba0] sm:$0xff]  ;;  %v1228_v59 = vld [vmem:[%s12582_s30 + $0xbb0] sm:$0xff] }
  0x6f   : > { %v1230_v60 = vld [vmem:[%s12582_s30 + $0xbc0] sm:$0xff]  ;;  %1227 = vst [vmem:[%s12590_s12 + $0x5d0] sm:$0xff] %v1226_v58  ;;  %1229 = vst [vmem:[%s12590_s12 + $0x5d8] sm:$0xff] %v1228_v59  ;;  %v1232_v61 = vld [vmem:[%s12582_s30 + $0xbd0] sm:$0xff] }
  0x70   : > { %1231 = vst [vmem:[%s12590_s12 + $0x5e0] sm:$0xff] %v1230_v60  ;;  %v1234_v62 = vld [vmem:[%s12582_s30 + $0xbe0] sm:$0xff]  ;;  %v1236_v63 = vld [vmem:[%s12582_s30 + $0xbf0] sm:$0xff]  ;;  %1233 = vst [vmem:[%s12590_s12 + $0x5e8] sm:$0xff] %v1232_v61 }
  0x71   : > { %1235 = vst [vmem:[%s12590_s12 + $0x5f0] sm:$0xff] %v1234_v62  ;;  %1237 = vst [vmem:[%s12590_s12 + $0x5f8] sm:$0xff] %v1236_v63  ;;  %v1238_v0 = vld [vmem:[%s12582_s30 + $0xc00] sm:$0xff]  ;;  %v1240_v1 = vld [vmem:[%s12582_s30 + $0xc10] sm:$0xff] }
  0x72   : > { %v1242_v2 = vld [vmem:[%s12582_s30 + $0xc20] sm:$0xff]  ;;  %1239 = vst [vmem:[%s12590_s12 + $0x600] sm:$0xff] %v1238_v0  ;;  %1241 = vst [vmem:[%s12590_s12 + $0x608] sm:$0xff] %v1240_v1  ;;  %v1244_v3 = vld [vmem:[%s12582_s30 + $0xc30] sm:$0xff] }
  0x73   : > { %1243 = vst [vmem:[%s12590_s12 + $0x610] sm:$0xff] %v1242_v2  ;;  %v1246_v4 = vld [vmem:[%s12582_s30 + $0xc40] sm:$0xff]  ;;  %v1248_v5 = vld [vmem:[%s12582_s30 + $0xc50] sm:$0xff]  ;;  %1245 = vst [vmem:[%s12590_s12 + $0x618] sm:$0xff] %v1244_v3 }
  0x74   : > { %1247 = vst [vmem:[%s12590_s12 + $0x620] sm:$0xff] %v1246_v4  ;;  %1249 = vst [vmem:[%s12590_s12 + $0x628] sm:$0xff] %v1248_v5  ;;  %v1250_v6 = vld [vmem:[%s12582_s30 + $0xc60] sm:$0xff]  ;;  %v1252_v7 = vld [vmem:[%s12582_s30 + $0xc70] sm:$0xff] }
  0x75   : > { %v1254_v8 = vld [vmem:[%s12582_s30 + $0xc80] sm:$0xff]  ;;  %1251 = vst [vmem:[%s12590_s12 + $0x630] sm:$0xff] %v1250_v6  ;;  %1253 = vst [vmem:[%s12590_s12 + $0x638] sm:$0xff] %v1252_v7  ;;  %v1256_v9 = vld [vmem:[%s12582_s30 + $0xc90] sm:$0xff] }
  0x76   : > { %1255 = vst [vmem:[%s12590_s12 + $0x640] sm:$0xff] %v1254_v8  ;;  %v1258_v10 = vld [vmem:[%s12582_s30 + $0xca0] sm:$0xff]  ;;  %v1260_v11 = vld [vmem:[%s12582_s30 + $0xcb0] sm:$0xff]  ;;  %1257 = vst [vmem:[%s12590_s12 + $0x648] sm:$0xff] %v1256_v9 }
  0x77   : > { %1259 = vst [vmem:[%s12590_s12 + $0x650] sm:$0xff] %v1258_v10  ;;  %1261 = vst [vmem:[%s12590_s12 + $0x658] sm:$0xff] %v1260_v11  ;;  %v1262_v12 = vld [vmem:[%s12582_s30 + $0xcc0] sm:$0xff]  ;;  %v1264_v13 = vld [vmem:[%s12582_s30 + $0xcd0] sm:$0xff] }
  0x78   : > { %v1266_v14 = vld [vmem:[%s12582_s30 + $0xce0] sm:$0xff]  ;;  %1263 = vst [vmem:[%s12590_s12 + $0x660] sm:$0xff] %v1262_v12  ;;  %1265 = vst [vmem:[%s12590_s12 + $0x668] sm:$0xff] %v1264_v13  ;;  %v1268_v15 = vld [vmem:[%s12582_s30 + $0xcf0] sm:$0xff] }
  0x79   : > { %1267 = vst [vmem:[%s12590_s12 + $0x670] sm:$0xff] %v1266_v14  ;;  %v1270_v16 = vld [vmem:[%s12582_s30 + $0xd00] sm:$0xff]  ;;  %v1272_v17 = vld [vmem:[%s12582_s30 + $0xd10] sm:$0xff]  ;;  %1269 = vst [vmem:[%s12590_s12 + $0x678] sm:$0xff] %v1268_v15 }
  0x7a   : > { %1271 = vst [vmem:[%s12590_s12 + $0x680] sm:$0xff] %v1270_v16  ;;  %1273 = vst [vmem:[%s12590_s12 + $0x688] sm:$0xff] %v1272_v17  ;;  %v1274_v18 = vld [vmem:[%s12582_s30 + $0xd20] sm:$0xff]  ;;  %v1276_v19 = vld [vmem:[%s12582_s30 + $0xd30] sm:$0xff] }
  0x7b   : > { %v1278_v20 = vld [vmem:[%s12582_s30 + $0xd40] sm:$0xff]  ;;  %1275 = vst [vmem:[%s12590_s12 + $0x690] sm:$0xff] %v1274_v18  ;;  %1277 = vst [vmem:[%s12590_s12 + $0x698] sm:$0xff] %v1276_v19  ;;  %v1280_v21 = vld [vmem:[%s12582_s30 + $0xd50] sm:$0xff] }
  0x7c   : > { %1279 = vst [vmem:[%s12590_s12 + $0x6a0] sm:$0xff] %v1278_v20  ;;  %v1282_v22 = vld [vmem:[%s12582_s30 + $0xd60] sm:$0xff]  ;;  %v1284_v23 = vld [vmem:[%s12582_s30 + $0xd70] sm:$0xff]  ;;  %1281 = vst [vmem:[%s12590_s12 + $0x6a8] sm:$0xff] %v1280_v21 }
  0x7d   : > { %1283 = vst [vmem:[%s12590_s12 + $0x6b0] sm:$0xff] %v1282_v22  ;;  %1285 = vst [vmem:[%s12590_s12 + $0x6b8] sm:$0xff] %v1284_v23  ;;  %v1286_v24 = vld [vmem:[%s12582_s30 + $0xd80] sm:$0xff]  ;;  %v1288_v25 = vld [vmem:[%s12582_s30 + $0xd90] sm:$0xff] }
  0x7e   : > { %v1290_v26 = vld [vmem:[%s12582_s30 + $0xda0] sm:$0xff]  ;;  %1287 = vst [vmem:[%s12590_s12 + $0x6c0] sm:$0xff] %v1286_v24  ;;  %1289 = vst [vmem:[%s12590_s12 + $0x6c8] sm:$0xff] %v1288_v25  ;;  %v1292_v27 = vld [vmem:[%s12582_s30 + $0xdb0] sm:$0xff] }
  0x7f   : > { %1291 = vst [vmem:[%s12590_s12 + $0x6d0] sm:$0xff] %v1290_v26  ;;  %v1294_v28 = vld [vmem:[%s12582_s30 + $0xdc0] sm:$0xff]  ;;  %v1296_v29 = vld [vmem:[%s12582_s30 + $0xdd0] sm:$0xff]  ;;  %1293 = vst [vmem:[%s12590_s12 + $0x6d8] sm:$0xff] %v1292_v27 }
  0x80   : > { %1295 = vst [vmem:[%s12590_s12 + $0x6e0] sm:$0xff] %v1294_v28  ;;  %1297 = vst [vmem:[%s12590_s12 + $0x6e8] sm:$0xff] %v1296_v29  ;;  %v1298_v30 = vld [vmem:[%s12582_s30 + $0xde0] sm:$0xff]  ;;  %v1300_v31 = vld [vmem:[%s12582_s30 + $0xdf0] sm:$0xff] }
  0x81   : > { %v1302_v32 = vld [vmem:[%s12582_s30 + $0xe00] sm:$0xff]  ;;  %1299 = vst [vmem:[%s12590_s12 + $0x6f0] sm:$0xff] %v1298_v30  ;;  %1301 = vst [vmem:[%s12590_s12 + $0x6f8] sm:$0xff] %v1300_v31  ;;  %v1304_v33 = vld [vmem:[%s12582_s30 + $0xe10] sm:$0xff] }
  0x82   : > { %1303 = vst [vmem:[%s12590_s12 + $0x700] sm:$0xff] %v1302_v32  ;;  %v1306_v34 = vld [vmem:[%s12582_s30 + $0xe20] sm:$0xff]  ;;  %v1308_v35 = vld [vmem:[%s12582_s30 + $0xe30] sm:$0xff]  ;;  %1305 = vst [vmem:[%s12590_s12 + $0x708] sm:$0xff] %v1304_v33 }
  0x83   : > { %1307 = vst [vmem:[%s12590_s12 + $0x710] sm:$0xff] %v1306_v34  ;;  %1309 = vst [vmem:[%s12590_s12 + $0x718] sm:$0xff] %v1308_v35  ;;  %v1310_v36 = vld [vmem:[%s12582_s30 + $0xe40] sm:$0xff]  ;;  %v1312_v37 = vld [vmem:[%s12582_s30 + $0xe50] sm:$0xff] }
  0x84   : > { %v1314_v38 = vld [vmem:[%s12582_s30 + $0xe60] sm:$0xff]  ;;  %1311 = vst [vmem:[%s12590_s12 + $0x720] sm:$0xff] %v1310_v36  ;;  %1313 = vst [vmem:[%s12590_s12 + $0x728] sm:$0xff] %v1312_v37  ;;  %v1316_v39 = vld [vmem:[%s12582_s30 + $0xe70] sm:$0xff] }
  0x85   : > { %1315 = vst [vmem:[%s12590_s12 + $0x730] sm:$0xff] %v1314_v38  ;;  %v1318_v40 = vld [vmem:[%s12582_s30 + $0xe80] sm:$0xff]  ;;  %v1320_v41 = vld [vmem:[%s12582_s30 + $0xe90] sm:$0xff]  ;;  %1317 = vst [vmem:[%s12590_s12 + $0x738] sm:$0xff] %v1316_v39 }
  0x86   : > { %1319 = vst [vmem:[%s12590_s12 + $0x740] sm:$0xff] %v1318_v40  ;;  %1321 = vst [vmem:[%s12590_s12 + $0x748] sm:$0xff] %v1320_v41  ;;  %v1322_v42 = vld [vmem:[%s12582_s30 + $0xea0] sm:$0xff]  ;;  %v1324_v43 = vld [vmem:[%s12582_s30 + $0xeb0] sm:$0xff] }
  0x87   : > { %v1326_v44 = vld [vmem:[%s12582_s30 + $0xec0] sm:$0xff]  ;;  %1323 = vst [vmem:[%s12590_s12 + $0x750] sm:$0xff] %v1322_v42  ;;  %1325 = vst [vmem:[%s12590_s12 + $0x758] sm:$0xff] %v1324_v43  ;;  %v1328_v45 = vld [vmem:[%s12582_s30 + $0xed0] sm:$0xff] }
  0x88   : > { %1327 = vst [vmem:[%s12590_s12 + $0x760] sm:$0xff] %v1326_v44  ;;  %v1330_v46 = vld [vmem:[%s12582_s30 + $0xee0] sm:$0xff]  ;;  %v1332_v47 = vld [vmem:[%s12582_s30 + $0xef0] sm:$0xff]  ;;  %1329 = vst [vmem:[%s12590_s12 + $0x768] sm:$0xff] %v1328_v45 }
  0x89   : > { %1331 = vst [vmem:[%s12590_s12 + $0x770] sm:$0xff] %v1330_v46  ;;  %1333 = vst [vmem:[%s12590_s12 + $0x778] sm:$0xff] %v1332_v47  ;;  %v1334_v48 = vld [vmem:[%s12582_s30 + $0xf00] sm:$0xff]  ;;  %v1336_v49 = vld [vmem:[%s12582_s30 + $0xf10] sm:$0xff] }
  0x8a   : > { %v1338_v50 = vld [vmem:[%s12582_s30 + $0xf20] sm:$0xff]  ;;  %1335 = vst [vmem:[%s12590_s12 + $0x780] sm:$0xff] %v1334_v48  ;;  %1337 = vst [vmem:[%s12590_s12 + $0x788] sm:$0xff] %v1336_v49  ;;  %v1340_v51 = vld [vmem:[%s12582_s30 + $0xf30] sm:$0xff] }
  0x8b   : > { %1339 = vst [vmem:[%s12590_s12 + $0x790] sm:$0xff] %v1338_v50  ;;  %v1342_v52 = vld [vmem:[%s12582_s30 + $0xf40] sm:$0xff]  ;;  %v1344_v53 = vld [vmem:[%s12582_s30 + $0xf50] sm:$0xff]  ;;  %1341 = vst [vmem:[%s12590_s12 + $0x798] sm:$0xff] %v1340_v51 }
  0x8c   : > { %1343 = vst [vmem:[%s12590_s12 + $0x7a0] sm:$0xff] %v1342_v52  ;;  %1345 = vst [vmem:[%s12590_s12 + $0x7a8] sm:$0xff] %v1344_v53 }
  0x8d PF: > { %p10148_p5 = scmp.ge.s32.totalorder %s12483_s19, 1  ;;  %p1350_p6 = scmp.lt.s32.totalorder %s12483_s19, 3 }
  0x8f   : > { %p1351_p7 = pnand %p10148_p5, %p1350_p6 }
  0x91   : > { %1354 = sbr.rel (%p1351_p7) target bundleno = 3437 (0xd6d), region = 98 }
  0x98   : > { %s1357_s13 = sand.u32 1, %s12475_s17   ;;  %v12485_v54 = vmov 0   ;;  %v12216_v51 = vld [vmem:[%s18042_s2 + $0x40] sm:$0xff]   ;;  %v18052_v52 = vmov 0.0   ;;  %vm12487_vm0 = vmmov 0   ;;  %p1395_p8 = scmp.lt.s32.totalorder %s10143_s20, 1 }
  0x99   : > { %12215 = vset.pattern.permute.xlu1 %v12485_v54  ;;  %12214 = vset.pattern.permute.xlu0 %v12485_v54  ;;  %s12186_s14 = smul.u32 1968, %s1357_s13 }
  0x9a   : > { %11493 = vmatprep.subr.bf16.mxu0 %v18052_v52  ;;  %11537 = vmatprep.subr.bf16.mxu1 %v18052_v52  ;;  %s18587_s20 = smov (!%p1395_p8, %s10143_s20), 1 }
  0x9b   : > { %s13081_s15 = scalar_lea.vmem [#allocation7], %s12186_s14  ;;  %11494 = vmatpush3.bf16.msra.mxu0 %v12216_v51  ;;  %11509 = vmatprep.mubr.msk.bf16.mxu0 %vm12487_vm0, %v18052_v52  ;;  %s10149_s30 = sshll.u32 %s18587_s20, 3 }
  0x9c   : > { %v13084_v55 = vld [vmem:[%s13081_s15 + $0x40] sm:$0xff]  ;;  %v13119_v3 = vld [vmem:[%s13081_s15 + $0x28] sm:$0xff]  ;;  %v13155_v15 = vld [vmem:[%s13081_s15 + $0x30] sm:$0xff]  ;;  %11495 = vmatprep.subr.bf16.mxu0 %v18052_v52  ;;  %11553 = vmatprep.mubr.msk.bf16.mxu1 %vm12487_vm0, %v18052_v52  ;;  %s1398_s14 = scalar_lea.vmem %s18051_s11, %s10149_s30 }
  0x9d   : > { %v1400_v56 = vld [vmem:[%s13081_s15] sm:$0xff]  ;;  %1425 = vperm.xlu1 %12215, %v13084_v55   ;;  %v10151_v4 = vld [vmem:[%s13081_s15 + $0x8] sm:$0xff]  ;;  %v10164_v16 = vld [vmem:[%s13081_s15 + $0x10] sm:$0xff] }
  0x9e   : > { %1415 = vperm.xlu0 %12214, %v1400_v56   ;;  %v13089_v57 = vld [vmem:[%s13081_s15 + $0x60] sm:$0xff]  ;;  %v13124_v5 = vld [vmem:[%s13081_s15 + $0x68] sm:$0xff]  ;;  %v10167_v17 = vld [vmem:[%s13081_s15 + $0x70] sm:$0xff] }
  0x9f   : > { %v13092_v58 = vld [vmem:[%s13081_s15 + $0x20] sm:$0xff]  ;;  %v13127_v6 = vld [vmem:[%s13081_s15 + $0x48] sm:$0xff]  ;;  %v10166_v18 = vld [vmem:[%s13081_s15 + $0x50] sm:$0xff] }
  0xa0   : > { %v13097_v59 = vld [vmem:[%s13081_s15 + $0xa0] sm:$0xff]  ;;  %v13131_v7 = vld [vmem:[%s13081_s15 + $0xa8] sm:$0xff]  ;;  %v10169_v19 = vld [vmem:[%s13081_s15 + $0xb0] sm:$0xff] }
  0xa1   : > { %1430 = vperm.xlu1 %12215, %v13089_v57   ;;  %v1404_v60 = vld [vmem:[%s13081_s15 + $0x80] sm:$0xff]  ;;  %v10155_v8 = vld [vmem:[%s13081_s15 + $0x88] sm:$0xff]  ;;  %v10168_v20 = vld [vmem:[%s13081_s15 + $0x90] sm:$0xff] }
  0xa2   : > { %1420 = vperm.xlu0 %12214, %v13092_v58   ;;  %v13102_v61 = vld [vmem:[%s13081_s15 + $0xe0] sm:$0xff]  ;;  %v13137_v9 = vld [vmem:[%s13081_s15 + $0xe8] sm:$0xff]  ;;  %v10171_v21 = vld [vmem:[%s13081_s15 + $0xf0] sm:$0xff] }
  0xa3   : > { %v13105_v62 = vld [vmem:[%s13081_s15 + $0xc0] sm:$0xff]  ;;  %v13140_v10 = vld [vmem:[%s13081_s15 + $0xc8] sm:$0xff]  ;;  %v10170_v22 = vld [vmem:[%s13081_s15 + $0xd0] sm:$0xff] }
  0xa4   : > { %v13110_v63 = vld [vmem:[%s13081_s15 + $0x120] sm:$0xff]  ;;  %v13144_v11 = vld [vmem:[%s13081_s15 + $0x128] sm:$0xff]  ;;  %v13167_v23 = vld [vmem:[%s13081_s15 + $0x130] sm:$0xff] }
  0xa5   : > { %1440 = vperm.xlu1 %12215, %v13097_v59   ;;  %v1408_v0 = vld [vmem:[%s13081_s15 + $0x100] sm:$0xff]  ;;  %v10159_v12 = vld [vmem:[%s13081_s15 + $0x108] sm:$0xff]  ;;  %v10172_v24 = vld [vmem:[%s13081_s15 + $0x110] sm:$0xff] }
  0xa6   : > { %1435 = vperm.xlu0 %12214, %v1404_v60   ;;  %v1411_v1 = vld [vmem:[%s13081_s15 + $0x160] sm:$0xff]  ;;  %v10162_v13 = vld [vmem:[%s13081_s15 + $0x168] sm:$0xff]  ;;  %v10175_v25 = vld [vmem:[%s13081_s15 + $0x170] sm:$0xff] }
  0xa7   : > { %v13116_v2 = vld [vmem:[%s13081_s15 + $0x140] sm:$0xff]  ;;  %v13151_v14 = vld [vmem:[%s13081_s15 + $0x148] sm:$0xff]  ;;  %v13172_v26 = vld [vmem:[%s13081_s15 + $0x150] sm:$0xff] }
  0xa8   : > { %v10178_v27 = vld [vmem:[%s13081_s15 + $0x38] sm:$0xff]  ;;  %v13197_v38 = vld [vmem:[%s13081_s15 + $0x1a0] sm:$0xff]  ;;  %v13202_v39 = vld [vmem:[%s13081_s15 + $0x1a8] sm:$0xff] }
  0xa9   : > { %1450 = vperm.xlu1 %12215, %v13102_v61   ;;  %v10177_v28 = vld [vmem:[%s13081_s15 + $0x18] sm:$0xff]  ;;  %v10269_v40 = vld [vmem:[%s13081_s15 + $0x180] sm:$0xff]  ;;  %v13211_v41 = vld [vmem:[%s13081_s15 + $0x1b0] sm:$0xff] }
  0xaa   : > { %1445 = vperm.xlu0 %12214, %v13105_v62   ;;  %v10180_v29 = vld [vmem:[%s13081_s15 + $0x78] sm:$0xff]  ;;  %v10282_v42 = vld [vmem:[%s13081_s15 + $0x188] sm:$0xff]  ;;  %v10295_v46 = vld [vmem:[%s13081_s15 + $0x190] sm:$0xff] }
  0xab   : > { %v10179_v30 = vld [vmem:[%s13081_s15 + $0x58] sm:$0xff]  ;;  %v13254_v60 = vld [vmem:[%s13081_s15 + $0x1c0] sm:$0xff] }
  0xac   : > { %v10182_v31 = vld [vmem:[%s13081_s15 + $0xb8] sm:$0xff] }
  0xad   : > { %1460 = vperm.xlu1 %12215, %v13110_v63   ;;  %v10181_v32 = vld [vmem:[%s13081_s15 + $0x98] sm:$0xff] }
  0xae   : > { %1455 = vperm.xlu0 %12214, %v1408_v0   ;;  %v10184_v33 = vld [vmem:[%s13081_s15 + $0xf8] sm:$0xff] }
  0xaf   : > { %v10183_v34 = vld [vmem:[%s13081_s15 + $0xd8] sm:$0xff] }
  0xb0   : > { %v13185_v35 = vld [vmem:[%s13081_s15 + $0x138] sm:$0xff] }
  0xb1   : > { %1470 = vperm.xlu1 %12215, %v1411_v1   ;;  %v10185_v36 = vld [vmem:[%s13081_s15 + $0x118] sm:$0xff] }
  0xb2   : > { %1465 = vperm.xlu0 %12214, %v13116_v2   ;;  %v13189_v37 = vld [vmem:[%s13081_s15 + $0x158] sm:$0xff] }
  0xb3   : > { %v13221_v45 = vld [vmem:[%s13081_s15 + $0x1b8] sm:$0xff] }
  0xb4   : > { %v12217_v56 = vld [vmem:[%s18042_s2 + $0x48] sm:$0xff]  }
  0xb5   : > { %1522 = vperm.xlu1 %12215, %v13119_v3   ;;  %11496 = vmatpush3.bf16.msra.mxu0 %v12217_v56  ;;  %v13389_v56 = vld [vmem:[%s13081_s15 + $0x230] sm:$0xff] }
  0xb6   : > { %1517 = vperm.xlu0 %12214, %v10151_v4   ;;  %11497 = vmatprep.subr.bf16.mxu0 %v18052_v52 }
  0xb9   : > { %1532 = vperm.xlu1 %12215, %v13124_v5  }
  0xba   : > { %1527 = vperm.xlu0 %12214, %v13127_v6  }
  0xbd   : > { %1542 = vperm.xlu1 %12215, %v13131_v7  }
  0xbe   : > { %1537 = vperm.xlu0 %12214, %v10155_v8   ;;  %v13288_v8 = vld [vmem:[%s13081_s15 + $0x220] sm:$0xff] }
  0xc1   : > { %1552 = vperm.xlu1 %12215, %v13137_v9  }
  0xc2   : > { %1547 = vperm.xlu0 %12214, %v13140_v10  }
  0xc5   : > { %1562 = vperm.xlu1 %12215, %v13144_v11  }
  0xc6   : > { %1557 = vperm.xlu0 %12214, %v10159_v12   ;;  %v12222_v12 = vld [vmem:[%s18042_s2] sm:$0xff]  }
  0xc7   : > { %11538 = vmatpush3.bf16.msra.mxu1 %v12222_v12 }
  0xc8   : > { %11539 = vmatprep.subr.bf16.mxu1 %v18052_v52 }
  0xc9   : > { %1572 = vperm.xlu1 %12215, %v10162_v13  }
  0xca   : > { %1567 = vperm.xlu0 %12214, %v13151_v14  }
  0xcd   : > { %1624 = vperm.xlu1 %12215, %v13155_v15  }
  0xce   : > { %1619 = vperm.xlu0 %12214, %v10164_v16   ;;  %v12223_v16 = vld [vmem:[%s18042_s2 + $0x70] sm:$0xff]  }
  0xd1   : > { %1634 = vperm.xlu1 %12215, %v10167_v17   ;;  %v12224_v17 = vld [vmem:[%s18042_s2 + $0x8] sm:$0xff]  }
  0xd2   : > { %1629 = vperm.xlu0 %12214, %v10166_v18   ;;  %11540 = vmatpush3.bf16.msra.mxu1 %v12224_v17 }
  0xd3   : > { %11541 = vmatprep.subr.bf16.mxu1 %v18052_v52 }
  0xd5   : > { %1644 = vperm.xlu1 %12215, %v10169_v19  }
  0xd6   : > { %1639 = vperm.xlu0 %12214, %v10168_v20   ;;  %v12225_v20 = vld [vmem:[%s18042_s2 + $0x78] sm:$0xff]  }
  0xd9   : > { %1654 = vperm.xlu1 %12215, %v10171_v21   ;;  %v12226_v21 = vld [vmem:[%s18042_s2 + $0x10] sm:$0xff]  }
  0xda   : > { %1649 = vperm.xlu0 %12214, %v10170_v22   ;;  %11542 = vmatpush3.bf16.msra.mxu1 %v12226_v21  ;;  %v10299_v21 = vld [vmem:[%s13081_s15 + $0x210] sm:$0xff] }
  0xdb   : > { %11543 = vmatprep.subr.bf16.mxu1 %v18052_v52 }
  0xdd   : > { %1664 = vperm.xlu1 %12215, %v13167_v23  }
  0xde   : > { %1659 = vperm.xlu0 %12214, %v10172_v24  }
  0xe1   : > { %1674 = vperm.xlu1 %12215, %v10175_v25   ;;  %v13341_v25 = vld [vmem:[%s13081_s15 + $0x1c8] sm:$0xff] }
  0xe2   : > { %1669 = vperm.xlu0 %12214, %v13172_v26  }
  0xe5   : > { %1726 = vperm.xlu1 %12215, %v10178_v27  }
  0xe6   : > { %1721 = vperm.xlu0 %12214, %v10177_v28  }
  0xe9   : > { %1736 = vperm.xlu1 %12215, %v10180_v29  }
  0xea   : > { %1731 = vperm.xlu0 %12214, %v10179_v30  }
  0xed   : > { %1746 = vperm.xlu1 %12215, %v10182_v31  }
  0xee   : > { %1741 = vperm.xlu0 %12214, %v10181_v32  }
  0xf1   : > { %1756 = vperm.xlu1 %12215, %v10184_v33   ;;  %v12404_v33 = vld [vmem:[%s13081_s15 + $0x48] sm:$0xff] }
  0xf2   : > { %1751 = vperm.xlu0 %12214, %v10183_v34  }
  0xf5   : > { %1766 = vperm.xlu1 %12215, %v13185_v35  }
  0xf6   : > { %1761 = vperm.xlu0 %12214, %v10185_v36  }
  0xf9   : > { %1828 = vperm.xlu1 %12215, %v13084_v55   ;;  %v10308_v55 = vld [vmem:[%s13081_s15 + $0x198] sm:$0xff] }
  0xfa   : > { %1771 = vperm.xlu0 %12214, %v13189_v37  }
  0xfd   : > { %1823 = vperm.xlu1 %12215, %v13092_v58  }
  0xfe   : > { %1848 = vperm.xlu0 %12214, %v13105_v62  }
 0x101   : > { %1930 = vperm.xlu1 %12215, %v13127_v6  }
 0x102   : > { %1843 = vperm.xlu0 %12214, %v13097_v59  }
 0x105   : > { %2481 = vperm.xlu1 %12215, %v13197_v38  }
 0x106   : > { %1950 = vperm.xlu0 %12214, %v13140_v10   ;;  %v12221_v10 = vld [vmem:[%s18042_s2 + $0x68] sm:$0xff]  }
 0x109   : > { %1925 = vperm.xlu1 %12215, %v13119_v3   ;;  %v12402_v3 = vld [vmem:[%s13081_s15 + $0x40] sm:$0xff] }
 0x10a   : > { %2583 = vperm.xlu0 %12214, %v13202_v39  }
 0x10d   : > { %2032 = vperm.xlu1 %12215, %v10166_v18  }
 0x10e   : > { %1945 = vperm.xlu0 %12214, %v13131_v7   ;;  %v12403_v7 = vld [vmem:[%s13081_s15 + $0xc0] sm:$0xff] }
 0x111   : > { %2476 = vperm.xlu1 %12215, %v10269_v40   ;;  %v12405_v40 = vld [vmem:[%s13081_s15 + $0xc8] sm:$0xff] }
 0x112   : > { %2052 = vperm.xlu0 %12214, %v10170_v22  }
 0x115   : > { %2685 = vperm.xlu1 %12215, %v13211_v41  }
 0x116   : > { %2578 = vperm.xlu0 %12214, %v10282_v42   ;;  %v10286_v42 = vld [vmem:[%s13081_s15 + $0x208] sm:$0xff] }
 0x119   : > { %2047 = vperm.xlu1 %12215, %v10169_v19  }
 0x11a   : > { %2027 = vperm.xlu0 %12214, %v13155_v15   ;;  %v13307_v15 = vld [vmem:[%s13081_s15 + $0x2a0] sm:$0xff] }
 0x11c   : > { %v13216_v43 = vpop.permute.xlu1 %1425 }
 0x11d   : > { %18141 = vst [vmem:[#allocation8_spill] sm:$0xff] %v13216_v43  ;;  %v13218_v44 = vpop.permute.xlu0 %1415  ;;  %2154 = vperm.xlu1 %12215, %v10183_v34   ;;  %v12229_v34 = vld [vmem:[%s18042_s2 + $0x28] sm:$0xff]   ;;  %v10356_v43 = vld [vmem:[%s13081_s15 + $0x2d0] sm:$0xff] }
 0x11e   : > { %2134 = vperm.xlu0 %12214, %v10179_v30   ;;  %v12228_v30 = vld [vmem:[%s18042_s2 + $0x20] sm:$0xff]  }
 0x120   : > { %v13224_v47 = vpop.permute.xlu1 %1430 }
 0x121   : > { %18142 = vst [vmem:[#allocation9_spill] sm:$0xff] %v13224_v47  ;;  %v13226_v48 = vpop.permute.xlu0 %1420  ;;  %2787 = vperm.xlu1 %12215, %v13221_v45  }
 0x122   : > { %2680 = vperm.xlu0 %12214, %v10295_v46   ;;  %v10277_v46 = vld [vmem:[%s13081_s15 + $0x280] sm:$0xff] }
 0x124   : > { %v13229_v49 = vpop.permute.xlu1 %1440 }
 0x125   : > { %v13231_v50 = vpop.permute.xlu0 %1435  ;;  %2129 = vperm.xlu1 %12215, %v10178_v27   ;;  %v12227_v27 = vld [vmem:[%s18042_s2 + $0x18] sm:$0xff]  }
 0x126   : > { %1868 = vperm.xlu0 %12214, %v13116_v2   ;;  %11544 = vmatpush3.bf16.msra.mxu1 %v12227_v27 }
 0x127   : > { %11545 = vmatprep.subr.bf16.mxu1 %v18052_v52 }
 0x128   : > { %v13239_v53 = vpop.permute.xlu1 %1450 }
 0x129   : > { %18143 = vst [vmem:[#allocation10_spill] sm:$0xff] %v13239_v53  ;;  %v13241_v54 = vpop.permute.xlu0 %1445  ;;  %2236 = vperm.xlu1 %12215, %v13089_v57   ;;  %v12218_v57 = vld [vmem:[%s18042_s2 + $0x50] sm:$0xff]  }
 0x12a   : > { %18144 = vst [vmem:[#allocation11_spill] sm:$0xff] %v13241_v54  ;;  %2149 = vperm.xlu0 %12214, %v10182_v31   ;;  %11498 = vmatpush3.bf16.msra.mxu0 %v12218_v57  ;;  %v10290_v57 = vld [vmem:[%s13081_s15 + $0x288] sm:$0xff] }
 0x12b   : > { %11499 = vmatprep.subr.bf16.mxu0 %v18052_v52  ;;  %11546 = vmatpush3.bf16.msra.mxu1 %v12228_v30 }
 0x12c   : > { %v13249_v58 = vpop.permute.xlu1 %1460  ;;  %11547 = vmatprep.subr.bf16.mxu1 %v18052_v52 }
 0x12d   : > { %v13251_v59 = vpop.permute.xlu0 %1455  ;;  %2782 = vperm.xlu1 %12215, %v10308_v55  }
 0x12e   : > { %18145 = vst [vmem:[#allocation12_spill] sm:$0xff] %v13251_v59  ;;  %2256 = vperm.xlu0 %12214, %v13102_v61   ;;  %v12219_v61 = vld [vmem:[%s18042_s2 + $0x58] sm:$0xff]  }
 0x12f   : > { %11500 = vmatpush3.bf16.msra.mxu0 %v12219_v61  ;;  %11548 = vmatpush3.bf16.msra.mxu1 %v12229_v34  ;;  %v12231_v61 = vld [vmem:[%s18042_s2 + $0x38] sm:$0xff]  }
 0x130   : > { %v13261_v62 = vpop.permute.xlu1 %1470  ;;  %11501 = vmatprep.subr.bf16.mxu0 %v18052_v52  ;;  %11549 = vmatprep.subr.bf16.mxu1 %v18052_v52 }
 0x131   : > { %18146 = vst [vmem:[#allocation13_spill] sm:$0xff] %v13261_v62  ;;  %v13263_v0 = vpop.permute.xlu0 %1465  ;;  %1863 = vperm.xlu1 %12215, %v13110_v63   ;;  %v12220_v63 = vld [vmem:[%s18042_s2 + $0x60] sm:$0xff]  }
 0x132   : > { %18147 = vst [vmem:[#allocation14_spill] sm:$0xff] %v13263_v0  ;;  %2889 = vperm.xlu0 %12214, %v13254_v60   ;;  %v13484_v0 = vld [vmem:[%s13081_s15 + $0x248] sm:$0xff] }
 0x133   : > { %11502 = vmatpush3.bf16.msra.mxu0 %v12220_v63 }
 0x134   : > { %v13271_v1 = vpop.permute.xlu1 %1522  ;;  %11503 = vmatprep.subr.bf16.mxu0 %v18052_v52 }
 0x135   : > { %v13273_v2 = vpop.permute.xlu0 %1517  ;;  %2231 = vperm.xlu1 %12215, %v12402_v3  }
 0x136   : > { %1970 = vperm.xlu0 %12214, %v13151_v14  }
 0x137   : > { %11504 = vmatpush3.bf16.msra.mxu0 %v12221_v10 }
 0x138   : > { %v13281_v4 = vpop.permute.xlu1 %1532  ;;  %11505 = vmatprep.subr.bf16.mxu0 %v18052_v52 }
 0x139   : > { %18148 = vst [vmem:[#allocation15_spill] sm:$0xff] %v13281_v4  ;;  %v13283_v6 = vpop.permute.xlu0 %1527  ;;  %2338 = vperm.xlu1 %12215, %v13124_v5   ;;  %v13304_v5 = vld [vmem:[%s13081_s15 + $0x228] sm:$0xff] }
 0x13a   : > { %18149 = vst [vmem:[#allocation16_spill] sm:$0xff] %v13283_v6  ;;  %2251 = vperm.xlu0 %12214, %v12403_v7   ;;  %v13402_v7 = vld [vmem:[%s13081_s15 + $0x2b0] sm:$0xff]  ;;  %v13523_v4 = vld [vmem:[%s13081_s15 + $0x3a8] sm:$0xff] }
 0x13b   : > { %11506 = vmatpush3.bf16.msra.mxu0 %v12223_v16  ;;  %v10348_v16 = vld [vmem:[%s13081_s15 + $0x1d0] sm:$0xff] }
 0x13c   : > { %v13297_v13 = vpop.permute.xlu1 %1542  ;;  %11507 = vmatprep.subr.bf16.mxu0 %v18052_v52 }
 0x13d   : > { %v13299_v14 = vpop.permute.xlu0 %1537  ;;  %2501 = vperm.xlu1 %12215, %v13288_v8  }
 0x13e   : > { %2358 = vperm.xlu0 %12214, %v13137_v9   ;;  %v13324_v9 = vld [vmem:[%s13081_s15 + $0x2a8] sm:$0xff] }
 0x13f   : > { %11508 = vmatpush3.bf16.msra.mxu0 %v12225_v20 }
 0x140   : > { %v13317_v18 = vpop.permute.xlu1 %1552  ;;  %11581 = vmatprep.subr.bf16.mxu0 %v18052_v52 }
 0x141   : > { %18150 = vst [vmem:[#allocation17_spill] sm:$0xff] %v13317_v18  ;;  %v13319_v19 = vpop.permute.xlu0 %1547  ;;  %2603 = vperm.xlu1 %12215, %v13304_v5  }
 0x142   : > { %18151 = vst [vmem:[#allocation18_spill] sm:$0xff] %v13319_v19  ;;  %2521 = vperm.xlu0 %12214, %v13307_v15   ;;  %v13545_v19 = vld [vmem:[%s18041_s1 + $0x1] ss:$0 sm:$0xff] }
 0x144   : > { %v13334_v22 = vpop.permute.xlu1 %1562 }
 0x145   : > { %v13336_v24 = vpop.permute.xlu0 %1557  ;;  %2884 = vperm.xlu1 %12215, %v13197_v38  }
 0x146   : > { %18152 = vst [vmem:[#allocation19_spill] sm:$0xff] %v13336_v24  ;;  %2623 = vperm.xlu0 %12214, %v13324_v9   ;;  %v13582_v24 = vld [vmem:[%s18041_s1 + $0x4] ss:$0 sm:$0xff] }
 0x148   : > { %v13352_v28 = vpop.permute.xlu1 %1572 }
 0x149   : > { %18153 = vst [vmem:[#allocation20_spill] sm:$0xff] %v13352_v28  ;;  %v13354_v29 = vpop.permute.xlu0 %1567  ;;  %1965 = vperm.xlu1 %12215, %v13144_v11   ;;  %v10273_v11 = vld [vmem:[%s13081_s15 + $0x200] sm:$0xff] }
 0x14a   : > { %18154 = vst [vmem:[#allocation21_spill] sm:$0xff] %v13354_v29  ;;  %2991 = vperm.xlu0 %12214, %v13341_v25  }
 0x14c   : > { %v13362_v31 = vpop.permute.xlu1 %1624 }
 0x14d   : > { %v13364_v32 = vpop.permute.xlu0 %1619  ;;  %2333 = vperm.xlu1 %12215, %v12404_v33   ;;  %v10303_v33 = vld [vmem:[%s13081_s15 + $0x290] sm:$0xff] }
 0x14e   : > { %2072 = vperm.xlu0 %12214, %v13172_v26   ;;  %v12230_v26 = vld [vmem:[%s18042_s2 + $0x30] sm:$0xff]  }
 0x14f   : > { %11550 = vmatpush3.bf16.msra.mxu1 %v12230_v26 }
 0x150   : > { %v13373_v36 = vpop.permute.xlu1 %1634  ;;  %11551 = vmatprep.subr.bf16.mxu1 %v18052_v52 }
 0x151   : > { %18155 = vst [vmem:[#allocation22_spill] sm:$0xff] %v13373_v36  ;;  %v13375_v38 = vpop.permute.xlu0 %1629  ;;  %2496 = vperm.xlu1 %12215, %v10273_v11  }
 0x152   : > { %18156 = vst [vmem:[#allocation23_spill] sm:$0xff] %v13375_v38  ;;  %2353 = vperm.xlu0 %12214, %v12405_v40  }
 0x153   : > { %11552 = vmatpush3.bf16.msra.mxu1 %v12231_v61 }
 0x154   : > { %v13384_v51 = vpop.permute.xlu1 %1644  ;;  %11625 = vmatprep.subr.bf16.mxu1 %v18052_v52 }
 0x155   : > { %v13386_v55 = vpop.permute.xlu0 %1639  ;;  %2598 = vperm.xlu1 %12215, %v10286_v42  }
 0x156   : > { %2516 = vperm.xlu0 %12214, %v10277_v46  }
 0x158   : > { %v13396_v3 = vpop.permute.xlu1 %1654 }
 0x159   : > { %18157 = vst [vmem:[#allocation24_spill] sm:$0xff] %v13396_v3  ;;  %v13398_v63 = vpop.permute.xlu0 %1649  ;;  %2705 = vperm.xlu1 %12215, %v13389_v56   ;;  %v13514_v3 = vld [vmem:[%s13081_s15 + $0x3a0] sm:$0xff] }
 0x15a   : > { %18158 = vst [vmem:[#allocation25_spill] sm:$0xff] %v13398_v63  ;;  %2618 = vperm.xlu0 %12214, %v10290_v57   ;;  %v10312_v57 = vld [vmem:[%s13081_s15 + $0x218] sm:$0xff]  ;;  %v10352_v63 = vld [vmem:[%s13081_s15 + $0x250] sm:$0xff] }
 0x15c   : > { %v13405_v10 = vpop.permute.xlu1 %1664 }
 0x15d   : > { %v13407_v12 = vpop.permute.xlu0 %1659  ;;  %2986 = vperm.xlu1 %12215, %v13202_v39   ;;  %v13424_v39 = vld [vmem:[%s13081_s15 + $0x238] sm:$0xff] }
 0x15e   : > { %18159 = vst [vmem:[#allocation26_spill] sm:$0xff] %v13407_v12  ;;  %2725 = vperm.xlu0 %12214, %v13402_v7  }
 0x160   : > { %v13412_v17 = vpop.permute.xlu1 %1674 }
 0x161   : > { %18160 = vst [vmem:[#allocation27_spill] sm:$0xff] %v13412_v17  ;;  %v13414_v20 = vpop.permute.xlu0 %1669  ;;  %2067 = vperm.xlu1 %12215, %v13167_v23   ;;  %v13433_v23 = vld [vmem:[%s13081_s15 + $0x2b8] sm:$0xff] }
 0x162   : > { %18161 = vst [vmem:[#allocation28_spill] sm:$0xff] %v13414_v20  ;;  %3093 = vperm.xlu0 %12214, %v10348_v16  }
 0x164   : > { %v13418_v27 = vpop.permute.xlu1 %1726 }
 0x165   : > { %v13420_v30 = vpop.permute.xlu0 %1721  ;;  %2700 = vperm.xlu1 %12215, %v10299_v21   ;;  %v12406_v21 = vld [vmem:[%s13081_s15 + $0x160] sm:$0xff] }
 0x166   : > { %2174 = vperm.xlu0 %12214, %v13189_v37   ;;  %v10361_v37 = vld [vmem:[%s13081_s15 + $0x1d8] sm:$0xff] }
 0x168   : > { %v13427_v11 = vpop.permute.xlu1 %1736 }
 0x169   : > { %18162 = vst [vmem:[#allocation29_spill] sm:$0xff] %v13427_v11  ;;  %v13429_v34 = vpop.permute.xlu0 %1731  ;;  %2807 = vperm.xlu1 %12215, %v13424_v39  }
 0x16a   : > { %18163 = vst [vmem:[#allocation30_spill] sm:$0xff] %v13429_v34  ;;  %2720 = vperm.xlu0 %12214, %v10303_v33   ;;  %v10316_v33 = vld [vmem:[%s13081_s15 + $0x298] sm:$0xff]  ;;  %v12409_v34 = vld [vmem:[%s13081_s15 + $0x148] sm:$0xff] }
 0x16c   : > { %v13435_v40 = vpop.permute.xlu1 %1746 }
 0x16d   : > { %v13437_v42 = vpop.permute.xlu0 %1741  ;;  %3088 = vperm.xlu1 %12215, %v13211_v41   ;;  %v13454_v41 = vld [vmem:[%s13081_s15 + $0x240] sm:$0xff] }
 0x16e   : > { %2827 = vperm.xlu0 %12214, %v13433_v23  }
 0x170   : > { %v13442_v46 = vpop.permute.xlu1 %1756 }
 0x171   : > { %18164 = vst [vmem:[#allocation31_spill] sm:$0xff] %v13442_v46  ;;  %v13444_v26 = vpop.permute.xlu0 %1751  ;;  %2169 = vperm.xlu1 %12215, %v13185_v35   ;;  %v13463_v35 = vld [vmem:[%s13081_s15 + $0x2c0] sm:$0xff]  ;;  %v10387_v46 = vld [vmem:[%s13081_s15 + $0x1e8] sm:$0xff] }
 0x172   : > { %18165 = vst [vmem:[#allocation32_spill] sm:$0xff] %v13444_v26  ;;  %3195 = vperm.xlu0 %12214, %v10361_v37  }
 0x174   : > { %v13448_v61 = vpop.permute.xlu1 %1766 }
 0x175   : > { %18166 = vst [vmem:[#allocation33_spill] sm:$0xff] %v13448_v61  ;;  %v13450_v16 = vpop.permute.xlu0 %1761  ;;  %2802 = vperm.xlu1 %12215, %v10312_v57  }
 0x176   : > { %18167 = vst [vmem:[#allocation34_spill] sm:$0xff] %v13450_v16  ;;  %2276 = vperm.xlu0 %12214, %v12406_v21   ;;  %v10374_v21 = vld [vmem:[%s13081_s15 + $0x1e0] sm:$0xff] }
 0x177   : > { %v13564_v16 = vld [vmem:[%s18041_s1] ss:$0 sm:$0xff] }
 0x178   : > { %v13457_v52 = vpop.permute.xlu1 %1828  ;;  %v1478_v12 = vmul.f32 %v13564_v16, %v13226_v48 }
 0x179   : > { %v13459_v17 = vpop.permute.xlu0 %1771  ;;  %2909 = vperm.xlu1 %12215, %v13454_v41  }
 0x17a   : > { %18168 = vst [vmem:[#allocation35_spill] sm:$0xff] %v13459_v17  ;;  %2822 = vperm.xlu0 %12214, %v10316_v33   ;;  %v12407_v17 = vld [vmem:[%s13081_s15 + $0x140] sm:$0xff] }
 0x17c   : > { %v13465_v37 = vpop.permute.xlu1 %1823 }
 0x17d   : > { %v13467_v57 = vpop.permute.xlu0 %1848  ;;  %3190 = vperm.xlu1 %12215, %v13221_v45   ;;  %v12408_v45 = vld [vmem:[%s13081_s15 + $0x168] sm:$0xff] }
 0x17e   : > { %2929 = vperm.xlu0 %12214, %v13463_v35  }
 0x180   : > { %v13472_v62 = vpop.permute.xlu1 %1930 }
 0x181   : > { %v13474_v28 = vpop.permute.xlu0 %1843  ;;  %2271 = vperm.xlu1 %12215, %v12407_v17   ;;  %v13493_v17 = vld [vmem:[%s13081_s15 + $0x2c8] sm:$0xff] }
 0x182   : > { %3297 = vperm.xlu0 %12214, %v10374_v21  }
 0x184   : > { %v13477_v33 = vpop.permute.xlu1 %2481 }
 0x185   : > { %18169 = vst [vmem:[#allocation36_spill] sm:$0xff] %v13477_v33  ;;  %v13479_v20 = vpop.permute.xlu0 %1950  ;;  %2904 = vperm.xlu1 %12215, %v13288_v8  }
 0x186   : > { %2378 = vperm.xlu0 %12214, %v12408_v45   ;;  %v13502_v45 = vld [vmem:[%s13081_s15 + $0x320] sm:$0xff] }
 0x188   : > { %v13486_v29 = vpop.permute.xlu1 %1925 }
 0x189   : > { %v13488_v11 = vpop.permute.xlu0 %2583  ;;  %3011 = vperm.xlu1 %12215, %v13484_v0  }
 0x18a   : > { %2924 = vperm.xlu0 %12214, %v13307_v15   ;;  %v13511_v15 = vld [vmem:[%s13081_s15 + $0x328] sm:$0xff] }
 0x18c   : > { %v13495_v21 = vpop.permute.xlu1 %2032 }
 0x18d   : > { %v13497_v8 = vpop.permute.xlu0 %1945  ;;  %3292 = vperm.xlu1 %12215, %v13254_v60  }
 0x18e   : > { %3031 = vperm.xlu0 %12214, %v13493_v17  }
 0x190   : > { %v13505_v36 = vpop.permute.xlu1 %2476 }
 0x191   : > { %18170 = vst [vmem:[#allocation37_spill] sm:$0xff] %v13505_v36  ;;  %v13507_v47 = vpop.permute.xlu0 %2052  ;;  %3543 = vperm.xlu1 %12215, %v13502_v45  }
 0x192   : > { %3399 = vperm.xlu0 %12214, %v10387_v46  }
 0x194   : > { %v13516_v60 = vpop.permute.xlu1 %2685 }
 0x195   : > { %18171 = vst [vmem:[#allocation38_spill] sm:$0xff] %v13516_v60  ;;  %v13518_v53 = vpop.permute.xlu0 %2578  ;;  %3645 = vperm.xlu1 %12215, %v13511_v15  }
 0x196   : > { %18172 = vst [vmem:[#allocation39_spill] sm:$0xff] %v13518_v53  ;;  %3563 = vperm.xlu0 %12214, %v13514_v3  }
 0x198   : > { %v13525_v18 = vpop.permute.xlu1 %2047 }
 0x199   : > { %v13527_v46 = vpop.permute.xlu0 %2027  ;;  %2373 = vperm.xlu1 %12215, %v12409_v34   ;;  %v10400_v34 = vld [vmem:[%s13081_s15 + $0x300] sm:$0xff] }
 0x19a   : > { %3665 = vperm.xlu0 %12214, %v13523_v4  }
 0x19c   : > { %v13531_v26 = vpop.permute.xlu1 %2154 }
 0x19d   : > { %v2135_v38 = vpop.permute.xlu0 %2134  ;;  %3026 = vperm.xlu1 %12215, %v13324_v9  }
 0x19e   : > { %3006 = vperm.xlu0 %12214, %v13304_v5   ;;  %v10413_v5 = vld [vmem:[%s13081_s15 + $0x308] sm:$0xff] }
 0x1a0   : > { %v13537_v54 = vpop.permute.xlu1 %2787 }
 0x1a1   : > { %18173 = vst [vmem:[#allocation40_spill] sm:$0xff] %v13537_v54  ;;  %v13539_v6 = vpop.permute.xlu0 %2680  ;;  %3133 = vperm.xlu1 %12215, %v10356_v43   ;;  %v13555_v43 = vld [vmem:[%s18041_s1 + $0x2] ss:$0 sm:$0xff] }
 0x1a2   : > { %18174 = vst [vmem:[#allocation41_spill] sm:$0xff] %v13539_v6  ;;  %3113 = vperm.xlu0 %12214, %v10352_v63   ;;  %v10404_v63 = vld [vmem:[%s13081_s15 + $0x380] sm:$0xff]  ;;  %v1580_v6 = vmul.f32 %v13545_v19, %v13271_v1  ;;  %v1682_v59 = vmul.f32 %v13555_v43, %v13362_v31  ;;  %v1584_v1 = vmul.f32 %v13545_v19, %v13297_v13  ;;  %v13585_v54 = vld [vmem:[%s13081_s15 + $0x330] sm:$0xff] }
 0x1a3   : > { %v1482_v31 = vmul.f32 %v13564_v16, %v13229_v49  ;;  %v13597_v13 = vld [vmem:[%s18041_s1 + $0x5] ss:$0 sm:$0xff] }
 0x1a4   : > { %v13547_v36 = vpop.permute.xlu1 %2129  ;;  %v1592_v60 = vadd.f32 %v1580_v6, %v1478_v12  ;;  %v1886_v6 = vmul.f32 %v13582_v24, %v13457_v52 }
 0x1a5   : > { %v13549_v9 = vpop.permute.xlu0 %1868  ;;  %3538 = vperm.xlu1 %12215, %v10400_v34   ;;  %v1596_v12 = vadd.f32 %v1584_v1, %v1482_v31 }
 0x1a6   : > { %18175 = vst [vmem:[#allocation42_spill] sm:$0xff] %v13549_v9  ;;  %3394 = vperm.xlu0 %12214, %v13341_v25   ;;  %v13569_v25 = vld [vmem:[%s18041_s1 + $0x3] ss:$0 sm:$0xff]  ;;  %v10417_v9 = vld [vmem:[%s13081_s15 + $0x388] sm:$0xff]  ;;  %v1694_v61 = vadd.f32 %v1682_v59, %v1592_v60  ;;  %v1988_v59 = vmul.f32 %v13597_v13, %v13472_v62  ;;  %v1890_v60 = vmul.f32 %v13582_v24, %v13467_v57 }
 0x1a7   : > { %v1784_v48 = vmul.f32 %v13569_v25, %v13418_v27  ;;  %v1788_v49 = vmul.f32 %v13569_v25, %v13435_v40  ;;  %v13612_v27 = vld [vmem:[%s13081_s15 + $0x3b0] sm:$0xff]  ;;  %v1992_v57 = vmul.f32 %v13597_v13, %v13479_v20 }
 0x1a8   : > { %v2237_v34 = vpop.permute.xlu1 %2236  ;;  %18177 = vst [vmem:[#allocation44_spill] sm:$0xff] %v13612_v27  ;;  %v13621_v40 = vld [vmem:[%s18041_s1 + $0x7] ss:$0 sm:$0xff] }
 0x1a9   : > { %v13571_v53 = vpop.permute.xlu0 %2149  ;;  %3640 = vperm.xlu1 %12215, %v10413_v5   ;;  %v1686_v5 = vmul.f32 %v13555_v43, %v13384_v51  ;;  %v13609_v51 = vld [vmem:[%s18041_s1 + $0x6] ss:$0 sm:$0xff] }
 0x1aa   : > { %3558 = vperm.xlu0 %12214, %v10404_v63  }
 0x1ab   : > { %v1698_v52 = vadd.f32 %v1686_v5, %v1596_v12  ;;  %v10365_v5 = vld [vmem:[%s13081_s15 + $0x258] sm:$0xff] }
 0x1ac   : > { %v13599_v63 = vpop.permute.xlu1 %2782 }
 0x1ad   : > { %18176 = vst [vmem:[#allocation43_spill] sm:$0xff] %v13599_v63  ;;  %v2257_v33 = vpop.permute.xlu0 %2256  ;;  %3747 = vperm.xlu1 %12215, %v13585_v54   ;;  %v1796_v63 = vadd.f32 %v1784_v48, %v1694_v61  ;;  %v2090_v61 = vmul.f32 %v13609_v51, %v13495_v21  ;;  %v1800_v62 = vadd.f32 %v1788_v49, %v1698_v52  ;;  %v13636_v48 = vld [vmem:[%s18041_s1 + $0x8] ss:$0 sm:$0xff] }
 0x1ae   : > { %3660 = vperm.xlu0 %12214, %v10417_v9   ;;  %v2294_v20 = vmul.f32 %v13636_v48, %v2237_v34 }
 0x1af   : > { %v1898_v31 = vadd.f32 %v1886_v6, %v1796_v63  ;;  %v2192_v6 = vmul.f32 %v13621_v40, %v2135_v38  ;;  %v1902_v21 = vadd.f32 %v1890_v60, %v1800_v62  ;;  %v13651_v38 = vld [vmem:[%s18041_s1 + $0x9] ss:$0 sm:$0xff]  ;;  %v2196_v60 = vmul.f32 %v13621_v40, %v13531_v26 }
 0x1b0   : > { %v13623_v9 = vpop.permute.xlu1 %1863 }
 0x1b1   : > { %18178 = vst [vmem:[#allocation45_spill] sm:$0xff] %v13623_v9  ;;  %v13625_v1 = vpop.permute.xlu0 %2889  ;;  %3108 = vperm.xlu1 %12215, %v13389_v56   ;;  %v2000_v63 = vadd.f32 %v1988_v59, %v1898_v31  ;;  %v2094_v56 = vmul.f32 %v13609_v51, %v13507_v47  ;;  %v2004_v9 = vadd.f32 %v1992_v57, %v1902_v21  ;;  %v10426_v59 = vld [vmem:[%s13081_s15 + $0x310] sm:$0xff]  ;;  %v10369_v47 = vld [vmem:[%s13081_s15 + $0x2d8] sm:$0xff] }
 0x1b2   : > { %3767 = vperm.xlu0 %12214, %v13612_v27   ;;  %v10430_v21 = vld [vmem:[%s13081_s15 + $0x390] sm:$0xff]  ;;  %v1579_v27 = vmul.f32 %v13545_v19, %v13273_v2  ;;  %v13683_v2 = vld [vmem:[%s13081_s15 + $0x3b8] sm:$0xff] }
 0x1b3   : > { %v2102_v52 = vadd.f32 %v2090_v61, %v2000_v63  ;;  %v2106_v61 = vadd.f32 %v2094_v56, %v2004_v9  ;;  %v13662_v63 = vld [vmem:[%s13081_s15 + $0x338] sm:$0xff]  ;;  %v1477_v9 = vmul.f32 %v13564_v16, %v13218_v44  ;;  %v1583_v44 = vmul.f32 %v13545_v19, %v13299_v14 }
 0x1b4   : > { %v13642_v12 = vpop.permute.xlu1 %2231 }
 0x1b5   : > { %v13644_v49 = vpop.permute.xlu0 %1970  ;;  %3215 = vperm.xlu1 %12215, %v10365_v5   ;;  %v2204_v31 = vadd.f32 %v2192_v6, %v2102_v52  ;;  %v2208_v26 = vadd.f32 %v2196_v60, %v2106_v61  ;;  %v1591_v60 = vadd.f32 %v1579_v27, %v1477_v9  ;;  %v1885_v27 = vmul.f32 %v13582_v24, %v13465_v37 }
 0x1b6   : > { %3128 = vperm.xlu0 %12214, %v13402_v7   ;;  %v2298_v7 = vmul.f32 %v13636_v48, %v2257_v33  ;;  %v13672_v33 = vld [vmem:[%s18050_s10] ss:$0 sm:$0xff] }
 0x1b7   : > { %v2306_v5 = vadd.f32 %v2294_v20, %v2204_v31  ;;  %v1681_v20 = vmul.f32 %v13555_v43, %v13364_v32  ;;  %v1783_v31 = vmul.f32 %v13569_v25, %v13420_v30  ;;  %v1481_v32 = vmul.f32 %v13564_v16, %v13231_v50 }
 0x1b8   : > { %v2339_v62 = vpop.permute.xlu1 %2338  ;;  %v1787_v50 = vmul.f32 %v13569_v25, %v13437_v42  ;;  %v2089_v42 = vmul.f32 %v13609_v51, %v13527_v46 }
 0x1b9   : > { %v13657_v34 = vpop.permute.xlu0 %2251  ;;  %v2396_v57 = vmul.f32 %v13651_v38, %v2339_v62  ;;  %3742 = vperm.xlu1 %12215, %v10426_v59   ;;  %v2310_v59 = vadd.f32 %v2298_v7, %v2208_v26  ;;  %v1693_v14 = vadd.f32 %v1681_v20, %v1591_v60  ;;  %v1595_v30 = vadd.f32 %v1583_v44, %v1481_v32 }
 0x1ba   : > { %3235 = vperm.xlu0 %12214, %v10369_v47   ;;  %v1991_v60 = vmul.f32 %v13597_v13, %v13497_v8 }
 0x1bb   : > { %v2408_v6 = vadd.f32 %v2396_v57, %v2306_v5  ;;  %v1685_v5 = vmul.f32 %v13555_v43, %v13386_v55  ;;  %v10378_v55 = vld [vmem:[%s13081_s15 + $0x260] sm:$0xff]  ;;  %v1795_v26 = vadd.f32 %v1783_v31, %v1693_v14  ;;  %v18180_v14 = vmov 0.0  }
 0x1bc   : > { %v13674_v56 = vpop.permute.xlu1 %2501  ;;  %v10382_v31 = vld [vmem:[%s13081_s15 + $0x2e0] sm:$0xff] }
 0x1bd   : > { %v2359_v52 = vpop.permute.xlu0 %2358  ;;  %3849 = vperm.xlu1 %12215, %v13662_v63   ;;  %v2425_v61 = vadd.f32 %v13672_v33, %v2408_v6  ;;  %v1987_v6 = vmul.f32 %v13597_v13, %v13486_v29 }
 0x1be   : > { %v2400_v47 = vmul.f32 %v13651_v38, %v2359_v52  ;;  %3762 = vperm.xlu0 %12214, %v10430_v21   ;;  %v1697_v52 = vadd.f32 %v1685_v5, %v1595_v30  ;;  %v13737_v30 = vld [vmem:[%s13081_s15 + $0x340] sm:$0xff] }
 0x1bf   : > { %v2437_v9 = vmax.f32 %v2425_v61, 0.0 }
 0x1c0   : > { %v2412_v62 = vadd.f32 %v2400_v47, %v2310_v59  ;;  %v13692_v7 = vpop.permute.xlu1 %2603  ;;  %v1897_v47 = vadd.f32 %v1885_v27, %v1795_v26  ;;  %v1799_v44 = vadd.f32 %v1787_v50, %v1697_v52  ;;  %v2293_v27 = vmul.f32 %v13636_v48, %v13642_v12  ;;  %v10443_v50 = vld [vmem:[%s13081_s15 + $0x398] sm:$0xff] }
 0x1c1   : > { %v13694_v57 = vpop.permute.xlu0 %2521  ;;  %3210 = vperm.xlu1 %12215, %v13424_v39   ;;  %v1889_v39 = vmul.f32 %v13582_v24, %v13474_v28  ;;  %v10439_v28 = vld [vmem:[%s13081_s15 + $0x318] sm:$0xff]  ;;  %v2297_v12 = vmul.f32 %v13636_v48, %v13657_v34  ;;  %v10391_v34 = vld [vmem:[%s13081_s15 + $0x268] sm:$0xff] }
 0x1c2   : > { %v13699_v21 = vadd.f32 %v13672_v33, %v2412_v62  ;;  %3869 = vperm.xlu0 %12214, %v13683_v2   ;;  %v1999_v61 = vadd.f32 %v1987_v6, %v1897_v47  ;;  %v2191_v62 = vmul.f32 %v13621_v40, %v13547_v36  ;;  %v13749_v47 = vld [vmem:[%s13081_s15 + $0x3c0] sm:$0xff] }
 0x1c3   : > { %v1901_v46 = vadd.f32 %v1889_v39, %v1799_v44 }
 0x1c4   : > { %18179 = vst [vmem:[#allocation46_spill] sm:$0xff] %v13699_v21  ;;  %v18055_v37 = vmax.f32 %v13699_v21, 0.0  ;;  %v13711_v20 = vpop.permute.xlu1 %2884  ;;  %v2101_v8 = vadd.f32 %v2089_v42, %v1999_v61 }
 0x1c5   : > { %v13713_v59 = vpop.permute.xlu0 %2623  ;;  %3317 = vperm.xlu1 %12215, %v10378_v55   ;;  %v2003_v36 = vadd.f32 %v1991_v60, %v1901_v46 }
 0x1c6   : > { %3230 = vperm.xlu0 %12214, %v13433_v23   ;;  %v6760_v29 = vpack.c.bf16 %v18055_v37, %v2437_v9  ;;  %v2093_v23 = vmul.f32 %v13609_v51, %v13525_v18  ;;  %v2203_v55 = vadd.f32 %v2191_v62, %v2101_v8  ;;  %v2195_v18 = vmul.f32 %v13621_v40, %v13571_v53  ;;  %v13767_v8 = vld [vmem:[%s13081_s15 + $0x420] sm:$0xff] }
 0x1c8   : > { %11510 = vmatmul.mubr.bf16.vlgmr.msra.gmra.mrb[0].mxu0 %v6760_v29  ;;  %v13728_v32 = vpop.permute.xlu1 %1965  ;;  %v2105_v26 = vadd.f32 %v2093_v23, %v2003_v36  ;;  %v2305_v52 = vadd.f32 %v2293_v27, %v2203_v55 }
 0x1c9   : > { %v13730_v5 = vpop.permute.xlu0 %2991  ;;  %11513 = vmatprep.mubr.msk.bf16.mxu0 %vm12487_vm0, %v18180_v14  ;;  %3844 = vperm.xlu1 %12215, %v10439_v28  }
 0x1ca   : > { %3337 = vperm.xlu0 %12214, %v10382_v31   ;;  %v2207_v42 = vadd.f32 %v2195_v18, %v2105_v26 }
 0x1cc   : > { %v2334_v6 = vpop.permute.xlu1 %2333  ;;  %v2309_v60 = vadd.f32 %v2297_v12, %v2207_v42  ;;  %v13799_v42 = vld [vmem:[%s13081_s15 + $0x4a0] sm:$0xff] }
 0x1cd   : > { %v13742_v9 = vpop.permute.xlu0 %2072  ;;  %v2395_v39 = vmul.f32 %v13651_v38, %v2334_v6  ;;  %3951 = vperm.xlu1 %12215, %v13737_v30  }
 0x1ce   : > { %3864 = vperm.xlu0 %12214, %v10443_v50  }
 0x1cf   : > { %v2407_v29 = vadd.f32 %v2395_v39, %v2305_v52  ;;  %v13790_v52 = vld [vmem:[%s13081_s15 + $0x348] sm:$0xff] }
 0x1d0   : > { %v13751_v53 = vpop.permute.xlu1 %2496 }
 0x1d1   : > { %18181 = vst [vmem:[#allocation47_spill] sm:$0xff] %v13751_v53  ;;  %v2354_v44 = vpop.permute.xlu0 %2353  ;;  %3312 = vperm.xlu1 %12215, %v13454_v41   ;;  %v2424_v31 = vadd.f32 %v13672_v33, %v2407_v29  ;;  %v10395_v41 = vld [vmem:[%s13081_s15 + $0x2e8] sm:$0xff] }
 0x1d2   : > { %v2399_v28 = vmul.f32 %v13651_v38, %v2354_v44  ;;  %3971 = vperm.xlu0 %12214, %v13749_v47   ;;  %v13802_v29 = vld [vmem:[%s13081_s15 + $0x3c8] sm:$0xff] }
 0x1d3   : > { %v2436_v27 = vmax.f32 %v2424_v31, 0.0 }
 0x1d4   : > { %v2411_v61 = vadd.f32 %v2399_v28, %v2309_v60  ;;  %v13758_v62 = vpop.permute.xlu1 %2598  ;;  %v13811_v60 = vld [vmem:[%s13081_s15 + $0x4a8] sm:$0xff] }
 0x1d5   : > { %18182 = vst [vmem:[#allocation48_spill] sm:$0xff] %v13758_v62  ;;  %v13760_v46 = vpop.permute.xlu0 %2516  ;;  %3419 = vperm.xlu1 %12215, %v10391_v34   ;;  %18187 = vst [vmem:[#allocation53_spill] sm:$0xff] %v13811_v60  ;;  %v18196_v62 = vld [vmem:[#allocation36_spill] sm:$0xff] }
 0x1d6   : > { %18183 = vst [vmem:[#allocation49_spill] sm:$0xff] %v13760_v46  ;;  %v13763_v23 = vadd.f32 %v13672_v33, %v2411_v61  ;;  %3332 = vperm.xlu0 %12214, %v13463_v35   ;;  %v13779_v35 = vld [vmem:[%s13081_s15 + $0x428] sm:$0xff]  ;;  %v10531_v46 = vld [vmem:[%s13081_s15 + $0x480] sm:$0xff] }
 0x1d8   : > { %18184 = vst [vmem:[#allocation50_spill] sm:$0xff] %v13763_v23  ;;  %v18056_v36 = vmax.f32 %v13763_v23, 0.0  ;;  %v13771_v50 = vpop.permute.xlu1 %2705 }
 0x1d9   : > { %v13773_v55 = vpop.permute.xlu0 %2618  ;;  %3583 = vperm.xlu1 %12215, %v13767_v8  }
 0x1da   : > { %18185 = vst [vmem:[#allocation51_spill] sm:$0xff] %v13773_v55  ;;  %3439 = vperm.xlu0 %12214, %v10395_v41   ;;  %v6722_v18 = vpack.c.bf16 %v18056_v36, %v2436_v27  ;;  %v13826_v41 = vld [vmem:[%s13081_s15 + $0x430] sm:$0xff]  ;;  %v10421_v27 = vld [vmem:[%s13081_s15 + $0x408] sm:$0xff]  ;;  %v1690_v55 = vmul.f32 %v13555_v43, %v13405_v10 }
 0x1db   : > { %18190 = vst [vmem:[#allocation56_spill] sm:$0xff] %v13826_v41 }
 0x1dc   : > { %11554 = vmatmul.mubr.bf16.vlgmr.msra.gmra.mrb[0].mxu1 %v6722_v18  ;;  %v13781_v26 = vpop.permute.xlu1 %2986 }
 0x1dd   : > { %v13783_v6 = vpop.permute.xlu0 %2725  ;;  %11557 = vmatprep.mubr.msk.bf16.mxu1 %vm12487_vm0, %v18180_v14  ;;  %3946 = vperm.xlu1 %12215, %v13502_v45  }
 0x1de   : > { %3685 = vperm.xlu0 %12214, %v13779_v35  }
 0x1e0   : > { %v13792_v12 = vpop.permute.xlu1 %2067 }
 0x1e1   : > { %v13794_v39 = vpop.permute.xlu0 %3093  ;;  %4053 = vperm.xlu1 %12215, %v13790_v52  }
 0x1e2   : > { %3966 = vperm.xlu0 %12214, %v13514_v3   ;;  %v10408_v3 = vld [vmem:[%s13081_s15 + $0x400] sm:$0xff] }
 0x1e4   : > { %v13804_v45 = vpop.permute.xlu1 %2700 }
 0x1e5   : > { %18186 = vst [vmem:[#allocation52_spill] sm:$0xff] %v13804_v45  ;;  %v13806_v44 = vpop.permute.xlu0 %2174  ;;  %4605 = vperm.xlu1 %12215, %v13799_v42   ;;  %v18195_v45 = vld [vmem:[#allocation33_spill] sm:$0xff] }
 0x1e6   : > { %4073 = vperm.xlu0 %12214, %v13802_v29   ;;  %v1792_v53 = vmul.f32 %v13569_v25, %v18195_v45 }
 0x1e8   : > { %v13813_v28 = vpop.permute.xlu1 %2807 }
 0x1e9   : > { %v13815_v34 = vpop.permute.xlu0 %2720  ;;  %3414 = vperm.xlu1 %12215, %v13484_v0  }
 0x1ea   : > { %18188 = vst [vmem:[#allocation54_spill] sm:$0xff] %v13815_v34  ;;  %4707 = vperm.xlu0 %12214, %v13811_v60   ;;  %v10544_v34 = vld [vmem:[%s13081_s15 + $0x488] sm:$0xff] }
 0x1ec   : > { %v13820_v31 = vpop.permute.xlu1 %3088 }
 0x1ed   : > { %v13822_v61 = vpop.permute.xlu0 %2827  ;;  %3578 = vperm.xlu1 %12215, %v10408_v3   ;;  %v10479_v3 = vld [vmem:[%s13081_s15 + $0x350] sm:$0xff] }
 0x1ee   : > { %18189 = vst [vmem:[#allocation55_spill] sm:$0xff] %v13822_v61  ;;  %3434 = vperm.xlu0 %12214, %v13493_v17   ;;  %v10483_v17 = vld [vmem:[%s13081_s15 + $0x3d0] sm:$0xff]  ;;  %v13876_v61 = vld [vmem:[%s13081_s15 + $0x438] sm:$0xff] }
 0x1f0   : > { %v13829_v18 = vpop.permute.xlu1 %2169 }
 0x1f1   : > { %v13831_v0 = vpop.permute.xlu0 %3195  ;;  %3787 = vperm.xlu1 %12215, %v13826_v41   ;;  %v2539_v41 = vmul.f32 %v13564_v16, %v18196_v62 }
 0x1f2   : > { %3680 = vperm.xlu0 %12214, %v10421_v27   ;;  %v1588_v27 = vmul.f32 %v13545_v19, %v13334_v22 }
 0x1f4   : > { %v13834_v37 = vpop.permute.xlu1 %2802 }
 0x1f5   : > { %18191 = vst [vmem:[#allocation57_spill] sm:$0xff] %v13834_v37  ;;  %v2277_v36 = vpop.permute.xlu0 %2276  ;;  %4068 = vperm.xlu1 %12215, %v13523_v4  }
 0x1f6   : > { %4048 = vperm.xlu0 %12214, %v13511_v15   ;;  %v1486_v15 = vmul.f32 %v13564_v16, %v13249_v58  ;;  %v18197_v58 = vld [vmem:[#allocation38_spill] sm:$0xff] }
 0x1f7   : > { %v2743_v60 = vmul.f32 %v13555_v43, %v18197_v58  ;;  %v1996_v58 = vmul.f32 %v13597_v13, %v13644_v49 }
 0x1f8   : > { %v13840_v21 = vpop.permute.xlu1 %2909  ;;  %v1600_v22 = vadd.f32 %v1588_v27, %v1486_v15  ;;  %v18199_v15 = vld [vmem:[#allocation40_spill] sm:$0xff] }
 0x1f9   : > { %18192 = vst [vmem:[#allocation58_spill] sm:$0xff] %v13840_v21  ;;  %v13842_v23 = vpop.permute.xlu0 %2822  ;;  %4175 = vperm.xlu1 %12215, %v10483_v17   ;;  %v2641_v17 = vmul.f32 %v13545_v19, %v13488_v11  ;;  %v2845_v45 = vmul.f32 %v13569_v25, %v18199_v15  ;;  %v2302_v15 = vmul.f32 %v13636_v48, %v2277_v36 }
 0x1fa   : > { %18193 = vst [vmem:[#allocation59_spill] sm:$0xff] %v13842_v23  ;;  %4155 = vperm.xlu0 %12214, %v10479_v3   ;;  %v10434_v3 = vld [vmem:[%s13081_s15 + $0x410] sm:$0xff] }
 0x1fb   : > { %v13860_v23 = vld [vmem:[%s13081_s15 + $0x4b0] sm:$0xff]  ;;  %v2653_v27 = vadd.f32 %v2641_v17, %v2539_v41  ;;  %v2098_v41 = vmul.f32 %v13609_v51, %v13742_v9  ;;  %v10492_v17 = vld [vmem:[%s13081_s15 + $0x358] sm:$0xff] }
 0x1fc   : > { %v13848_v37 = vpop.permute.xlu1 %3190 }
 0x1fd   : > { %v13850_v4 = vpop.permute.xlu0 %2929  ;;  %4702 = vperm.xlu1 %12215, %v10544_v34   ;;  %v1702_v34 = vadd.f32 %v1690_v55, %v1600_v22  ;;  %v2755_v21 = vadd.f32 %v2743_v60, %v2653_v27  ;;  %v2947_v55 = vmul.f32 %v13582_v24, %v13625_v1  ;;  %v3049_v60 = vmul.f32 %v13597_v13, %v13730_v5  ;;  %v10557_v5 = vld [vmem:[%s13081_s15 + $0x490] sm:$0xff] }
 0x1fe   : > { %18194 = vst [vmem:[#allocation60_spill] sm:$0xff] %v13850_v4  ;;  %4600 = vperm.xlu0 %12214, %v10531_v46   ;;  %v18198_v4 = vld [vmem:[#allocation42_spill] sm:$0xff]  ;;  %v2200_v1 = vmul.f32 %v13621_v40, %v13806_v44 }
 0x1ff   : > { %v1894_v11 = vmul.f32 %v13582_v24, %v18198_v4  ;;  %v1804_v62 = vadd.f32 %v1792_v53, %v1702_v34  ;;  %v2857_v53 = vadd.f32 %v2845_v45, %v2755_v21  ;;  %v18200_v21 = vld [vmem:[#allocation44_spill] sm:$0xff]  ;;  %v10496_v45 = vld [vmem:[%s13081_s15 + $0x3d8] sm:$0xff] }
 0x200   : > { %v13868_v10 = vpop.permute.xlu1 %2271 }
 0x201   : > { %v3298_v46 = vpop.permute.xlu0 %3297  ;;  %3782 = vperm.xlu1 %12215, %v10434_v3   ;;  %v1906_v3 = vadd.f32 %v1894_v11, %v1804_v62  ;;  %v2959_v34 = vadd.f32 %v2947_v55, %v2857_v53 }
 0x202   : > { %4809 = vperm.xlu0 %12214, %v13860_v23   ;;  %v3355_v53 = vmul.f32 %v13636_v48, %v3298_v46 }
 0x203   : > { %v2008_v49 = vadd.f32 %v1996_v58, %v1906_v3  ;;  %v3061_v62 = vadd.f32 %v3049_v60, %v2959_v34  ;;  %v3253_v58 = vmul.f32 %v13621_v40, %v13831_v0  ;;  %v18202_v60 = vld [vmem:[#allocation19_spill] sm:$0xff] }
 0x204   : > { %v13882_v22 = vpop.permute.xlu1 %2904 }
 0x205   : > { %v2379_v4 = vpop.permute.xlu0 %2378  ;;  %4150 = vperm.xlu1 %12215, %v13585_v54   ;;  %v2110_v9 = vadd.f32 %v2098_v41, %v2008_v49  ;;  %v3151_v54 = vmul.f32 %v13609_v51, %v13794_v39  ;;  %v13913_v49 = vld [vmem:[%s13081_s15 + $0x4b8] sm:$0xff] }
 0x206   : > { %3889 = vperm.xlu0 %12214, %v13876_v61   ;;  %v2404_v55 = vmul.f32 %v13651_v38, %v2379_v4  ;;  %18201 = vst [vmem:[#allocation33_spill] sm:$0xff] %v13913_v49  ;;  %v18203_v4 = vld [vmem:[#allocation12_spill] sm:$0xff] }
 0x207   : > { %v2212_v44 = vadd.f32 %v2200_v1, %v2110_v9  ;;  %v3163_v39 = vadd.f32 %v3151_v54, %v3061_v62  ;;  %v1587_v1 = vmul.f32 %v13545_v19, %v18202_v60  ;;  %v1485_v9 = vmul.f32 %v13564_v16, %v18203_v4  ;;  %v18206_v62 = vld [vmem:[#allocation39_spill] sm:$0xff] }
 0x208   : > { %v13893_v11 = vpop.permute.xlu1 %3011 }
 0x209   : > { %v13895_v27 = vpop.permute.xlu0 %2924  ;;  %4257 = vperm.xlu1 %12215, %v10492_v17   ;;  %v2314_v36 = vadd.f32 %v2302_v15, %v2212_v44  ;;  %v10447_v17 = vld [vmem:[%s13081_s15 + $0x418] sm:$0xff]  ;;  %v3265_v0 = vadd.f32 %v3253_v58, %v3163_v39  ;;  %v18205_v15 = vld [vmem:[#allocation26_spill] sm:$0xff]  ;;  %v2640_v44 = vmul.f32 %v13545_v19, %v18206_v62 }
 0x20a   : > { %4170 = vperm.xlu0 %12214, %v18200_v21   ;;  %v1689_v46 = vmul.f32 %v13555_v43, %v18205_v15  ;;  %v13928_v58 = vld [vmem:[%s13081_s15 + $0x440] sm:$0xff] }
 0x20b   : > { %v2416_v34 = vadd.f32 %v2404_v55, %v2314_v36  ;;  %v1599_v55 = vadd.f32 %v1587_v1, %v1485_v9  ;;  %v18207_v39 = vld [vmem:[#allocation34_spill] sm:$0xff] }
 0x20c   : > { %v13906_v3 = vpop.permute.xlu1 %3292  ;;  %v1791_v36 = vmul.f32 %v13569_v25, %v18207_v39  ;;  %v10505_v39 = vld [vmem:[%s13081_s15 + $0x360] sm:$0xff] }
 0x20d   : > { %v13908_v41 = vpop.permute.xlu0 %3031  ;;  %4804 = vperm.xlu1 %12215, %v10557_v5   ;;  %v3367_v5 = vadd.f32 %v3355_v53, %v3265_v0  ;;  %v13933_v60 = vadd.f32 %v13672_v33, %v2416_v34  ;;  %v18209_v53 = vld [vmem:[#allocation37_spill] sm:$0xff] }
 0x20e   : > { %4277 = vperm.xlu0 %12214, %v10496_v45   ;;  %v2538_v0 = vmul.f32 %v13564_v16, %v18209_v53 }
 0x20f   : > { %18208 = vst [vmem:[#allocation38_spill] sm:$0xff] %v13933_v60 }
 0x210   : > { %v13919_v21 = vpop.permute.xlu1 %3543  ;;  %v2652_v34 = vadd.f32 %v2640_v44, %v2538_v0 }
 0x211   : > { %18204 = vst [vmem:[#allocation36_spill] sm:$0xff] %v13919_v21  ;;  %v3400_v54 = vpop.permute.xlu0 %3399  ;;  %3884 = vperm.xlu1 %12215, %v10447_v17   ;;  %v18210_v17 = vld [vmem:[#allocation41_spill] sm:$0xff]  ;;  %v1701_v21 = vadd.f32 %v1689_v46, %v1599_v55  ;;  %v1995_v46 = vmul.f32 %v13597_v13, %v13728_v32 }
 0x212   : > { %v3457_v45 = vmul.f32 %v13651_v38, %v3400_v54  ;;  %4911 = vperm.xlu0 %12214, %v13913_v49   ;;  %v2742_v54 = vmul.f32 %v13555_v43, %v18210_v17  ;;  %v18211_v49 = vld [vmem:[#allocation45_spill] sm:$0xff] }
 0x213   : > { %v1893_v1 = vmul.f32 %v13582_v24, %v18211_v49  ;;  %v1803_v53 = vadd.f32 %v1791_v36, %v1701_v21  ;;  %v18064_v49 = vmax.f32 %v13933_v60, 0.0  ;;  %v10570_v36 = vld [vmem:[%s13081_s15 + $0x498] sm:$0xff] }
 0x214   : > { %v3469_v4 = vadd.f32 %v3457_v45, %v3367_v5  ;;  %v13939_v15 = vpop.permute.xlu1 %3645  ;;  %v18213_v5 = vld [vmem:[#allocation43_spill] sm:$0xff] }
 0x215   : > { %v13941_v62 = vpop.permute.xlu0 %3563  ;;  %4252 = vperm.xlu1 %12215, %v13662_v63   ;;  %v2844_v45 = vmul.f32 %v13569_v25, %v18213_v5  ;;  %v2946_v63 = vmul.f32 %v13582_v24, %v13711_v20  ;;  %v1905_v0 = vadd.f32 %v1893_v1, %v1803_v53  ;;  %v2097_v5 = vmul.f32 %v13609_v51, %v13792_v12 }
 0x216   : > { %v13946_v9 = vadd.f32 %v13672_v33, %v3469_v4  ;;  %3991 = vperm.xlu0 %12214, %v13928_v58   ;;  %v2754_v4 = vadd.f32 %v2742_v54, %v2652_v34  ;;  %v10509_v54 = vld [vmem:[%s13081_s15 + $0x3e0] sm:$0xff]  ;;  %v3048_v34 = vmul.f32 %v13597_v13, %v13781_v26  ;;  %v2199_v1 = vmul.f32 %v13621_v40, %v13829_v18 }
 0x217   : > { %v2007_v20 = vadd.f32 %v1995_v46, %v1905_v0  ;;  %v3150_v53 = vmul.f32 %v13609_v51, %v13820_v31  ;;  %v2301_v26 = vmul.f32 %v13636_v48, %v13868_v10  ;;  %v13985_v18 = vld [vmem:[%s13081_s15 + $0x4c0] sm:$0xff]  ;;  %v3354_v10 = vmul.f32 %v13636_v48, %v13906_v3  ;;  %v10518_v3 = vld [vmem:[%s13081_s15 + $0x368] sm:$0xff] }
 0x218   : > { %18212 = vst [vmem:[#allocation42_spill] sm:$0xff] %v13946_v9  ;;  %v18062_v55 = vmax.f32 %v13946_v9, 0.0  ;;  %v2374_v17 = vpop.permute.xlu1 %2373  ;;  %v2856_v21 = vadd.f32 %v2844_v45, %v2754_v4  ;;  %v10539_v9 = vld [vmem:[%s13081_s15 + $0x580] sm:$0xff] }
 0x219   : > { %v13959_v44 = vpop.permute.xlu0 %3665  ;;  %4359 = vperm.xlu1 %12215, %v10505_v39   ;;  %v2109_v45 = vadd.f32 %v2097_v5, %v2007_v20  ;;  %v2403_v0 = vmul.f32 %v13651_v38, %v2374_v17 }
 0x21a   : > { %4272 = vperm.xlu0 %12214, %v13683_v2   ;;  %v6761_v32 = vpack.c.bf16 %v18062_v55, %v18064_v49  ;;  %v2958_v12 = vadd.f32 %v2946_v63, %v2856_v21  ;;  %v3252_v63 = vmul.f32 %v13621_v40, %v13848_v37 }
 0x21b   : > { %v2211_v4 = vadd.f32 %v2199_v1, %v2109_v45 }
 0x21c   : > { %11514 = vmatmul.mubr.bf16.gmra.mrb[4].mxu0 %v6761_v32  ;;  %v13974_v39 = vpop.permute.xlu1 %3026  ;;  %v3060_v46 = vadd.f32 %v3048_v34, %v2958_v12 }
 0x21d   : > { %v13976_v2 = vpop.permute.xlu0 %3006  ;;  %11517 = vmatprep.mubr.msk.bf16.mxu0 %vm12487_vm0, %v18180_v14  ;;  %4906 = vperm.xlu1 %12215, %v10570_v36   ;;  %v2313_v21 = vadd.f32 %v2301_v26, %v2211_v4  ;;  %v13999_v36 = vld [vmem:[%s13081_s15 + $0x448] sm:$0xff] }
 0x21e   : > { %4379 = vperm.xlu0 %12214, %v10509_v54   ;;  %v3162_v31 = vadd.f32 %v3150_v53, %v3060_v46  ;;  %v10522_v46 = vld [vmem:[%s13081_s15 + $0x3e8] sm:$0xff] }
 0x21f   : > { %v2415_v37 = vadd.f32 %v2403_v0, %v2313_v21  ;;  %v14034_v21 = vld [vmem:[%s13081_s15 + $0x528] sm:$0xff] }
 0x220   : > { %v13990_v32 = vpop.permute.xlu1 %3133  ;;  %v3264_v54 = vadd.f32 %v3252_v63, %v3162_v31 }
 0x221   : > { %v13992_v5 = vpop.permute.xlu0 %3113  ;;  %3986 = vperm.xlu1 %12215, %v13767_v8   ;;  %v14008_v8 = vadd.f32 %v13672_v33, %v2415_v37 }
 0x222   : > { %5013 = vperm.xlu0 %12214, %v13985_v18   ;;  %v3366_v34 = vadd.f32 %v3354_v10, %v3264_v54  ;;  %v14037_v10 = vld [vmem:[%s13081_s15 + $0x5a0] sm:$0xff] }
 0x223   : > { %18215 = vst [vmem:[#allocation44_spill] sm:$0xff] %v14008_v8  ;;  %v18065_v4 = vmax.f32 %v14008_v8, 0.0 }
 0x224   : > { %v14001_v17 = vpop.permute.xlu1 %3538 }
 0x225   : > { %18214 = vst [vmem:[#allocation40_spill] sm:$0xff] %v14001_v17  ;;  %v3395_v20 = vpop.permute.xlu0 %3394  ;;  %4354 = vperm.xlu1 %12215, %v13737_v30   ;;  %v14019_v30 = vld [vmem:[%s13081_s15 + $0x520] sm:$0xff]  ;;  %v14105_v17 = vld [vmem:[%s13081_s15 + $0x5b0] sm:$0xff] }
 0x226   : > { %v3456_v1 = vmul.f32 %v13651_v38, %v3395_v20  ;;  %4093 = vperm.xlu0 %12214, %v13999_v36   ;;  %v14048_v20 = vld [vmem:[%s13081_s15 + $0x5a8] sm:$0xff] }
 0x228   : > { %v3468_v12 = vadd.f32 %v3456_v1, %v3366_v34  ;;  %v14010_v45 = vpop.permute.xlu1 %3640 }
 0x229   : > { %18216 = vst [vmem:[#allocation19_spill] sm:$0xff] %v14010_v45  ;;  %v14012_v53 = vpop.permute.xlu0 %3558  ;;  %4461 = vperm.xlu1 %12215, %v10518_v3   ;;  %v14055_v3 = vld [vmem:[%s13081_s15 + $0x4c8] sm:$0xff]  ;;  %v18225_v45 = vld [vmem:[#allocation60_spill] sm:$0xff] }
 0x22a   : > { %18217 = vst [vmem:[#allocation12_spill] sm:$0xff] %v14012_v53  ;;  %v14015_v26 = vadd.f32 %v13672_v33, %v3468_v12  ;;  %4374 = vperm.xlu0 %12214, %v13749_v47  }
 0x22c   : > { %18218 = vst [vmem:[#allocation26_spill] sm:$0xff] %v14015_v26  ;;  %v18063_v63 = vmax.f32 %v14015_v26, 0.0  ;;  %v14024_v0 = vpop.permute.xlu1 %3747  ;;  %v2645_v26 = vmul.f32 %v13545_v19, %v13692_v7  ;;  %v2849_v7 = vmul.f32 %v13569_v25, %v13813_v28 }
 0x22d   : > { %v14026_v31 = vpop.permute.xlu0 %3660  ;;  %4625 = vperm.xlu1 %12215, %v14019_v30  }
 0x22e   : > { %18219 = vst [vmem:[#allocation39_spill] sm:$0xff] %v14026_v31  ;;  %4481 = vperm.xlu0 %12214, %v10522_v46   ;;  %v6723_v47 = vpack.c.bf16 %v18063_v63, %v18065_v4  ;;  %v2547_v31 = vmul.f32 %v13564_v16, %v13694_v57 }
 0x230   : > { %11558 = vmatmul.mubr.bf16.gmra.mrb[4].mxu1 %v6723_v47  ;;  %v14039_v54 = vpop.permute.xlu1 %3108  ;;  %v10487_v47 = vld [vmem:[%s13081_s15 + $0x450] sm:$0xff] }
 0x231   : > { %v14041_v37 = vpop.permute.xlu0 %3767  ;;  %11561 = vmatprep.mubr.msk.bf16.mxu1 %vm12487_vm0, %v18180_v14  ;;  %4727 = vperm.xlu1 %12215, %v14034_v21  }
 0x232   : > { %4645 = vperm.xlu0 %12214, %v14037_v10  }
 0x234   : > { %v3216_v34 = vpop.permute.xlu1 %3215 }
 0x235   : > { %v14050_v1 = vpop.permute.xlu0 %3128  ;;  %5008 = vperm.xlu1 %12215, %v13799_v42   ;;  %v10535_v42 = vld [vmem:[%s13081_s15 + $0x500] sm:$0xff] }
 0x236   : > { %4747 = vperm.xlu0 %12214, %v14048_v20  }
 0x238   : > { %v14057_v12 = vpop.permute.xlu1 %3742 }
 0x239   : > { %18220 = vst [vmem:[#allocation34_spill] sm:$0xff] %v14057_v12  ;;  %v14059_v46 = vpop.permute.xlu0 %3235  ;;  %4088 = vperm.xlu1 %12215, %v13779_v35   ;;  %v10548_v35 = vld [vmem:[%s13081_s15 + $0x508] sm:$0xff]  ;;  %v18223_v12 = vld [vmem:[#allocation58_spill] sm:$0xff] }
 0x23a   : > { %5115 = vperm.xlu0 %12214, %v14055_v3  }
 0x23c   : > { %v14064_v55 = vpop.permute.xlu1 %3849 }
 0x23d   : > { %v14066_v63 = vpop.permute.xlu0 %3762  ;;  %4456 = vperm.xlu1 %12215, %v13790_v52   ;;  %v2543_v52 = vmul.f32 %v13564_v16, %v13674_v56  ;;  %v2751_v56 = vmul.f32 %v13555_v43, %v13783_v6  ;;  %v3053_v6 = vmul.f32 %v13597_v13, %v13893_v11  ;;  %v3057_v11 = vmul.f32 %v13597_v13, %v13908_v41 }
 0x23e   : > { %18221 = vst [vmem:[#allocation37_spill] sm:$0xff] %v14066_v63  ;;  %4195 = vperm.xlu0 %12214, %v10487_v47   ;;  %v2747_v47 = vmul.f32 %v13555_v43, %v13771_v50  ;;  %v10552_v63 = vld [vmem:[%s13081_s15 + $0x588] sm:$0xff] }
 0x23f   : > { %v2657_v53 = vadd.f32 %v2645_v26, %v2543_v52  ;;  %v18224_v52 = vld [vmem:[#allocation55_spill] sm:$0xff] }
 0x240   : > { %v14070_v49 = vpop.permute.xlu1 %3210  ;;  %v2853_v28 = vmul.f32 %v13569_v25, %v18224_v52 }
 0x241   : > { %v14072_v4 = vpop.permute.xlu0 %3869  ;;  %4620 = vperm.xlu1 %12215, %v10535_v42   ;;  %v14088_v42 = vld [vmem:[%s13081_s15 + $0x530] sm:$0xff] }
 0x242   : > { %4476 = vperm.xlu0 %12214, %v13802_v29   ;;  %v2649_v29 = vmul.f32 %v13545_v19, %v13713_v59  ;;  %v2951_v59 = vmul.f32 %v13582_v24, %v18223_v12 }
 0x244   : > { %v3318_v60 = vpop.permute.xlu1 %3317  ;;  %v2661_v26 = vadd.f32 %v2649_v29, %v2547_v31  ;;  %v3155_v31 = vmul.f32 %v13609_v51, %v13992_v5  ;;  %v18227_v29 = vld [vmem:[#allocation53_spill] sm:$0xff] }
 0x245   : > { %v14079_v8 = vpop.permute.xlu0 %3230  ;;  %4722 = vperm.xlu1 %12215, %v10548_v35   ;;  %v2759_v35 = vadd.f32 %v2747_v47, %v2657_v53  ;;  %v2955_v53 = vmul.f32 %v13582_v24, %v18225_v45 }
 0x246   : > { %4640 = vperm.xlu0 %12214, %v10539_v9  }
 0x247   : > { %v2861_v57 = vadd.f32 %v2849_v7, %v2759_v35  ;;  %v3257_v35 = vmul.f32 %v13621_v40, %v3216_v34 }
 0x248   : > { %v14097_v50 = vpop.permute.xlu1 %3844 }
 0x249   : > { %18222 = vst [vmem:[#allocation41_spill] sm:$0xff] %v14097_v50  ;;  %v3338_v9 = vpop.permute.xlu0 %3337  ;;  %4829 = vperm.xlu1 %12215, %v14088_v42   ;;  %v2763_v50 = vadd.f32 %v2751_v56, %v2661_v26  ;;  %v10610_v56 = vld [vmem:[%s13081_s15 + $0x4d0] sm:$0xff] }
 0x24a   : > { %4742 = vperm.xlu0 %12214, %v10552_v63   ;;  %v2963_v63 = vadd.f32 %v2951_v59, %v2861_v57  ;;  %v3159_v59 = vmul.f32 %v13609_v51, %v13990_v32 }
 0x24b   : > { %v2865_v7 = vadd.f32 %v2853_v28, %v2763_v50  ;;  %v10561_v50 = vld [vmem:[%s13081_s15 + $0x510] sm:$0xff]  ;;  %v10500_v28 = vld [vmem:[%s13081_s15 + $0x458] sm:$0xff] }
 0x24c   : > { %v14111_v47 = vpop.permute.xlu1 %3951  ;;  %v3065_v45 = vadd.f32 %v3053_v6, %v2963_v63  ;;  %v3261_v6 = vmul.f32 %v13621_v40, %v14059_v46 }
 0x24d   : > { %v14113_v12 = vpop.permute.xlu0 %3864  ;;  %5110 = vperm.xlu1 %12215, %v18227_v29   ;;  %v2967_v26 = vadd.f32 %v2955_v53, %v2865_v7  ;;  %v3359_v29 = vmul.f32 %v13636_v48, %v3318_v60 }
 0x24e   : > { %18226 = vst [vmem:[#allocation45_spill] sm:$0xff] %v14113_v12  ;;  %4849 = vperm.xlu0 %12214, %v14105_v17   ;;  %v3167_v57 = vadd.f32 %v3155_v31, %v3065_v45  ;;  %v18228_v12 = vld [vmem:[#allocation56_spill] sm:$0xff]  ;;  %v3363_v31 = vmul.f32 %v13636_v48, %v3338_v9 }
 0x24f   : > { %v3069_v41 = vadd.f32 %v3057_v11, %v2967_v26  ;;  %v10565_v11 = vld [vmem:[%s13081_s15 + $0x590] sm:$0xff]  ;;  %v18230_v26 = vld [vmem:[#allocation47_spill] sm:$0xff] }
 0x250   : > { %v14125_v52 = vpop.permute.xlu1 %3312  ;;  %v3269_v34 = vadd.f32 %v3257_v35, %v3167_v57  ;;  %v18231_v9 = vld [vmem:[#allocation52_spill] sm:$0xff] }
 0x251   : > { %v14127_v5 = vpop.permute.xlu0 %3971  ;;  %4190 = vperm.xlu1 %12215, %v18228_v12   ;;  %v3171_v32 = vadd.f32 %v3159_v59, %v3069_v41  ;;  %v14140_v12 = vld [vmem:[%s13081_s15 + $0x538] sm:$0xff]  ;;  %v2542_v59 = vmul.f32 %v13564_v16, %v18230_v26  ;;  %v2746_v41 = vmul.f32 %v13555_v43, %v18231_v9 }
 0x252   : > { %5217 = vperm.xlu0 %12214, %v10610_v56   ;;  %v3371_v7 = vadd.f32 %v3359_v29, %v3269_v34  ;;  %v18229_v56 = vld [vmem:[#allocation48_spill] sm:$0xff]  ;;  %v18232_v34 = vld [vmem:[#allocation51_spill] sm:$0xff] }
 0x253   : > { %v2644_v45 = vmul.f32 %v13545_v19, %v18229_v56  ;;  %v3273_v35 = vadd.f32 %v3261_v6, %v3171_v32  ;;  %v14156_v6 = vld [vmem:[%s13081_s15 + $0x5b8] sm:$0xff] }
 0x254   : > { %v3420_v53 = vpop.permute.xlu1 %3419 }
 0x255   : > { %v14135_v63 = vpop.permute.xlu0 %3332  ;;  %v3461_v60 = vmul.f32 %v13651_v38, %v3420_v53  ;;  %4824 = vperm.xlu1 %12215, %v10561_v50   ;;  %v3375_v50 = vadd.f32 %v3363_v31, %v3273_v35  ;;  %v2648_v53 = vmul.f32 %v13545_v19, %v18232_v34  ;;  %v2656_v32 = vadd.f32 %v2644_v45, %v2542_v59  ;;  %v18235_v31 = vld [vmem:[#allocation49_spill] sm:$0xff] }
 0x256   : > { %4297 = vperm.xlu0 %12214, %v10500_v28   ;;  %v2546_v35 = vmul.f32 %v13564_v16, %v18235_v31  ;;  %v2950_v45 = vmul.f32 %v13582_v24, %v13882_v22  ;;  %v18238_v16 = vld [vmem:[#allocation59_spill] sm:$0xff] }
 0x257   : > { %v3473_v46 = vadd.f32 %v3461_v60, %v3371_v7  ;;  %v18233_v7 = vld [vmem:[#allocation57_spill] sm:$0xff]  ;;  %v2758_v34 = vadd.f32 %v2746_v41, %v2656_v32  ;;  %v3052_v41 = vmul.f32 %v13597_v13, %v13976_v2 }
 0x258   : > { %v14147_v57 = vpop.permute.xlu1 %3583  ;;  %v2848_v60 = vmul.f32 %v13569_v25, %v18233_v7 }
 0x259   : > { %v3440_v29 = vpop.permute.xlu0 %3439  ;;  %4931 = vperm.xlu1 %12215, %v14140_v12   ;;  %v14161_v56 = vadd.f32 %v13672_v33, %v3473_v46  ;;  %v2660_v46 = vadd.f32 %v2648_v53, %v2546_v35  ;;  %v10513_v35 = vld [vmem:[%s13081_s15 + $0x460] sm:$0xff] }
 0x25a   : > { %v3465_v28 = vmul.f32 %v13651_v38, %v3440_v29  ;;  %4844 = vperm.xlu0 %12214, %v10565_v11   ;;  %v18236_v29 = vld [vmem:[#allocation54_spill] sm:$0xff] }
 0x25b   : > { %18234 = vst [vmem:[#allocation43_spill] sm:$0xff] %v14161_v56  ;;  %v2750_v11 = vmul.f32 %v13555_v43, %v18236_v29  ;;  %v10623_v43 = vld [vmem:[%s13081_s15 + $0x4d8] sm:$0xff]  ;;  %v18072_v22 = vmax.f32 %v14161_v56, 0.0 }
 0x25c   : > { %v3477_v26 = vadd.f32 %v3465_v28, %v3375_v50  ;;  %v14167_v9 = vpop.permute.xlu1 %3946  ;;  %v2852_v50 = vmul.f32 %v13569_v25, %v18238_v16  ;;  %v2860_v28 = vadd.f32 %v2848_v60, %v2758_v34  ;;  %v3154_v60 = vmul.f32 %v13609_v51, %v14039_v54  ;;  %v10578_v16 = vld [vmem:[%s13081_s15 + $0x598] sm:$0xff] }
 0x25d   : > { %v14169_v19 = vpop.permute.xlu0 %3685  ;;  %5212 = vperm.xlu1 %12215, %v13860_v23   ;;  %v2762_v7 = vadd.f32 %v2750_v11, %v2660_v46  ;;  %v2954_v23 = vmul.f32 %v13582_v24, %v13895_v27  ;;  %v3056_v24 = vmul.f32 %v13597_v13, %v13974_v39  ;;  %v10574_v27 = vld [vmem:[%s13081_s15 + $0x518] sm:$0xff]  ;;  %v3256_v54 = vmul.f32 %v13621_v40, %v14070_v49  ;;  %v14215_v46 = vld [vmem:[%s13081_s15 + $0x540] sm:$0xff] }
 0x25e   : > { %v14174_v59 = vadd.f32 %v13672_v33, %v3477_v26  ;;  %4951 = vperm.xlu0 %12214, %v14156_v6   ;;  %v2962_v25 = vadd.f32 %v2950_v45, %v2860_v28  ;;  %v3158_v11 = vmul.f32 %v13609_v51, %v14050_v1  ;;  %v3358_v39 = vmul.f32 %v13636_v48, %v14125_v52 }
 0x25f   : > { %v2864_v31 = vadd.f32 %v2852_v50, %v2762_v7  ;;  %v3260_v51 = vmul.f32 %v13621_v40, %v14079_v8  ;;  %v3362_v52 = vmul.f32 %v13636_v48, %v14135_v63  ;;  %v10636_v48 = vld [vmem:[%s13081_s15 + $0x4e0] sm:$0xff] }
 0x260   : > { %18237 = vst [vmem:[#allocation58_spill] sm:$0xff] %v14174_v59  ;;  %v18070_v32 = vmax.f32 %v14174_v59, 0.0  ;;  %v14187_v26 = vpop.permute.xlu1 %4053  ;;  %v3064_v29 = vadd.f32 %v3052_v41, %v2962_v25  ;;  %v18252_v59 = vld [vmem:[#allocation36_spill] sm:$0xff] }
 0x261   : > { %v14189_v53 = vpop.permute.xlu0 %3966  ;;  %4292 = vperm.xlu1 %12215, %v13876_v61   ;;  %v2966_v61 = vadd.f32 %v2954_v23, %v2864_v31  ;;  %v14227_v23 = vld [vmem:[%s13081_s15 + $0x5c0] sm:$0xff] }
 0x262   : > { %5319 = vperm.xlu0 %12214, %v10623_v43   ;;  %v6762_v2 = vpack.c.bf16 %v18070_v32, %v18072_v22  ;;  %v3166_v13 = vadd.f32 %v3154_v60, %v3064_v29 }
 0x263   : > { %v3068_v49 = vadd.f32 %v3056_v24, %v2966_v61  ;;  %v18240_v24 = vld [vmem:[#allocation33_spill] sm:$0xff] }
 0x264   : > { %11518 = vmatmul.mubr.bf16.gmra.mrb[8].mxu0 %v6762_v2  ;;  %v14206_v34 = vpop.permute.xlu1 %4605  ;;  %v3268_v50 = vadd.f32 %v3256_v54, %v3166_v13 }
 0x265   : > { %v14208_v45 = vpop.permute.xlu0 %4073  ;;  %11521 = vmatprep.mubr.msk.bf16.mxu0 %vm12487_vm0, %v18180_v14  ;;  %4926 = vperm.xlu1 %12215, %v10574_v27   ;;  %v3170_v1 = vadd.f32 %v3158_v11, %v3068_v49 }
 0x266   : > { %4399 = vperm.xlu0 %12214, %v10513_v35   ;;  %v3370_v41 = vadd.f32 %v3358_v39, %v3268_v50 }
 0x267   : > { %v3272_v25 = vadd.f32 %v3260_v51, %v3170_v1  ;;  %v14279_v1 = vld [vmem:[%s13081_s15 + $0x620] sm:$0xff] }
 0x268   : > { %v3415_v43 = vpop.permute.xlu1 %3414 }
 0x269   : > { %v14220_v28 = vpop.permute.xlu0 %4707  ;;  %v3460_v7 = vmul.f32 %v13651_v38, %v3415_v43  ;;  %5033 = vperm.xlu1 %12215, %v14215_v46   ;;  %v3374_v2 = vadd.f32 %v3362_v52, %v3272_v25  ;;  %v10649_v43 = vld [vmem:[%s13081_s15 + $0x4e8] sm:$0xff] }
 0x26a   : > { %4946 = vperm.xlu0 %12214, %v10578_v16  }
 0x26b   : > { %v3472_v60 = vadd.f32 %v3460_v7, %v3370_v41  ;;  %v14291_v7 = vld [vmem:[%s13081_s15 + $0x6a0] sm:$0xff] }
 0x26c   : > { %v14229_v40 = vpop.permute.xlu1 %3578 }
 0x26d   : > { %18239 = vst [vmem:[#allocation55_spill] sm:$0xff] %v14229_v40  ;;  %v3435_v8 = vpop.permute.xlu0 %3434  ;;  %5314 = vperm.xlu1 %12215, %v18240_v24   ;;  %v14236_v63 = vadd.f32 %v13672_v33, %v3472_v60  ;;  %v14300_v60 = vld [vmem:[%s13081_s15 + $0x6a8] sm:$0xff] }
 0x26e   : > { %v3464_v31 = vmul.f32 %v13651_v38, %v3435_v8  ;;  %5053 = vperm.xlu0 %12214, %v14227_v23   ;;  %v10526_v38 = vld [vmem:[%s13081_s15 + $0x468] sm:$0xff] }
 0x26f   : > { %18241 = vst [vmem:[#allocation60_spill] sm:$0xff] %v14236_v63  ;;  %v18073_v61 = vmax.f32 %v14236_v63, 0.0 }
 0x270   : > { %v3476_v27 = vadd.f32 %v3464_v31, %v3374_v2  ;;  %v14238_v35 = vpop.permute.xlu1 %3787 }
 0x271   : > { %v14240_v29 = vpop.permute.xlu0 %3680  ;;  %4394 = vperm.xlu1 %12215, %v13928_v58   ;;  %v14259_v58 = vld [vmem:[%s13081_s15 + $0x548] sm:$0xff] }
 0x272   : > { %18242 = vst [vmem:[#allocation53_spill] sm:$0xff] %v14240_v29  ;;  %v14243_v54 = vadd.f32 %v13672_v33, %v3476_v27  ;;  %5421 = vperm.xlu0 %12214, %v10636_v48   ;;  %v10618_v48 = vld [vmem:[%s13081_s15 + $0x5d0] sm:$0xff] }
 0x273   : > { %v10614_v27 = vld [vmem:[%s13081_s15 + $0x550] sm:$0xff] }
 0x274   : > { %18243 = vst [vmem:[#allocation56_spill] sm:$0xff] %v14243_v54  ;;  %v18071_v11 = vmax.f32 %v14243_v54, 0.0  ;;  %v14249_v13 = vpop.permute.xlu1 %4068  ;;  %v14393_v29 = vld [vmem:[%s18041_s1 + $0x6] ss:$0 sm:$0xff] }
 0x275   : > { %v14251_v39 = vpop.permute.xlu0 %4048  ;;  %5028 = vperm.xlu1 %12215, %v14019_v30   ;;  %v14270_v30 = vld [vmem:[%s13081_s15 + $0x5c8] sm:$0xff] }
 0x276   : > { %4501 = vperm.xlu0 %12214, %v10526_v38   ;;  %v6724_v33 = vpack.c.bf16 %v18071_v11, %v18073_v61  ;;  %v14328_v11 = vld [vmem:[%s18041_s1 + $0x1] ss:$0 sm:$0xff] }
 0x277   : > { %v3703_v22 = vmul.f32 %v14328_v11, %v13939_v15  ;;  %v10679_v15 = vld [vmem:[%s13081_s15 + $0x688] sm:$0xff] }
 0x278   : > { %11562 = vmatmul.mubr.bf16.gmra.mrb[8].mxu1 %v6724_v33  ;;  %v14261_v49 = vpop.permute.xlu1 %4175 }
 0x279   : > { %v14263_v16 = vpop.permute.xlu0 %4155  ;;  %11565 = vmatprep.mubr.msk.bf16.mxu1 %vm12487_vm0, %v18180_v14  ;;  %5135 = vperm.xlu1 %12215, %v14259_v58  }
 0x27a   : > { %5048 = vperm.xlu0 %12214, %v14037_v10   ;;  %v14288_v10 = vld [vmem:[%s13081_s15 + $0x628] sm:$0xff] }
 0x27c   : > { %v14272_v50 = vpop.permute.xlu1 %4702 }
 0x27d   : > { %18244 = vst [vmem:[#allocation48_spill] sm:$0xff] %v14272_v50  ;;  %v14274_v51 = vpop.permute.xlu0 %4600  ;;  %5416 = vperm.xlu1 %12215, %v13985_v18  }
 0x27e   : > { %18245 = vst [vmem:[#allocation47_spill] sm:$0xff] %v14274_v51  ;;  %5155 = vperm.xlu0 %12214, %v14270_v30  }
 0x280   : > { %v14282_v41 = vpop.permute.xlu1 %3782 }
 0x281   : > { %18246 = vst [vmem:[#allocation52_spill] sm:$0xff] %v14282_v41  ;;  %v14284_v52 = vpop.permute.xlu0 %4809  ;;  %5667 = vperm.xlu1 %12215, %v14279_v1   ;;  %v14378_v41 = vld [vmem:[%s18041_s1 + $0x5] ss:$0 sm:$0xff] }
 0x282   : > { %18247 = vst [vmem:[#allocation51_spill] sm:$0xff] %v14284_v52  ;;  %5523 = vperm.xlu0 %12214, %v10649_v43  }
 0x284   : > { %v14293_v25 = vpop.permute.xlu1 %4150 }
 0x285   : > { %v14295_v18 = vpop.permute.xlu0 %3889  ;;  %5769 = vperm.xlu1 %12215, %v14288_v10  }
 0x286   : > { %5687 = vperm.xlu0 %12214, %v14291_v7  }
 0x288   : > { %v14302_v8 = vpop.permute.xlu1 %4257 }
 0x289   : > { %v14304_v2 = vpop.permute.xlu0 %4170  ;;  %4496 = vperm.xlu1 %12215, %v13999_v36   ;;  %v10662_v36 = vld [vmem:[%s13081_s15 + $0x600] sm:$0xff] }
 0x28a   : > { %5789 = vperm.xlu0 %12214, %v14300_v60  }
 0x28c   : > { %v14308_v31 = vpop.permute.xlu1 %4804 }
 0x28d   : > { %18248 = vst [vmem:[#allocation57_spill] sm:$0xff] %v14308_v31  ;;  %v14310_v24 = vpop.permute.xlu0 %4277  ;;  %5150 = vperm.xlu1 %12215, %v14048_v20   ;;  %v10666_v20 = vld [vmem:[%s13081_s15 + $0x680] sm:$0xff]  ;;  %v14359_v31 = vld [vmem:[%s13081_s15 + $0x630] sm:$0xff] }
 0x28e   : > { %5130 = vperm.xlu0 %12214, %v14034_v21   ;;  %v10675_v21 = vld [vmem:[%s13081_s15 + $0x608] sm:$0xff] }
 0x290   : > { %v14316_v38 = vpop.permute.xlu1 %3884 }
 0x291   : > { %18249 = vst [vmem:[#allocation49_spill] sm:$0xff] %v14316_v38  ;;  %v14318_v33 = vpop.permute.xlu0 %4911  ;;  %5257 = vperm.xlu1 %12215, %v10618_v48   ;;  %v14336_v48 = vld [vmem:[%s18041_s1] ss:$0 sm:$0xff]  ;;  %v14365_v38 = vld [vmem:[%s18041_s1 + $0x4] ss:$0 sm:$0xff] }
 0x292   : > { %18250 = vst [vmem:[#allocation54_spill] sm:$0xff] %v14318_v33  ;;  %5237 = vperm.xlu0 %12214, %v10614_v27   ;;  %v14341_v27 = vld [vmem:[%s18041_s1 + $0x2] ss:$0 sm:$0xff]  ;;  %v3601_v54 = vmul.f32 %v14336_v48, %v18252_v59 }
 0x293   : > { %v3805_v56 = vmul.f32 %v14341_v27, %v14024_v0 }
 0x294   : > { %v14321_v43 = vpop.permute.xlu1 %4252 }
 0x295   : > { %v14323_v32 = vpop.permute.xlu0 %3991  ;;  %5662 = vperm.xlu1 %12215, %v10662_v36  }
 0x296   : > { %18251 = vst [vmem:[#allocation59_spill] sm:$0xff] %v14323_v32  ;;  %5518 = vperm.xlu0 %12214, %v14055_v3   ;;  %v14350_v3 = vld [vmem:[%s18041_s1 + $0x3] ss:$0 sm:$0xff] }
 0x297   : > { %v3907_v59 = vmul.f32 %v14350_v3, %v14064_v55  ;;  %v3809_v55 = vmul.f32 %v14341_v27, %v14041_v37  ;;  %v18264_v32 = vld [vmem:[#allocation12_spill] sm:$0xff] }
 0x298   : > { %v4360_v61 = vpop.permute.xlu1 %4359 }
 0x299   : > { %v14345_v36 = vpop.permute.xlu0 %4272  ;;  %5764 = vperm.xlu1 %12215, %v10675_v21   ;;  %v3715_v21 = vadd.f32 %v3703_v22, %v3601_v54  ;;  %v4009_v54 = vmul.f32 %v14365_v38, %v14111_v47  ;;  %v14404_v47 = vld [vmem:[%s18041_s1 + $0x7] ss:$0 sm:$0xff] }
 0x29a   : > { %5682 = vperm.xlu0 %12214, %v10666_v20   ;;  %v3707_v20 = vmul.f32 %v14328_v11, %v13959_v44  ;;  %v3605_v44 = vmul.f32 %v14336_v48, %v13941_v62  ;;  %v3911_v62 = vmul.f32 %v14350_v3, %v14072_v4  ;;  %v4013_v4 = vmul.f32 %v14365_v38, %v14127_v5 }
 0x29b   : > { %v14356_v63 = vpop.f32.mrb[0].mxu0  ;;  %v3817_v22 = vadd.f32 %v3805_v56, %v3715_v21  ;;  %v4111_v56 = vmul.f32 %v14378_v41, %v14187_v26  ;;  %v4213_v26 = vmul.f32 %v14393_v29, %v14263_v16 }
 0x29c   : > { %v11511_v51 = vpop.f32.mrb[1].mxu0  ;;  %v14371_v0 = vpop.permute.xlu1 %4906 }
 0x29d   : > { %18253 = vst [vmem:[#allocation33_spill] sm:$0xff] %v14371_v0  ;;  %v14373_v50 = vpop.f32.mrb[2].mxu0  ;;  %v4380_v40 = vpop.permute.xlu0 %4379  ;;  %5871 = vperm.xlu1 %12215, %v14359_v31   ;;  %v14388_v0 = vld [vmem:[%s13081_s15 + $0x6b0] sm:$0xff] }
 0x29e   : > { %v11512_v51 = vpop.f32.mrb[3].mxu0  ;;  %5784 = vperm.xlu0 %12214, %v10679_v15   ;;  %v3919_v15 = vadd.f32 %v3907_v59, %v3817_v22  ;;  %v14418_v22 = vld [vmem:[%s18041_s1 + $0x8] ss:$0 sm:$0xff] }
 0x29f   : > { %v3719_v51 = vadd.f32 %v3707_v20, %v3605_v44  ;;  %v10627_v44 = vld [vmem:[%s13081_s15 + $0x558] sm:$0xff] }
 0x2a0   : > { %v14399_v37 = vpop.permute.xlu1 %3986  ;;  %v4021_v59 = vadd.f32 %v4009_v54, %v3919_v15  ;;  %v4315_v54 = vmul.f32 %v14404_v47, %v14302_v8  ;;  %v4217_v15 = vmul.f32 %v14393_v29, %v14261_v49  ;;  %v10688_v8 = vld [vmem:[%s13081_s15 + $0x610] sm:$0xff] }
 0x2a1   : > { %18254 = vst [vmem:[#allocation36_spill] sm:$0xff] %v14399_v37  ;;  %v14406_v21 = vpop.permute.xlu0 %5013  ;;  %5232 = vperm.xlu1 %12215, %v14088_v42   ;;  %v3821_v20 = vadd.f32 %v3809_v55, %v3719_v51  ;;  %v4115_v55 = vmul.f32 %v14378_v41, %v14208_v45  ;;  %v14435_v45 = vld [vmem:[%s18041_s1 + $0x9] ss:$0 sm:$0xff] }
 0x2a2   : > { %18255 = vst [vmem:[#allocation61_spill] sm:$0xff] %v14406_v21  ;;  %5891 = vperm.xlu0 %12214, %v14388_v0   ;;  %v4123_v42 = vadd.f32 %v4111_v56, %v4021_v59  ;;  %v10631_v56 = vld [vmem:[%s13081_s15 + $0x5d8] sm:$0xff] }
 0x2a3   : > { %v3923_v37 = vadd.f32 %v3911_v62, %v3821_v20  ;;  %v4417_v62 = vmul.f32 %v14418_v22, %v4360_v61 }
 0x2a4   : > { %v14424_v5 = vpop.permute.xlu1 %4354  ;;  %v4225_v21 = vadd.f32 %v4213_v26, %v4123_v42  ;;  %v14446_v42 = vld [vmem:[%s13081_s15 + $0x638] sm:$0xff] }
 0x2a5   : > { %v14426_v51 = vpop.permute.xlu0 %4093  ;;  %5339 = vperm.xlu1 %12215, %v10627_v44   ;;  %v4025_v16 = vadd.f32 %v4013_v4, %v3923_v37  ;;  %v4421_v44 = vmul.f32 %v14418_v22, %v4380_v40  ;;  %v14460_v40 = vld [vmem:[%s18050_s10] ss:$0 sm:$0xff] }
 0x2a6   : > { %18256 = vst [vmem:[#allocation62_spill] sm:$0xff] %v14426_v51  ;;  %5252 = vperm.xlu0 %12214, %v14105_v17   ;;  %v4327_v59 = vadd.f32 %v4315_v54, %v4225_v21  ;;  %v4319_v17 = vmul.f32 %v14404_v47, %v14310_v24  ;;  %v10692_v51 = vld [vmem:[%s13081_s15 + $0x690] sm:$0xff] }
 0x2a7   : > { %v4127_v20 = vadd.f32 %v4115_v55, %v4025_v16  ;;  %v18257_v55 = vld [vmem:[#allocation19_spill] sm:$0xff] }
 0x2a8   : > { %v4462_v37 = vpop.permute.xlu1 %4461  ;;  %v4429_v26 = vadd.f32 %v4417_v62, %v4327_v59  ;;  %v3702_v21 = vmul.f32 %v14328_v11, %v18257_v55  ;;  %v18262_v55 = vld [vmem:[#allocation41_spill] sm:$0xff] }
 0x2a9   : > { %v4519_v49 = vmul.f32 %v14435_v45, %v4462_v37  ;;  %v14442_v4 = vpop.permute.xlu0 %4374  ;;  %5866 = vperm.xlu1 %12215, %v10688_v8   ;;  %v4229_v61 = vadd.f32 %v4217_v15, %v4127_v20  ;;  %v18259_v37 = vld [vmem:[#allocation40_spill] sm:$0xff]  ;;  %v18260_v8 = vld [vmem:[#allocation34_spill] sm:$0xff] }
 0x2aa   : > { %5359 = vperm.xlu0 %12214, %v10631_v56   ;;  %v3600_v33 = vmul.f32 %v14336_v48, %v18259_v37  ;;  %v3804_v15 = vmul.f32 %v14341_v27, %v18260_v8  ;;  %v3906_v37 = vmul.f32 %v14350_v3, %v18262_v55 }
 0x2ab   : > { %v4331_v54 = vadd.f32 %v4319_v17, %v4229_v61  ;;  %v4531_v24 = vadd.f32 %v4519_v49, %v4429_v26  ;;  %v14465_v17 = vld [vmem:[%s13081_s15 + $0x6b8] sm:$0xff] }
 0x2ac   : > { %v14451_v16 = vpop.permute.xlu1 %4625  ;;  %v3714_v49 = vadd.f32 %v3702_v21, %v3600_v33  ;;  %v18261_v61 = vld [vmem:[#allocation39_spill] sm:$0xff] }
 0x2ad   : > { %18258 = vst [vmem:[#allocation19_spill] sm:$0xff] %v14451_v16  ;;  %v4482_v62 = vpop.permute.xlu0 %4481  ;;  %5973 = vperm.xlu1 %12215, %v14446_v42   ;;  %v4433_v56 = vadd.f32 %v4421_v44, %v4331_v54  ;;  %v3706_v26 = vmul.f32 %v14328_v11, %v18261_v61  ;;  %v14477_v44 = vadd.f32 %v14460_v40, %v4531_v24  ;;  %v18266_v61 = vld [vmem:[#allocation37_spill] sm:$0xff] }
 0x2ae   : > { %5886 = vperm.xlu0 %12214, %v10692_v51   ;;  %v4523_v20 = vmul.f32 %v14435_v45, %v4482_v62  ;;  %v3604_v51 = vmul.f32 %v14336_v48, %v18264_v32  ;;  %v3816_v21 = vadd.f32 %v3804_v15, %v3714_v49  ;;  %v3808_v52 = vmul.f32 %v14341_v27, %v18266_v61  ;;  %v10640_v15 = vld [vmem:[%s13081_s15 + $0x560] sm:$0xff] }
 0x2af   : > { %v7003_v59 = vpop.f32.mrb[0].mxu1  ;;  %18265 = vst [vmem:[#allocation34_spill] sm:$0xff] %v14477_v44  ;;  %v4008_v32 = vmul.f32 %v14365_v38, %v14167_v9 }
 0x2b0   : > { %v14472_v8 = vadd.f32 %v7003_v59, %v14356_v63  ;;  %v11555_v16 = vpop.f32.mrb[1].mxu1  ;;  %v4535_v54 = vadd.f32 %v4523_v20, %v4433_v56  ;;  %v14479_v62 = vpop.permute.xlu1 %4727  ;;  %v3718_v56 = vadd.f32 %v3706_v26, %v3604_v51  ;;  %v3918_v20 = vadd.f32 %v3906_v37, %v3816_v21  ;;  %v10701_v21 = vld [vmem:[%s13081_s15 + $0x618] sm:$0xff] }
 0x2b1   : > { %v7006_v33 = vpop.f32.mrb[2].mxu1  ;;  %v14486_v63 = vpop.permute.xlu0 %4645  ;;  %5334 = vperm.xlu1 %12215, %v14140_v12   ;;  %v4110_v12 = vmul.f32 %v14378_v41, %v14251_v39  ;;  %v4012_v37 = vmul.f32 %v14365_v38, %v14189_v53  ;;  %v4212_v51 = vmul.f32 %v14393_v29, %v14293_v25  ;;  %v4314_v53 = vmul.f32 %v14404_v47, %v14321_v43 }
 0x2b2   : > { %18263 = vst [vmem:[#allocation40_spill] sm:$0xff] %v14472_v8  ;;  %v14484_v55 = vadd.f32 %v7006_v33, %v14373_v50  ;;  %v11556_v16 = vpop.f32.mrb[3].mxu1  ;;  %5993 = vperm.xlu0 %12214, %v14465_v17   ;;  %v14493_v24 = vadd.f32 %v14460_v40, %v4535_v54  ;;  %v18269_v50 = vld [vmem:[#allocation45_spill] sm:$0xff]  ;;  %v18080_v33 = vmax.f32 %v14477_v44, 0.0  ;;  %v3820_v61 = vadd.f32 %v3808_v52, %v3718_v56  ;;  %v10644_v52 = vld [vmem:[%s13081_s15 + $0x5e0] sm:$0xff] }
 0x2b3   : > { %v3910_v59 = vmul.f32 %v14350_v3, %v18269_v50  ;;  %v4020_v26 = vadd.f32 %v4008_v32, %v3918_v20  ;;  %v4216_v50 = vmul.f32 %v14393_v29, %v14304_v2  ;;  %v4663_v8 = vmul.f32 %v14336_v48, %v14206_v34 }
 0x2b4   : > { %18267 = vst [vmem:[#allocation39_spill] sm:$0xff] %v14484_v55  ;;  %18268 = vst [vmem:[#allocation41_spill] sm:$0xff] %v14493_v24  ;;  %v14500_v49 = vpop.permute.xlu1 %5008  ;;  %v18078_v9 = vmax.f32 %v14493_v24, 0.0 }
 0x2b5   : > { %v14504_v54 = vpop.permute.xlu0 %4747  ;;  %5441 = vperm.xlu1 %12215, %v10640_v15   ;;  %v3922_v16 = vadd.f32 %v3910_v59, %v3820_v61  ;;  %v4122_v32 = vadd.f32 %v4110_v12, %v4020_v26  ;;  %v14530_v59 = vld [vmem:[%s13081_s15 + $0x640] sm:$0xff]  ;;  %v10705_v12 = vld [vmem:[%s13081_s15 + $0x698] sm:$0xff]  ;;  %v4318_v26 = vmul.f32 %v14404_v47, %v14345_v36 }
 0x2b6   : > { %5354 = vperm.xlu0 %12214, %v14156_v6   ;;  %v6763_v39 = vpack.c.bf16 %v18078_v9, %v18080_v33  ;;  %v4114_v6 = vmul.f32 %v14378_v41, %v14249_v13  ;;  %v4416_v13 = vmul.f32 %v14418_v22, %v14424_v5 }
 0x2b7   : > { %v4024_v56 = vadd.f32 %v4012_v37, %v3922_v16  ;;  %v4224_v20 = vadd.f32 %v4212_v51, %v4122_v32 }
 0x2b8   : > { %11522 = vmatmul.mubr.bf16.gmra.mrb[12].mxu0 %v6763_v39  ;;  %v14521_v15 = vpop.permute.xlu1 %4088 }
 0x2b9   : > { %v14523_v25 = vpop.permute.xlu0 %5115  ;;  %5968 = vperm.xlu1 %12215, %v10701_v21   ;;  %11525 = vmatprep.mubr.msk.bf16.mxu0 %vm12487_vm0, %v18180_v14  ;;  %v4126_v43 = vadd.f32 %v4114_v6, %v4024_v56  ;;  %v4326_v61 = vadd.f32 %v4314_v53, %v4224_v20  ;;  %v4420_v21 = vmul.f32 %v14418_v22, %v14442_v4  ;;  %v10653_v20 = vld [vmem:[%s13081_s15 + $0x568] sm:$0xff] }
 0x2ba   : > { %5461 = vperm.xlu0 %12214, %v10644_v52   ;;  %v14544_v52 = vld [vmem:[%s13081_s15 + $0x6c0] sm:$0xff] }
 0x2bb   : > { %v4228_v5 = vadd.f32 %v4216_v50, %v4126_v43  ;;  %v4428_v39 = vadd.f32 %v4416_v13, %v4326_v61  ;;  %v10657_v43 = vld [vmem:[%s13081_s15 + $0x5e8] sm:$0xff] }
 0x2bc   : > { %v4457_v37 = vpop.permute.xlu1 %4456 }
 0x2bd   : > { %v4518_v51 = vmul.f32 %v14435_v45, %v4457_v37  ;;  %v14538_v2 = vpop.permute.xlu0 %4195  ;;  %6075 = vperm.xlu1 %12215, %v14530_v59   ;;  %v4330_v16 = vadd.f32 %v4318_v26, %v4228_v5  ;;  %v14576_v5 = vld [vmem:[%s13081_s15 + $0x648] sm:$0xff] }
 0x2be   : > { %5988 = vperm.xlu0 %12214, %v10705_v12  }
 0x2bf   : > { %v4530_v6 = vadd.f32 %v4518_v51, %v4428_v39  ;;  %v4432_v53 = vadd.f32 %v4420_v21, %v4330_v16 }
 0x2c0   : > { %v14546_v36 = vpop.permute.xlu1 %4620 }
 0x2c1   : > { %18270 = vst [vmem:[#allocation12_spill] sm:$0xff] %v14546_v36  ;;  %v4477_v32 = vpop.permute.xlu0 %4476  ;;  %5436 = vperm.xlu1 %12215, %v14215_v46   ;;  %v14553_v50 = vadd.f32 %v14460_v40, %v4530_v6 }
 0x2c2   : > { %6095 = vperm.xlu0 %12214, %v14544_v52   ;;  %v4522_v56 = vmul.f32 %v14435_v45, %v4477_v32 }
 0x2c3   : > { %18271 = vst [vmem:[#allocation37_spill] sm:$0xff] %v14553_v50  ;;  %v18081_v26 = vmax.f32 %v14553_v50, 0.0 }
 0x2c4   : > { %v4534_v4 = vadd.f32 %v4522_v56, %v4432_v53  ;;  %v14555_v13 = vpop.permute.xlu1 %4722 }
 0x2c5   : > { %v14557_v12 = vpop.permute.xlu0 %4640  ;;  %5543 = vperm.xlu1 %12215, %v10653_v20  }
 0x2c6   : > { %18272 = vst [vmem:[#allocation45_spill] sm:$0xff] %v14557_v12  ;;  %5456 = vperm.xlu0 %12214, %v14227_v23   ;;  %v14561_v46 = vadd.f32 %v14460_v40, %v4534_v4  ;;  %v18281_v12 = vld [vmem:[#allocation54_spill] sm:$0xff] }
 0x2c8   : > { %18273 = vst [vmem:[#allocation63_spill] sm:$0xff] %v14561_v46  ;;  %v14564_v61 = vpop.permute.xlu1 %4829  ;;  %v18079_v37 = vmax.f32 %v14561_v46, 0.0 }
 0x2c9   : > { %v14568_v51 = vpop.permute.xlu0 %4742  ;;  %6070 = vperm.xlu1 %12215, %v14279_v1   ;;  %v14585_v1 = vld [vmem:[%s13081_s15 + $0x6c8] sm:$0xff] }
 0x2ca   : > { %18274 = vst [vmem:[#allocation64_spill] sm:$0xff] %v14568_v51  ;;  %5563 = vperm.xlu0 %12214, %v10657_v43   ;;  %v6725_v23 = vpack.c.bf16 %v18079_v37, %v18081_v26 }
 0x2cc   : > { %11566 = vmatmul.mubr.bf16.gmra.mrb[12].mxu1 %v6725_v23  ;;  %v14578_v39 = vpop.permute.xlu1 %5110 }
 0x2cd   : > { %v14580_v21 = vpop.permute.xlu0 %4849  ;;  %6177 = vperm.xlu1 %12215, %v14576_v5   ;;  %11569 = vmatprep.mubr.msk.bf16.mxu1 %vm12487_vm0, %v18180_v14 }
 0x2ce   : > { %6090 = vperm.xlu0 %12214, %v14291_v7   ;;  %v10741_v7 = vld [vmem:[%s13081_s15 + $0x650] sm:$0xff] }
 0x2d0   : > { %v14589_v16 = vpop.permute.xlu1 %4190 }
 0x2d1   : > { %v14591_v6 = vpop.permute.xlu0 %5217  ;;  %5538 = vperm.xlu1 %12215, %v14259_v58   ;;  %v10745_v58 = vld [vmem:[%s13081_s15 + $0x6d0] sm:$0xff] }
 0x2d2   : > { %6197 = vperm.xlu0 %12214, %v14585_v1  }
 0x2d4   : > { %v14595_v32 = vpop.permute.xlu1 %4824 }
 0x2d5   : > { %18275 = vst [vmem:[#allocation65_spill] sm:$0xff] %v14595_v32  ;;  %v14597_v53 = vpop.permute.xlu0 %4297  ;;  %6172 = vperm.xlu1 %12215, %v14288_v10   ;;  %v18284_v32 = vld [vmem:[#allocation61_spill] sm:$0xff] }
 0x2d6   : > { %5558 = vperm.xlu0 %12214, %v14270_v30   ;;  %v10754_v30 = vld [vmem:[%s13081_s15 + $0x658] sm:$0xff]  ;;  %v5071_v36 = vmul.f32 %v14365_v38, %v18284_v32 }
 0x2d8   : > { %v14602_v56 = vpop.permute.xlu1 %4931 }
 0x2d9   : > { %v14604_v20 = vpop.permute.xlu0 %4844  ;;  %6279 = vperm.xlu1 %12215, %v10741_v7   ;;  %v10192_v7 = vld [vmem:[%s13081_s15 + $0x60] sm:$0xff] }
 0x2da   : > { %18276 = vst [vmem:[#allocation66_spill] sm:$0xff] %v14604_v20  ;;  %6192 = vperm.xlu0 %12214, %v14300_v60   ;;  %v10758_v60 = vld [vmem:[%s13081_s15 + $0x6d8] sm:$0xff]  ;;  %v14664_v20 = vld [vmem:[%s13081_s15 + $0x100] sm:$0xff] }
 0x2dc   : > { %v14608_v4 = vpop.permute.xlu1 %5212 }
 0x2dd   : > { %v14610_v43 = vpop.permute.xlu0 %4951  ;;  %6274 = vperm.xlu1 %12215, %v14359_v31   ;;  %v10196_v31 = vld [vmem:[%s13081_s15 + $0xe0] sm:$0xff] }
 0x2de   : > { %6299 = vperm.xlu0 %12214, %v10745_v58  }
 0x2e0   : > { %v14614_v10 = vpop.permute.xlu1 %4292 }
 0x2e1   : > { %v14616_v23 = vpop.permute.xlu0 %5319  ;;  %6381 = vperm.xlu1 %12215, %v10754_v30   ;;  %v10767_v30 = vld [vmem:[%s13081_s15 + $0x660] sm:$0xff] }
 0x2e2   : > { %6294 = vperm.xlu0 %12214, %v14388_v0   ;;  %v3711_v0 = vmul.f32 %v14328_v11, %v14169_v19 }
 0x2e4   : > { %v14621_v9 = vpop.permute.xlu1 %4926 }
 0x2e5   : > { %18277 = vst [vmem:[#allocation67_spill] sm:$0xff] %v14621_v9  ;;  %v4400_v37 = vpop.permute.xlu0 %4399  ;;  %1833 = vperm.xlu1 %12215, %v10192_v7   ;;  %v3609_v7 = vmul.f32 %v14336_v48, %v14147_v57 }
 0x2e6   : > { %6401 = vperm.xlu0 %12214, %v10758_v60   ;;  %v3813_v60 = vmul.f32 %v14341_v27, %v14238_v35 }
 0x2e7   : > { %v3723_v44 = vadd.f32 %v3711_v0, %v3609_v7  ;;  %v18279_v0 = vld [vmem:[#allocation51_spill] sm:$0xff] }
 0x2e8   : > { %v14624_v58 = vpop.permute.xlu1 %5033  ;;  %v4867_v7 = vmul.f32 %v14341_v27, %v18279_v0 }
 0x2e9   : > { %v14626_v33 = vpop.permute.xlu0 %4946  ;;  %6376 = vperm.xlu1 %12215, %v14446_v42   ;;  %v14644_v42 = vld [vmem:[%s13081_s15 + $0x80] sm:$0xff] }
 0x2ea   : > { %18278 = vst [vmem:[#allocation68_spill] sm:$0xff] %v14626_v33  ;;  %1853 = vperm.xlu0 %12214, %v10196_v31   ;;  %v10771_v31 = vld [vmem:[%s13081_s15 + $0x6e0] sm:$0xff]  ;;  %v10205_v33 = vld [vmem:[%s13081_s15 + $0x68] sm:$0xff] }
 0x2ec   : > { %v14632_v26 = vpop.permute.xlu1 %5314 }
 0x2ed   : > { %v14634_v24 = vpop.permute.xlu0 %5053  ;;  %6483 = vperm.xlu1 %12215, %v10767_v30   ;;  %v4765_v30 = vmul.f32 %v14328_v11, %v14220_v28  ;;  %v18280_v28 = vld [vmem:[#allocation59_spill] sm:$0xff] }
 0x2ee   : > { %6396 = vperm.xlu0 %12214, %v14465_v17   ;;  %v3915_v17 = vmul.f32 %v14350_v3, %v14295_v18  ;;  %v4017_v18 = vmul.f32 %v14365_v38, %v18280_v28 }
 0x2ef   : > { %v14641_v46 = vpop.f32.mrb[4].mxu0  ;;  %v4777_v9 = vadd.f32 %v4765_v30, %v4663_v8  ;;  %v4221_v8 = vmul.f32 %v14393_v29, %v14538_v2  ;;  %v10271_v30 = vld [vmem:[%s13081_s15 + $0x1c0] sm:$0xff]  ;;  %v5275_v2 = vmul.f32 %v14393_v29, %v14591_v6 }
 0x2f0   : > { %v11515_v19 = vpop.f32.mrb[5].mxu0  ;;  %v14651_v50 = vpop.permute.xlu1 %4394 }
 0x2f1   : > { %v14653_v57 = vpop.f32.mrb[6].mxu0  ;;  %v5422_v35 = vpop.permute.xlu0 %5421  ;;  %1838 = vperm.xlu1 %12215, %v14644_v42   ;;  %v3825_v19 = vadd.f32 %v3813_v60, %v3723_v44  ;;  %v4879_v0 = vadd.f32 %v4867_v7, %v4777_v9  ;;  %v4425_v7 = vmul.f32 %v14418_v22, %v4400_v37 }
 0x2f2   : > { %v11516_v55 = vpop.f32.mrb[7].mxu0  ;;  %6503 = vperm.xlu0 %12214, %v10771_v31   ;;  %v18282_v31 = vld [vmem:[#allocation62_spill] sm:$0xff] }
 0x2f3   : > { %v3927_v51 = vadd.f32 %v3915_v17, %v3825_v19  ;;  %v4969_v55 = vmul.f32 %v14350_v3, %v18281_v12  ;;  %v4119_v34 = vmul.f32 %v14378_v41, %v18282_v31  ;;  %v10209_v12 = vld [vmem:[%s13081_s15 + $0xe8] sm:$0xff]  ;;  %v5173_v31 = vmul.f32 %v14378_v41, %v14523_v25 }
 0x2f4   : > { %v14670_v44 = vpop.permute.xlu1 %5028 }
 0x2f5   : > { %18283 = vst [vmem:[#allocation51_spill] sm:$0xff] %v14670_v44  ;;  %v4502_v60 = vpop.permute.xlu0 %4501  ;;  %1935 = vperm.xlu1 %12215, %v10205_v33   ;;  %v4029_v28 = vadd.f32 %v4017_v18, %v3927_v51  ;;  %v4981_v17 = vadd.f32 %v4969_v55, %v4879_v0  ;;  %v4323_v33 = vmul.f32 %v14404_v47, %v14597_v53  ;;  %v10284_v18 = vld [vmem:[%s13081_s15 + $0x1c8] sm:$0xff] }
 0x2f6   : > { %1858 = vperm.xlu0 %12214, %v14664_v20   ;;  %v5377_v53 = vmul.f32 %v14404_v47, %v14616_v23  ;;  %v18286_v23 = vld [vmem:[#allocation55_spill] sm:$0xff] }
 0x2f7   : > { %v4131_v19 = vadd.f32 %v4119_v34, %v4029_v28  ;;  %v5083_v51 = vadd.f32 %v5071_v36, %v4981_v17  ;;  %v4527_v34 = vmul.f32 %v14435_v45, %v4502_v60  ;;  %v18285_v36 = vld [vmem:[#allocation53_spill] sm:$0xff]  ;;  %v3608_v60 = vmul.f32 %v14336_v48, %v18286_v23 }
 0x2f8   : > { %v14683_v44 = vpop.permute.xlu1 %5135  ;;  %v3710_v6 = vmul.f32 %v14328_v11, %v18285_v36 }
 0x2f9   : > { %v14685_v9 = vpop.permute.xlu0 %5048  ;;  %2486 = vperm.xlu1 %12215, %v10271_v30   ;;  %v4233_v32 = vadd.f32 %v4221_v8, %v4131_v19  ;;  %v5185_v55 = vadd.f32 %v5173_v31, %v5083_v51  ;;  %v5479_v30 = vmul.f32 %v14418_v22, %v5422_v35 }
 0x2fa   : > { %1955 = vperm.xlu0 %12214, %v10209_v12   ;;  %v10780_v12 = vld [vmem:[%s13081_s15 + $0x668] sm:$0xff] }
 0x2fb   : > { %v4335_v25 = vadd.f32 %v4323_v33, %v4233_v32  ;;  %v5287_v8 = vadd.f32 %v5275_v2, %v5185_v55  ;;  %v18287_v33 = vld [vmem:[#allocation52_spill] sm:$0xff]  ;;  %v3722_v32 = vadd.f32 %v3710_v6, %v3608_v60  ;;  %v10784_v55 = vld [vmem:[%s13081_s15 + $0x6e8] sm:$0xff] }
 0x2fc   : > { %v14694_v0 = vpop.permute.xlu1 %5416 }
 0x2fd   : > { %v14696_v28 = vpop.permute.xlu0 %5155  ;;  %6478 = vperm.xlu1 %12215, %v14530_v59   ;;  %v4437_v37 = vadd.f32 %v4425_v7, %v4335_v25  ;;  %v5389_v17 = vadd.f32 %v5377_v53, %v5287_v8  ;;  %v3812_v59 = vmul.f32 %v14341_v27, %v18287_v33  ;;  %v18288_v25 = vld [vmem:[#allocation48_spill] sm:$0xff]  ;;  %v18290_v8 = vld [vmem:[#allocation49_spill] sm:$0xff] }
 0x2fe   : > { %2588 = vperm.xlu0 %12214, %v10284_v18   ;;  %v14712_v18 = vld [vmem:[%s13081_s15 + $0x88] sm:$0xff]  ;;  %v4764_v53 = vmul.f32 %v14328_v11, %v18288_v25 }
 0x2ff   : > { %v4539_v19 = vadd.f32 %v4527_v34, %v4437_v37  ;;  %v5491_v2 = vadd.f32 %v5479_v30, %v5389_v17  ;;  %v18289_v34 = vld [vmem:[#allocation47_spill] sm:$0xff]  ;;  %v3914_v37 = vmul.f32 %v14350_v3, %v18290_v8  ;;  %v3824_v17 = vadd.f32 %v3812_v59, %v3722_v32  ;;  %v18293_v33 = vld [vmem:[#allocation57_spill] sm:$0xff] }
 0x300   : > { %v14705_v31 = vpop.permute.xlu1 %5667  ;;  %v4662_v36 = vmul.f32 %v14336_v48, %v18289_v34  ;;  %v14744_v59 = vld [vmem:[%s13081_s15 + $0x108] sm:$0xff] }
 0x301   : > { %v5524_v51 = vpop.permute.xlu0 %5523  ;;  %6585 = vperm.xlu1 %12215, %v10780_v12   ;;  %v14725_v30 = vadd.f32 %v14460_v40, %v4539_v19  ;;  %v18297_v8 = vld [vmem:[#allocation33_spill] sm:$0xff] }
 0x302   : > { %6498 = vperm.xlu0 %12214, %v14544_v52   ;;  %v5581_v7 = vmul.f32 %v14435_v45, %v5524_v51  ;;  %v4866_v51 = vmul.f32 %v14341_v27, %v18293_v33  ;;  %v4776_v32 = vadd.f32 %v4764_v53, %v4662_v36  ;;  %v5070_v36 = vmul.f32 %v14365_v38, %v14500_v49 }
 0x303   : > { %v7011_v35 = vpop.f32.mrb[4].mxu1  ;;  %18292 = vst [vmem:[#allocation54_spill] sm:$0xff] %v14725_v30  ;;  %v18087_v33 = vmax.f32 %v14725_v30, 0.0  ;;  %v4322_v49 = vmul.f32 %v14404_v47, %v14614_v10  ;;  %v4769_v30 = vmul.f32 %v14328_v11, %v14479_v62  ;;  %v4773_v62 = vmul.f32 %v14328_v11, %v14504_v54 }
 0x304   : > { %v14722_v52 = vadd.f32 %v7011_v35, %v14641_v46  ;;  %v11559_v6 = vpop.f32.mrb[5].mxu1  ;;  %v5593_v12 = vadd.f32 %v5581_v7, %v5491_v2  ;;  %v14727_v23 = vpop.permute.xlu1 %5769  ;;  %v18295_v35 = vld [vmem:[#allocation36_spill] sm:$0xff]  ;;  %v4875_v54 = vmul.f32 %v14341_v27, %v14580_v21 }
 0x305   : > { %v7014_v60 = vpop.f32.mrb[6].mxu1  ;;  %v14734_v34 = vpop.permute.xlu0 %5687  ;;  %1940 = vperm.xlu1 %12215, %v14712_v18   ;;  %v4016_v19 = vmul.f32 %v14365_v38, %v18295_v35  ;;  %v10218_v7 = vld [vmem:[%s13081_s15 + $0x70] sm:$0xff]  ;;  %v4968_v6 = vmul.f32 %v14350_v3, %v18297_v8 }
 0x306   : > { %18291 = vst [vmem:[#allocation59_spill] sm:$0xff] %v14722_v52  ;;  %v14732_v25 = vadd.f32 %v7014_v60, %v14653_v57  ;;  %v11560_v46 = vpop.f32.mrb[7].mxu1  ;;  %6605 = vperm.xlu0 %12214, %v10784_v55   ;;  %v14740_v2 = vadd.f32 %v14460_v40, %v5593_v12  ;;  %v3926_v57 = vadd.f32 %v3914_v37, %v3824_v17  ;;  %v14764_v17 = vld [vmem:[%s13081_s15 + $0x1e0] sm:$0xff] }
 0x307   : > { %v4118_v60 = vmul.f32 %v14378_v41, %v14521_v15  ;;  %v4878_v12 = vadd.f32 %v4866_v51, %v4776_v32  ;;  %v4220_v37 = vmul.f32 %v14393_v29, %v14589_v16  ;;  %v10222_v51 = vld [vmem:[%s13081_s15 + $0xf0] sm:$0xff] }
 0x308   : > { %18294 = vst [vmem:[#allocation62_spill] sm:$0xff] %v14732_v25  ;;  %18296 = vst [vmem:[#allocation61_spill] sm:$0xff] %v14740_v2  ;;  %v4497_v55 = vpop.permute.xlu1 %4496  ;;  %v18086_v46 = vmax.f32 %v14740_v2, 0.0  ;;  %v4028_v53 = vadd.f32 %v4016_v19, %v3926_v57  ;;  %v5172_v19 = vmul.f32 %v14378_v41, %v14578_v39  ;;  %v10297_v39 = vld [vmem:[%s13081_s15 + $0x1d0] sm:$0xff]  ;;  %v14865_v2 = vld [vmem:[%s13081_s15 + $0x1f8] sm:$0xff] }
 0x309   : > { %v14752_v35 = vpop.permute.xlu0 %5789  ;;  %2037 = vperm.xlu1 %12215, %v10218_v7   ;;  %v4980_v7 = vadd.f32 %v4968_v6, %v4878_v12  ;;  %v5274_v6 = vmul.f32 %v14393_v29, %v14608_v4  ;;  %v14782_v12 = vld [vmem:[%s13081_s15 + $0x1e8] sm:$0xff]  ;;  %v12238_v21 = vld [vmem:[%s18042_s2 + $0xc0] sm:$0xff]  }
 0x30a   : > { %1960 = vperm.xlu0 %12214, %v14744_v59   ;;  %v6764_v15 = vpack.c.bf16 %v18086_v46, %v18087_v33  ;;  %v4130_v32 = vadd.f32 %v4118_v60, %v4028_v53  ;;  %v4424_v60 = vmul.f32 %v14418_v22, %v14651_v50  ;;  %11626 = vmatpush3.bf16.msra.mxu1 %v12238_v21 }
 0x30b   : > { %v5082_v8 = vadd.f32 %v5070_v36, %v4980_v7  ;;  %v4526_v36 = vmul.f32 %v14435_v45, %v4497_v55  ;;  %v5478_v7 = vmul.f32 %v14418_v22, %v14694_v0  ;;  %11627 = vmatprep.subr.bf16.mxu1 %v18180_v14 }
 0x30c   : > { %11526 = vmatmul.mubr.bf16.gmra.mrb[16].mxu0 %v6764_v15  ;;  %v14771_v16 = vpop.permute.xlu1 %5150  ;;  %v4232_v46 = vadd.f32 %v4220_v37, %v4130_v32  ;;  %v5376_v15 = vmul.f32 %v14404_v47, %v14632_v26 }
 0x30d   : > { %v14773_v57 = vpop.permute.xlu0 %5130  ;;  %2491 = vperm.xlu1 %12215, %v14764_v17   ;;  %11529 = vmatprep.mubr.msk.bf16.mxu0 %vm12487_vm0, %v18180_v14  ;;  %v5184_v10 = vadd.f32 %v5172_v19, %v5082_v8  ;;  %v10223_v8 = vld [vmem:[%s13081_s15 + $0x110] sm:$0xff] }
 0x30e   : > { %2057 = vperm.xlu0 %12214, %v10222_v51   ;;  %v4334_v53 = vadd.f32 %v4322_v49, %v4232_v46 }
 0x30f   : > { %v5286_v50 = vadd.f32 %v5274_v6, %v5184_v10  ;;  %v10219_v6 = vld [vmem:[%s13081_s15 + $0x90] sm:$0xff] }
 0x310   : > { %v14789_v37 = vpop.permute.xlu1 %5257  ;;  %v4436_v51 = vadd.f32 %v4424_v60, %v4334_v53  ;;  %v10231_v53 = vld [vmem:[%s13081_s15 + $0x78] sm:$0xff] }
 0x311   : > { %v14791_v4 = vpop.permute.xlu0 %5237  ;;  %2690 = vperm.xlu1 %12215, %v10297_v39   ;;  %v5388_v46 = vadd.f32 %v5376_v15, %v5286_v50 }
 0x312   : > { %2593 = vperm.xlu0 %12214, %v14782_v12   ;;  %v4538_v32 = vadd.f32 %v4526_v36, %v4436_v51 }
 0x313   : > { %v5490_v19 = vadd.f32 %v5478_v7, %v5388_v46  ;;  %v10310_v46 = vld [vmem:[%s13081_s15 + $0x1d8] sm:$0xff] }
 0x314   : > { %v14796_v26 = vpop.permute.xlu1 %5662  ;;  %v14804_v60 = vadd.f32 %v14460_v40, %v4538_v32  ;;  %v14827_v32 = vld [vmem:[%s13081_s15 + $0x1f0] sm:$0xff] }
 0x315   : > { %18298 = vst [vmem:[#allocation53_spill] sm:$0xff] %v14796_v26  ;;  %v5519_v55 = vpop.permute.xlu0 %5518  ;;  %6600 = vperm.xlu1 %12215, %v14585_v1   ;;  %v10249_v26 = vld [vmem:[%s13081_s15 + $0x120] sm:$0xff] }
 0x316   : > { %6580 = vperm.xlu0 %12214, %v14576_v5   ;;  %v5580_v49 = vmul.f32 %v14435_v45, %v5519_v55  ;;  %18299 = vst [vmem:[#allocation55_spill] sm:$0xff] %v14804_v60  ;;  %v10235_v5 = vld [vmem:[%s13081_s15 + $0xf8] sm:$0xff]  ;;  %v18088_v36 = vmax.f32 %v14804_v60, 0.0 }
 0x318   : > { %v5592_v0 = vadd.f32 %v5580_v49, %v5490_v19  ;;  %v14806_v39 = vpop.permute.xlu1 %5764  ;;  %v10200_v49 = vld [vmem:[%s13081_s15 + $0x160] sm:$0xff] }
 0x319   : > { %18300 = vst [vmem:[#allocation52_spill] sm:$0xff] %v14806_v39  ;;  %v14808_v10 = vpop.permute.xlu0 %5682  ;;  %2062 = vperm.xlu1 %12215, %v10223_v8   ;;  %v14836_v8 = vld [vmem:[%s13081_s15 + $0x178] sm:$0xff] }
 0x31a   : > { %18301 = vst [vmem:[#allocation48_spill] sm:$0xff] %v14808_v10  ;;  %2042 = vperm.xlu0 %12214, %v10219_v6   ;;  %v14811_v1 = vadd.f32 %v14460_v40, %v5592_v0 }
 0x31c   : > { %v14815_v15 = vpop.permute.xlu1 %5871  ;;  %v18089_v50 = vmax.f32 %v14811_v1, 0.0 }
 0x31d   : > { %v14819_v51 = vpop.permute.xlu0 %5784  ;;  %2159 = vperm.xlu1 %12215, %v10235_v5   ;;  %v10236_v5 = vld [vmem:[%s13081_s15 + $0x118] sm:$0xff] }
 0x31e   : > { %18302 = vst [vmem:[#allocation47_spill] sm:$0xff] %v14819_v51  ;;  %2139 = vperm.xlu0 %12214, %v10231_v53   ;;  %v6726_v7 = vpack.c.bf16 %v18089_v50, %v18088_v36  ;;  %v10232_v53 = vld [vmem:[%s13081_s15 + $0x98] sm:$0xff] }
 0x320   : > { %11570 = vmatmul.mubr.bf16.gmra.mrb[16].mxu1 %v6726_v7  ;;  %v14829_v55 = vpop.permute.xlu1 %5232  ;;  %v12232_v7 = vld [vmem:[%s18042_s2 + $0x80] sm:$0xff]  }
 0x321   : > { %v14831_v19 = vpop.permute.xlu0 %5891  ;;  %2792 = vperm.xlu1 %12215, %v10310_v46   ;;  %11573 = vmatprep.mubr.msk.bf16.mxu1 %vm12487_vm0, %v18180_v14 }
 0x322   : > { %18303 = vst [vmem:[#allocation49_spill] sm:$0xff] %v14831_v19  ;;  %2695 = vperm.xlu0 %12214, %v14827_v32   ;;  %11582 = vmatpush3.bf16.msra.mxu0 %v12232_v7 }
 0x323   : > { %11583 = vmatprep.subr.bf16.mxu0 %v18180_v14 }
 0x324   : > { %v14840_v6 = vpop.permute.xlu1 %5339 }
 0x325   : > { %v14842_v0 = vpop.permute.xlu0 %5252  ;;  %1873 = vperm.xlu1 %12215, %v10200_v49   ;;  %v12233_v49 = vld [vmem:[%s18042_s2 + $0x88] sm:$0xff]  }
 0x326   : > { %1776 = vperm.xlu0 %12214, %v14836_v8   ;;  %11584 = vmatpush3.bf16.msra.mxu0 %v12233_v49  ;;  %v12235_v49 = vld [vmem:[%s18042_s2 + $0x98] sm:$0xff]  }
 0x327   : > { %11585 = vmatprep.subr.bf16.mxu0 %v18180_v14 }
 0x328   : > { %v14850_v46 = vpop.permute.xlu1 %5866 }
 0x329   : > { %18304 = vst [vmem:[#allocation57_spill] sm:$0xff] %v14850_v46  ;;  %v14852_v33 = vpop.permute.xlu0 %5359  ;;  %2164 = vperm.xlu1 %12215, %v10236_v5   ;;  %v12234_v5 = vld [vmem:[%s18042_s2 + $0x90] sm:$0xff]  }
 0x32a   : > { %2144 = vperm.xlu0 %12214, %v10232_v53   ;;  %11586 = vmatpush3.bf16.msra.mxu0 %v12234_v5  ;;  %v4871_v5 = vmul.f32 %v14341_v27, %v14564_v61 }
 0x32b   : > { %11587 = vmatprep.subr.bf16.mxu0 %v18180_v14 }
 0x32c   : > { %v14858_v36 = vpop.permute.xlu1 %5973 }
 0x32d   : > { %v14860_v50 = vpop.permute.xlu0 %5886  ;;  %2261 = vperm.xlu1 %12215, %v14664_v20   ;;  %v10213_v20 = vld [vmem:[%s13081_s15 + $0x168] sm:$0xff] }
 0x32e   : > { %18305 = vst [vmem:[#allocation36_spill] sm:$0xff] %v14860_v50  ;;  %2241 = vperm.xlu0 %12214, %v14644_v42   ;;  %v14879_v42 = vld [vmem:[%s13081_s15 + $0x180] sm:$0xff]  ;;  %11588 = vmatpush3.bf16.msra.mxu0 %v12235_v49  ;;  %v4671_v49 = vmul.f32 %v14336_v48, %v14486_v63  ;;  %v12237_v63 = vld [vmem:[%s18042_s2 + $0xa8] sm:$0xff]  }
 0x32f   : > { %v10245_v50 = vld [vmem:[%s13081_s15 + $0xa0] sm:$0xff]  ;;  %11589 = vmatprep.subr.bf16.mxu0 %v18180_v14 }
 0x330   : > { %v14871_v53 = vpop.permute.xlu1 %5334 }
 0x331   : > { %v14873_v7 = vpop.permute.xlu0 %5993  ;;  %2894 = vperm.xlu1 %12215, %v14764_v17   ;;  %v18307_v17 = vld [vmem:[#allocation19_spill] sm:$0xff] }
 0x332   : > { %18306 = vst [vmem:[#allocation33_spill] sm:$0xff] %v14873_v7  ;;  %2797 = vperm.xlu0 %12214, %v14865_v2   ;;  %v4667_v52 = vmul.f32 %v14336_v48, %v18307_v17  ;;  %v4973_v17 = vmul.f32 %v14350_v3, %v14602_v56  ;;  %v4785_v56 = vadd.f32 %v4773_v62, %v4671_v49 }
 0x334   : > { %v14887_v60 = vpop.permute.xlu1 %5441  ;;  %v4781_v39 = vadd.f32 %v4769_v30, %v4667_v52  ;;  %v5075_v52 = vmul.f32 %v14365_v38, %v14624_v58  ;;  %v4977_v30 = vmul.f32 %v14350_v3, %v14610_v43  ;;  %v5177_v58 = vmul.f32 %v14378_v41, %v14683_v44  ;;  %v10279_v44 = vld [vmem:[%s13081_s15 + $0x2c0] sm:$0xff] }
 0x335   : > { %v14889_v25 = vpop.permute.xlu0 %5354  ;;  %1975 = vperm.xlu1 %12215, %v10213_v20   ;;  %v12236_v20 = vld [vmem:[%s18042_s2 + $0xa0] sm:$0xff]   ;;  %v4768_v43 = vmul.f32 %v14328_v11, %v14555_v13 }
 0x336   : > { %1878 = vperm.xlu0 %12214, %v14879_v42   ;;  %v4883_v19 = vadd.f32 %v4871_v5, %v4781_v39  ;;  %11590 = vmatpush3.bf16.msra.mxu0 %v12236_v20  ;;  %v10275_v20 = vld [vmem:[%s13081_s15 + $0x240] sm:$0xff] }
 0x337   : > { %v14896_v46 = vpop.f32.mrb[8].mxu0  ;;  %11591 = vmatprep.subr.bf16.mxu0 %v18180_v14 }
 0x338   : > { %v11519_v10 = vpop.f32.mrb[9].mxu0  ;;  %v14908_v61 = vpop.permute.xlu1 %5968 }
 0x339   : > { %v14910_v51 = vpop.f32.mrb[10].mxu0  ;;  %v14916_v10 = vpop.permute.xlu0 %5461  ;;  %2266 = vperm.xlu1 %12215, %v10249_v26   ;;  %v4985_v26 = vadd.f32 %v4973_v17, %v4883_v19  ;;  %v5279_v19 = vmul.f32 %v14393_v29, %v14791_v4  ;;  %v18308_v17 = vld [vmem:[#allocation12_spill] sm:$0xff] }
 0x33a   : > { %v11520_v7 = vpop.f32.mrb[11].mxu0  ;;  %2246 = vperm.xlu0 %12214, %v10245_v50   ;;  %v4887_v50 = vadd.f32 %v4875_v54, %v4785_v56  ;;  %11592 = vmatpush3.bf16.msra.mxu0 %v12237_v63  ;;  %v4666_v13 = vmul.f32 %v14336_v48, %v18308_v17  ;;  %v5381_v56 = vmul.f32 %v14404_v47, %v14840_v6  ;;  %v18310_v6 = vld [vmem:[#allocation45_spill] sm:$0xff] }
 0x33b   : > { %v5079_v7 = vmul.f32 %v14365_v38, %v14634_v24  ;;  %v5087_v62 = vadd.f32 %v5075_v52, %v4985_v26  ;;  %11593 = vmatprep.subr.bf16.mxu0 %v18180_v14  ;;  %v12239_v24 = vld [vmem:[%s18042_s2 + $0xb0] sm:$0xff]   ;;  %v5181_v52 = vmul.f32 %v14378_v41, %v14696_v28  ;;  %v10288_v28 = vld [vmem:[%s13081_s15 + $0x248] sm:$0xff] }
 0x33c   : > { %v14931_v39 = vpop.permute.xlu1 %6075  ;;  %v4989_v49 = vadd.f32 %v4977_v30, %v4887_v50  ;;  %v4780_v63 = vadd.f32 %v4768_v43, %v4666_v13  ;;  %v5283_v50 = vmul.f32 %v14393_v29, %v14789_v37  ;;  %v18311_v43 = vld [vmem:[#allocation64_spill] sm:$0xff]  ;;  %v18312_v13 = vld [vmem:[#allocation67_spill] sm:$0xff] }
 0x33d   : > { %v14937_v5 = vpop.permute.xlu0 %5988  ;;  %2363 = vperm.xlu1 %12215, %v14744_v59   ;;  %v18309_v59 = vld [vmem:[#allocation65_spill] sm:$0xff]  ;;  %v5189_v54 = vadd.f32 %v5177_v58, %v5087_v62  ;;  %v4670_v62 = vmul.f32 %v14336_v48, %v18310_v6  ;;  %v12241_v37 = vld [vmem:[%s18042_s2 + $0xb8] sm:$0xff]  }
 0x33e   : > { %2343 = vperm.xlu0 %12214, %v14712_v18   ;;  %v12240_v18 = vld [vmem:[%s18042_s2 + $0xc8] sm:$0xff]   ;;  %v4870_v4 = vmul.f32 %v14341_v27, %v18309_v59  ;;  %v5091_v21 = vadd.f32 %v5079_v7, %v4989_v49  ;;  %v5483_v27 = vmul.f32 %v14418_v22, %v14887_v60  ;;  %11594 = vmatpush3.bf16.msra.mxu0 %v12239_v24  ;;  %v12242_v60 = vld [vmem:[%s18042_s2 + $0xd0] sm:$0xff]   ;;  %v12410_v49 = vld [vmem:[%s18041_s1 + $0x2] ss:$0 sm:$0xff] }
 0x33f   : > { %v5291_v17 = vadd.f32 %v5279_v19, %v5189_v54  ;;  %v10292_v58 = vld [vmem:[%s13081_s15 + $0x2c8] sm:$0xff]  ;;  %11628 = vmatpush3.bf16.msra.mxu1 %v12240_v18  ;;  %v4772_v7 = vmul.f32 %v14328_v11, %v18311_v43  ;;  %11595 = vmatprep.subr.bf16.mxu0 %v18180_v14  ;;  %v5385_v11 = vmul.f32 %v14404_v47, %v14852_v33  ;;  %v18313_v24 = vld [vmem:[#allocation66_spill] sm:$0xff] }
 0x340   : > { %v14961_v30 = vpop.permute.xlu1 %5436  ;;  %11629 = vmatprep.subr.bf16.mxu1 %v18180_v14  ;;  %v4882_v48 = vadd.f32 %v4870_v4, %v4780_v63  ;;  %v5193_v19 = vadd.f32 %v5181_v52, %v5091_v21  ;;  %v4874_v18 = vmul.f32 %v12410_v49, %v18313_v24  ;;  %v18314_v59 = vld [vmem:[#allocation51_spill] sm:$0xff]  ;;  %v5487_v47 = vmul.f32 %v14418_v22, %v14916_v10  ;;  %v14999_v33 = vld [vmem:[%s13081_s15 + $0x200] sm:$0xff] }
 0x341   : > { %v14963_v26 = vpop.permute.xlu0 %6095  ;;  %2526 = vperm.xlu1 %12215, %v10279_v44   ;;  %v4972_v44 = vmul.f32 %v14350_v3, %v18312_v13  ;;  %v5074_v54 = vmul.f32 %v14365_v38, %v18314_v59  ;;  %v5176_v63 = vmul.f32 %v14378_v41, %v14773_v57  ;;  %v12243_v38 = vld [vmem:[%s18042_s2 + $0xd8] sm:$0xff]   ;;  %v4784_v21 = vadd.f32 %v4772_v7, %v4670_v62  ;;  %v12411_v22 = vld [vmem:[%s18041_s1 + $0x3] ss:$0 sm:$0xff]  ;;  %v12412_v7 = vld [vmem:[%s18041_s1 + $0x4] ss:$0 sm:$0xff] }
 0x342   : > { %2506 = vperm.xlu0 %12214, %v10275_v20   ;;  %v5393_v20 = vadd.f32 %v5381_v56, %v5291_v17  ;;  %v5295_v4 = vadd.f32 %v5283_v50, %v5193_v19  ;;  %11596 = vmatpush3.bf16.msra.mxu0 %v12241_v37  ;;  %v18315_v10 = vld [vmem:[#allocation68_spill] sm:$0xff]  ;;  %v5078_v13 = vmul.f32 %v12412_v7, %v14685_v9  ;;  %v15025_v19 = vld [vmem:[%s13081_s15 + $0x188] sm:$0xff] }
 0x343   : > { %11630 = vmatpush3.bf16.msra.mxu1 %v12242_v60  ;;  %v4984_v56 = vadd.f32 %v4972_v44, %v4882_v48  ;;  %11669 = vmatprep.subr.bf16.mxu0 %v18180_v14  ;;  %v4976_v50 = vmul.f32 %v12411_v22, %v18315_v10  ;;  %v4886_v62 = vadd.f32 %v4874_v18, %v4784_v21  ;;  %v10226_v48 = vld [vmem:[%s13081_s15 + $0x170] sm:$0xff]  ;;  %v10258_v21 = vld [vmem:[%s13081_s15 + $0xa8] sm:$0xff] }
 0x344   : > { %v5544_v3 = vpop.permute.xlu1 %5543  ;;  %v5495_v52 = vadd.f32 %v5483_v27, %v5393_v20  ;;  %11631 = vmatprep.subr.bf16.mxu1 %v18180_v14  ;;  %v5397_v17 = vadd.f32 %v5385_v11, %v5295_v4  ;;  %v12245_v22 = vld [vmem:[%s18042_s2 + $0xe8] sm:$0xff]  }
 0x345   : > { %v5585_v6 = vmul.f32 %v14435_v45, %v5544_v3  ;;  %v14994_v43 = vpop.permute.xlu0 %5456  ;;  %2628 = vperm.xlu1 %12215, %v10292_v58   ;;  %v5086_v57 = vadd.f32 %v5074_v54, %v4984_v56  ;;  %v5278_v58 = vmul.f32 %v14393_v29, %v14829_v55  ;;  %v4988_v9 = vadd.f32 %v4976_v50, %v4886_v62  ;;  %v12414_v3 = vld [vmem:[%s18041_s1 + $0x5] ss:$0 sm:$0xff]  ;;  %v12415_v54 = vld [vmem:[%s18041_s1 + $0x8] ss:$0 sm:$0xff]  ;;  %v12416_v56 = vld [vmem:[%s18041_s1 + $0x6] ss:$0 sm:$0xff] }
 0x346   : > { %2608 = vperm.xlu0 %12214, %v10288_v28   ;;  %v5499_v44 = vadd.f32 %v5487_v47, %v5397_v17  ;;  %v5180_v49 = vmul.f32 %v12414_v3, %v14771_v16  ;;  %v5486_v7 = vmul.f32 %v12415_v54, %v14994_v43  ;;  %v15104_v3 = vld [vmem:[%s13081_s15 + $0x268] sm:$0xff] }
 0x347   : > { %v5597_v27 = vadd.f32 %v5585_v6, %v5495_v52  ;;  %11632 = vmatpush3.bf16.msra.mxu1 %v12243_v38  ;;  %v5188_v29 = vadd.f32 %v5176_v63, %v5086_v57  ;;  %v5482_v6 = vmul.f32 %v12415_v54, %v14961_v30  ;;  %v5090_v47 = vadd.f32 %v5078_v13, %v4988_v9  ;;  %v10262_v30 = vld [vmem:[%s13081_s15 + $0x128] sm:$0xff]  ;;  %v15084_v13 = vld [vmem:[%s13081_s15 + $0x2e0] sm:$0xff] }
 0x348   : > { %v15012_v41 = vpop.permute.xlu1 %6070  ;;  %11633 = vmatprep.subr.bf16.mxu1 %v18180_v14  ;;  %v5282_v63 = vmul.f32 %v12416_v56, %v14842_v0  ;;  %v12417_v57 = vld [vmem:[%s18041_s1 + $0x9] ss:$0 sm:$0xff]  ;;  %v10305_v56 = vld [vmem:[%s13081_s15 + $0x2d0] sm:$0xff] }
 0x349   : > { %v5564_v28 = vpop.permute.xlu0 %5563  ;;  %2996 = vperm.xlu1 %12215, %v14782_v12   ;;  %v12413_v12 = vld [vmem:[%s18041_s1 + $0x7] ss:$0 sm:$0xff]  ;;  %v15043_v24 = vadd.f32 %v14460_v40, %v5597_v27  ;;  %v5290_v59 = vadd.f32 %v5278_v58, %v5188_v29  ;;  %v5192_v10 = vadd.f32 %v5180_v49, %v5090_v47  ;;  %v12418_v29 = vld [vmem:[%s18050_s10] ss:$0 sm:$0xff]  ;;  %v15101_v9 = vld [vmem:[%s13081_s15 + $0x2e8] sm:$0xff] }
 0x34a   : > { %2899 = vperm.xlu0 %12214, %v14999_v33   ;;  %v5589_v37 = vmul.f32 %v14435_v45, %v5564_v28  ;;  %v5380_v55 = vmul.f32 %v12413_v12, %v14871_v53  ;;  %v12244_v45 = vld [vmem:[%s18042_s2 + $0xe0] sm:$0xff]   ;;  %v5384_v50 = vmul.f32 %v12413_v12, %v14889_v25 }
 0x34b   : > { %v7019_v60 = vpop.f32.mrb[8].mxu1  ;;  %18317 = vst [vmem:[#allocation12_spill] sm:$0xff] %v15043_v24  ;;  %11634 = vmatpush3.bf16.msra.mxu1 %v12244_v45  ;;  %v18093_v0 = vmax.f32 %v15043_v24, 0.0  ;;  %v5294_v62 = vadd.f32 %v5282_v63, %v5192_v10  ;;  %v10301_v63 = vld [vmem:[%s13081_s15 + $0x250] sm:$0xff] }
 0x34c   : > { %v15032_v20 = vadd.f32 %v7019_v60, %v14896_v46  ;;  %v11563_v11 = vpop.f32.mrb[9].mxu1  ;;  %v5601_v46 = vadd.f32 %v5589_v37, %v5499_v44  ;;  %v15045_v53 = vpop.permute.xlu1 %6177  ;;  %11635 = vmatprep.subr.bf16.mxu1 %v18180_v14  ;;  %v15087_v44 = vld [vmem:[%s13081_s15 + $0x260] sm:$0xff] }
 0x34d   : > { %v7022_v18 = vpop.f32.mrb[10].mxu1  ;;  %v15054_v16 = vpop.permute.xlu0 %6090  ;;  %2077 = vperm.xlu1 %12215, %v10226_v48   ;;  %v12246_v60 = vld [vmem:[%s18042_s2 + $0xf0] sm:$0xff]   ;;  %v5396_v43 = vadd.f32 %v5384_v50, %v5294_v62 }
 0x34e   : > { %18316 = vst [vmem:[#allocation19_spill] sm:$0xff] %v15032_v20  ;;  %v15052_v4 = vadd.f32 %v7022_v18, %v14910_v51  ;;  %v11564_v52 = vpop.f32.mrb[11].mxu1  ;;  %1980 = vperm.xlu0 %12214, %v15025_v19   ;;  %v15062_v38 = vadd.f32 %v14460_v40, %v5601_v46  ;;  %v5392_v51 = vadd.f32 %v5380_v55, %v5290_v59  ;;  %v12247_v46 = vld [vmem:[%s18042_s2 + $0xf8] sm:$0xff]   ;;  %v15155_v62 = vld [vmem:[%s13081_s15 + $0x270] sm:$0xff] }
 0x34f   : > { %11636 = vmatpush3.bf16.msra.mxu1 %v12245_v22  ;;  %v5498_v11 = vadd.f32 %v5486_v7, %v5396_v43  ;;  %v15135_v22 = vld [vmem:[%s13081_s15 + $0x208] sm:$0xff] }
 0x350   : > { %18318 = vst [vmem:[#allocation65_spill] sm:$0xff] %v15052_v4  ;;  %v5539_v17 = vpop.permute.xlu1 %5538  ;;  %v18095_v40 = vmax.f32 %v15062_v38, 0.0  ;;  %v5494_v27 = vadd.f32 %v5482_v6, %v5392_v51  ;;  %11637 = vmatprep.subr.bf16.mxu1 %v18180_v14  ;;  %v18319_v6 = vmax.f32 %v14811_v1, 0.0  ;;  %v10367_v4 = vld [vmem:[%s13081_s15 + $0x298] sm:$0xff] }
 0x351   : > { %v5584_v58 = vmul.f32 %v12417_v57, %v5539_v17  ;;  %v15076_v28 = vpop.permute.xlu0 %6197  ;;  %2368 = vperm.xlu1 %12215, %v10262_v30   ;;  %v10227_v17 = vld [vmem:[%s13081_s15 + $0x190] sm:$0xff] }
 0x352   : > { %2348 = vperm.xlu0 %12214, %v10258_v21   ;;  %v6765_v25 = vpack.c.bf16 %v18095_v40, %v18093_v0 }
 0x353   : > { %v5596_v37 = vadd.f32 %v5584_v58, %v5494_v27  ;;  %11638 = vmatpush3.bf16.msra.mxu1 %v12246_v60  ;;  %v15152_v58 = vld [vmem:[%s13081_s15 + $0x2f0] sm:$0xff] }
 0x354   : > { %11530 = vmatmul.mubr.bf16.gmra.mrb[20].mxu0 %v6765_v25  ;;  %v15093_v48 = vpop.permute.xlu1 %6172  ;;  %11639 = vmatprep.subr.bf16.mxu1 %v18180_v14  ;;  %v10318_v25 = vld [vmem:[%s13081_s15 + $0x2d8] sm:$0xff] }
 0x355   : > { %v5613_v12 = vadd.f32 %v12418_v29, %v5596_v37  ;;  %v5559_v55 = vpop.permute.xlu0 %5558  ;;  %2531 = vperm.xlu1 %12215, %v15084_v13   ;;  %11533 = vmatprep.mubr.msk.bf16.mxu0 %vm12487_vm0, %v18180_v14  ;;  %v10314_v37 = vld [vmem:[%s13081_s15 + $0x258] sm:$0xff] }
 0x356   : > { %2511 = vperm.xlu0 %12214, %v15087_v44   ;;  %v5588_v45 = vmul.f32 %v12417_v57, %v5559_v55  ;;  %v10350_v55 = vld [vmem:[%s13081_s15 + $0x210] sm:$0xff] }
 0x357   : > { %v5625_v49 = vmax.f32 %v5613_v12, 0.0  ;;  %11640 = vmatpush3.bf16.msra.mxu1 %v12247_v46  ;;  %v15180_v12 = vld [vmem:[%s18041_s1 + $0x2] ss:$0 sm:$0xff] }
 0x358   : > { %v5600_v18 = vadd.f32 %v5588_v45, %v5498_v11  ;;  %v15112_v59 = vpop.permute.xlu1 %6279  ;;  %11713 = vmatprep.subr.bf16.mxu1 %v18180_v14  ;;  %v15188_v45 = vld [vmem:[%s18041_s1 + $0x3] ss:$0 sm:$0xff] }
 0x359   : > { %v15114_v54 = vpop.permute.xlu0 %6192  ;;  %2633 = vperm.xlu1 %12215, %v15101_v9   ;;  %v15120_v52 = vpack.c.bf16 %v5625_v49, %v18319_v6 }
 0x35a   : > { %2613 = vperm.xlu0 %12214, %v15104_v3   ;;  %v15122_v47 = vadd.f32 %v12418_v29, %v5600_v18  ;;  %v15175_v29 = vld [vmem:[%s18041_s1] ss:$0 sm:$0xff]  ;;  %v5929_v18 = vmul.f32 %v15180_v12, %v14815_v15 }
 0x35b   : > { %18320 = vst [vmem:[#allocation45_spill] sm:$0xff] %v15120_v52  ;;  %v5725_v46 = vmul.f32 %v15175_v29, %v14705_v31 }
 0x35c   : > { %v15127_v30 = vpop.permute.xlu1 %6274  ;;  %v18094_v21 = vmax.f32 %v15122_v47, 0.0 }
 0x35d   : > { %v15130_v51 = vpop.permute.xlu0 %6299  ;;  %2730 = vperm.xlu1 %12215, %v10305_v56   ;;  %v10240_v56 = vld [vmem:[%s13081_s15 + $0x198] sm:$0xff] }
 0x35e   : > { %2710 = vperm.xlu0 %12214, %v10301_v63   ;;  %v6727_v1 = vpack.c.bf16 %v18094_v21, %v5625_v49 }
 0x360   : > { %11574 = vmatmul.mubr.bf16.gmra.mrb[20].mxu1 %v6727_v1  ;;  %v15137_v10 = vpop.permute.xlu1 %6381  ;;  %v6031_v1 = vmul.f32 %v15188_v45, %v14858_v36  ;;  %v5729_v36 = vmul.f32 %v15175_v29, %v14734_v34 }
 0x361   : > { %v15139_v50 = vpop.permute.xlu0 %6294  ;;  %3098 = vperm.xlu1 %12215, %v14827_v32   ;;  %11577 = vmatprep.mubr.msk.bf16.mxu1 %vm12487_vm0, %v18180_v14 }
 0x362   : > { %3001 = vperm.xlu0 %12214, %v15135_v22  }
 0x364   : > { %v15146_v27 = vpop.permute.xlu1 %1833 }
 0x365   : > { %v15148_v57 = vpop.permute.xlu0 %6401  ;;  %2179 = vperm.xlu1 %12215, %v14836_v8   ;;  %v15168_v8 = vld [vmem:[%s18041_s1 + $0x1] ss:$0 sm:$0xff] }
 0x366   : > { %2082 = vperm.xlu0 %12214, %v10227_v17   ;;  %v5827_v11 = vmul.f32 %v15168_v8, %v14727_v23  ;;  %v15200_v23 = vld [vmem:[%s18041_s1 + $0x4] ss:$0 sm:$0xff]  ;;  %v5831_v31 = vmul.f32 %v15168_v8, %v14752_v35  ;;  %v18321_v35 = vld [vmem:[#allocation49_spill] sm:$0xff] }
 0x368   : > { %v15157_v7 = vpop.permute.xlu1 %6376  ;;  %v5839_v63 = vadd.f32 %v5827_v11, %v5725_v46  ;;  %v15226_v11 = vld [vmem:[%s18041_s1 + $0x6] ss:$0 sm:$0xff]  ;;  %v15229_v46 = vld [vmem:[%s13081_s15 + $0x2f8] sm:$0xff] }
 0x369   : > { %v15159_v32 = vpop.permute.xlu0 %1853  ;;  %2735 = vperm.xlu1 %12215, %v15152_v58   ;;  %v6337_v40 = vmul.f32 %v15226_v11, %v15112_v59 }
 0x36a   : > { %2715 = vperm.xlu0 %12214, %v15155_v62   ;;  %v5941_v17 = vadd.f32 %v5929_v18, %v5839_v63  ;;  %v15232_v18 = vld [vmem:[%s13081_s15 + $0x278] sm:$0xff] }
 0x36b   : > { %v18322_v63 = vld [vmem:[#allocation33_spill] sm:$0xff] }
 0x36c   : > { %v6484_v60 = vpop.permute.xlu1 %6483  ;;  %v6035_v34 = vmul.f32 %v15188_v45, %v18322_v63 }
 0x36d   : > { %v15170_v43 = vpop.permute.xlu0 %6396  ;;  %2832 = vperm.xlu1 %12215, %v10318_v25   ;;  %v6133_v25 = vmul.f32 %v15200_v23, %v14931_v39  ;;  %v6043_v39 = vadd.f32 %v6031_v1, %v5941_v17  ;;  %v6137_v1 = vmul.f32 %v15200_v23, %v14963_v26 }
 0x36e   : > { %2812 = vperm.xlu0 %12214, %v10314_v37  }
 0x36f   : > { %v6145_v21 = vadd.f32 %v6133_v25, %v6043_v39 }
 0x370   : > { %v15190_v49 = vpop.permute.xlu1 %1838 }
 0x371   : > { %v6504_v6 = vpop.permute.xlu0 %6503  ;;  %3200 = vperm.xlu1 %12215, %v14865_v2   ;;  %v15210_v2 = vld [vmem:[%s18041_s1 + $0x5] ss:$0 sm:$0xff] }
 0x372   : > { %3103 = vperm.xlu0 %12214, %v10350_v55   ;;  %v5933_v55 = vmul.f32 %v15180_v12, %v18321_v35  ;;  %v15241_v35 = vld [vmem:[%s18041_s1 + $0x7] ss:$0 sm:$0xff] }
 0x373   : > { %v6439_v59 = vmul.f32 %v15241_v35, %v15137_v10  ;;  %v10363_v10 = vld [vmem:[%s13081_s15 + $0x218] sm:$0xff] }
 0x374   : > { %v15212_v15 = vpop.permute.xlu1 %1935 }
 0x375   : > { %v15216_v37 = vpop.permute.xlu0 %1858  ;;  %2281 = vperm.xlu1 %12215, %v14879_v42   ;;  %v6235_v42 = vmul.f32 %v15210_v2, %v15045_v53 }
 0x376   : > { %2184 = vperm.xlu0 %12214, %v10240_v56   ;;  %v5843_v56 = vadd.f32 %v5831_v31, %v5729_v36  ;;  %v15256_v31 = vld [vmem:[%s18041_s1 + $0x8] ss:$0 sm:$0xff]  ;;  %v6239_v36 = vmul.f32 %v15210_v2, %v15076_v28  ;;  %v15274_v28 = vld [vmem:[%s18041_s1 + $0x9] ss:$0 sm:$0xff] }
 0x377   : > { %v6247_v17 = vadd.f32 %v6235_v42, %v6145_v21  ;;  %v6341_v21 = vmul.f32 %v15226_v11, %v15130_v51 }
 0x378   : > { %v15243_v0 = vpop.permute.xlu1 %2486  ;;  %v5945_v53 = vadd.f32 %v5933_v55, %v5843_v56  ;;  %v6541_v56 = vmul.f32 %v15256_v31, %v6484_v60  ;;  %v6443_v60 = vmul.f32 %v15241_v35, %v15148_v57 }
 0x379   : > { %v15247_v24 = vpop.permute.xlu0 %1955  ;;  %2837 = vperm.xlu1 %12215, %v15229_v46   ;;  %v6349_v55 = vadd.f32 %v6337_v40, %v6247_v17  ;;  %v15287_v17 = vld [vmem:[%s18050_s10] ss:$0 sm:$0xff] }
 0x37a   : > { %2817 = vperm.xlu0 %12214, %v15232_v18   ;;  %v6047_v25 = vadd.f32 %v6035_v34, %v5945_v53 }
 0x37b   : > { %v6451_v40 = vadd.f32 %v6439_v59, %v6349_v55  ;;  %v10253_v59 = vld [vmem:[%s13081_s15 + $0x1a0] sm:$0xff] }
 0x37c   : > { %v15262_v39 = vpop.permute.xlu1 %6478  ;;  %v6149_v26 = vadd.f32 %v6137_v1, %v6047_v25  ;;  %v6545_v1 = vmul.f32 %v15256_v31, %v6504_v6  ;;  %v18323_v25 = vld [vmem:[#allocation47_spill] sm:$0xff]  ;;  %v18324_v55 = vld [vmem:[#allocation52_spill] sm:$0xff] }
 0x37d   : > { %v15265_v63 = vpop.permute.xlu0 %2588  ;;  %2934 = vperm.xlu1 %12215, %v15084_v13   ;;  %v6553_v13 = vadd.f32 %v6541_v56, %v6451_v40  ;;  %v5830_v57 = vmul.f32 %v15168_v8, %v18323_v25  ;;  %v5826_v56 = vmul.f32 %v15168_v8, %v18324_v55  ;;  %v18327_v25 = vld [vmem:[#allocation53_spill] sm:$0xff]  ;;  %v15308_v55 = vld [vmem:[%s13081_s15 + $0x300] sm:$0xff] }
 0x37e   : > { %2914 = vperm.xlu0 %12214, %v15087_v44   ;;  %v6251_v42 = vadd.f32 %v6239_v36, %v6149_v26 }
 0x380   : > { %v6586_v34 = vpop.permute.xlu1 %6585  ;;  %v6353_v51 = vadd.f32 %v6341_v21, %v6251_v42  ;;  %v18325_v21 = vld [vmem:[#allocation48_spill] sm:$0xff] }
 0x381   : > { %v6643_v44 = vmul.f32 %v15274_v28, %v6586_v34  ;;  %v15280_v53 = vpop.permute.xlu0 %6498  ;;  %3302 = vperm.xlu1 %12215, %v14999_v33   ;;  %v5728_v6 = vmul.f32 %v15175_v29, %v18325_v21  ;;  %v15311_v21 = vld [vmem:[%s13081_s15 + $0x280] sm:$0xff] }
 0x382   : > { %3205 = vperm.xlu0 %12214, %v10363_v10   ;;  %v6455_v33 = vadd.f32 %v6443_v60, %v6353_v51  ;;  %v18326_v10 = vld [vmem:[#allocation36_spill] sm:$0xff] }
 0x383   : > { %v6655_v36 = vadd.f32 %v6643_v44, %v6553_v13  ;;  %v5932_v40 = vmul.f32 %v15180_v12, %v18326_v10  ;;  %v5724_v13 = vmul.f32 %v15175_v29, %v18327_v25  ;;  %v18328_v44 = vld [vmem:[#allocation57_spill] sm:$0xff]  ;;  %v5842_v10 = vadd.f32 %v5830_v57, %v5728_v6 }
 0x384   : > { %v15294_v26 = vpop.permute.xlu1 %1940  ;;  %v5928_v8 = vmul.f32 %v15180_v12, %v18328_v44  ;;  %v6557_v60 = vadd.f32 %v6545_v1, %v6455_v33  ;;  %v6136_v1 = vmul.f32 %v15200_v23, %v15054_v16  ;;  %v6238_v16 = vmul.f32 %v15210_v2, %v15114_v54 }
 0x385   : > { %v6672_v42 = vadd.f32 %v15287_v17, %v6655_v36  ;;  %v6606_v34 = vpop.permute.xlu0 %6605  ;;  %2383 = vperm.xlu1 %12215, %v15025_v19   ;;  %v6034_v36 = vmul.f32 %v15188_v45, %v14937_v5  ;;  %v5838_v19 = vadd.f32 %v5826_v56, %v5724_v13  ;;  %v5944_v12 = vadd.f32 %v5932_v40, %v5842_v10  ;;  %v10376_v10 = vld [vmem:[%s13081_s15 + $0x220] sm:$0xff] }
 0x386   : > { %2286 = vperm.xlu0 %12214, %v10253_v59   ;;  %v6647_v51 = vmul.f32 %v15274_v28, %v6606_v34  ;;  %v6030_v59 = vmul.f32 %v15188_v45, %v14908_v61  ;;  %v18329_v5 = vmax.f32 %v15062_v38, 0.0  ;;  %v6132_v61 = vmul.f32 %v15200_v23, %v15012_v41 }
 0x387   : > { %v6684_v52 = vmax.f32 %v6672_v42, 0.0  ;;  %v5940_v56 = vadd.f32 %v5928_v8, %v5838_v19  ;;  %v6046_v6 = vadd.f32 %v6034_v36, %v5944_v12  ;;  %v6234_v38 = vmul.f32 %v15210_v2, %v15093_v48 }
 0x388   : > { %v6659_v29 = vadd.f32 %v6647_v51, %v6557_v60  ;;  %v15317_v25 = vpop.permute.xlu1 %2037  ;;  %v6340_v23 = vmul.f32 %v15226_v11, %v15139_v50  ;;  %v6336_v48 = vmul.f32 %v15226_v11, %v15127_v30  ;;  %v6442_v36 = vmul.f32 %v15241_v35, %v15170_v43 }
 0x389   : > { %v15321_v33 = vpop.permute.xlu0 %1960  ;;  %2939 = vperm.xlu1 %12215, %v15308_v55   ;;  %v15327_v57 = vpack.c.bf16 %v6684_v52, %v18329_v5  ;;  %v6042_v42 = vadd.f32 %v6030_v59, %v5940_v56  ;;  %v6148_v41 = vadd.f32 %v6136_v1, %v6046_v6  ;;  %v6544_v30 = vmul.f32 %v15256_v31, %v15280_v53 }
 0x38a   : > { %2919 = vperm.xlu0 %12214, %v15311_v21   ;;  %v15332_v45 = vadd.f32 %v15287_v17, %v6659_v29  ;;  %v6540_v43 = vmul.f32 %v15256_v31, %v15262_v39  ;;  %v10406_v29 = vld [vmem:[%s13081_s15 + $0x3c0] sm:$0xff]  ;;  %v10419_v31 = vld [vmem:[%s13081_s15 + $0x3c8] sm:$0xff] }
 0x38b   : > { %18330 = vst [vmem:[#allocation64_spill] sm:$0xff] %v15327_v57  ;;  %v15336_v40 = vpop.f32.mrb[12].mxu0  ;;  %v6144_v54 = vadd.f32 %v6132_v61, %v6042_v42  ;;  %v6250_v50 = vadd.f32 %v6238_v16, %v6148_v41  ;;  %v10415_v39 = vld [vmem:[%s13081_s15 + $0x348] sm:$0xff]  ;;  %v15487_v57 = vld [vmem:[%s18041_s1 + $0x4] ss:$0 sm:$0xff] }
 0x38c   : > { %18331 = vst [vmem:[#allocation67_spill] sm:$0xff] %v15332_v45  ;;  %v11523_v34 = vpop.f32.mrb[13].mxu0  ;;  %v15340_v13 = vpop.permute.xlu1 %2491  ;;  %v18097_v44 = vmax.f32 %v15332_v45, 0.0  ;;  %v18345_v45 = vld [vmem:[#allocation30_spill] sm:$0xff] }
 0x38d   : > { %v15345_v8 = vpop.f32.mrb[14].mxu0  ;;  %v15347_v60 = vpop.permute.xlu0 %2057  ;;  %3036 = vperm.xlu1 %12215, %v15101_v9   ;;  %v6246_v19 = vadd.f32 %v6234_v38, %v6144_v54  ;;  %v6438_v9 = vmul.f32 %v15241_v35, %v15157_v7  ;;  %v6352_v59 = vadd.f32 %v6340_v23, %v6250_v50  ;;  %v10402_v7 = vld [vmem:[%s13081_s15 + $0x340] sm:$0xff]  ;;  %v15386_v23 = vld [vmem:[%s13081_s15 + $0x288] sm:$0xff] }
 0x38e   : > { %3016 = vperm.xlu0 %12214, %v15104_v3   ;;  %v11524_v2 = vpop.f32.mrb[15].mxu0  ;;  %v6766_v51 = vpack.c.bf16 %v18097_v44, %v6684_v52  ;;  %v10266_v54 = vld [vmem:[%s13081_s15 + $0x1a8] sm:$0xff] }
 0x38f   : > { %v6348_v52 = vadd.f32 %v6336_v48, %v6246_v19  ;;  %v6454_v35 = vadd.f32 %v6442_v36, %v6352_v59  ;;  %v15398_v50 = vld [vmem:[%s13081_s15 + $0x308] sm:$0xff] }
 0x390   : > { %11534 = vmatmul.mubr.bf16.gmra.mrb[24].mxu0 %v6766_v51  ;;  %v15360_v3 = vpop.permute.xlu1 %2690 }
 0x391   : > { %v15364_v11 = vpop.permute.xlu0 %2593  ;;  %3404 = vperm.xlu1 %12215, %v15135_v22   ;;  %11597 = vmatprep.mubr.msk.bf16.mxu0 %vm12487_vm0, %v18180_v14  ;;  %v6450_v12 = vadd.f32 %v6438_v9, %v6348_v52  ;;  %v6556_v53 = vadd.f32 %v6544_v30, %v6454_v35 }
 0x392   : > { %3307 = vperm.xlu0 %12214, %v10376_v10  }
 0x393   : > { %v6552_v56 = vadd.f32 %v6540_v43, %v6450_v12  ;;  %v15428_v12 = vld [vmem:[%s13081_s15 + $0x360] sm:$0xff] }
 0x394   : > { %v6601_v1 = vpop.permute.xlu1 %6600 }
 0x395   : > { %v6646_v5 = vmul.f32 %v15274_v28, %v6601_v1  ;;  %v6581_v22 = vpop.permute.xlu0 %6580  ;;  %3568 = vperm.xlu1 %12215, %v10406_v29   ;;  %v10389_v29 = vld [vmem:[%s13081_s15 + $0x228] sm:$0xff] }
 0x396   : > { %3548 = vperm.xlu0 %12214, %v10402_v7   ;;  %v6642_v61 = vmul.f32 %v15274_v28, %v6581_v22  ;;  %v18338_v22 = vld [vmem:[#allocation18_spill] sm:$0xff] }
 0x397   : > { %v6658_v6 = vadd.f32 %v6646_v5, %v6556_v53  ;;  %v15437_v53 = vld [vmem:[%s13081_s15 + $0x3e8] sm:$0xff] }
 0x398   : > { %v6654_v16 = vadd.f32 %v6642_v61, %v6552_v56  ;;  %v15377_v42 = vpop.permute.xlu1 %2062  ;;  %v15440_v5 = vld [vmem:[%s13081_s15 + $0x368] sm:$0xff]  ;;  %v18339_v61 = vld [vmem:[#allocation16_spill] sm:$0xff] }
 0x399   : > { %v15380_v38 = vadd.f32 %v15287_v17, %v6658_v6  ;;  %v15382_v34 = vpop.permute.xlu0 %2042  ;;  %3670 = vperm.xlu1 %12215, %v10419_v31   ;;  %v15454_v6 = vld [vmem:[%s18041_s1] ss:$0 sm:$0xff] }
 0x39a   : > { %3650 = vperm.xlu0 %12214, %v10415_v39   ;;  %v6671_v41 = vadd.f32 %v15287_v17, %v6654_v16  ;;  %v18333_v17 = vmax.f32 %v15122_v47, 0.0  ;;  %v18340_v16 = vld [vmem:[#allocation11_spill] sm:$0xff] }
 0x39b   : > { %18332 = vst [vmem:[#allocation66_spill] sm:$0xff] %v15380_v38  ;;  %v18098_v28 = vmax.f32 %v15380_v38, 0.0 }
 0x39c   : > { %v15390_v48 = vpop.permute.xlu1 %2159  ;;  %v6683_v2 = vmax.f32 %v6671_v41, 0.0  ;;  %v1483_v41 = vmul.f32 %v15454_v6, %v18340_v16  ;;  %v15476_v16 = vld [vmem:[%s18041_s1 + $0x3] ss:$0 sm:$0xff] }
 0x39d   : > { %v15392_v51 = vpop.permute.xlu0 %2139  ;;  %3021 = vperm.xlu1 %12215, %v15386_v23  }
 0x39e   : > { %2388 = vperm.xlu0 %12214, %v10266_v54   ;;  %v6728_v10 = vpack.c.bf16 %v18098_v28, %v6683_v2  ;;  %v15402_v36 = vpack.c.bf16 %v6683_v2, %v18333_v17  ;;  %v15461_v54 = vld [vmem:[%s18041_s1 + $0x2] ss:$0 sm:$0xff]  ;;  %v18341_v2 = vld [vmem:[#allocation25_spill] sm:$0xff] }
 0x39f   : > { %v7027_v19 = vpop.f32.mrb[12].mxu1 }
 0x3a0   : > { %18334 = vst [vmem:[#allocation51_spill] sm:$0xff] %v15402_v36  ;;  %v15405_v9 = vadd.f32 %v7027_v19, %v15336_v40  ;;  %v11567_v59 = vpop.f32.mrb[13].mxu1  ;;  %11578 = vmatmul.mubr.bf16.gmra.mrb[24].mxu1 %v6728_v10  ;;  %v15407_v30 = vpop.permute.xlu1 %2792  ;;  %v1687_v10 = vmul.f32 %v15461_v54, %v18341_v2  ;;  %v18342_v19 = vld [vmem:[#allocation8_spill] sm:$0xff] }
 0x3a1   : > { %v7030_v52 = vpop.f32.mrb[14].mxu1  ;;  %v15409_v43 = vpop.permute.xlu0 %2695  ;;  %3118 = vperm.xlu1 %12215, %v15155_v62   ;;  %11641 = vmatprep.mubr.msk.bf16.mxu1 %vm12487_vm0, %v18180_v14  ;;  %v15425_v62 = vld [vmem:[%s13081_s15 + $0x3e0] sm:$0xff]  ;;  %v1479_v59 = vmul.f32 %v15454_v6, %v18342_v19  ;;  %v1785_v19 = vmul.f32 %v15476_v16, %v18345_v45  ;;  %v10358_v45 = vld [vmem:[%s13081_s15 + $0x310] sm:$0xff] }
 0x3a2   : > { %18335 = vst [vmem:[#allocation68_spill] sm:$0xff] %v15405_v9  ;;  %18336 = vst [vmem:[#allocation49_spill] sm:$0xff] %v15409_v43  ;;  %3041 = vperm.xlu0 %12214, %v15398_v50   ;;  %v15414_v47 = vadd.f32 %v7030_v52, %v15345_v8  ;;  %v11568_v40 = vpop.f32.mrb[15].mxu1  ;;  %v18343_v52 = vld [vmem:[#allocation23_spill] sm:$0xff]  ;;  %v18344_v2 = vld [vmem:[#allocation32_spill] sm:$0xff] }
 0x3a3   : > { %v1683_v40 = vmul.f32 %v15461_v54, %v18343_v52  ;;  %v1789_v44 = vmul.f32 %v15476_v16, %v18344_v2 }
 0x3a4   : > { %18337 = vst [vmem:[#allocation33_spill] sm:$0xff] %v15414_v47  ;;  %v15419_v7 = vpop.permute.xlu1 %1873  ;;  %v18351_v47 = vld [vmem:[#allocation10_spill] sm:$0xff] }
 0x3a5   : > { %v15421_v35 = vpop.permute.xlu0 %1776  ;;  %3409 = vperm.xlu1 %12215, %v10389_v29   ;;  %v10432_v29 = vld [vmem:[%s13081_s15 + $0x3d0] sm:$0xff]  ;;  %v1484_v9 = vmul.f32 %v15454_v6, %v18351_v47 }
 0x3a6   : > { %3138 = vperm.xlu0 %12214, %v15152_v58   ;;  %v15445_v58 = vld [vmem:[%s18041_s1 + $0x1] ss:$0 sm:$0xff] }
 0x3a7   : > { %v1585_v56 = vmul.f32 %v15445_v58, %v18338_v22  ;;  %v1581_v31 = vmul.f32 %v15445_v58, %v18339_v61  ;;  %v10428_v22 = vld [vmem:[%s13081_s15 + $0x350] sm:$0xff] }
 0x3a8   : > { %v15430_v1 = vpop.permute.xlu1 %2164 }
 0x3a9   : > { %v15432_v8 = vpop.permute.xlu0 %2144  ;;  %3573 = vperm.xlu1 %12215, %v15425_v62   ;;  %v1597_v61 = vadd.f32 %v1585_v56, %v1483_v41  ;;  %v1593_v28 = vadd.f32 %v1581_v31, %v1479_v59  ;;  %v1891_v56 = vmul.f32 %v15487_v57, %v15159_v32  ;;  %v1887_v31 = vmul.f32 %v15487_v57, %v15146_v27  ;;  %v10354_v59 = vld [vmem:[%s13081_s15 + $0x290] sm:$0xff] }
 0x3aa   : > { %3553 = vperm.xlu0 %12214, %v15428_v12   ;;  %v15511_v27 = vld [vmem:[%s18041_s1 + $0x6] ss:$0 sm:$0xff] }
 0x3ab   : > { %v1699_v52 = vadd.f32 %v1687_v10, %v1597_v61  ;;  %v1695_v2 = vadd.f32 %v1683_v40, %v1593_v28  ;;  %v15500_v10 = vld [vmem:[%s18041_s1 + $0x5] ss:$0 sm:$0xff] }
 0x3ac   : > { %v2262_v39 = vpop.permute.xlu1 %2261  ;;  %v1993_v61 = vmul.f32 %v15500_v10, %v15247_v24 }
 0x3ad   : > { %v2242_v17 = vpop.permute.xlu0 %2241  ;;  %3675 = vperm.xlu1 %12215, %v15437_v53   ;;  %v1801_v36 = vadd.f32 %v1789_v44, %v1699_v52  ;;  %v1797_v32 = vadd.f32 %v1785_v19, %v1695_v2  ;;  %v2095_v44 = vmul.f32 %v15511_v27, %v15347_v60 }
 0x3ae   : > { %3655 = vperm.xlu0 %12214, %v15440_v5  }
 0x3af   : > { %v1903_v28 = vadd.f32 %v1891_v56, %v1801_v36  ;;  %v1899_v24 = vadd.f32 %v1887_v31, %v1797_v32  ;;  %v15522_v36 = vld [vmem:[%s18041_s1 + $0x7] ss:$0 sm:$0xff] }
 0x3b0   : > { %v15482_v38 = vpop.permute.xlu1 %2894  ;;  %v2197_v52 = vmul.f32 %v15522_v36, %v15390_v48  ;;  %v2193_v56 = vmul.f32 %v15522_v36, %v15392_v51  ;;  %v15545_v32 = vld [vmem:[%s13081_s15 + $0x370] sm:$0xff] }
 0x3b1   : > { %v15491_v41 = vpop.permute.xlu0 %2797  ;;  %3772 = vperm.xlu1 %12215, %v10432_v29   ;;  %v1989_v29 = vmul.f32 %v15500_v10, %v15212_v15  ;;  %v2091_v15 = vmul.f32 %v15511_v27, %v15317_v25  ;;  %v2005_v19 = vadd.f32 %v1993_v61, %v1903_v28  ;;  %v15533_v25 = vld [vmem:[%s18041_s1 + $0x8] ss:$0 sm:$0xff]  ;;  %v15542_v61 = vld [vmem:[%s13081_s15 + $0x3f0] sm:$0xff] }
 0x3b2   : > { %18346 = vst [vmem:[#allocation47_spill] sm:$0xff] %v15491_v41  ;;  %3752 = vperm.xlu0 %12214, %v10428_v22   ;;  %v2295_v51 = vmul.f32 %v15533_v25, %v2242_v17 }
 0x3b3   : > { %v2001_v60 = vadd.f32 %v1989_v29, %v1899_v24  ;;  %v2107_v31 = vadd.f32 %v2095_v44, %v2005_v19  ;;  %v10445_v19 = vld [vmem:[%s13081_s15 + $0x3d8] sm:$0xff] }
 0x3b4   : > { %v15506_v22 = vpop.permute.xlu1 %1975 }
 0x3b5   : > { %v15515_v40 = vpop.permute.xlu0 %1878  ;;  %3143 = vperm.xlu1 %12215, %v10358_v45   ;;  %v2299_v45 = vmul.f32 %v15533_v25, %v2262_v39  ;;  %v2103_v48 = vadd.f32 %v2091_v15, %v2001_v60  ;;  %v2209_v29 = vadd.f32 %v2197_v52, %v2107_v31  ;;  %v15550_v39 = vld [vmem:[%s18041_s1 + $0x9] ss:$0 sm:$0xff] }
 0x3b6   : > { %18347 = vst [vmem:[#allocation52_spill] sm:$0xff] %v15515_v40  ;;  %3123 = vperm.xlu0 %12214, %v10354_v59   ;;  %v10441_v52 = vld [vmem:[%s13081_s15 + $0x358] sm:$0xff] }
 0x3b7   : > { %v2205_v28 = vadd.f32 %v2193_v56, %v2103_v48  ;;  %v2311_v24 = vadd.f32 %v2299_v45, %v2209_v29  ;;  %v18348_v60 = vld [vmem:[#allocation17_spill] sm:$0xff]  ;;  %v18349_v45 = vld [vmem:[#allocation15_spill] sm:$0xff] }
 0x3b8   : > { %v15528_v2 = vpop.permute.xlu1 %2266  ;;  %v1586_v56 = vmul.f32 %v15445_v58, %v18348_v60  ;;  %v1582_v48 = vmul.f32 %v15445_v58, %v18349_v45 }
 0x3b9   : > { %v15536_v59 = vpop.permute.xlu0 %2246  ;;  %3240 = vperm.xlu1 %12215, %v15229_v46   ;;  %v2307_v17 = vadd.f32 %v2295_v51, %v2205_v28  ;;  %v18352_v51 = vld [vmem:[#allocation24_spill] sm:$0xff] }
 0x3ba   : > { %3220 = vperm.xlu0 %12214, %v15232_v18   ;;  %v1688_v28 = vmul.f32 %v15461_v54, %v18352_v51  ;;  %v10371_v51 = vld [vmem:[%s13081_s15 + $0x318] sm:$0xff]  ;;  %v1598_v20 = vadd.f32 %v1586_v56, %v1484_v9  ;;  %v1888_v56 = vmul.f32 %v15487_v57, %v15190_v49 }
 0x3bc   : > { %v2364_v44 = vpop.permute.xlu1 %2363 }
 0x3bd   : > { %v2401_v46 = vmul.f32 %v15550_v39, %v2364_v44  ;;  %v2344_v18 = vpop.permute.xlu0 %2343  ;;  %3777 = vperm.xlu1 %12215, %v15542_v61  }
 0x3be   : > { %3757 = vperm.xlu0 %12214, %v15545_v32   ;;  %v2397_v15 = vmul.f32 %v15550_v39, %v2344_v18  ;;  %v15571_v18 = vld [vmem:[%s18050_s10] ss:$0 sm:$0xff] }
 0x3bf   : > { %v2413_v31 = vadd.f32 %v2401_v46, %v2311_v24  ;;  %v18355_v46 = vld [vmem:[#allocation9_spill] sm:$0xff] }
 0x3c0   : > { %v2409_v29 = vadd.f32 %v2397_v15, %v2307_v17  ;;  %v15562_v44 = vpop.permute.xlu1 %2526  ;;  %v1480_v17 = vmul.f32 %v15454_v6, %v18355_v46  ;;  %v18356_v15 = vld [vmem:[#allocation22_spill] sm:$0xff]  ;;  %v1700_v46 = vadd.f32 %v1688_v28, %v1598_v20  ;;  %v1994_v20 = vmul.f32 %v15500_v10, %v15321_v33 }
 0x3c1   : > { %18350 = vst [vmem:[#allocation48_spill] sm:$0xff] %v15562_v44  ;;  %v15574_v60 = vadd.f32 %v15571_v18, %v2413_v31  ;;  %v15576_v24 = vpop.permute.xlu0 %2506  ;;  %3874 = vperm.xlu1 %12215, %v10445_v19   ;;  %v1684_v47 = vmul.f32 %v15461_v54, %v18356_v15  ;;  %v18357_v44 = vld [vmem:[#allocation31_spill] sm:$0xff]  ;;  %v1892_v15 = vmul.f32 %v15487_v57, %v15216_v37 }
 0x3c2   : > { %18354 = vst [vmem:[#allocation53_spill] sm:$0xff] %v15576_v24  ;;  %3854 = vperm.xlu0 %12214, %v10441_v52   ;;  %v2426_v45 = vadd.f32 %v15571_v18, %v2409_v29  ;;  %v1790_v41 = vmul.f32 %v15476_v16, %v18357_v44  ;;  %v1594_v40 = vadd.f32 %v1582_v48, %v1480_v17  ;;  %v18358_v24 = vld [vmem:[#allocation29_spill] sm:$0xff] }
 0x3c3   : > { %18353 = vst [vmem:[#allocation36_spill] sm:$0xff] %v15574_v60  ;;  %v18102_v31 = vmax.f32 %v15574_v60, 0.0  ;;  %v1786_v19 = vmul.f32 %v15476_v16, %v18358_v24  ;;  %v1990_v37 = vmul.f32 %v15500_v10, %v15294_v26  ;;  %v2092_v33 = vmul.f32 %v15511_v27, %v15382_v34  ;;  %v15615_v17 = vld [vmem:[%s13081_s15 + $0x3f8] sm:$0xff] }
 0x3c4   : > { %v2438_v52 = vmax.f32 %v2426_v45, 0.0  ;;  %v15590_v43 = vpop.permute.xlu1 %2628  ;;  %v1696_v9 = vadd.f32 %v1684_v47, %v1594_v40  ;;  %v1802_v44 = vadd.f32 %v1790_v41, %v1700_v46  ;;  %v2096_v40 = vmul.f32 %v15511_v27, %v15377_v42  ;;  %v15618_v26 = vld [vmem:[%s13081_s15 + $0x378] sm:$0xff] }
 0x3c5   : > { %v15594_v29 = vpop.permute.xlu0 %2608  ;;  %3245 = vperm.xlu1 %12215, %v10371_v51   ;;  %v2198_v42 = vmul.f32 %v15522_v36, %v15430_v1  ;;  %v2300_v34 = vmul.f32 %v15533_v25, %v15528_v2  ;;  %v2296_v1 = vmul.f32 %v15533_v25, %v15536_v59 }
 0x3c6   : > { %3225 = vperm.xlu0 %12214, %v10367_v4   ;;  %v7073_v48 = vpack.c.bf16 %v18102_v31, %v2438_v52  ;;  %v1798_v28 = vadd.f32 %v1786_v19, %v1696_v9  ;;  %v1904_v4 = vadd.f32 %v1892_v15, %v1802_v44 }
 0x3c8   : > { %11598 = vmatmul.mubr.bf16.vlgmr.msra.gmra.mrb[28].mxu0 %v7073_v48  ;;  %v15604_v24 = vpop.permute.xlu1 %2996  ;;  %v1900_v41 = vadd.f32 %v1888_v56, %v1798_v28  ;;  %v2006_v47 = vadd.f32 %v1994_v20, %v1904_v4  ;;  %v10384_v20 = vld [vmem:[%s13081_s15 + $0x320] sm:$0xff] }
 0x3c9   : > { %v15608_v49 = vpop.permute.xlu0 %2899  ;;  %3342 = vperm.xlu1 %12215, %v15308_v55   ;;  %11601 = vmatprep.mubr.msk.bf16.mxu0 %vm12487_vm0, %v18180_v14  ;;  %v2194_v55 = vmul.f32 %v15522_v36, %v15432_v8  ;;  %v10380_v28 = vld [vmem:[%s13081_s15 + $0x2a0] sm:$0xff] }
 0x3ca   : > { %3322 = vperm.xlu0 %12214, %v15311_v21   ;;  %v2002_v45 = vadd.f32 %v1990_v37, %v1900_v41  ;;  %v2108_v51 = vadd.f32 %v2096_v40, %v2006_v47 }
 0x3cc   : > { %v15626_v21 = vpop.permute.xlu1 %2077  ;;  %v2104_v52 = vadd.f32 %v2092_v33, %v2002_v45  ;;  %v2210_v46 = vadd.f32 %v2198_v42, %v2108_v51  ;;  %v10410_v51 = vld [vmem:[%s13081_s15 + $0x440] sm:$0xff] }
 0x3cd   : > { %v15630_v19 = vpop.permute.xlu0 %1980  ;;  %3879 = vperm.xlu1 %12215, %v15615_v17  }
 0x3ce   : > { %3859 = vperm.xlu0 %12214, %v15618_v26   ;;  %v2206_v8 = vadd.f32 %v2194_v55, %v2104_v52  ;;  %v2312_v9 = vadd.f32 %v2300_v34, %v2210_v46  ;;  %v10423_v55 = vld [vmem:[%s13081_s15 + $0x448] sm:$0xff]  ;;  %v15669_v46 = vld [vmem:[%s13081_s15 + $0x380] sm:$0xff] }
 0x3d0   : > { %v2369_v15 = vpop.permute.xlu1 %2368  ;;  %v2308_v2 = vadd.f32 %v2296_v1, %v2206_v8  ;;  %v15666_v1 = vld [vmem:[%s13081_s15 + $0x400] sm:$0xff] }
 0x3d1   : > { %v2402_v56 = vmul.f32 %v15550_v39, %v2369_v15  ;;  %v2349_v48 = vpop.permute.xlu0 %2348  ;;  %3976 = vperm.xlu1 %12215, %v15425_v62  }
 0x3d2   : > { %3956 = vperm.xlu0 %12214, %v15428_v12   ;;  %v2398_v44 = vmul.f32 %v15550_v39, %v2349_v48 }
 0x3d3   : > { %v2414_v37 = vadd.f32 %v2402_v56, %v2312_v9 }
 0x3d4   : > { %v2410_v59 = vadd.f32 %v2398_v44, %v2308_v2  ;;  %v15642_v4 = vpop.permute.xlu1 %2531  ;;  %v10546_v44 = vld [vmem:[%s13081_s15 + $0x4c8] sm:$0xff] }
 0x3d5   : > { %18359 = vst [vmem:[#allocation57_spill] sm:$0xff] %v15642_v4  ;;  %v15645_v40 = vadd.f32 %v15571_v18, %v2414_v37  ;;  %v15647_v41 = vpop.permute.xlu0 %2511  ;;  %3347 = vperm.xlu1 %12215, %v10384_v20   ;;  %v10533_v20 = vld [vmem:[%s13081_s15 + $0x4c0] sm:$0xff]  ;;  %v18376_v4 = vld [vmem:[#allocation35_spill] sm:$0xff] }
 0x3d6   : > { %18361 = vst [vmem:[#allocation16_spill] sm:$0xff] %v15647_v41  ;;  %3327 = vperm.xlu0 %12214, %v10380_v28   ;;  %v2427_v62 = vadd.f32 %v15571_v18, %v2410_v59  ;;  %v10397_v59 = vld [vmem:[%s13081_s15 + $0x328] sm:$0xff] }
 0x3d7   : > { %18360 = vst [vmem:[#allocation18_spill] sm:$0xff] %v15645_v40  ;;  %v18101_v12 = vmax.f32 %v15645_v40, 0.0 }
 0x3d8   : > { %v2439_v33 = vmax.f32 %v2427_v62, 0.0  ;;  %v15651_v47 = vpop.permute.xlu1 %2633  ;;  %v10393_v62 = vld [vmem:[%s13081_s15 + $0x2a8] sm:$0xff] }
 0x3d9   : > { %18362 = vst [vmem:[#allocation11_spill] sm:$0xff] %v15651_v47  ;;  %v15653_v42 = vpop.permute.xlu0 %2613  ;;  %3444 = vperm.xlu1 %12215, %v15398_v50  }
 0x3da   : > { %18363 = vst [vmem:[#allocation25_spill] sm:$0xff] %v15653_v42  ;;  %3424 = vperm.xlu0 %12214, %v15386_v23   ;;  %v7263_v45 = vpack.c.bf16 %v18101_v12, %v2439_v33  ;;  %v2744_v42 = vmul.f32 %v15461_v54, %v15360_v3 }
 0x3dc   : > { %11642 = vmatmul.mubr.bf16.vlgmr.msra.gmra.mrb[28].mxu1 %v7263_v45  ;;  %v15661_v34 = vpop.permute.xlu1 %2730 }
 0x3dd   : > { %v15663_v52 = vpop.permute.xlu0 %2710  ;;  %3690 = vperm.xlu1 %12215, %v10423_v55   ;;  %11645 = vmatprep.mubr.msk.bf16.mxu1 %vm12487_vm0, %v18180_v14 }
 0x3de   : > { %3588 = vperm.xlu0 %12214, %v10410_v51  }
 0x3df   : > { %v6898_v23 = vpop.f32.mrb[16].mxu0 }
 0x3e0   : > { %v11527_v50 = vpop.f32.mrb[17].mxu0  ;;  %v15673_v8 = vpop.permute.xlu1 %3098 }
 0x3e1   : > { %v6901_v15 = vpop.f32.mrb[18].mxu0  ;;  %v15675_v9 = vpop.permute.xlu0 %3001  ;;  %3981 = vperm.xlu1 %12215, %v15666_v1   ;;  %v15710_v50 = vld [vmem:[%s13081_s15 + $0x388] sm:$0xff] }
 0x3e2   : > { %3961 = vperm.xlu0 %12214, %v15669_v46   ;;  %v11528_v56 = vpop.f32.mrb[19].mxu0 }
 0x3e3   : > { %v10436_v56 = vld [vmem:[%s13081_s15 + $0x450] sm:$0xff] }
 0x3e4   : > { %v15679_v48 = vpop.permute.xlu1 %2179 }
 0x3e5   : > { %v15681_v2 = vpop.permute.xlu0 %2082  ;;  %4078 = vperm.xlu1 %12215, %v15437_v53   ;;  %v15698_v53 = vld [vmem:[%s13081_s15 + $0x468] sm:$0xff] }
 0x3e6   : > { %4058 = vperm.xlu0 %12214, %v15440_v5   ;;  %v15701_v5 = vld [vmem:[%s13081_s15 + $0x460] sm:$0xff] }
 0x3e8   : > { %v15687_v28 = vpop.permute.xlu1 %2735 }
 0x3e9   : > { %18364 = vst [vmem:[#allocation8_spill] sm:$0xff] %v15687_v28  ;;  %v15689_v37 = vpop.permute.xlu0 %2715  ;;  %4712 = vperm.xlu1 %12215, %v10546_v44  }
 0x3ea   : > { %18365 = vst [vmem:[#allocation23_spill] sm:$0xff] %v15689_v37  ;;  %4610 = vperm.xlu0 %12214, %v10533_v20   ;;  %v15721_v37 = vld [vmem:[%s13081_s15 + $0x408] sm:$0xff] }
 0x3ec   : > { %v15693_v33 = vpop.permute.xlu1 %2832 }
 0x3ed   : > { %v15695_v45 = vpop.permute.xlu0 %2812  ;;  %3449 = vperm.xlu1 %12215, %v10397_v59  }
 0x3ee   : > { %18366 = vst [vmem:[#allocation32_spill] sm:$0xff] %v15695_v45  ;;  %3429 = vperm.xlu0 %12214, %v10393_v62   ;;  %v10485_v45 = vld [vmem:[%s13081_s15 + $0x410] sm:$0xff] }
 0x3f0   : > { %v15703_v55 = vpop.permute.xlu1 %3200 }
 0x3f1   : > { %v15705_v51 = vpop.permute.xlu0 %3103  ;;  %3695 = vperm.xlu1 %12215, %v15698_v53  }
 0x3f2   : > { %3593 = vperm.xlu0 %12214, %v15701_v5  }
 0x3f3   : > { %v7035_v44 = vpop.f32.mrb[16].mxu1 }
 0x3f4   : > { %v15713_v20 = vadd.f32 %v7035_v44, %v6898_v23  ;;  %v11571_v59 = vpop.f32.mrb[17].mxu1  ;;  %v2282_v62 = vpop.permute.xlu1 %2281  ;;  %v15730_v23 = vld [vmem:[%s13081_s15 + $0x4e0] sm:$0xff]  ;;  %v18371_v44 = vld [vmem:[#allocation21_spill] sm:$0xff] }
 0x3f5   : > { %v7038_v12 = vpop.f32.mrb[18].mxu1  ;;  %v15715_v31 = vpop.permute.xlu0 %2184  ;;  %4063 = vperm.xlu1 %12215, %v15710_v50   ;;  %v18374_v59 = vld [vmem:[#allocation28_spill] sm:$0xff] }
 0x3f6   : > { %18367 = vst [vmem:[#allocation30_spill] sm:$0xff] %v15713_v20  ;;  %3792 = vperm.xlu0 %12214, %v10436_v56   ;;  %v15718_v40 = vadd.f32 %v7038_v12, %v6901_v15  ;;  %v11572_v60 = vpop.f32.mrb[19].mxu1  ;;  %v1589_v56 = vmul.f32 %v15445_v58, %v18371_v44  ;;  %v18373_v15 = vld [vmem:[#allocation14_spill] sm:$0xff] }
 0x3f7   : > { %v1487_v60 = vmul.f32 %v15454_v6, %v18373_v15  ;;  %v10559_v44 = vld [vmem:[%s13081_s15 + $0x4d0] sm:$0xff]  ;;  %v1793_v15 = vmul.f32 %v15476_v16, %v18376_v4  ;;  %v2846_v4 = vmul.f32 %v15476_v16, %v15407_v30 }
 0x3f8   : > { %18368 = vst [vmem:[#allocation17_spill] sm:$0xff] %v15718_v40  ;;  %v15723_v41 = vpop.permute.xlu1 %2837  ;;  %v1691_v40 = vmul.f32 %v15461_v54, %v18374_v59  ;;  %v2540_v59 = vmul.f32 %v15454_v6, %v15243_v0  ;;  %v10449_v0 = vld [vmem:[%s13081_s15 + $0x458] sm:$0xff] }
 0x3f9   : > { %18369 = vst [vmem:[#allocation15_spill] sm:$0xff] %v15723_v41  ;;  %v15725_v28 = vpop.permute.xlu0 %2817  ;;  %4160 = vperm.xlu1 %12215, %v15545_v32   ;;  %v2642_v32 = vmul.f32 %v15445_v58, %v15265_v63  ;;  %v1601_v41 = vadd.f32 %v1589_v56, %v1487_v60  ;;  %v15765_v60 = vld [vmem:[%s13081_s15 + $0x470] sm:$0xff] }
 0x3fa   : > { %18370 = vst [vmem:[#allocation10_spill] sm:$0xff] %v15725_v28  ;;  %4083 = vperm.xlu0 %12214, %v15721_v37   ;;  %v15748_v28 = vld [vmem:[%s13081_s15 + $0x4e8] sm:$0xff] }
 0x3fb   : > { %v2654_v56 = vadd.f32 %v2642_v32, %v2540_v59  ;;  %v2099_v32 = vmul.f32 %v15511_v27, %v15626_v21  ;;  %v3152_v21 = vmul.f32 %v15511_v27, %v15673_v8 }
 0x3fc   : > { %v15734_v12 = vpop.permute.xlu1 %2934 }
 0x3fd   : > { %18372 = vst [vmem:[#allocation24_spill] sm:$0xff] %v15734_v12  ;;  %v15740_v20 = vpop.permute.xlu0 %2914  ;;  %4615 = vperm.xlu1 %12215, %v15730_v23  }
 0x3fe   : > { %18375 = vst [vmem:[#allocation9_spill] sm:$0xff] %v15740_v20  ;;  %4180 = vperm.xlu0 %12214, %v15542_v61   ;;  %v1703_v61 = vadd.f32 %v1691_v40, %v1601_v41  ;;  %v1895_v20 = vmul.f32 %v15487_v57, %v15419_v7  ;;  %v1997_v40 = vmul.f32 %v15500_v10, %v15506_v22 }
 0x3ff   : > { %v2756_v41 = vadd.f32 %v2744_v42, %v2654_v56  ;;  %v2948_v7 = vmul.f32 %v15487_v57, %v15482_v38  ;;  %v3050_v22 = vmul.f32 %v15500_v10, %v15604_v24  ;;  %v2201_v38 = vmul.f32 %v15522_v36, %v15679_v48 }
 0x400   : > { %v3303_v47 = vpop.permute.xlu1 %3302  ;;  %v1805_v3 = vadd.f32 %v1793_v15, %v1703_v61  ;;  %v10481_v15 = vld [vmem:[%s13081_s15 + $0x390] sm:$0xff]  ;;  %v3254_v48 = vmul.f32 %v15522_v36, %v15703_v55 }
 0x401   : > { %v15758_v63 = vpop.permute.xlu0 %3205  ;;  %4814 = vperm.xlu1 %12215, %v10559_v44   ;;  %v2858_v30 = vadd.f32 %v2846_v4, %v2756_v41  ;;  %v3356_v8 = vmul.f32 %v15533_v25, %v3303_v47  ;;  %v18379_v47 = vld [vmem:[#allocation27_spill] sm:$0xff] }
 0x402   : > { %4717 = vperm.xlu0 %12214, %v15748_v28   ;;  %v1907_v12 = vadd.f32 %v1895_v20, %v1805_v3 }
 0x403   : > { %v2960_v42 = vadd.f32 %v2948_v7, %v2858_v30  ;;  %v18377_v30 = vld [vmem:[#allocation20_spill] sm:$0xff] }
 0x404   : > { %v2384_v44 = vpop.permute.xlu1 %2383  ;;  %v2009_v61 = vadd.f32 %v1997_v40, %v1907_v12  ;;  %v1590_v55 = vmul.f32 %v15445_v58, %v18377_v30  ;;  %v18382_v30 = vld [vmem:[#allocation52_spill] sm:$0xff] }
 0x405   : > { %v15773_v59 = vpop.permute.xlu0 %2286  ;;  %3894 = vperm.xlu1 %12215, %v10449_v0   ;;  %v2303_v0 = vmul.f32 %v15533_v25, %v2282_v62  ;;  %v3062_v12 = vadd.f32 %v3050_v22, %v2960_v42  ;;  %v2405_v3 = vmul.f32 %v15550_v39, %v2384_v44  ;;  %v15801_v62 = vld [vmem:[%s13081_s15 + $0x4f0] sm:$0xff]  ;;  %v1692_v42 = vmul.f32 %v15461_v54, %v18379_v47 }
 0x406   : > { %3797 = vperm.xlu0 %12214, %v15765_v60   ;;  %v2111_v56 = vadd.f32 %v2099_v32, %v2009_v61  ;;  %v18378_v61 = vld [vmem:[#allocation13_spill] sm:$0xff] }
 0x407   : > { %v3164_v41 = vadd.f32 %v3152_v21, %v3062_v12  ;;  %v1488_v22 = vmul.f32 %v15454_v6, %v18378_v61 }
 0x408   : > { %v15782_v20 = vpop.permute.xlu1 %2939  ;;  %v2213_v24 = vadd.f32 %v2201_v38, %v2111_v56 }
 0x409   : > { %v15787_v4 = vpop.permute.xlu0 %2919  ;;  %4185 = vperm.xlu1 %12215, %v10485_v45   ;;  %v10572_v45 = vld [vmem:[%s13081_s15 + $0x4d8] sm:$0xff]  ;;  %v3266_v44 = vadd.f32 %v3254_v48, %v3164_v41  ;;  %v1602_v12 = vadd.f32 %v1590_v55, %v1488_v22  ;;  %v2541_v41 = vmul.f32 %v15454_v6, %v15340_v13  ;;  %v1896_v55 = vmul.f32 %v15487_v57, %v18382_v30 }
 0x40a   : > { %4165 = vperm.xlu0 %12214, %v10481_v15   ;;  %v2315_v7 = vadd.f32 %v2303_v0, %v2213_v24  ;;  %v15814_v0 = vld [vmem:[%s13081_s15 + $0x478] sm:$0xff]  ;;  %v1794_v24 = vmul.f32 %v15476_v16, %v15421_v35 }
 0x40b   : > { %v3368_v56 = vadd.f32 %v3356_v8, %v3266_v44  ;;  %v18384_v13 = vld [vmem:[#allocation47_spill] sm:$0xff] }
 0x40c   : > { %v15792_v40 = vpop.permute.xlu1 %3036  ;;  %v2417_v15 = vadd.f32 %v2405_v3, %v2315_v7  ;;  %v18381_v7 = vld [vmem:[#allocation49_spill] sm:$0xff]  ;;  %v2847_v61 = vmul.f32 %v15476_v16, %v18384_v13  ;;  %v2304_v13 = vmul.f32 %v15533_v25, %v15773_v59 }
 0x40d   : > { %v15795_v32 = vpop.permute.xlu0 %3016  ;;  %4282 = vperm.xlu1 %12215, %v15615_v17   ;;  %v2745_v8 = vmul.f32 %v15461_v54, %v18381_v7  ;;  %v10498_v22 = vld [vmem:[%s13081_s15 + $0x418] sm:$0xff] }
 0x40e   : > { %4262 = vperm.xlu0 %12214, %v15618_v26   ;;  %v2643_v26 = vmul.f32 %v15445_v58, %v15364_v11  ;;  %v15819_v48 = vadd.f32 %v15571_v18, %v2417_v15  ;;  %v1704_v11 = vadd.f32 %v1692_v42, %v1602_v12  ;;  %v1998_v42 = vmul.f32 %v15500_v10, %v15630_v19 }
 0x410   : > { %v3405_v38 = vpop.permute.xlu1 %3404  ;;  %18380 = vst [vmem:[#allocation22_spill] sm:$0xff] %v15819_v48  ;;  %v2655_v15 = vadd.f32 %v2643_v26, %v2541_v41  ;;  %v1806_v47 = vadd.f32 %v1794_v24, %v1704_v11  ;;  %v2100_v41 = vmul.f32 %v15511_v27, %v15681_v2  ;;  %v2202_v11 = vmul.f32 %v15522_v36, %v15715_v31  ;;  %v15871_v31 = vld [vmem:[%s13081_s15 + $0x4f8] sm:$0xff] }
 0x411   : > { %v3458_v17 = vmul.f32 %v15550_v39, %v3405_v38  ;;  %v3308_v21 = vpop.permute.xlu0 %3307  ;;  %4916 = vperm.xlu1 %12215, %v10572_v45   ;;  %v10494_v38 = vld [vmem:[%s13081_s15 + $0x398] sm:$0xff] }
 0x412   : > { %4819 = vperm.xlu0 %12214, %v15801_v62   ;;  %v2757_v12 = vadd.f32 %v2745_v8, %v2655_v15  ;;  %v1908_v26 = vadd.f32 %v1896_v55, %v1806_v47  ;;  %v3153_v15 = vmul.f32 %v15511_v27, %v15705_v51 }
 0x413   : > { %v3470_v3 = vadd.f32 %v3458_v17, %v3368_v56  ;;  %v18108_v56 = vmax.f32 %v15819_v48, 0.0 }
 0x414   : > { %v15825_v45 = vpop.permute.xlu1 %3568  ;;  %v2859_v24 = vadd.f32 %v2847_v61, %v2757_v12  ;;  %v2010_v8 = vadd.f32 %v1998_v42, %v1908_v26  ;;  %v3357_v12 = vmul.f32 %v15533_v25, %v3308_v21  ;;  %v10511_v21 = vld [vmem:[%s13081_s15 + $0x420] sm:$0xff] }
 0x415   : > { %v15830_v44 = vadd.f32 %v15571_v18, %v3470_v3  ;;  %v15832_v35 = vpop.permute.xlu0 %3548  ;;  %3996 = vperm.xlu1 %12215, %v15701_v5   ;;  %v2949_v5 = vmul.f32 %v15487_v57, %v15608_v49  ;;  %v3051_v49 = vmul.f32 %v15500_v10, %v15675_v9 }
 0x416   : > { %3899 = vperm.xlu0 %12214, %v15814_v0   ;;  %v2112_v55 = vadd.f32 %v2100_v41, %v2010_v8  ;;  %v10507_v8 = vld [vmem:[%s13081_s15 + $0x3a0] sm:$0xff] }
 0x417   : > { %18383 = vst [vmem:[#allocation31_spill] sm:$0xff] %v15830_v44  ;;  %v18106_v17 = vmax.f32 %v15830_v44, 0.0  ;;  %v2961_v2 = vadd.f32 %v2949_v5, %v2859_v24 }
 0x418   : > { %v15846_v3 = vpop.permute.xlu1 %3670 }
 0x419   : > { %v15850_v7 = vpop.permute.xlu0 %3650  ;;  %4287 = vperm.xlu1 %12215, %v10498_v22   ;;  %v7074_v19 = vpack.c.bf16 %v18106_v17, %v18108_v56  ;;  %v3063_v9 = vadd.f32 %v3051_v49, %v2961_v2  ;;  %v2214_v22 = vadd.f32 %v2202_v11, %v2112_v55 }
 0x41a   : > { %4267 = vperm.xlu0 %12214, %v10494_v38   ;;  %v3255_v38 = vmul.f32 %v15522_v36, %v15758_v63 }
 0x41b   : > { %11602 = vmatmul.mubr.bf16.gmra.mrb[32].mxu0 %v7074_v19  ;;  %v3165_v51 = vadd.f32 %v3153_v15, %v3063_v9  ;;  %v2316_v59 = vadd.f32 %v2304_v13, %v2214_v22 }
 0x41c   : > { %v15860_v30 = vpop.permute.xlu1 %3021  ;;  %11605 = vmatprep.mubr.msk.bf16.mxu0 %vm12487_vm0, %v18180_v14 }
 0x41d   : > { %v2389_v61 = vpop.permute.xlu0 %2388  ;;  %4384 = vperm.xlu1 %12215, %v15666_v1   ;;  %v3267_v5 = vadd.f32 %v3255_v38, %v3165_v51 }
 0x41e   : > { %4364 = vperm.xlu0 %12214, %v15669_v46   ;;  %v2406_v47 = vmul.f32 %v15550_v39, %v2389_v61  ;;  %v15884_v46 = vld [vmem:[%s13081_s15 + $0x480] sm:$0xff] }
 0x41f   : > { %v3369_v41 = vadd.f32 %v3357_v12, %v3267_v5  ;;  %v10537_v12 = vld [vmem:[%s13081_s15 + $0x540] sm:$0xff] }
 0x420   : > { %v15876_v42 = vpop.permute.xlu1 %3118  ;;  %v2418_v63 = vadd.f32 %v2406_v47, %v2316_v59  ;;  %v10541_v59 = vld [vmem:[%s13081_s15 + $0x5c0] sm:$0xff] }
 0x421   : > { %v15879_v1 = vpop.permute.xlu0 %3041  ;;  %5018 = vperm.xlu1 %12215, %v15730_v23  }
 0x422   : > { %4921 = vperm.xlu0 %12214, %v15871_v31   ;;  %v15894_v23 = vadd.f32 %v15571_v18, %v2418_v63 }
 0x424   : > { %v3410_v26 = vpop.permute.xlu1 %3409  ;;  %18385 = vst [vmem:[#allocation29_spill] sm:$0xff] %v15894_v23  ;;  %v18107_v9 = vmax.f32 %v15894_v23, 0.0  ;;  %v18398_v23 = vld [vmem:[#allocation53_spill] sm:$0xff] }
 0x425   : > { %v3459_v19 = vmul.f32 %v15550_v39, %v3410_v26  ;;  %v15887_v24 = vpop.permute.xlu0 %3138  ;;  %4098 = vperm.xlu1 %12215, %v15698_v53   ;;  %v2544_v48 = vmul.f32 %v15454_v6, %v18398_v23 }
 0x426   : > { %4001 = vperm.xlu0 %12214, %v15884_v46  }
 0x427   : > { %v3471_v49 = vadd.f32 %v3459_v19, %v3369_v41  ;;  %v6906_v11 = vpop.f32.mrb[20].mxu0 }
 0x428   : > { %v11531_v2 = vpop.f32.mrb[21].mxu0  ;;  %v15896_v55 = vpop.permute.xlu1 %3573 }
 0x429   : > { %18386 = vst [vmem:[#allocation21_spill] sm:$0xff] %v15896_v55  ;;  %v15899_v15 = vadd.f32 %v15571_v18, %v3471_v49  ;;  %v6909_v13 = vpop.f32.mrb[22].mxu0  ;;  %v15901_v61 = vpop.permute.xlu0 %3553  ;;  %4389 = vperm.xlu1 %12215, %v10511_v21  }
 0x42a   : > { %18388 = vst [vmem:[#allocation28_spill] sm:$0xff] %v15901_v61  ;;  %4369 = vperm.xlu0 %12214, %v10507_v8   ;;  %v11532_v53 = vpop.f32.mrb[23].mxu0 }
 0x42b   : > { %18387 = vst [vmem:[#allocation14_spill] sm:$0xff] %v15899_v15  ;;  %v18105_v22 = vmax.f32 %v15899_v15, 0.0  ;;  %v2752_v15 = vmul.f32 %v15461_v54, %v15661_v34  ;;  %v18399_v34 = vld [vmem:[#allocation32_spill] sm:$0xff] }
 0x42c   : > { %v15905_v38 = vpop.permute.xlu1 %3675  ;;  %v2850_v55 = vmul.f32 %v15476_v16, %v18399_v34 }
 0x42d   : > { %18389 = vst [vmem:[#allocation35_spill] sm:$0xff] %v15905_v38  ;;  %v15907_v47 = vpop.permute.xlu0 %3655  ;;  %4486 = vperm.xlu1 %12215, %v15721_v37   ;;  %v7264_v51 = vpack.c.bf16 %v18105_v22, %v18107_v9  ;;  %v10554_v37 = vld [vmem:[%s13081_s15 + $0x5c8] sm:$0xff] }
 0x42e   : > { %18390 = vst [vmem:[#allocation20_spill] sm:$0xff] %v15907_v47  ;;  %4466 = vperm.xlu0 %12214, %v15710_v50   ;;  %v10550_v50 = vld [vmem:[%s13081_s15 + $0x548] sm:$0xff] }
 0x42f   : > { %11646 = vmatmul.mubr.bf16.gmra.mrb[32].mxu1 %v7264_v51  ;;  %v15934_v51 = vld [vmem:[%s13081_s15 + $0x500] sm:$0xff]  ;;  %v15971_v9 = vld [vmem:[%s13081_s15 + $0x568] sm:$0xff] }
 0x430   : > { %v15917_v5 = vpop.permute.xlu1 %3772  ;;  %11649 = vmatprep.mubr.msk.bf16.mxu1 %vm12487_vm0, %v18180_v14 }
 0x431   : > { %v15921_v63 = vpop.permute.xlu0 %3752  ;;  %4650 = vperm.xlu1 %12215, %v10541_v59  }
 0x432   : > { %4630 = vperm.xlu0 %12214, %v10537_v12   ;;  %v15941_v12 = vld [vmem:[%s13081_s15 + $0x488] sm:$0xff] }
 0x433   : > { %v7043_v26 = vpop.f32.mrb[20].mxu1 }
 0x434   : > { %v15925_v41 = vadd.f32 %v7043_v26, %v6906_v11  ;;  %v11575_v19 = vpop.f32.mrb[21].mxu1  ;;  %v15927_v21 = vpop.permute.xlu1 %3143 }
 0x435   : > { %v7046_v8 = vpop.f32.mrb[22].mxu1  ;;  %v15929_v49 = vpop.permute.xlu0 %3123  ;;  %4752 = vperm.xlu1 %12215, %v10554_v37  }
 0x436   : > { %18391 = vst [vmem:[#allocation13_spill] sm:$0xff] %v15925_v41  ;;  %4732 = vperm.xlu0 %12214, %v10550_v50   ;;  %v15931_v2 = vadd.f32 %v7046_v8, %v6909_v13  ;;  %v11576_v53 = vpop.f32.mrb[23].mxu1  ;;  %v10524_v13 = vld [vmem:[%s13081_s15 + $0x428] sm:$0xff] }
 0x437   : > { %v10520_v50 = vld [vmem:[%s13081_s15 + $0x3a8] sm:$0xff]  ;;  %v15959_v53 = vld [vmem:[%s13081_s15 + $0x560] sm:$0xff] }
 0x438   : > { %18392 = vst [vmem:[#allocation27_spill] sm:$0xff] %v15931_v2  ;;  %v3241_v59 = vpop.permute.xlu1 %3240  ;;  %v18397_v2 = vld [vmem:[#allocation48_spill] sm:$0xff] }
 0x439   : > { %v15936_v11 = vpop.permute.xlu0 %3220  ;;  %5120 = vperm.xlu1 %12215, %v15748_v28   ;;  %v15956_v28 = vld [vmem:[%s13081_s15 + $0x5e0] sm:$0xff]  ;;  %v2548_v41 = vmul.f32 %v15454_v6, %v18397_v2  ;;  %v2854_v2 = vmul.f32 %v15476_v16, %v15693_v33  ;;  %v16002_v33 = vld [vmem:[%s13081_s15 + $0x508] sm:$0xff] }
 0x43a   : > { %5023 = vperm.xlu0 %12214, %v15934_v51  }
 0x43c   : > { %v15943_v26 = vpop.permute.xlu1 %3777 }
 0x43d   : > { %18393 = vst [vmem:[#allocation49_spill] sm:$0xff] %v15943_v26  ;;  %v15945_v37 = vpop.permute.xlu0 %3757  ;;  %4200 = vperm.xlu1 %12215, %v15765_v60   ;;  %v15968_v60 = vld [vmem:[%s13081_s15 + $0x5e8] sm:$0xff] }
 0x43e   : > { %18394 = vst [vmem:[#allocation52_spill] sm:$0xff] %v15945_v37  ;;  %4103 = vperm.xlu0 %12214, %v15941_v12   ;;  %v10563_v37 = vld [vmem:[%s13081_s15 + $0x550] sm:$0xff] }
 0x440   : > { %v15951_v19 = vpop.permute.xlu1 %3874 }
 0x441   : > { %18395 = vst [vmem:[#allocation47_spill] sm:$0xff] %v15951_v19  ;;  %v15953_v8 = vpop.permute.xlu0 %3854  ;;  %4491 = vperm.xlu1 %12215, %v10524_v13   ;;  %v2650_v13 = vmul.f32 %v15445_v58, %v15590_v43  ;;  %v2748_v43 = vmul.f32 %v15461_v54, %v15663_v52 }
 0x442   : > { %18396 = vst [vmem:[#allocation69_spill] sm:$0xff] %v15953_v8  ;;  %4471 = vperm.xlu0 %12214, %v10520_v50   ;;  %v2646_v50 = vmul.f32 %v15445_v58, %v15594_v29  ;;  %v10567_v29 = vld [vmem:[%s13081_s15 + $0x5d0] sm:$0xff] }
 0x443   : > { %v2662_v61 = vadd.f32 %v2650_v13, %v2548_v41  ;;  %v18400_v8 = vld [vmem:[#allocation24_spill] sm:$0xff]  ;;  %v18401_v41 = vld [vmem:[#allocation9_spill] sm:$0xff] }
 0x444   : > { %v15961_v22 = vpop.permute.xlu1 %3245  ;;  %v2658_v26 = vadd.f32 %v2646_v50, %v2544_v48  ;;  %v2956_v23 = vmul.f32 %v15487_v57, %v18400_v8  ;;  %v2952_v13 = vmul.f32 %v15487_v57, %v18401_v41  ;;  %v3058_v50 = vmul.f32 %v15500_v10, %v15792_v40 }
 0x445   : > { %v15963_v17 = vpop.permute.xlu0 %3225  ;;  %4655 = vperm.xlu1 %12215, %v15956_v28   ;;  %v2764_v38 = vadd.f32 %v2752_v15, %v2662_v61  ;;  %v3054_v15 = vmul.f32 %v15500_v10, %v15795_v32  ;;  %v3156_v40 = vmul.f32 %v15511_v27, %v15876_v42 }
 0x446   : > { %4635 = vperm.xlu0 %12214, %v15959_v53   ;;  %v2760_v52 = vadd.f32 %v2748_v43, %v2658_v26  ;;  %v3262_v43 = vmul.f32 %v15522_v36, %v3241_v59  ;;  %v16030_v59 = vld [vmem:[%s13081_s15 + $0x5f0] sm:$0xff] }
 0x447   : > { %v2866_v48 = vadd.f32 %v2854_v2, %v2764_v38 }
 0x448   : > { %v3343_v56 = vpop.permute.xlu1 %3342  ;;  %v2862_v34 = vadd.f32 %v2850_v55, %v2760_v52  ;;  %v10489_v55 = vld [vmem:[%s13081_s15 + $0x490] sm:$0xff] }
 0x449   : > { %v3323_v44 = vpop.permute.xlu0 %3322  ;;  %4757 = vperm.xlu1 %12215, %v15968_v60   ;;  %v2968_v8 = vadd.f32 %v2956_v23, %v2866_v48 }
 0x44a   : > { %4737 = vperm.xlu0 %12214, %v15971_v9   ;;  %v2964_v38 = vadd.f32 %v2952_v13, %v2862_v34  ;;  %v3360_v41 = vmul.f32 %v15533_v25, %v3323_v44  ;;  %v16033_v13 = vld [vmem:[%s13081_s15 + $0x570] sm:$0xff]  ;;  %v10576_v44 = vld [vmem:[%s13081_s15 + $0x558] sm:$0xff] }
 0x44b   : > { %v3070_v32 = vadd.f32 %v3058_v50, %v2968_v8 }
 0x44c   : > { %v15993_v47 = vpop.permute.xlu1 %3879 }
 0x44d   : > { %v15997_v19 = vpop.permute.xlu0 %3859  ;;  %4854 = vperm.xlu1 %12215, %v10567_v29   ;;  %v3066_v29 = vadd.f32 %v3054_v15, %v2964_v38  ;;  %v18402_v38 = vld [vmem:[#allocation11_spill] sm:$0xff] }
 0x44e   : > { %4834 = vperm.xlu0 %12214, %v10563_v37   ;;  %v3160_v37 = vmul.f32 %v15511_v27, %v15887_v24  ;;  %v3258_v24 = vmul.f32 %v15522_v36, %v15936_v11 }
 0x44f   : > { %v3168_v42 = vadd.f32 %v3156_v40, %v3066_v29  ;;  %v2651_v40 = vmul.f32 %v15445_v58, %v18402_v38  ;;  %v18410_v38 = vld [vmem:[#allocation15_spill] sm:$0xff] }
 0x450   : > { %v16008_v61 = vpop.permute.xlu1 %3976  ;;  %v3172_v23 = vadd.f32 %v3160_v37, %v3070_v32  ;;  %v10580_v37 = vld [vmem:[%s13081_s15 + $0x5d8] sm:$0xff] }
 0x451   : > { %v16012_v26 = vpop.permute.xlu0 %3956  ;;  %5222 = vperm.xlu1 %12215, %v15801_v62   ;;  %v3364_v62 = vmul.f32 %v15533_v25, %v3343_v56  ;;  %v3270_v48 = vadd.f32 %v3258_v24, %v3168_v42  ;;  %v18403_v32 = vld [vmem:[#allocation25_spill] sm:$0xff]  ;;  %v18405_v42 = vld [vmem:[#allocation8_spill] sm:$0xff] }
 0x452   : > { %5125 = vperm.xlu0 %12214, %v16002_v33   ;;  %v3274_v11 = vadd.f32 %v3262_v43, %v3172_v23  ;;  %v2647_v43 = vmul.f32 %v15445_v58, %v18403_v32  ;;  %v18404_v23 = vld [vmem:[#allocation57_spill] sm:$0xff]  ;;  %v18408_v58 = vld [vmem:[#allocation23_spill] sm:$0xff] }
 0x454   : > { %v16022_v2 = vpop.permute.xlu1 %3347  ;;  %v3376_v34 = vadd.f32 %v3364_v62, %v3274_v11  ;;  %v2549_v62 = vmul.f32 %v15454_v6, %v18404_v23 }
 0x455   : > { %v16025_v52 = vpop.permute.xlu0 %3327  ;;  %4302 = vperm.xlu1 %12215, %v15814_v0   ;;  %v3372_v0 = vadd.f32 %v3360_v41, %v3270_v48  ;;  %v2753_v41 = vmul.f32 %v15461_v54, %v18405_v42 }
 0x456   : > { %4205 = vperm.xlu0 %12214, %v10489_v55  }
 0x458   : > { %v3445_v50 = vpop.permute.xlu1 %3444 }
 0x459   : > { %v3466_v56 = vmul.f32 %v15550_v39, %v3445_v50  ;;  %v3425_v15 = vpop.permute.xlu0 %3424  ;;  %4859 = vperm.xlu1 %12215, %v16030_v59   ;;  %v18407_v50 = vld [vmem:[#allocation16_spill] sm:$0xff] }
 0x45a   : > { %4839 = vperm.xlu0 %12214, %v16033_v13   ;;  %v3462_v8 = vmul.f32 %v15550_v39, %v3425_v15 }
 0x45b   : > { %v3478_v55 = vadd.f32 %v3466_v56, %v3376_v34  ;;  %v2545_v34 = vmul.f32 %v15454_v6, %v18407_v50  ;;  %v2749_v56 = vmul.f32 %v15461_v54, %v18408_v58 }
 0x45c   : > { %v3474_v29 = vadd.f32 %v3462_v8, %v3372_v0  ;;  %v16045_v24 = vpop.permute.xlu1 %3690  ;;  %v10612_v0 = vld [vmem:[%s13081_s15 + $0x510] sm:$0xff]  ;;  %v2663_v8 = vadd.f32 %v2651_v40, %v2549_v62  ;;  %v10502_v62 = vld [vmem:[%s13081_s15 + $0x498] sm:$0xff] }
 0x45d   : > { %v16052_v11 = vadd.f32 %v15571_v18, %v3478_v55  ;;  %v16054_v48 = vpop.permute.xlu0 %3588  ;;  %4956 = vperm.xlu1 %12215, %v10580_v37   ;;  %v2855_v55 = vmul.f32 %v15476_v16, %v18410_v38  ;;  %v2659_v23 = vadd.f32 %v2647_v43, %v2545_v34  ;;  %v18411_v37 = vld [vmem:[#allocation10_spill] sm:$0xff]  ;;  %v2953_v43 = vmul.f32 %v15487_v57, %v15787_v4 }
 0x45e   : > { %4936 = vperm.xlu0 %12214, %v10576_v44   ;;  %v16061_v15 = vadd.f32 %v15571_v18, %v3474_v29  ;;  %v2851_v44 = vmul.f32 %v15476_v16, %v18411_v37  ;;  %v2765_v54 = vadd.f32 %v2753_v41, %v2663_v8  ;;  %v2957_v29 = vmul.f32 %v15487_v57, %v15782_v20 }
 0x45f   : > { %18406 = vst [vmem:[#allocation48_spill] sm:$0xff] %v16052_v11  ;;  %v18114_v32 = vmax.f32 %v16052_v11, 0.0  ;;  %v2761_v40 = vadd.f32 %v2749_v56, %v2659_v23  ;;  %v3059_v41 = vmul.f32 %v15500_v10, %v15879_v1  ;;  %v18425_v11 = vld [vmem:[#allocation39_spill] sm:$0xff] }
 0x460   : > { %18409 = vst [vmem:[#allocation53_spill] sm:$0xff] %v16061_v15  ;;  %v16069_v42 = vpop.permute.xlu1 %3981  ;;  %v18116_v6 = vmax.f32 %v16061_v15, 0.0  ;;  %v2867_v34 = vadd.f32 %v2855_v55, %v2765_v54  ;;  %v3157_v55 = vmul.f32 %v15511_v27, %v15929_v49 }
 0x461   : > { %v16074_v50 = vpop.permute.xlu0 %3961  ;;  %5324 = vperm.xlu1 %12215, %v15871_v31   ;;  %v2863_v58 = vadd.f32 %v2851_v44, %v2761_v40  ;;  %v3055_v31 = vmul.f32 %v15500_v10, %v15860_v30  ;;  %v16098_v10 = vld [vmem:[%s13081_s15 + $0x5f8] sm:$0xff] }
 0x462   : > { %5227 = vperm.xlu0 %12214, %v10612_v0   ;;  %v7075_v16 = vpack.c.bf16 %v18114_v32, %v18116_v6  ;;  %v2969_v4 = vadd.f32 %v2957_v29, %v2867_v34  ;;  %v3161_v0 = vmul.f32 %v15511_v27, %v15927_v21  ;;  %v16101_v30 = vld [vmem:[%s13081_s15 + $0x578] sm:$0xff]  ;;  %v3263_v21 = vmul.f32 %v15522_v36, %v15961_v22  ;;  %v18424_v32 = vld [vmem:[#allocation40_spill] sm:$0xff] }
 0x463   : > { %v6914_v20 = vpop.f32.mrb[24].mxu0  ;;  %v2965_v1 = vadd.f32 %v2953_v43, %v2863_v58  ;;  %v3365_v27 = vmul.f32 %v15533_v25, %v16022_v2  ;;  %v3361_v22 = vmul.f32 %v15533_v25, %v16025_v52  ;;  %v10625_v58 = vld [vmem:[%s13081_s15 + $0x518] sm:$0xff] }
 0x464   : > { %v11535_v56 = vpop.f32.mrb[25].mxu0  ;;  %11606 = vmatmul.mubr.bf16.gmra.mrb[36].mxu0 %v7075_v16  ;;  %v16088_v57 = vpop.permute.xlu1 %4078  ;;  %v3071_v37 = vadd.f32 %v3059_v41, %v2969_v4 }
 0x465   : > { %v6917_v8 = vpop.f32.mrb[26].mxu0  ;;  %v16092_v38 = vpop.permute.xlu0 %4058  ;;  %4404 = vperm.xlu1 %12215, %v15884_v46   ;;  %11609 = vmatprep.mubr.msk.bf16.mxu0 %vm12487_vm0, %v18180_v14  ;;  %v3067_v44 = vadd.f32 %v3055_v31, %v2965_v1  ;;  %v3259_v46 = vmul.f32 %v15522_v36, %v15963_v17 }
 0x466   : > { %4307 = vperm.xlu0 %12214, %v10502_v62   ;;  %v11536_v23 = vpop.f32.mrb[27].mxu0  ;;  %v3173_v29 = vadd.f32 %v3161_v0, %v3071_v37 }
 0x467   : > { %v3169_v40 = vadd.f32 %v3157_v55, %v3067_v44 }
 0x468   : > { %v16109_v54 = vpop.permute.xlu1 %4712  ;;  %v3275_v43 = vadd.f32 %v3263_v21, %v3173_v29  ;;  %v16155_v29 = vld [vmem:[%s13081_s15 + $0x580] sm:$0xff] }
 0x469   : > { %v16113_v49 = vpop.permute.xlu0 %4610  ;;  %4961 = vperm.xlu1 %12215, %v16098_v10   ;;  %v3271_v16 = vadd.f32 %v3259_v46, %v3169_v40  ;;  %v16152_v46 = vld [vmem:[%s13081_s15 + $0x600] sm:$0xff] }
 0x46a   : > { %4941 = vperm.xlu0 %12214, %v16101_v30   ;;  %v3377_v17 = vadd.f32 %v3365_v27, %v3275_v43 }
 0x46b   : > { %v3373_v2 = vadd.f32 %v3361_v22, %v3271_v16  ;;  %v10638_v22 = vld [vmem:[%s13081_s15 + $0x520] sm:$0xff] }
 0x46c   : > { %v3450_v36 = vpop.permute.xlu1 %3449 }
 0x46d   : > { %v3467_v62 = vmul.f32 %v15550_v39, %v3450_v36  ;;  %v3430_v34 = vpop.permute.xlu0 %3429  ;;  %5058 = vperm.xlu1 %12215, %v15956_v28   ;;  %v10668_v36 = vld [vmem:[%s13081_s15 + $0x6c0] sm:$0xff] }
 0x46e   : > { %5038 = vperm.xlu0 %12214, %v15959_v53   ;;  %v3463_v41 = vmul.f32 %v15550_v39, %v3430_v34  ;;  %v10515_v53 = vld [vmem:[%s13081_s15 + $0x4a0] sm:$0xff] }
 0x46f   : > { %v3479_v31 = vadd.f32 %v3467_v62, %v3377_v17  ;;  %v10664_v17 = vld [vmem:[%s13081_s15 + $0x640] sm:$0xff] }
 0x470   : > { %v3475_v56 = vadd.f32 %v3463_v41, %v3373_v2  ;;  %v16124_v4 = vpop.permute.xlu1 %3695 }
 0x471   : > { %18412 = vst [vmem:[#allocation32_spill] sm:$0xff] %v16124_v4  ;;  %v16127_v25 = vadd.f32 %v15571_v18, %v3479_v31  ;;  %v16129_v52 = vpop.permute.xlu0 %3593  ;;  %5426 = vperm.xlu1 %12215, %v15934_v51  }
 0x472   : > { %18414 = vst [vmem:[#allocation9_spill] sm:$0xff] %v16129_v52  ;;  %5329 = vperm.xlu0 %12214, %v10625_v58   ;;  %v16133_v28 = vadd.f32 %v15571_v18, %v3475_v56  ;;  %v10528_v58 = vld [vmem:[%s13081_s15 + $0x4a8] sm:$0xff] }
 0x473   : > { %18413 = vst [vmem:[#allocation24_spill] sm:$0xff] %v16127_v25  ;;  %v7051_v39 = vpop.f32.mrb[24].mxu1  ;;  %v18113_v0 = vmax.f32 %v16127_v25, 0.0  ;;  %v18427_v52 = vld [vmem:[#allocation69_spill] sm:$0xff] }
 0x474   : > { %18415 = vst [vmem:[#allocation11_spill] sm:$0xff] %v16133_v28  ;;  %v16137_v1 = vadd.f32 %v7051_v39, %v6914_v20  ;;  %v11579_v55 = vpop.f32.mrb[25].mxu1  ;;  %v16139_v23 = vpop.permute.xlu1 %4063  ;;  %v18115_v37 = vmax.f32 %v16133_v28, 0.0 }
 0x475   : > { %v7054_v21 = vpop.f32.mrb[26].mxu1  ;;  %v16142_v44 = vpop.permute.xlu0 %3792  ;;  %4506 = vperm.xlu1 %12215, %v15941_v12  }
 0x476   : > { %18416 = vst [vmem:[#allocation25_spill] sm:$0xff] %v16137_v1  ;;  %4409 = vperm.xlu0 %12214, %v10515_v53   ;;  %v16145_v18 = vadd.f32 %v7054_v21, %v6917_v8  ;;  %v11580_v51 = vpop.f32.mrb[27].mxu1  ;;  %v7265_v20 = vpack.c.bf16 %v18113_v0, %v18115_v37  ;;  %v16199_v53 = vld [vmem:[%s13081_s15 + $0x608] sm:$0xff]  ;;  %v16246_v1 = vld [vmem:[%s18041_s1] ss:$0 sm:$0xff] }
 0x477   : > { %v10651_v21 = vld [vmem:[%s13081_s15 + $0x528] sm:$0xff]  ;;  %v3606_v25 = vmul.f32 %v16246_v1, %v15825_v45 }
 0x478   : > { %18417 = vst [vmem:[#allocation57_spill] sm:$0xff] %v16145_v18  ;;  %11650 = vmatmul.mubr.bf16.gmra.mrb[36].mxu1 %v7265_v20  ;;  %v16157_v27 = vpop.permute.xlu1 %4160 }
 0x479   : > { %v16159_v12 = vpop.permute.xlu0 %4083  ;;  %5063 = vperm.xlu1 %12215, %v16152_v46   ;;  %11653 = vmatprep.mubr.msk.bf16.mxu1 %vm12487_vm0, %v18180_v14 }
 0x47a   : > { %5043 = vperm.xlu0 %12214, %v16155_v29  }
 0x47c   : > { %v16165_v8 = vpop.permute.xlu1 %4615 }
 0x47d   : > { %18418 = vst [vmem:[#allocation8_spill] sm:$0xff] %v16165_v8  ;;  %v16167_v40 = vpop.permute.xlu0 %4180  ;;  %5160 = vperm.xlu1 %12215, %v15968_v60   ;;  %v10677_v60 = vld [vmem:[%s13081_s15 + $0x648] sm:$0xff]  ;;  %v10690_v8 = vld [vmem:[%s13081_s15 + $0x650] sm:$0xff] }
 0x47e   : > { %5140 = vperm.xlu0 %12214, %v15971_v9   ;;  %v10681_v9 = vld [vmem:[%s13081_s15 + $0x6c8] sm:$0xff] }
 0x480   : > { %v16172_v43 = vpop.permute.xlu1 %4814 }
 0x481   : > { %v16174_v16 = vpop.permute.xlu0 %4717  ;;  %5528 = vperm.xlu1 %12215, %v16002_v33   ;;  %v16190_v33 = vld [vmem:[%s13081_s15 + $0x588] sm:$0xff] }
 0x482   : > { %18419 = vst [vmem:[#allocation16_spill] sm:$0xff] %v16174_v16  ;;  %5431 = vperm.xlu0 %12214, %v10638_v22   ;;  %v16214_v22 = vld [vmem:[%s13081_s15 + $0x6e0] sm:$0xff]  ;;  %v18426_v16 = vld [vmem:[#allocation47_spill] sm:$0xff] }
 0x484   : > { %v16179_v62 = vpop.permute.xlu1 %3894 }
 0x485   : > { %v16181_v34 = vpop.permute.xlu0 %3797  ;;  %5692 = vperm.xlu1 %12215, %v10668_v36   ;;  %v16217_v36 = vld [vmem:[%s13081_s15 + $0x660] sm:$0xff] }
 0x486   : > { %18420 = vst [vmem:[#allocation23_spill] sm:$0xff] %v16181_v34  ;;  %5672 = vperm.xlu0 %12214, %v10664_v17  }
 0x488   : > { %v16185_v2 = vpop.permute.xlu1 %4185 }
 0x489   : > { %v16187_v41 = vpop.permute.xlu0 %4165  ;;  %5794 = vperm.xlu1 %12215, %v10681_v9  }
 0x48a   : > { %5774 = vperm.xlu0 %12214, %v10677_v60   ;;  %v16229_v60 = vld [vmem:[%s13081_s15 + $0x668] sm:$0xff] }
 0x48c   : > { %v16193_v31 = vpop.permute.xlu1 %4282 }
 0x48d   : > { %v16195_v56 = vpop.permute.xlu0 %4262  ;;  %5145 = vperm.xlu1 %12215, %v16190_v33  }
 0x48e   : > { %4511 = vperm.xlu0 %12214, %v10528_v58  }
 0x490   : > { %v16201_v39 = vpop.permute.xlu1 %4916 }
 0x491   : > { %18421 = vst [vmem:[#allocation15_spill] sm:$0xff] %v16201_v39  ;;  %v16203_v55 = vpop.permute.xlu0 %4819  ;;  %5242 = vperm.xlu1 %12215, %v16033_v13   ;;  %v16226_v13 = vld [vmem:[%s13081_s15 + $0x6e8] sm:$0xff] }
 0x492   : > { %18422 = vst [vmem:[#allocation10_spill] sm:$0xff] %v16203_v55  ;;  %5165 = vperm.xlu0 %12214, %v16199_v53   ;;  %v10694_v55 = vld [vmem:[%s13081_s15 + $0x6d0] sm:$0xff] }
 0x494   : > { %v16208_v51 = vpop.permute.xlu1 %3996 }
 0x495   : > { %v16210_v20 = vpop.permute.xlu0 %3899  ;;  %5533 = vperm.xlu1 %12215, %v10651_v21  }
 0x496   : > { %18423 = vst [vmem:[#allocation70_spill] sm:$0xff] %v16210_v20  ;;  %5262 = vperm.xlu0 %12214, %v16030_v59   ;;  %v16234_v59 = vld [vmem:[%s18041_s1 + $0x1] ss:$0 sm:$0xff]  ;;  %v16271_v20 = vld [vmem:[%s18041_s1 + $0x3] ss:$0 sm:$0xff] }
 0x497   : > { %v3708_v58 = vmul.f32 %v16234_v59, %v15846_v3  ;;  %v3704_v0 = vmul.f32 %v16234_v59, %v15850_v7  ;;  %v16253_v3 = vld [vmem:[%s18041_s1 + $0x2] ss:$0 sm:$0xff] }
 0x498   : > { %v16219_v17 = vpop.permute.xlu1 %4287  ;;  %v3810_v7 = vmul.f32 %v16253_v3, %v15917_v5  ;;  %v3806_v45 = vmul.f32 %v16253_v3, %v15921_v63  ;;  %v3908_v63 = vmul.f32 %v16271_v20, %v18427_v52  ;;  %v10620_v52 = vld [vmem:[%s13081_s15 + $0x610] sm:$0xff] }
 0x499   : > { %v16221_v9 = vpop.permute.xlu0 %4267  ;;  %5697 = vperm.xlu1 %12215, %v16214_v22   ;;  %v3720_v5 = vadd.f32 %v3708_v58, %v3606_v25 }
 0x49a   : > { %5677 = vperm.xlu0 %12214, %v16217_v36  }
 0x49b   : > { %v7179_v21 = vpop.f32.mrb[28].mxu0 }
 0x49c   : > { %v16241_v37 = vadd.f32 %v7179_v21, %v18424_v32  ;;  %v11599_v6 = vpop.f32.mrb[29].mxu0  ;;  %v4385_v18 = vpop.permute.xlu1 %4384 }
 0x49d   : > { %v7182_v32 = vpop.f32.mrb[30].mxu0  ;;  %v4365_v21 = vpop.permute.xlu0 %4364  ;;  %5799 = vperm.xlu1 %12215, %v16226_v13   ;;  %v3602_v6 = vmul.f32 %v16246_v1, %v15832_v35  ;;  %v3912_v35 = vmul.f32 %v16271_v20, %v18426_v16 }
 0x49e   : > { %5779 = vperm.xlu0 %12214, %v16229_v60   ;;  %v16264_v28 = vadd.f32 %v7182_v32, %v18425_v11  ;;  %v11600_v15 = vpop.f32.mrb[31].mxu0  ;;  %v16282_v32 = vld [vmem:[%s18041_s1 + $0x4] ss:$0 sm:$0xff] }
 0x49f   : > { %v3716_v34 = vadd.f32 %v3704_v0, %v3602_v6  ;;  %v3822_v15 = vadd.f32 %v3810_v7, %v3720_v5  ;;  %v4014_v25 = vmul.f32 %v16282_v32, %v16008_v61  ;;  %v4010_v0 = vmul.f32 %v16282_v32, %v16012_v26  ;;  %v10616_v6 = vld [vmem:[%s13081_s15 + $0x590] sm:$0xff] }
 0x4a0   : > { %v16277_v11 = vpop.permute.xlu1 %5018  ;;  %v16295_v7 = vld [vmem:[%s18041_s1 + $0x5] ss:$0 sm:$0xff]  ;;  %v16306_v26 = vld [vmem:[%s18041_s1 + $0x6] ss:$0 sm:$0xff] }
 0x4a1   : > { %18428 = vst [vmem:[#allocation40_spill] sm:$0xff] %v16277_v11  ;;  %v16286_v58 = vpop.permute.xlu0 %4921  ;;  %5896 = vperm.xlu1 %12215, %v10694_v55   ;;  %v3818_v16 = vadd.f32 %v3806_v45, %v3716_v34  ;;  %v3924_v4 = vadd.f32 %v3912_v35, %v3822_v15  ;;  %v4116_v5 = vmul.f32 %v16295_v7, %v16088_v57  ;;  %v18437_v11 = vld [vmem:[#allocation49_spill] sm:$0xff] }
 0x4a2   : > { %18429 = vst [vmem:[#allocation39_spill] sm:$0xff] %v16286_v58  ;;  %5876 = vperm.xlu0 %12214, %v10690_v8   ;;  %v4112_v55 = vmul.f32 %v16295_v7, %v16092_v38  ;;  %v4218_v45 = vmul.f32 %v16306_v26, %v16167_v40  ;;  %v4214_v38 = vmul.f32 %v16306_v26, %v16157_v27  ;;  %v16328_v27 = vld [vmem:[%s18041_s1 + $0x8] ss:$0 sm:$0xff] }
 0x4a3   : > { %v3920_v61 = vadd.f32 %v3908_v63, %v3818_v16  ;;  %v4026_v34 = vadd.f32 %v4014_v25, %v3924_v4  ;;  %v16317_v4 = vld [vmem:[%s18041_s1 + $0x7] ss:$0 sm:$0xff] }
 0x4a4   : > { %v16301_v8 = vpop.permute.xlu1 %4098  ;;  %v4320_v15 = vmul.f32 %v16317_v4, %v16193_v31  ;;  %v4316_v25 = vmul.f32 %v16317_v4, %v16195_v56  ;;  %v4418_v56 = vmul.f32 %v16328_v27, %v4365_v21 }
 0x4a5   : > { %18430 = vst [vmem:[#allocation47_spill] sm:$0xff] %v16301_v8  ;;  %v16310_v35 = vpop.permute.xlu0 %4001  ;;  %5267 = vperm.xlu1 %12215, %v10620_v52   ;;  %v4022_v57 = vadd.f32 %v4010_v0, %v3920_v61  ;;  %v4128_v63 = vadd.f32 %v4116_v5, %v4026_v34  ;;  %v4422_v52 = vmul.f32 %v16328_v27, %v4385_v18  ;;  %v16337_v5 = vld [vmem:[%s13081_s15 + $0x6f0] sm:$0xff]  ;;  %v16345_v18 = vld [vmem:[%s18041_s1 + $0x9] ss:$0 sm:$0xff] }
 0x4a6   : > { %18431 = vst [vmem:[#allocation69_spill] sm:$0xff] %v16310_v35  ;;  %5247 = vperm.xlu0 %12214, %v10616_v6   ;;  %v16340_v61 = vld [vmem:[%s13081_s15 + $0x670] sm:$0xff] }
 0x4a7   : > { %v4124_v40 = vadd.f32 %v4112_v55, %v4022_v57  ;;  %v4230_v0 = vadd.f32 %v4218_v45, %v4128_v63  ;;  %v10707_v63 = vld [vmem:[%s13081_s15 + $0x6d8] sm:$0xff] }
 0x4a8   : > { %v16323_v16 = vpop.permute.xlu1 %4389 }
 0x4a9   : > { %v16331_v6 = vpop.permute.xlu0 %4369  ;;  %5364 = vperm.xlu1 %12215, %v16098_v10   ;;  %v4226_v31 = vadd.f32 %v4214_v38, %v4124_v40  ;;  %v4332_v55 = vadd.f32 %v4320_v15, %v4230_v0  ;;  %v10703_v15 = vld [vmem:[%s13081_s15 + $0x658] sm:$0xff] }
 0x4aa   : > { %5344 = vperm.xlu0 %12214, %v16101_v30   ;;  %v18432_v40 = vld [vmem:[#allocation35_spill] sm:$0xff] }
 0x4ab   : > { %v4328_v34 = vadd.f32 %v4316_v25, %v4226_v31  ;;  %v4434_v57 = vadd.f32 %v4422_v52, %v4332_v55  ;;  %v3709_v25 = vmul.f32 %v16234_v59, %v18432_v40  ;;  %v18433_v31 = vld [vmem:[#allocation20_spill] sm:$0xff]  ;;  %v3811_v40 = vmul.f32 %v16253_v3, %v18437_v11 }
 0x4ac   : > { %v4487_v45 = vpop.permute.xlu1 %4486  ;;  %v3705_v55 = vmul.f32 %v16234_v59, %v18433_v31 }
 0x4ad   : > { %v4524_v10 = vmul.f32 %v16345_v18, %v4487_v45  ;;  %v4467_v30 = vpop.permute.xlu0 %4466  ;;  %5901 = vperm.xlu1 %12215, %v16337_v5   ;;  %v4430_v21 = vadd.f32 %v4418_v56, %v4328_v34  ;;  %v18436_v34 = vld [vmem:[#allocation21_spill] sm:$0xff] }
 0x4ae   : > { %5881 = vperm.xlu0 %12214, %v16340_v61   ;;  %v4520_v38 = vmul.f32 %v16345_v18, %v4467_v30  ;;  %v3607_v30 = vmul.f32 %v16246_v1, %v18436_v34 }
 0x4af   : > { %v4536_v0 = vadd.f32 %v4524_v10, %v4434_v57  ;;  %v7369_v52 = vpop.f32.mrb[28].mxu1  ;;  %v16369_v57 = vld [vmem:[%s18050_s10] ss:$0 sm:$0xff] }
 0x4b0   : > { %v4532_v58 = vadd.f32 %v4520_v38, %v4430_v21  ;;  %v16358_v45 = vadd.f32 %v7369_v52, %v16241_v37  ;;  %v11643_v35 = vpop.f32.mrb[29].mxu1  ;;  %v16360_v56 = vpop.permute.xlu1 %4650  ;;  %v18441_v52 = vld [vmem:[#allocation52_spill] sm:$0xff]  ;;  %v3721_v8 = vadd.f32 %v3709_v25, %v3607_v30  ;;  %v4113_v30 = vmul.f32 %v16295_v7, %v16139_v23  ;;  %v16424_v23 = vld [vmem:[%s13081_s15 + $0x678] sm:$0xff] }
 0x4b1   : > { %18435 = vst [vmem:[#allocation20_spill] sm:$0xff] %v16360_v56  ;;  %v16372_v10 = vadd.f32 %v16369_v57, %v4536_v0  ;;  %v7372_v37 = vpop.f32.mrb[30].mxu1  ;;  %v16374_v21 = vpop.permute.xlu0 %4630  ;;  %5998 = vperm.xlu1 %12215, %v10707_v63   ;;  %v18440_v35 = vld [vmem:[#allocation28_spill] sm:$0xff]  ;;  %v3807_v31 = vmul.f32 %v16253_v3, %v18441_v52  ;;  %v10633_v0 = vld [vmem:[%s13081_s15 + $0x618] sm:$0xff]  ;;  %v3913_v63 = vmul.f32 %v16271_v20, %v15993_v47 }
 0x4b2   : > { %18434 = vst [vmem:[#allocation35_spill] sm:$0xff] %v16358_v45  ;;  %18439 = vst [vmem:[#allocation49_spill] sm:$0xff] %v16374_v21  ;;  %5978 = vperm.xlu0 %12214, %v10703_v15   ;;  %v3603_v38 = vmul.f32 %v16246_v1, %v18440_v35  ;;  %v16381_v11 = vadd.f32 %v16369_v57, %v4532_v58  ;;  %v16384_v34 = vadd.f32 %v7372_v37, %v16264_v28  ;;  %v11644_v45 = vpop.f32.mrb[31].mxu1  ;;  %v10629_v56 = vld [vmem:[%s13081_s15 + $0x598] sm:$0xff] }
 0x4b3   : > { %18438 = vst [vmem:[#allocation21_spill] sm:$0xff] %v16372_v10  ;;  %v18122_v15 = vmax.f32 %v16372_v10, 0.0  ;;  %v3909_v35 = vmul.f32 %v16271_v20, %v15997_v19  ;;  %v3823_v39 = vadd.f32 %v3811_v40, %v3721_v8  ;;  %v4015_v28 = vmul.f32 %v16282_v32, %v16069_v42 }
 0x4b4   : > { %18442 = vst [vmem:[#allocation28_spill] sm:$0xff] %v16381_v11  ;;  %18443 = vst [vmem:[#allocation52_spill] sm:$0xff] %v16384_v34  ;;  %v3717_v21 = vadd.f32 %v3705_v55, %v3603_v38  ;;  %v16393_v52 = vpop.permute.xlu1 %4752  ;;  %v18124_v58 = vmax.f32 %v16381_v11, 0.0  ;;  %v4011_v47 = vmul.f32 %v16282_v32, %v16074_v50  ;;  %v4117_v8 = vmul.f32 %v16295_v7, %v16159_v12 }
 0x4b5   : > { %v16398_v45 = vpop.permute.xlu0 %4732  ;;  %5369 = vperm.xlu1 %12215, %v10633_v0   ;;  %v3925_v55 = vadd.f32 %v3913_v63, %v3823_v39  ;;  %v4219_v50 = vmul.f32 %v16306_v26, %v16185_v2  ;;  %v4215_v12 = vmul.f32 %v16306_v26, %v16187_v41  ;;  %v4321_v2 = vmul.f32 %v16317_v4, %v16219_v17 }
 0x4b6   : > { %5349 = vperm.xlu0 %12214, %v10629_v56   ;;  %v3819_v25 = vadd.f32 %v3807_v31, %v3717_v21  ;;  %v7076_v19 = vpack.c.bf16 %v18122_v15, %v18124_v58  ;;  %v16421_v21 = vld [vmem:[%s13081_s15 + $0x6f8] sm:$0xff]  ;;  %v4423_v41 = vmul.f32 %v16328_v27, %v16323_v16  ;;  %v4419_v17 = vmul.f32 %v16328_v27, %v16331_v6 }
 0x4b7   : > { %v4027_v40 = vadd.f32 %v4015_v28, %v3925_v55  ;;  %v3814_v58 = vmul.f32 %v16253_v3, %v16142_v44  ;;  %v3916_v44 = vmul.f32 %v16271_v20, %v16179_v62 }
 0x4b8   : > { %v3921_v42 = vadd.f32 %v3909_v35, %v3819_v25  ;;  %11610 = vmatmul.mubr.bf16.gmra.mrb[40].mxu0 %v7076_v19  ;;  %v16410_v56 = vpop.permute.xlu1 %5120 }
 0x4b9   : > { %v16414_v37 = vpop.permute.xlu0 %5023  ;;  %5466 = vperm.xlu1 %12215, %v16152_v46   ;;  %11613 = vmatprep.mubr.msk.bf16.mxu0 %vm12487_vm0, %v18180_v14  ;;  %v4129_v38 = vadd.f32 %v4117_v8, %v4027_v40  ;;  %v4317_v46 = vmul.f32 %v16317_v4, %v16221_v9 }
 0x4ba   : > { %5446 = vperm.xlu0 %12214, %v16155_v29   ;;  %v4023_v39 = vadd.f32 %v4011_v47, %v3921_v42  ;;  %v10646_v42 = vld [vmem:[%s13081_s15 + $0x620] sm:$0xff] }
 0x4bb   : > { %v4231_v0 = vadd.f32 %v4219_v50, %v4129_v38 }
 0x4bc   : > { %v4125_v31 = vadd.f32 %v4113_v30, %v4023_v39  ;;  %v16432_v29 = vpop.permute.xlu1 %4200  ;;  %v10642_v30 = vld [vmem:[%s13081_s15 + $0x5a0] sm:$0xff] }
 0x4bd   : > { %v16436_v63 = vpop.permute.xlu0 %4103  ;;  %6003 = vperm.xlu1 %12215, %v16421_v21   ;;  %v4333_v28 = vadd.f32 %v4321_v2, %v4231_v0  ;;  %v16471_v0 = vld [vmem:[%s13081_s15 + $0x700] sm:$0xff] }
 0x4be   : > { %5983 = vperm.xlu0 %12214, %v16424_v23   ;;  %v4227_v35 = vadd.f32 %v4215_v12, %v4125_v31 }
 0x4bf   : > { %v4435_v47 = vadd.f32 %v4423_v41, %v4333_v28  ;;  %v16474_v41 = vld [vmem:[%s13081_s15 + $0x680] sm:$0xff]  ;;  %v10659_v28 = vld [vmem:[%s13081_s15 + $0x628] sm:$0xff] }
 0x4c0   : > { %v4329_v9 = vadd.f32 %v4317_v46, %v4227_v35  ;;  %v4492_v25 = vpop.permute.xlu1 %4491 }
 0x4c1   : > { %v4525_v19 = vmul.f32 %v16345_v18, %v4492_v25  ;;  %v4472_v55 = vpop.permute.xlu0 %4471  ;;  %6100 = vperm.xlu1 %12215, %v16214_v22  }
 0x4c2   : > { %6080 = vperm.xlu0 %12214, %v16217_v36   ;;  %v4431_v16 = vadd.f32 %v4419_v17, %v4329_v9  ;;  %v4521_v8 = vmul.f32 %v16345_v18, %v4472_v55  ;;  %v10655_v9 = vld [vmem:[%s13081_s15 + $0x5a8] sm:$0xff] }
 0x4c3   : > { %v4537_v40 = vadd.f32 %v4525_v19, %v4435_v47  ;;  %v12248_v47 = vld [vmem:[%s18042_s2 + $0x100] sm:$0xff]  }
 0x4c4   : > { %v4533_v6 = vadd.f32 %v4521_v8, %v4431_v16  ;;  %v16448_v50 = vpop.permute.xlu1 %4655  ;;  %v12249_v19 = vld [vmem:[%s18042_s2 + $0x140] sm:$0xff]   ;;  %v16503_v16 = vld [vmem:[%s13081_s15 + $0x708] sm:$0xff]  ;;  %11670 = vmatpush3.bf16.msra.mxu0 %v12248_v47  ;;  %v12252_v47 = vld [vmem:[%s18042_s2 + $0x110] sm:$0xff]  }
 0x4c5   : > { %v16451_v39 = vadd.f32 %v16369_v57, %v4537_v40  ;;  %v16453_v12 = vpop.permute.xlu0 %4635  ;;  %5471 = vperm.xlu1 %12215, %v10646_v42   ;;  %11714 = vmatpush3.bf16.msra.mxu1 %v12249_v19  ;;  %v12251_v40 = vld [vmem:[%s18042_s2 + $0x148] sm:$0xff]   ;;  %v12253_v19 = vld [vmem:[%s18042_s2 + $0x150] sm:$0xff]  }
 0x4c6   : > { %18445 = vst [vmem:[#allocation72_spill] sm:$0xff] %v16453_v12  ;;  %5451 = vperm.xlu0 %12214, %v10642_v30   ;;  %v16456_v22 = vadd.f32 %v16369_v57, %v4533_v6  ;;  %11671 = vmatprep.subr.bf16.mxu0 %v18180_v14  ;;  %v12250_v30 = vld [vmem:[%s18042_s2 + $0x108] sm:$0xff]  }
 0x4c7   : > { %18444 = vst [vmem:[#allocation71_spill] sm:$0xff] %v16451_v39  ;;  %v18121_v36 = vmax.f32 %v16451_v39, 0.0  ;;  %11715 = vmatprep.subr.bf16.mxu1 %v18180_v14  ;;  %v10769_v39 = vld [vmem:[%s13081_s15 + $0x6a0] sm:$0xff] }
 0x4c8   : > { %18446 = vst [vmem:[#allocation73_spill] sm:$0xff] %v16456_v22  ;;  %v16459_v38 = vpop.permute.xlu1 %4757  ;;  %v18123_v2 = vmax.f32 %v16456_v22, 0.0  ;;  %11672 = vmatpush3.bf16.msra.mxu0 %v12250_v30  ;;  %v18450_v22 = vld [vmem:[#allocation59_spill] sm:$0xff] }
 0x4c9   : > { %v16462_v31 = vpop.permute.xlu0 %4737  ;;  %5568 = vperm.xlu1 %12215, %v16199_v53   ;;  %11716 = vmatpush3.bf16.msra.mxu1 %v12251_v40  ;;  %v16553_v40 = vld [vmem:[%s13081_s15 + $0x718] sm:$0xff] }
 0x4ca   : > { %5548 = vperm.xlu0 %12214, %v16190_v33   ;;  %v7266_v46 = vpack.c.bf16 %v18121_v36, %v18123_v2  ;;  %11673 = vmatprep.subr.bf16.mxu0 %v18180_v14  ;;  %v10756_v36 = vld [vmem:[%s13081_s15 + $0x698] sm:$0xff] }
 0x4cb   : > { %11717 = vmatprep.subr.bf16.mxu1 %v18180_v14 }
 0x4cc   : > { %11654 = vmatmul.mubr.bf16.gmra.mrb[40].mxu1 %v7266_v46  ;;  %v16476_v35 = vpop.permute.xlu1 %4854  ;;  %v16529_v46 = vld [vmem:[%s13081_s15 + $0x710] sm:$0xff]  ;;  %11674 = vmatpush3.bf16.msra.mxu0 %v12252_v47  ;;  %v12254_v47 = vld [vmem:[%s18042_s2 + $0x118] sm:$0xff]  }
 0x4cd   : > { %v16478_v17 = vpop.permute.xlu0 %4834  ;;  %6105 = vperm.xlu1 %12215, %v16471_v0   ;;  %11657 = vmatprep.mubr.msk.bf16.mxu1 %vm12487_vm0, %v18180_v14 }
 0x4ce   : > { %6085 = vperm.xlu0 %12214, %v16474_v41   ;;  %11675 = vmatprep.subr.bf16.mxu0 %v18180_v14 }
 0x4cf   : > { %11718 = vmatpush3.bf16.msra.mxu1 %v12253_v19  ;;  %v12255_v19 = vld [vmem:[%s18042_s2 + $0x158] sm:$0xff]  }
 0x4d0   : > { %v16484_v33 = vpop.permute.xlu1 %5222  ;;  %11719 = vmatprep.subr.bf16.mxu1 %v18180_v14  ;;  %11676 = vmatpush3.bf16.msra.mxu0 %v12254_v47  ;;  %v16586_v47 = vld [vmem:[%s13081_s15 + $0x720] sm:$0xff] }
 0x4d1   : > { %v16486_v53 = vpop.permute.xlu0 %5125  ;;  %6202 = vperm.xlu1 %12215, %v16226_v13   ;;  %v16506_v13 = vld [vmem:[%s13081_s15 + $0x688] sm:$0xff]  ;;  %11677 = vmatprep.subr.bf16.mxu0 %v18180_v14 }
 0x4d2   : > { %6182 = vperm.xlu0 %12214, %v16229_v60  }
 0x4d3   : > { %11720 = vmatpush3.bf16.msra.mxu1 %v12255_v19 }
 0x4d4   : > { %v16492_v25 = vpop.permute.xlu1 %4302  ;;  %11721 = vmatprep.subr.bf16.mxu1 %v18180_v14 }
 0x4d5   : > { %v16500_v55 = vpop.permute.xlu0 %4205  ;;  %5573 = vperm.xlu1 %12215, %v10659_v28   ;;  %v10743_v28 = vld [vmem:[%s13081_s15 + $0x690] sm:$0xff] }
 0x4d6   : > { %5553 = vperm.xlu0 %12214, %v10655_v9  }
 0x4d8   : > { %v16510_v60 = vpop.permute.xlu1 %4859 }
 0x4d9   : > { %v16512_v8 = vpop.permute.xlu0 %4839  ;;  %6207 = vperm.xlu1 %12215, %v16503_v16  }
 0x4da   : > { %18447 = vst [vmem:[#allocation74_spill] sm:$0xff] %v16512_v8  ;;  %6187 = vperm.xlu0 %12214, %v16506_v13   ;;  %v18452_v8 = vld [vmem:[#allocation15_spill] sm:$0xff] }
 0x4db   : > { %v4970_v12 = vmul.f32 %v16271_v20, %v18452_v8  ;;  %v4222_v8 = vmul.f32 %v16306_v26, %v16432_v29 }
 0x4dc   : > { %v16516_v42 = vpop.permute.xlu1 %4956 }
 0x4dd   : > { %v16524_v6 = vpop.permute.xlu0 %4936  ;;  %6304 = vperm.xlu1 %12215, %v16337_v5  }
 0x4de   : > { %6284 = vperm.xlu0 %12214, %v16340_v61  }
 0x4e0   : > { %v16534_v9 = vpop.permute.xlu1 %5324 }
 0x4e1   : > { %v16539_v5 = vpop.permute.xlu0 %5227  ;;  %6309 = vperm.xlu1 %12215, %v16529_v46  }
 0x4e2   : > { %6289 = vperm.xlu0 %12214, %v10743_v28  }
 0x4e4   : > { %v16543_v61 = vpop.permute.xlu1 %4404 }
 0x4e5   : > { %v16548_v30 = vpop.permute.xlu0 %4307  ;;  %6406 = vperm.xlu1 %12215, %v16421_v21   ;;  %v3712_v21 = vmul.f32 %v16234_v59, %v16045_v24  ;;  %v4766_v24 = vmul.f32 %v16234_v59, %v16109_v54  ;;  %v4868_v54 = vmul.f32 %v16253_v3, %v16172_v43 }
 0x4e6   : > { %6386 = vperm.xlu0 %12214, %v16424_v23   ;;  %v3610_v23 = vmul.f32 %v16246_v1, %v16054_v48  ;;  %v4664_v48 = vmul.f32 %v16246_v1, %v16113_v49 }
 0x4e8   : > { %v16557_v28 = vpop.permute.xlu1 %4961  ;;  %v3724_v10 = vadd.f32 %v3712_v21, %v3610_v23  ;;  %v12257_v21 = vld [vmem:[%s18042_s2 + $0x160] sm:$0xff]  }
 0x4e9   : > { %18448 = vst [vmem:[#allocation75_spill] sm:$0xff] %v16557_v28  ;;  %v16562_v15 = vpop.permute.xlu0 %4941  ;;  %6411 = vperm.xlu1 %12215, %v16553_v40   ;;  %v12256_v28 = vld [vmem:[%s18042_s2 + $0x120] sm:$0xff]   ;;  %11722 = vmatpush3.bf16.msra.mxu1 %v12257_v21  ;;  %v16626_v21 = vld [vmem:[%s13081_s15 + $0x728] sm:$0xff] }
 0x4ea   : > { %18449 = vst [vmem:[#allocation76_spill] sm:$0xff] %v16562_v15  ;;  %6391 = vperm.xlu0 %12214, %v10756_v36   ;;  %v3826_v62 = vadd.f32 %v3814_v58, %v3724_v10  ;;  %11678 = vmatpush3.bf16.msra.mxu0 %v12256_v28  ;;  %v18453_v58 = vld [vmem:[#allocation47_spill] sm:$0xff] }
 0x4eb   : > { %11679 = vmatprep.subr.bf16.mxu0 %v18180_v14  ;;  %11723 = vmatprep.subr.bf16.mxu1 %v18180_v14 }
 0x4ec   : > { %v16573_v2 = vpop.permute.xlu1 %5058  ;;  %v3928_v10 = vadd.f32 %v3916_v44, %v3826_v62  ;;  %v10782_v62 = vld [vmem:[%s13081_s15 + $0x6a8] sm:$0xff] }
 0x4ed   : > { %v16577_v34 = vpop.permute.xlu0 %5038  ;;  %6508 = vperm.xlu1 %12215, %v16471_v0  }
 0x4ee   : > { %6488 = vperm.xlu0 %12214, %v16474_v41   ;;  %v7187_v36 = vpop.f32.mrb[32].mxu0 }
 0x4ef   : > { %v16592_v11 = vadd.f32 %v7187_v36, %v18450_v22  ;;  %v11603_v15 = vpop.f32.mrb[33].mxu0  ;;  %v4018_v22 = vmul.f32 %v16282_v32, %v16208_v51  ;;  %v4778_v36 = vadd.f32 %v4766_v24, %v4664_v48  ;;  %v4120_v51 = vmul.f32 %v16295_v7, %v18453_v58 }
 0x4f0   : > { %v5427_v41 = vpop.permute.xlu1 %5426  ;;  %v7190_v49 = vpop.f32.mrb[34].mxu0  ;;  %v18451_v15 = vld [vmem:[#allocation62_spill] sm:$0xff]  ;;  %v5276_v58 = vmul.f32 %v16306_v26, %v16484_v33 }
 0x4f1   : > { %v16606_v23 = vadd.f32 %v7190_v49, %v18451_v15  ;;  %v16608_v19 = vpop.permute.xlu0 %5329  ;;  %6513 = vperm.xlu1 %12215, %v16586_v47   ;;  %v11604_v43 = vpop.f32.mrb[35].mxu0  ;;  %v4880_v49 = vadd.f32 %v4868_v54, %v4778_v36  ;;  %v18454_v15 = vld [vmem:[#allocation40_spill] sm:$0xff]  ;;  %v4030_v48 = vadd.f32 %v4018_v22, %v3928_v10  ;;  %v5174_v54 = vmul.f32 %v16295_v7, %v16410_v56 }
 0x4f2   : > { %6493 = vperm.xlu0 %12214, %v10769_v39   ;;  %v5072_v39 = vmul.f32 %v16282_v32, %v18454_v15  ;;  %v4324_v22 = vmul.f32 %v16317_v4, %v16492_v25  ;;  %v5378_v25 = vmul.f32 %v16317_v4, %v16534_v9  ;;  %v12258_v15 = vld [vmem:[%s18042_s2 + $0x128] sm:$0xff]   ;;  %v18455_v9 = vld [vmem:[#allocation32_spill] sm:$0xff] }
 0x4f3   : > { %v4982_v44 = vadd.f32 %v4970_v12, %v4880_v49  ;;  %v4132_v43 = vadd.f32 %v4120_v51, %v4030_v48  ;;  %v4426_v12 = vmul.f32 %v16328_v27, %v16543_v61  ;;  %v12259_v61 = vld [vmem:[%s18042_s2 + $0x168] sm:$0xff]   ;;  %11680 = vmatpush3.bf16.msra.mxu0 %v12258_v15  ;;  %v18459_v15 = vld [vmem:[#allocation70_spill] sm:$0xff] }
 0x4f4   : > { %v4507_v24 = vpop.permute.xlu1 %4506  ;;  %11724 = vmatpush3.bf16.msra.mxu1 %v12259_v61  ;;  %11681 = vmatprep.subr.bf16.mxu0 %v18180_v14  ;;  %v3917_v61 = vmul.f32 %v16271_v20, %v18459_v15 }
 0x4f5   : > { %v16621_v28 = vpop.permute.xlu0 %4409  ;;  %6610 = vperm.xlu1 %12215, %v16503_v16   ;;  %v5084_v36 = vadd.f32 %v5072_v39, %v4982_v44  ;;  %v4234_v29 = vadd.f32 %v4222_v8, %v4132_v43  ;;  %v4528_v49 = vmul.f32 %v16345_v18, %v4507_v24  ;;  %v5480_v8 = vmul.f32 %v16328_v27, %v5427_v41  ;;  %v12260_v41 = vld [vmem:[%s18042_s2 + $0x130] sm:$0xff]  }
 0x4f6   : > { %6590 = vperm.xlu0 %12214, %v16506_v13   ;;  %v3713_v24 = vmul.f32 %v16234_v59, %v18455_v9  ;;  %11725 = vmatprep.subr.bf16.mxu1 %v18180_v14 }
 0x4f7   : > { %v5186_v51 = vadd.f32 %v5174_v54, %v5084_v36  ;;  %v4336_v56 = vadd.f32 %v4324_v22, %v4234_v29  ;;  %v12261_v29 = vld [vmem:[%s18042_s2 + $0x170] sm:$0xff]   ;;  %11682 = vmatpush3.bf16.msra.mxu0 %v12260_v41 }
 0x4f8   : > { %v16633_v10 = vpop.permute.xlu1 %5063  ;;  %11726 = vmatpush3.bf16.msra.mxu1 %v12261_v29  ;;  %11683 = vmatprep.subr.bf16.mxu0 %v18180_v14 }
 0x4f9   : > { %v16639_v13 = vpop.permute.xlu0 %5043  ;;  %6615 = vperm.xlu1 %12215, %v16626_v21   ;;  %v5288_v39 = vadd.f32 %v5276_v58, %v5186_v51  ;;  %v4438_v48 = vadd.f32 %v4426_v12, %v4336_v56  ;;  %11727 = vmatprep.subr.bf16.mxu1 %v18180_v14 }
 0x4fa   : > { %6595 = vperm.xlu0 %12214, %v10782_v62   ;;  %v18456_v62 = vld [vmem:[#allocation9_spill] sm:$0xff] }
 0x4fb   : > { %v3611_v43 = vmul.f32 %v16246_v1, %v18456_v62  ;;  %v5390_v54 = vadd.f32 %v5378_v25, %v5288_v39  ;;  %v4540_v22 = vadd.f32 %v4528_v49, %v4438_v48  ;;  %v18458_v25 = vld [vmem:[#allocation16_spill] sm:$0xff] }
 0x4fc   : > { %v16648_v33 = vpop.permute.xlu1 %5160  ;;  %v4767_v49 = vmul.f32 %v16234_v59, %v18458_v25  ;;  %v16682_v48 = vld [vmem:[%s13081_s15 + $0x730] sm:$0xff] }
 0x4fd   : > { %v16654_v44 = vpop.permute.xlu0 %5140  ;;  %5804 = vperm.xlu1 %12215, %v16503_v16   ;;  %v5492_v58 = vadd.f32 %v5480_v8, %v5390_v54  ;;  %v3725_v56 = vadd.f32 %v3713_v24, %v3611_v43  ;;  %v16685_v8 = vadd.f32 %v16369_v57, %v4540_v22  ;;  %v12262_v24 = vld [vmem:[%s18042_s2 + $0x138] sm:$0xff]   ;;  %v18462_v43 = vld [vmem:[#allocation8_spill] sm:$0xff]  ;;  %v18463_v22 = vld [vmem:[#allocation10_spill] sm:$0xff] }
 0x4fe   : > { %5702 = vperm.xlu0 %12214, %v16471_v0   ;;  %v18457_v0 = vld [vmem:[#allocation23_spill] sm:$0xff]  ;;  %v4665_v41 = vmul.f32 %v16246_v1, %v18462_v43  ;;  %11684 = vmatpush3.bf16.msra.mxu0 %v12262_v24 }
 0x4ff   : > { %v3815_v16 = vmul.f32 %v16253_v3, %v18457_v0  ;;  %18460 = vst [vmem:[#allocation59_spill] sm:$0xff] %v16685_v8  ;;  %11757 = vmatprep.subr.bf16.mxu0 %v18180_v14 }
 0x500   : > { %v5529_v36 = vpop.permute.xlu1 %5528 }
 0x501   : > { %v5582_v12 = vmul.f32 %v16345_v18, %v5529_v36  ;;  %v16673_v51 = vpop.permute.xlu0 %5431  ;;  %5809 = vperm.xlu1 %12215, %v16626_v21   ;;  %v3827_v0 = vadd.f32 %v3815_v16, %v3725_v56  ;;  %v4869_v36 = vmul.f32 %v16253_v3, %v18463_v22  ;;  %v4779_v56 = vadd.f32 %v4767_v49, %v4665_v41  ;;  %v10710_v22 = vld [vmem:[%s13081_s15 + $0x738] sm:$0xff] }
 0x502   : > { %5707 = vperm.xlu0 %12214, %v16586_v47   ;;  %v7377_v39 = vpop.f32.mrb[32].mxu1  ;;  %v5073_v49 = vmul.f32 %v16282_v32, %v16414_v37  ;;  %v4223_v41 = vmul.f32 %v16306_v26, %v16500_v55  ;;  %v4325_v55 = vmul.f32 %v16317_v4, %v16548_v30  ;;  %v16754_v30 = vld [vmem:[%s13081_s15 + $0x748] sm:$0xff] }
 0x503   : > { %v5594_v9 = vadd.f32 %v5582_v12, %v5492_v58  ;;  %v16688_v62 = vadd.f32 %v7377_v39, %v16592_v11  ;;  %v11647_v54 = vpop.f32.mrb[33].mxu1  ;;  %v18464_v58 = vld [vmem:[#allocation69_spill] sm:$0xff] }
 0x504   : > { %v16699_v29 = vpop.permute.xlu1 %5692  ;;  %v7380_v11 = vpop.f32.mrb[34].mxu1  ;;  %v4019_v12 = vmul.f32 %v16282_v32, %v18464_v58  ;;  %v18467_v54 = vld [vmem:[#allocation39_spill] sm:$0xff]  ;;  %v3929_v58 = vadd.f32 %v3917_v61, %v3827_v0 }
 0x505   : > { %18461 = vst [vmem:[#allocation62_spill] sm:$0xff] %v16688_v62  ;;  %v16704_v25 = vadd.f32 %v16369_v57, %v5594_v9  ;;  %v16707_v15 = vadd.f32 %v7380_v11, %v16606_v23  ;;  %v16709_v39 = vpop.permute.xlu0 %5672  ;;  %5911 = vperm.xlu1 %12215, %v16682_v48   ;;  %v11648_v16 = vpop.f32.mrb[35].mxu1  ;;  %v4971_v43 = vmul.f32 %v16271_v20, %v18467_v54  ;;  %v18130_v23 = vmax.f32 %v16685_v8, 0.0  ;;  %v18477_v62 = vld [vmem:[#allocation19_spill] sm:$0xff] }
 0x506   : > { %5906 = vperm.xlu0 %12214, %v16529_v46   ;;  %v4121_v9 = vmul.f32 %v16295_v7, %v16436_v63  ;;  %v12263_v16 = vld [vmem:[%s18042_s2 + $0x178] sm:$0xff]   ;;  %v4881_v46 = vadd.f32 %v4869_v36, %v4779_v56  ;;  %v4031_v61 = vadd.f32 %v4019_v12, %v3929_v58  ;;  %v16736_v36 = vld [vmem:[%s13081_s15 + $0x740] sm:$0xff]  ;;  %v5175_v12 = vmul.f32 %v16295_v7, %v16486_v53 }
 0x507   : > { %18465 = vst [vmem:[#allocation15_spill] sm:$0xff] %v16704_v25  ;;  %18466 = vst [vmem:[#allocation47_spill] sm:$0xff] %v16707_v15  ;;  %v18129_v11 = vmax.f32 %v16704_v25, 0.0  ;;  %11728 = vmatpush3.bf16.msra.mxu1 %v12263_v16  ;;  %v5277_v58 = vmul.f32 %v16306_v26, %v16539_v5  ;;  %v4770_v15 = vmul.f32 %v16234_v59, %v16398_v45 }
 0x508   : > { %v5795_v24 = vpop.permute.xlu1 %5794  ;;  %v4983_v54 = vadd.f32 %v4971_v43, %v4881_v46  ;;  %v4133_v37 = vadd.f32 %v4121_v9, %v4031_v61  ;;  %11801 = vmatprep.subr.bf16.mxu1 %v18180_v14  ;;  %v4427_v9 = vmul.f32 %v16328_v27, %v16621_v28  ;;  %v4872_v45 = vmul.f32 %v16253_v3, %v16478_v17 }
 0x509   : > { %v16728_v63 = vpop.permute.xlu0 %5774  ;;  %6013 = vperm.xlu1 %12215, %v10710_v22   ;;  %v7077_v0 = vpack.c.bf16 %v18129_v11, %v18130_v23  ;;  %v5080_v17 = vmul.f32 %v16282_v32, %v16573_v2 }
 0x50a   : > { %6008 = vperm.xlu0 %12214, %v16553_v40   ;;  %v5085_v40 = vadd.f32 %v5073_v49, %v4983_v54  ;;  %v4235_v43 = vadd.f32 %v4223_v41, %v4133_v37  ;;  %v5379_v49 = vmul.f32 %v16317_v4, %v16608_v19 }
 0x50b   : > { %11614 = vmatmul.mubr.bf16.gmra.mrb[44].mxu0 %v7077_v0  ;;  %v5481_v0 = vmul.f32 %v16328_v27, %v16673_v51  ;;  %v10762_v51 = vld [vmem:[%s13081_s15 + $0x758] sm:$0xff] }
 0x50c   : > { %v16743_v56 = vpop.permute.xlu1 %5145  ;;  %11617 = vmatprep.mubr.msk.bf16.mxu0 %vm12487_vm0, %v18180_v14  ;;  %v5187_v16 = vadd.f32 %v5175_v12, %v5085_v40  ;;  %v4337_v46 = vadd.f32 %v4325_v55, %v4235_v43 }
 0x50d   : > { %v4512_v53 = vpop.permute.xlu0 %4511  ;;  %6115 = vperm.xlu1 %12215, %v16736_v36  }
 0x50e   : > { %6110 = vperm.xlu0 %12214, %v16586_v47   ;;  %v4529_v61 = vmul.f32 %v16345_v18, %v4512_v53  ;;  %v5289_v5 = vadd.f32 %v5277_v58, %v5187_v16  ;;  %v4439_v28 = vadd.f32 %v4427_v9, %v4337_v46  ;;  %v10749_v47 = vld [vmem:[%s13081_s15 + $0x750] sm:$0xff]  ;;  %v10775_v46 = vld [vmem:[%s13081_s15 + $0x760] sm:$0xff] }
 0x510   : > { %v16759_v41 = vpop.permute.xlu1 %5242  ;;  %v5391_v37 = vadd.f32 %v5379_v49, %v5289_v5  ;;  %v4541_v19 = vadd.f32 %v4529_v61, %v4439_v28 }
 0x511   : > { %v16763_v54 = vpop.permute.xlu0 %5165  ;;  %6217 = vperm.xlu1 %12215, %v16754_v30  }
 0x512   : > { %6212 = vperm.xlu0 %12214, %v16626_v21   ;;  %v5493_v55 = vadd.f32 %v5481_v0, %v5391_v37  ;;  %v16774_v58 = vadd.f32 %v16369_v57, %v4541_v19  ;;  %v16791_v0 = vld [vmem:[%s18041_s1] ss:$0 sm:$0xff] }
 0x513   : > { %18471 = vst [vmem:[#allocation23_spill] sm:$0xff] %v16791_v0  ;;  %v5726_v11 = vmul.f32 %v16791_v0, %v16709_v39 }
 0x514   : > { %v5534_v12 = vpop.permute.xlu1 %5533  ;;  %18468 = vst [vmem:[#allocation40_spill] sm:$0xff] %v16774_v58  ;;  %v18132_v49 = vmax.f32 %v16774_v58, 0.0  ;;  %v18478_v58 = vld [vmem:[#allocation20_spill] sm:$0xff] }
 0x515   : > { %v5583_v40 = vmul.f32 %v16345_v18, %v5534_v12  ;;  %v16769_v43 = vpop.permute.xlu0 %5262  ;;  %6319 = vperm.xlu1 %12215, %v10749_v47   ;;  %v4672_v8 = vmul.f32 %v16246_v1, %v18478_v58  ;;  %v10751_v58 = vld [vmem:[%s13081_s15 + $0x790] sm:$0xff] }
 0x516   : > { %6314 = vperm.xlu0 %12214, %v16682_v48   ;;  %v16785_v48 = vld [vmem:[%s18041_s1 + $0x1] ss:$0 sm:$0xff] }
 0x517   : > { %v5595_v9 = vadd.f32 %v5583_v40, %v5493_v55  ;;  %18470 = vst [vmem:[#allocation9_spill] sm:$0xff] %v16785_v48  ;;  %v5832_v5 = vmul.f32 %v16785_v48, %v5795_v24  ;;  %v5828_v24 = vmul.f32 %v16785_v48, %v16728_v63 }
 0x518   : > { %v5698_v53 = vpop.permute.xlu1 %5697 }
 0x519   : > { %v16777_v21 = vadd.f32 %v16369_v57, %v5595_v9  ;;  %v5678_v16 = vpop.permute.xlu0 %5677  ;;  %6421 = vperm.xlu1 %12215, %v10762_v51   ;;  %v10788_v9 = vld [vmem:[%s13081_s15 + $0x768] sm:$0xff]  ;;  %v5840_v39 = vadd.f32 %v5828_v24, %v5726_v11  ;;  %v10699_v11 = vld [vmem:[%s13081_s15 + $0x770] sm:$0xff] }
 0x51a   : > { %6416 = vperm.xlu0 %12214, %v10710_v22   ;;  %v5731_v22 = vmul.f32 %v16791_v0, %v5698_v53  ;;  %v5727_v55 = vmul.f32 %v16791_v0, %v5678_v16  ;;  %v5730_v53 = vmul.f32 %v16791_v0, %v16699_v29  ;;  %v16818_v16 = vld [vmem:[%s18041_s1 + $0x2] ss:$0 sm:$0xff] }
 0x51b   : > { %18469 = vst [vmem:[#allocation32_spill] sm:$0xff] %v16777_v21  ;;  %v18131_v61 = vmax.f32 %v16777_v21, 0.0 }
 0x51c   : > { %v5800_v28 = vpop.permute.xlu1 %5799  ;;  %v5844_v63 = vadd.f32 %v5832_v5, %v5730_v53 }
 0x51d   : > { %v5833_v37 = vmul.f32 %v16785_v48, %v5800_v28  ;;  %v5780_v19 = vpop.permute.xlu0 %5779  ;;  %6523 = vperm.xlu1 %12215, %v10775_v46   ;;  %v7267_v12 = vpack.c.bf16 %v18131_v61, %v18132_v49  ;;  %v4774_v49 = vmul.f32 %v16234_v59, %v16393_v52  ;;  %v18479_v52 = vld [vmem:[#allocation49_spill] sm:$0xff] }
 0x51e   : > { %6518 = vperm.xlu0 %12214, %v16736_v36   ;;  %v5829_v40 = vmul.f32 %v16785_v48, %v5780_v19 }
 0x51f   : > { %v16807_v28 = vadd.f32 %v5833_v37, %v5731_v22  ;;  %11658 = vmatmul.mubr.bf16.gmra.mrb[44].mxu1 %v7267_v12 }
 0x520   : > { %v16811_v23 = vadd.f32 %v5829_v40, %v5727_v55  ;;  %v5897_v61 = vpop.permute.xlu1 %5896  ;;  %11661 = vmatprep.mubr.msk.bf16.mxu1 %vm12487_vm0, %v18180_v14 }
 0x521   : > { %18472 = vst [vmem:[#allocation16_spill] sm:$0xff] %v16807_v28  ;;  %v5934_v29 = vmul.f32 %v16818_v16, %v5897_v61  ;;  %v5877_v22 = vpop.permute.xlu0 %5876  ;;  %6625 = vperm.xlu1 %12215, %v10788_v9   ;;  %v4786_v28 = vadd.f32 %v4774_v49, %v4672_v8  ;;  %v5076_v8 = vmul.f32 %v16282_v32, %v16577_v34 }
 0x522   : > { %18473 = vst [vmem:[#allocation70_spill] sm:$0xff] %v16811_v23  ;;  %6620 = vperm.xlu0 %12214, %v16754_v30   ;;  %v5930_v37 = vmul.f32 %v16818_v16, %v5877_v22  ;;  %v4668_v23 = vmul.f32 %v16246_v1, %v18479_v52  ;;  %v5178_v49 = vmul.f32 %v16295_v7, %v16654_v44 }
 0x523   : > { %v16823_v19 = vadd.f32 %v5934_v29, %v5844_v63  ;;  %v10712_v63 = vld [vmem:[%s13081_s15 + $0x778] sm:$0xff]  ;;  %v4775_v34 = vmul.f32 %v16234_v59, %v16459_v38 }
 0x524   : > { %v16825_v12 = vadd.f32 %v5930_v37, %v5840_v39  ;;  %v16827_v5 = vpop.permute.xlu1 %5267  ;;  %v16853_v37 = vld [vmem:[%s13081_s15 + $0x788] sm:$0xff] }
 0x525   : > { %18474 = vst [vmem:[#allocation8_spill] sm:$0xff] %v16823_v19  ;;  %v16829_v55 = vpop.permute.xlu0 %5247  ;;  %5814 = vperm.xlu1 %12215, %v16754_v30  }
 0x526   : > { %18475 = vst [vmem:[#allocation10_spill] sm:$0xff] %v16825_v12  ;;  %5712 = vperm.xlu0 %12214, %v16736_v36   ;;  %v10725_v36 = vld [vmem:[%s13081_s15 + $0x780] sm:$0xff]  ;;  %v4782_v12 = vadd.f32 %v4770_v15, %v4668_v23 }
 0x528   : > { %v16833_v61 = vpop.permute.xlu1 %5364 }
 0x529   : > { %v16835_v40 = vpop.permute.xlu0 %5344  ;;  %5819 = vperm.xlu1 %12215, %v10788_v9  }
 0x52a   : > { %5717 = vperm.xlu0 %12214, %v10775_v46  }
 0x52c   : > { %v16838_v24 = vpop.permute.xlu1 %5901 }
 0x52d   : > { %v16840_v53 = vpop.permute.xlu0 %5881  ;;  %5921 = vperm.xlu1 %12215, %v10699_v11  }
 0x52e   : > { %18476 = vst [vmem:[#allocation69_spill] sm:$0xff] %v16840_v53  ;;  %5916 = vperm.xlu0 %12214, %v10749_v47  }
 0x530   : > { %v16843_v29 = vpop.permute.xlu1 %5998 }
 0x531   : > { %v16845_v30 = vpop.permute.xlu0 %5978  ;;  %6023 = vperm.xlu1 %12215, %v10712_v63  }
 0x532   : > { %6018 = vperm.xlu0 %12214, %v10762_v51  }
 0x534   : > { %v16848_v22 = vpop.permute.xlu1 %5369 }
 0x535   : > { %v16850_v39 = vpop.permute.xlu0 %5349  ;;  %6125 = vperm.xlu1 %12215, %v10725_v36  }
 0x536   : > { %6120 = vperm.xlu0 %12214, %v10775_v46   ;;  %v4876_v46 = vmul.f32 %v16253_v3, %v16476_v35  ;;  %v4978_v35 = vmul.f32 %v16271_v20, %v16516_v42  ;;  %v10764_v42 = vld [vmem:[%s13081_s15 + $0x798] sm:$0xff] }
 0x537   : > { %v7195_v47 = vpop.f32.mrb[36].mxu0 }
 0x538   : > { %v16860_v21 = vadd.f32 %v7195_v47, %v18477_v62  ;;  %v11607_v51 = vpop.f32.mrb[37].mxu0  ;;  %v5467_v25 = vpop.permute.xlu1 %5466  ;;  %v18480_v62 = vld [vmem:[#allocation65_spill] sm:$0xff]  ;;  %v4888_v52 = vadd.f32 %v4876_v46, %v4786_v28 }
 0x539   : > { %v7198_v0 = vpop.f32.mrb[38].mxu0  ;;  %v5447_v48 = vpop.permute.xlu0 %5446  ;;  %6227 = vperm.xlu1 %12215, %v16853_v37  }
 0x53a   : > { %6222 = vperm.xlu0 %12214, %v10788_v9   ;;  %v16872_v47 = vadd.f32 %v7198_v0, %v18480_v62  ;;  %v11608_v51 = vpop.f32.mrb[39].mxu0  ;;  %v4974_v9 = vmul.f32 %v16271_v20, %v16524_v6  ;;  %v4884_v0 = vadd.f32 %v4872_v45, %v4782_v12  ;;  %v4990_v15 = vadd.f32 %v4978_v35, %v4888_v52  ;;  %v10777_v45 = vld [vmem:[%s13081_s15 + $0x7a0] sm:$0xff]  ;;  %v18483_v52 = vld [vmem:[#allocation75_spill] sm:$0xff] }
 0x53b   : > { %v5182_v6 = vmul.f32 %v16295_v7, %v16648_v33  ;;  %v5280_v33 = vmul.f32 %v16306_v26, %v16759_v41  ;;  %v4673_v7 = vmul.f32 %v16246_v1, %v16448_v50  ;;  %v5386_v62 = vmul.f32 %v16317_v4, %v16833_v61  ;;  %v18481_v41 = vld [vmem:[#allocation72_spill] sm:$0xff] }
 0x53c   : > { %v16879_v19 = vpop.permute.xlu1 %6003  ;;  %v4986_v23 = vadd.f32 %v4974_v9, %v4884_v0  ;;  %v5092_v2 = vadd.f32 %v5080_v17, %v4990_v15  ;;  %v5382_v51 = vmul.f32 %v16317_v4, %v16835_v40  ;;  %v4669_v50 = vmul.f32 %v16246_v1, %v18481_v41  ;;  %v10790_v9 = vld [vmem:[%s13081_s15 + $0x7a8] sm:$0xff] }
 0x53d   : > { %v16883_v53 = vpop.permute.xlu0 %5983  ;;  %6329 = vperm.xlu1 %12215, %v10751_v58   ;;  %v5488_v35 = vmul.f32 %v16328_v27, %v5467_v25  ;;  %v5484_v40 = vmul.f32 %v16328_v27, %v5447_v48  ;;  %v4979_v1 = vmul.f32 %v16271_v20, %v18483_v52 }
 0x53e   : > { %6324 = vperm.xlu0 %12214, %v10699_v11   ;;  %v5284_v11 = vmul.f32 %v16306_v26, %v16769_v43  ;;  %v5088_v46 = vadd.f32 %v5076_v8, %v4986_v23  ;;  %v5194_v44 = vadd.f32 %v5182_v6, %v5092_v2  ;;  %v4771_v43 = vmul.f32 %v16234_v59, %v16462_v31  ;;  %v18482_v31 = vld [vmem:[#allocation74_spill] sm:$0xff]  ;;  %v18484_v8 = vld [vmem:[#allocation76_spill] sm:$0xff] }
 0x53f   : > { %v4787_v59 = vadd.f32 %v4775_v34, %v4673_v7  ;;  %v5081_v23 = vmul.f32 %v16282_v32, %v16633_v10  ;;  %v12446_v2 = vld [vmem:[%s18041_s1 + $0x4] ss:$0 sm:$0xff]  ;;  %v12447_v32 = vld [vmem:[%s18041_s1 + $0x5] ss:$0 sm:$0xff] }
 0x540   : > { %v16892_v28 = vpop.permute.xlu1 %6100  ;;  %v5190_v38 = vadd.f32 %v5178_v49, %v5088_v46  ;;  %v5296_v58 = vadd.f32 %v5284_v11, %v5194_v44  ;;  %v4783_v25 = vadd.f32 %v4771_v43, %v4669_v50  ;;  %v5077_v11 = vmul.f32 %v12446_v2, %v16639_v13 }
 0x541   : > { %v16896_v12 = vpop.permute.xlu0 %6080  ;;  %6431 = vperm.xlu1 %12215, %v10764_v42   ;;  %v5183_v10 = vmul.f32 %v12447_v32, %v16763_v54  ;;  %v5179_v44 = vmul.f32 %v12447_v32, %v16743_v56 }
 0x542   : > { %6426 = vperm.xlu0 %12214, %v10712_v63   ;;  %v4877_v63 = vmul.f32 %v16253_v3, %v16510_v60  ;;  %v12444_v3 = vld [vmem:[%s18041_s1 + $0x2] ss:$0 sm:$0xff]  ;;  %v5292_v4 = vadd.f32 %v5280_v33, %v5190_v38  ;;  %v5398_v17 = vadd.f32 %v5386_v62, %v5296_v58  ;;  %v12448_v38 = vld [vmem:[%s18041_s1 + $0x6] ss:$0 sm:$0xff] }
 0x543   : > { %v4873_v60 = vmul.f32 %v12444_v3, %v18482_v31 }
 0x544   : > { %v16913_v26 = vpop.permute.xlu1 %5471  ;;  %v4889_v0 = vadd.f32 %v4877_v63, %v4787_v59  ;;  %v5394_v15 = vadd.f32 %v5382_v51, %v5292_v4  ;;  %v5500_v49 = vadd.f32 %v5488_v35, %v5398_v17  ;;  %v5285_v51 = vmul.f32 %v12448_v38, %v16827_v5  ;;  %v12449_v5 = vld [vmem:[%s18041_s1 + $0x7] ss:$0 sm:$0xff] }
 0x545   : > { %v16918_v61 = vpop.permute.xlu0 %5451  ;;  %6533 = vperm.xlu1 %12215, %v10777_v45   ;;  %v4885_v20 = vadd.f32 %v4873_v60, %v4783_v25  ;;  %v5387_v31 = vmul.f32 %v12449_v5, %v16848_v22 }
 0x546   : > { %6528 = vperm.xlu0 %12214, %v10725_v36   ;;  %v12445_v36 = vld [vmem:[%s18041_s1 + $0x3] ss:$0 sm:$0xff]  ;;  %v5496_v34 = vadd.f32 %v5484_v40, %v5394_v15  ;;  %v4991_v33 = vadd.f32 %v4979_v1, %v4889_v0  ;;  %v5383_v40 = vmul.f32 %v12449_v5, %v16850_v39  ;;  %v12451_v15 = vld [vmem:[%s18041_s1 + $0x9] ss:$0 sm:$0xff] }
 0x547   : > { %v4975_v42 = vmul.f32 %v12445_v36, %v18484_v8 }
 0x548   : > { %v5569_v6 = vpop.permute.xlu1 %5568 }
 0x549   : > { %v5590_v27 = vmul.f32 %v16345_v18, %v5569_v6  ;;  %v5549_v48 = vpop.permute.xlu0 %5548  ;;  %6635 = vperm.xlu1 %12215, %v10790_v9  }
 0x54a   : > { %6630 = vperm.xlu0 %12214, %v16853_v37   ;;  %v5586_v46 = vmul.f32 %v16345_v18, %v5549_v48  ;;  %v4987_v37 = vadd.f32 %v4975_v42, %v4885_v20  ;;  %v5093_v18 = vadd.f32 %v5081_v23, %v4991_v33 }
 0x54b   : > { %v5602_v45 = vadd.f32 %v5590_v27, %v5500_v49  ;;  %v7385_v7 = vpop.f32.mrb[36].mxu1 }
 0x54c   : > { %v5598_v62 = vadd.f32 %v5586_v46, %v5496_v34  ;;  %v16947_v43 = vadd.f32 %v7385_v7, %v16860_v21  ;;  %v11651_v13 = vpop.f32.mrb[37].mxu1  ;;  %v16949_v63 = vpop.permute.xlu1 %6105  ;;  %v5089_v56 = vadd.f32 %v5077_v11, %v4987_v37  ;;  %v5281_v21 = vmul.f32 %v12448_v38, %v16829_v55  ;;  %v12452_v11 = vld [vmem:[%s18050_s10] ss:$0 sm:$0xff] }
 0x54d   : > { %v16956_v54 = vadd.f32 %v16369_v57, %v5602_v45  ;;  %v7388_v41 = vpop.f32.mrb[38].mxu1  ;;  %v16958_v50 = vpop.permute.xlu0 %6085  ;;  %v5195_v3 = vadd.f32 %v5183_v10, %v5093_v18 }
 0x54e   : > { %v16962_v58 = vadd.f32 %v16369_v57, %v5598_v62  ;;  %v16965_v35 = vadd.f32 %v7388_v41, %v16872_v47  ;;  %v11652_v59 = vpop.f32.mrb[39].mxu1  ;;  %v5191_v4 = vadd.f32 %v5179_v44, %v5089_v56  ;;  %v12450_v47 = vld [vmem:[%s18041_s1 + $0x8] ss:$0 sm:$0xff]  ;;  %v17007_v62 = vld [vmem:[%s18041_s1 + $0x3] ss:$0 sm:$0xff] }
 0x54f   : > { %v5631_v60 = vmax.f32 %v16956_v54, 0.0  ;;  %v5297_v52 = vadd.f32 %v5285_v51, %v5195_v3  ;;  %v5489_v1 = vmul.f32 %v12450_v47, %v16913_v26  ;;  %v5485_v0 = vmul.f32 %v12450_v47, %v16918_v61  ;;  %v17018_v41 = vld [vmem:[%s18041_s1 + $0x4] ss:$0 sm:$0xff]  ;;  %v18485_v59 = vld [vmem:[#allocation69_spill] sm:$0xff] }
 0x550   : > { %v5627_v55 = vmax.f32 %v16962_v58, 0.0  ;;  %v6203_v9 = vpop.permute.xlu1 %6202  ;;  %v5293_v25 = vadd.f32 %v5281_v21, %v5191_v4  ;;  %v6036_v13 = vmul.f32 %v17007_v62, %v16843_v29  ;;  %v6032_v18 = vmul.f32 %v17007_v62, %v16845_v30  ;;  %v18486_v30 = vld [vmem:[#allocation8_spill] sm:$0xff] }
 0x551   : > { %v6183_v17 = vpop.permute.xlu0 %6182  ;;  %v5399_v39 = vadd.f32 %v5387_v31, %v5297_v52  ;;  %v5935_v51 = vmul.f32 %v16818_v16, %v16838_v24  ;;  %v6138_v56 = vmul.f32 %v17018_v41, %v16892_v28  ;;  %v5931_v3 = vmul.f32 %v16818_v16, %v18485_v59  ;;  %v17032_v31 = vld [vmem:[%s18041_s1 + $0x5] ss:$0 sm:$0xff]  ;;  %v18487_v28 = vld [vmem:[#allocation10_spill] sm:$0xff] }
 0x552   : > { %v7078_v22 = vpack.c.bf16 %v5631_v60, %v5627_v55  ;;  %v5395_v36 = vadd.f32 %v5383_v40, %v5293_v25  ;;  %v6134_v29 = vmul.f32 %v17018_v41, %v16896_v12  ;;  %v6048_v5 = vadd.f32 %v6036_v13, %v18486_v30 }
 0x553   : > { %v5501_v42 = vadd.f32 %v5489_v1, %v5399_v39  ;;  %v6037_v24 = vmul.f32 %v17007_v62, %v16879_v19  ;;  %v6240_v4 = vmul.f32 %v17032_v31, %v6203_v9  ;;  %v6044_v40 = vadd.f32 %v6032_v18, %v18487_v28  ;;  %v18488_v1 = vld [vmem:[#allocation16_spill] sm:$0xff] }
 0x554   : > { %11618 = vmatmul.mubr.bf16.gmra.mrb[48].mxu0 %v7078_v22  ;;  %v5574_v8 = vpop.permute.xlu1 %5573  ;;  %v5497_v61 = vadd.f32 %v5485_v0, %v5395_v36  ;;  %v6033_v52 = vmul.f32 %v17007_v62, %v16883_v53  ;;  %v6236_v47 = vmul.f32 %v17032_v31, %v6183_v17  ;;  %v5947_v25 = vadd.f32 %v5935_v51, %v18488_v1  ;;  %v17045_v22 = vld [vmem:[%s18041_s1 + $0x6] ss:$0 sm:$0xff]  ;;  %v18489_v36 = vld [vmem:[#allocation70_spill] sm:$0xff] }
 0x555   : > { %v5591_v6 = vmul.f32 %v12451_v15, %v5574_v8  ;;  %v5554_v26 = vpop.permute.xlu0 %5553  ;;  %11621 = vmatprep.mubr.msk.bf16.mxu0 %vm12487_vm0, %v18180_v14  ;;  %v6150_v0 = vadd.f32 %v6138_v56, %v6048_v5  ;;  %v6139_v19 = vmul.f32 %v17018_v41, %v16949_v63  ;;  %v5943_v8 = vadd.f32 %v5931_v3, %v18489_v36  ;;  %v17084_v36 = vld [vmem:[%s18050_s10] ss:$0 sm:$0xff] }
 0x556   : > { %v5587_v23 = vmul.f32 %v12451_v15, %v5554_v26  ;;  %v6146_v53 = vadd.f32 %v6134_v29, %v6044_v40  ;;  %v6135_v17 = vmul.f32 %v17018_v41, %v16958_v50  ;;  %v6049_v15 = vadd.f32 %v6037_v24, %v5947_v25  ;;  %v17056_v26 = vld [vmem:[%s18041_s1 + $0x7] ss:$0 sm:$0xff]  ;;  %v17076_v40 = vld [vmem:[%s18041_s1 + $0x9] ss:$0 sm:$0xff] }
 0x557   : > { %v5603_v49 = vadd.f32 %v5591_v6, %v5501_v42  ;;  %v6252_v6 = vadd.f32 %v6240_v4, %v6150_v0 }
 0x558   : > { %v5599_v27 = vadd.f32 %v5587_v23, %v5497_v61  ;;  %v6208_v48 = vpop.permute.xlu1 %6207  ;;  %v6045_v23 = vadd.f32 %v6033_v52, %v5943_v8 }
 0x559   : > { %v16989_v20 = vadd.f32 %v16369_v57, %v5603_v49  ;;  %v6188_v2 = vpop.permute.xlu0 %6187  ;;  %v6241_v63 = vmul.f32 %v17032_v31, %v6208_v48  ;;  %v6248_v49 = vadd.f32 %v6236_v47, %v6146_v53  ;;  %v17065_v48 = vld [vmem:[%s18041_s1 + $0x8] ss:$0 sm:$0xff] }
 0x55a   : > { %v16994_v34 = vadd.f32 %v12452_v11, %v5599_v27  ;;  %v6237_v27 = vmul.f32 %v17032_v31, %v6188_v2 }
 0x55b   : > { %v5632_v46 = vmax.f32 %v16989_v20, 0.0 }
 0x55c   : > { %v5628_v33 = vmax.f32 %v16994_v34, 0.0  ;;  %v6305_v32 = vpop.permute.xlu1 %6304 }
 0x55d   : > { %v6285_v10 = vpop.permute.xlu0 %6284  ;;  %v6342_v9 = vmul.f32 %v17045_v22, %v6305_v32  ;;  %v6151_v32 = vadd.f32 %v6139_v19, %v6049_v15 }
 0x55e   : > { %v7268_v45 = vpack.c.bf16 %v5632_v46, %v5628_v33  ;;  %v6338_v42 = vmul.f32 %v17045_v22, %v6285_v10 }
 0x55f   : > { %v6354_v10 = vadd.f32 %v6342_v9, %v6252_v6 }
 0x560   : > { %11662 = vmatmul.mubr.bf16.gmra.mrb[48].mxu1 %v7268_v45  ;;  %v6310_v57 = vpop.permute.xlu1 %6309  ;;  %v6350_v51 = vadd.f32 %v6338_v42, %v6248_v49 }
 0x561   : > { %v6290_v7 = vpop.permute.xlu0 %6289  ;;  %11665 = vmatprep.mubr.msk.bf16.mxu1 %vm12487_vm0, %v18180_v14  ;;  %v6343_v45 = vmul.f32 %v17045_v22, %v6310_v57 }
 0x562   : > { %v6339_v56 = vmul.f32 %v17045_v22, %v6290_v7 }
 0x564   : > { %v6407_v37 = vpop.permute.xlu1 %6406 }
 0x565   : > { %v6387_v44 = vpop.permute.xlu0 %6386  ;;  %v6444_v61 = vmul.f32 %v17056_v26, %v6407_v37  ;;  %v6147_v37 = vadd.f32 %v6135_v17, %v6045_v23 }
 0x566   : > { %v6440_v11 = vmul.f32 %v17056_v26, %v6387_v44  ;;  %v6253_v44 = vadd.f32 %v6241_v63, %v6151_v32 }
 0x567   : > { %v6456_v59 = vadd.f32 %v6444_v61, %v6354_v10  ;;  %v6249_v29 = vadd.f32 %v6237_v27, %v6147_v37 }
 0x568   : > { %v6412_v38 = vpop.permute.xlu1 %6411  ;;  %v6452_v57 = vadd.f32 %v6440_v11, %v6350_v51  ;;  %v6355_v24 = vadd.f32 %v6343_v45, %v6253_v44  ;;  %v12264_v44 = vld [vmem:[%s18042_s2 + $0x180] sm:$0xff]  }
 0x569   : > { %v6392_v21 = vpop.permute.xlu0 %6391  ;;  %v6445_v3 = vmul.f32 %v17056_v26, %v6412_v38  ;;  %v6351_v47 = vadd.f32 %v6339_v56, %v6249_v29  ;;  %v18492_v29 = vld [vmem:[#allocation44_spill] sm:$0xff] }
 0x56a   : > { %v6441_v30 = vmul.f32 %v17056_v26, %v6392_v21 }
 0x56b   : > { %v6457_v21 = vadd.f32 %v6445_v3, %v6355_v24  ;;  %v12266_v24 = vld [vmem:[%s18042_s2 + $0x188] sm:$0xff]  }
 0x56c   : > { %v6509_v12 = vpop.permute.xlu1 %6508  ;;  %v6453_v0 = vadd.f32 %v6441_v30, %v6351_v47 }
 0x56d   : > { %v6489_v39 = vpop.permute.xlu0 %6488  ;;  %v6546_v13 = vmul.f32 %v17065_v48, %v6509_v12 }
 0x56e   : > { %v6542_v2 = vmul.f32 %v17065_v48, %v6489_v39 }
 0x56f   : > { %v6558_v4 = vadd.f32 %v6546_v13, %v6456_v59  ;;  %v18490_v59 = vld [vmem:[#allocation50_spill] sm:$0xff] }
 0x570   : > { %v6514_v50 = vpop.permute.xlu1 %6513  ;;  %v6554_v12 = vadd.f32 %v6542_v2, %v6452_v57  ;;  %v18491_v3 = vmax.f32 %v18490_v59, 0.0  ;;  %v18493_v57 = vmax.f32 %v18492_v29, 0.0  ;;  %v18506_v59 = vld [vmem:[#allocation43_spill] sm:$0xff] }
 0x571   : > { %v6494_v18 = vpop.permute.xlu0 %6493  ;;  %v6547_v28 = vmul.f32 %v17065_v48, %v6514_v50 }
 0x572   : > { %v6543_v38 = vmul.f32 %v17065_v48, %v6494_v18  ;;  %v7453_v30 = vpack.c.bf16 %v18493_v57, %v18491_v3  ;;  %v18507_v3 = vmax.f32 %v18506_v59, 0.0  ;;  %v12270_v57 = vld [vmem:[%s18042_s2 + $0x198] sm:$0xff]  }
 0x573   : > { %v6559_v39 = vadd.f32 %v6547_v28, %v6457_v21 }
 0x574   : > { %v6611_v5 = vpop.permute.xlu1 %6610  ;;  %v6555_v42 = vadd.f32 %v6543_v38, %v6453_v0  ;;  %v18498_v38 = vld [vmem:[#allocation68_spill] sm:$0xff] }
 0x575   : > { %v6648_v7 = vmul.f32 %v17076_v40, %v6611_v5  ;;  %v6591_v52 = vpop.permute.xlu0 %6590  ;;  %v12265_v5 = vld [vmem:[%s18042_s2 + $0x1c0] sm:$0xff]  }
 0x576   : > { %v6644_v1 = vmul.f32 %v17076_v40, %v6591_v52 }
 0x577   : > { %v6660_v25 = vadd.f32 %v6648_v7, %v6558_v4  ;;  %v18494_v4 = vld [vmem:[#allocation46_spill] sm:$0xff] }
 0x578   : > { %v6656_v19 = vadd.f32 %v6644_v1, %v6554_v12  ;;  %v6616_v9 = vpop.permute.xlu1 %6615  ;;  %v18495_v28 = vmax.f32 %v18494_v4, 0.0  ;;  %v18496_v7 = vld [vmem:[#allocation38_spill] sm:$0xff]  ;;  %v18508_v4 = vld [vmem:[#allocation9_spill] sm:$0xff] }
 0x579   : > { %v17087_v8 = vadd.f32 %v17084_v36, %v6660_v25  ;;  %v6649_v53 = vmul.f32 %v17076_v40, %v6616_v9  ;;  %v6596_v17 = vpop.permute.xlu0 %6595  ;;  %v18497_v52 = vmax.f32 %v18496_v7, 0.0  ;;  %v12267_v9 = vld [vmem:[%s18042_s2 + $0x1c8] sm:$0xff]   ;;  %v18509_v7 = vld [vmem:[#allocation23_spill] sm:$0xff] }
 0x57a   : > { %v6673_v15 = vadd.f32 %v17084_v36, %v6656_v19  ;;  %v6645_v6 = vmul.f32 %v17076_v40, %v6596_v17 }
 0x57b   : > { %v6689_v63 = vmax.f32 %v17087_v8, 0.0  ;;  %v6661_v61 = vadd.f32 %v6649_v53, %v6559_v39  ;;  %v7643_v47 = vpack.c.bf16 %v18497_v52, %v18495_v28  ;;  %v18499_v39 = vld [vmem:[#allocation33_spill] sm:$0xff]  ;;  %v12280_v8 = vld [vmem:[%s18043_s3 + $0x40] sm:$0xff]  }
 0x57c   : > { %v6685_v23 = vmax.f32 %v6673_v15, 0.0  ;;  %v6657_v49 = vadd.f32 %v6645_v6, %v6555_v42  ;;  %v17093_v27 = vpop.permute.xlu1 %5804  ;;  %v18500_v42 = vld [vmem:[#allocation26_spill] sm:$0xff]  ;;  %v18502_v6 = vld [vmem:[#allocation60_spill] sm:$0xff] }
 0x57d   : > { %v17096_v11 = vadd.f32 %v17084_v36, %v6661_v61  ;;  %v5703_v50 = vpop.permute.xlu0 %5702  ;;  %v18501_v15 = vmax.f32 %v18500_v42, 0.0  ;;  %v18503_v61 = vmax.f32 %v18502_v6, 0.0  ;;  %v5834_v28 = vmul.f32 %v18508_v4, %v17093_v27 }
 0x57e   : > { %v6674_v32 = vadd.f32 %v17084_v36, %v6657_v49  ;;  %v7079_v10 = vpack.c.bf16 %v6689_v63, %v6685_v23  ;;  %v17103_v45 = vpack.c.bf16 %v6685_v23, %v5631_v60  ;;  %v12268_v49 = vld [vmem:[%s18042_s2 + $0x190] sm:$0xff]   ;;  %v5732_v52 = vmul.f32 %v18509_v7, %v5703_v50 }
 0x57f   : > { %v6690_v13 = vmax.f32 %v17096_v11, 0.0  ;;  %v7454_v23 = vpack.c.bf16 %v18503_v61, %v18501_v15  ;;  %v12273_v15 = vld [vmem:[%s18042_s2 + $0x1e0] sm:$0xff]   ;;  %v18514_v61 = vld [vmem:[#allocation58_spill] sm:$0xff]  ;;  %v12282_v11 = vld [vmem:[%s18043_s3 + $0x48] sm:$0xff]  }
 0x580   : > { %v6686_v18 = vmax.f32 %v6674_v32, 0.0  ;;  %11622 = vmatmul.mubr.bf16.gmra.mrb[52].mxu0 %v7079_v10  ;;  %v17106_v37 = vpop.permute.xlu1 %5809  ;;  %v5846_v6 = vadd.f32 %v5834_v28, %v5732_v52  ;;  %v18518_v52 = vld [vmem:[#allocation63_spill] sm:$0xff] }
 0x581   : > { %v17108_v51 = vpop.permute.xlu0 %5707  ;;  %11685 = vmatprep.mubr.msk.bf16.mxu0 %vm12487_vm0, %v18180_v14  ;;  %v5835_v50 = vmul.f32 %v18508_v4, %v17106_v37 }
 0x582   : > { %v7269_v56 = vpack.c.bf16 %v6690_v13, %v6686_v18  ;;  %v17116_v2 = vpack.c.bf16 %v6686_v18, %v5632_v46  ;;  %v12269_v18 = vld [vmem:[%s18042_s2 + $0x1d0] sm:$0xff]  }
 0x584   : > { %11666 = vmatmul.mubr.bf16.gmra.mrb[52].mxu1 %v7269_v56  ;;  %v17118_v54 = vpop.permute.xlu1 %5911  ;;  %v18504_v56 = vld [vmem:[#allocation42_spill] sm:$0xff] }
 0x585   : > { %v5907_v60 = vpop.permute.xlu0 %5906  ;;  %11729 = vmatprep.mubr.msk.bf16.mxu1 %vm12487_vm0, %v18180_v14 }
 0x588   : > { %11686 = vmatmul.mubr.bf16.vlgmr.msra.gmra.mrb[56].mxu0 %v7453_v30  ;;  %v17129_v20 = vpop.permute.xlu1 %6013 }
 0x589   : > { %v6009_v46 = vpop.permute.xlu0 %6008  ;;  %11758 = vmatpush3.bf16.msra.mxu0 %v12264_v44  ;;  %11689 = vmatprep.mubr.msk.bf16.mxu0 %vm12487_vm0, %v18180_v14  ;;  %v18505_v44 = vmax.f32 %v18504_v56, 0.0  ;;  %v5937_v56 = vmul.f32 %v16818_v16, %v17118_v54  ;;  %v12275_v54 = vld [vmem:[%s18042_s2 + $0x1e8] sm:$0xff]  }
 0x58a   : > { %11759 = vmatprep.subr.bf16.mxu0 %v18180_v14 }
 0x58b   : > { %v7203_v12 = vpop.f32.mrb[40].mxu0  ;;  %v7644_v29 = vpack.c.bf16 %v18507_v3, %v18505_v44  ;;  %v6039_v3 = vmul.f32 %v17007_v62, %v17129_v20  ;;  %v12276_v20 = vld [vmem:[%s18042_s2 + $0x1b0] sm:$0xff]  }
 0x58c   : > { %v17145_v1 = vadd.f32 %v7203_v12, %v18498_v38  ;;  %v11611_v21 = vpop.f32.mrb[41].mxu0  ;;  %11730 = vmatmul.mubr.bf16.vlgmr.msra.gmra.mrb[56].mxu1 %v7643_v47  ;;  %v17147_v25 = vpop.permute.xlu1 %6115  ;;  %v18510_v47 = vld [vmem:[#allocation56_spill] sm:$0xff]  ;;  %v18512_v38 = vld [vmem:[#allocation37_spill] sm:$0xff] }
 0x58d   : > { %11802 = vmatpush3.bf16.msra.mxu1 %v12265_v5  ;;  %v7206_v0 = vpop.f32.mrb[42].mxu0  ;;  %v6111_v19 = vpop.permute.xlu0 %6110  ;;  %11760 = vmatpush3.bf16.msra.mxu0 %v12266_v24  ;;  %v12271_v24 = vld [vmem:[%s18042_s2 + $0x1d8] sm:$0xff]   ;;  %v18511_v12 = vmax.f32 %v18510_v47, 0.0  ;;  %v18513_v21 = vmax.f32 %v18512_v38, 0.0 }
 0x58e   : > { %v17153_v53 = vadd.f32 %v7206_v0, %v18499_v39  ;;  %v11612_v17 = vpop.f32.mrb[43].mxu0  ;;  %11803 = vmatprep.subr.bf16.mxu1 %v18180_v14  ;;  %11733 = vmatprep.mubr.msk.bf16.mxu1 %vm12487_vm0, %v18180_v14  ;;  %v5936_v39 = vmul.f32 %v16818_v16, %v5907_v60  ;;  %v6038_v60 = vmul.f32 %v17007_v62, %v6009_v46  ;;  %v18520_v47 = vld [vmem:[#allocation55_spill] sm:$0xff] }
 0x58f   : > { %11761 = vmatprep.subr.bf16.mxu0 %v18180_v14  ;;  %v7455_v0 = vpack.c.bf16 %v18513_v21, %v18511_v12  ;;  %v5733_v17 = vmul.f32 %v18509_v7, %v17108_v51  ;;  %v12274_v51 = vld [vmem:[%s18042_s2 + $0x1a8] sm:$0xff]   ;;  %v6140_v46 = vmul.f32 %v17018_v41, %v6111_v19  ;;  %v18519_v19 = vmax.f32 %v18518_v52, 0.0 }
 0x590   : > { %11690 = vmatmul.mubr.bf16.gmra.mrb[60].mxu0 %v7454_v23  ;;  %v17166_v32 = vpop.permute.xlu1 %6217  ;;  %v18515_v23 = vmax.f32 %v18514_v61, 0.0  ;;  %v5948_v44 = vadd.f32 %v5936_v39, %v5846_v6  ;;  %v18521_v12 = vmax.f32 %v18520_v47, 0.0 }
 0x591   : > { %v6213_v10 = vpop.permute.xlu0 %6212  ;;  %11804 = vmatpush3.bf16.msra.mxu1 %v12267_v9  ;;  %11693 = vmatprep.mubr.msk.bf16.mxu0 %vm12487_vm0, %v18180_v14  ;;  %v12272_v9 = vld [vmem:[%s18042_s2 + $0x1a0] sm:$0xff]   ;;  %v5847_v59 = vadd.f32 %v5835_v50, %v5733_v17  ;;  %v6243_v6 = vmul.f32 %v17032_v31, %v17166_v32 }
 0x592   : > { %11762 = vmatpush3.bf16.msra.mxu0 %v12268_v49  ;;  %11805 = vmatprep.subr.bf16.mxu1 %v18180_v14  ;;  %v18516_v49 = vld [vmem:[#allocation34_spill] sm:$0xff]  ;;  %v6242_v28 = vmul.f32 %v17032_v31, %v6213_v10  ;;  %v7456_v38 = vpack.c.bf16 %v18521_v12, %v18519_v19 }
 0x593   : > { %11763 = vmatprep.subr.bf16.mxu0 %v18180_v14  ;;  %v5949_v21 = vadd.f32 %v5937_v56, %v5847_v59 }
 0x594   : > { %11734 = vmatmul.mubr.bf16.gmra.mrb[60].mxu1 %v7644_v29  ;;  %v17182_v30 = vpop.permute.xlu1 %6319 }
 0x595   : > { %v6315_v5 = vpop.permute.xlu0 %6314  ;;  %11806 = vmatpush3.bf16.msra.mxu1 %v12269_v18  ;;  %11737 = vmatprep.mubr.msk.bf16.mxu1 %vm12487_vm0, %v18180_v14  ;;  %v18517_v18 = vmax.f32 %v18516_v49, 0.0 }
 0x596   : > { %11764 = vmatpush3.bf16.msra.mxu0 %v12270_v57  ;;  %11807 = vmatprep.subr.bf16.mxu1 %v18180_v14  ;;  %v6344_v39 = vmul.f32 %v17045_v22, %v6315_v5 }
 0x597   : > { %11765 = vmatprep.subr.bf16.mxu0 %v18180_v14  ;;  %v7645_v37 = vpack.c.bf16 %v18517_v18, %v18515_v23  ;;  %v18522_v23 = vld [vmem:[#allocation41_spill] sm:$0xff] }
 0x598   : > { %11694 = vmatmul.mubr.bf16.gmra.mrb[64].mxu0 %v7455_v0  ;;  %v17202_v27 = vpop.permute.xlu1 %6421  ;;  %v6141_v0 = vmul.f32 %v17018_v41, %v17147_v25  ;;  %v18523_v49 = vmax.f32 %v18522_v23, 0.0  ;;  %v18524_v25 = vld [vmem:[#allocation54_spill] sm:$0xff] }
 0x599   : > { %v6417_v42 = vpop.permute.xlu0 %6416  ;;  %11697 = vmatprep.mubr.msk.bf16.mxu0 %vm12487_vm0, %v18180_v14  ;;  %11808 = vmatpush3.bf16.msra.mxu1 %v12271_v24  ;;  %v6050_v24 = vadd.f32 %v6038_v60, %v5948_v44  ;;  %v18525_v18 = vmax.f32 %v18524_v25, 0.0  ;;  %v12278_v44 = vld [vmem:[%s18042_s2 + $0x1b8] sm:$0xff]   ;;  %v6447_v52 = vmul.f32 %v17056_v26, %v17202_v27 }
 0x59a   : > { %11766 = vmatpush3.bf16.msra.mxu0 %v12272_v9  ;;  %11809 = vmatprep.subr.bf16.mxu1 %v18180_v14 }
 0x59b   : > { %11767 = vmatprep.subr.bf16.mxu0 %v18180_v14  ;;  %v6152_v10 = vadd.f32 %v6140_v46, %v6050_v24 }
 0x59c   : > { %11738 = vmatmul.mubr.bf16.gmra.mrb[64].mxu1 %v7645_v37  ;;  %v6524_v29 = vpop.permute.xlu1 %6523  ;;  %v7646_v37 = vpack.c.bf16 %v18525_v18, %v18523_v49  ;;  %v18531_v49 = vld [vmem:[#allocation51_spill] sm:$0xff] }
 0x59d   : > { %v6519_v57 = vpop.permute.xlu0 %6518  ;;  %11741 = vmatprep.mubr.msk.bf16.mxu1 %vm12487_vm0, %v18180_v14  ;;  %11810 = vmatpush3.bf16.msra.mxu1 %v12273_v15  ;;  %v6051_v15 = vadd.f32 %v6039_v3, %v5949_v21  ;;  %v6254_v5 = vadd.f32 %v6242_v28, %v6152_v10  ;;  %v6345_v3 = vmul.f32 %v17045_v22, %v17182_v30  ;;  %v12279_v28 = vld [vmem:[%s18042_s2 + $0x1f8] sm:$0xff]  }
 0x59e   : > { %11768 = vmatpush3.bf16.msra.mxu0 %v12274_v51  ;;  %11811 = vmatprep.subr.bf16.mxu1 %v18180_v14  ;;  %v6446_v51 = vmul.f32 %v17056_v26, %v6417_v42  ;;  %v6548_v42 = vmul.f32 %v17065_v48, %v6519_v57  ;;  %v6549_v47 = vmul.f32 %v17065_v48, %v6524_v29 }
 0x59f   : > { %v7393_v9 = vpop.f32.mrb[40].mxu1  ;;  %11769 = vmatprep.subr.bf16.mxu0 %v18180_v14  ;;  %v6153_v46 = vadd.f32 %v6141_v0, %v6051_v15 }
 0x5a0   : > { %v17247_v50 = vadd.f32 %v7393_v9, %v17145_v1  ;;  %v11655_v17 = vpop.f32.mrb[41].mxu1  ;;  %11698 = vmatmul.mubr.bf16.gmra.mrb[68].mxu0 %v7456_v38  ;;  %v12277_v1 = vld [vmem:[%s18042_s2 + $0x1f0] sm:$0xff]   ;;  %v6626_v59 = vpop.permute.xlu1 %6625  ;;  %v18526_v38 = vld [vmem:[#allocation45_spill] sm:$0xff] }
 0x5a1   : > { %v7396_v60 = vpop.f32.mrb[42].mxu1  ;;  %v6621_v61 = vpop.permute.xlu0 %6620  ;;  %11701 = vmatprep.mubr.msk.bf16.mxu0 %vm12487_vm0, %v18180_v14  ;;  %11812 = vmatpush3.bf16.msra.mxu1 %v12275_v54  ;;  %v6356_v54 = vadd.f32 %v6344_v39, %v6254_v5  ;;  %v6651_v21 = vmul.f32 %v17076_v40, %v6626_v59  ;;  %v18527_v9 = vld [vmem:[#allocation61_spill] sm:$0xff]  ;;  %v18529_v39 = vld [vmem:[#allocation12_spill] sm:$0xff] }
 0x5a2   : > { %v17262_v32 = vadd.f32 %v7396_v60, %v17153_v53  ;;  %v11656_v56 = vpop.f32.mrb[43].mxu1  ;;  %11770 = vmatpush3.bf16.msra.mxu0 %v12276_v20  ;;  %11813 = vmatprep.subr.bf16.mxu1 %v18180_v14  ;;  %v6255_v53 = vadd.f32 %v6243_v6, %v6153_v46  ;;  %v6650_v30 = vmul.f32 %v17076_v40, %v6621_v61  ;;  %v18528_v10 = vmax.f32 %v18527_v9, 0.0 }
 0x5a3   : > { %11771 = vmatprep.subr.bf16.mxu0 %v18180_v14  ;;  %v6458_v19 = vadd.f32 %v6446_v51, %v6356_v54  ;;  %v18530_v17 = vmax.f32 %v18529_v39, 0.0  ;;  %v18533_v56 = vld [vmem:[#allocation66_spill] sm:$0xff]  ;;  %v18545_v39 = vld [vmem:[#allocation31_spill] sm:$0xff] }
 0x5a4   : > { %11742 = vmatmul.mubr.bf16.gmra.mrb[68].mxu1 %v7646_v37  ;;  %v6357_v57 = vadd.f32 %v6345_v3, %v6255_v53  ;;  %v5815_v20 = vpop.permute.xlu1 %5814  ;;  %v18535_v3 = vld [vmem:[#allocation67_spill] sm:$0xff] }
 0x5a5   : > { %v17272_v24 = vpop.permute.xlu0 %5712  ;;  %11745 = vmatprep.mubr.msk.bf16.mxu1 %vm12487_vm0, %v18180_v14  ;;  %11814 = vmatpush3.bf16.msra.mxu1 %v12277_v1  ;;  %v6560_v12 = vadd.f32 %v6548_v42, %v6458_v19  ;;  %v7647_v15 = vpack.c.bf16 %v18530_v17, %v18528_v10  ;;  %v18532_v1 = vld [vmem:[#allocation64_spill] sm:$0xff]  ;;  %v18536_v54 = vmax.f32 %v18535_v3, 0.0  ;;  %v18546_v17 = vmax.f32 %v18545_v39, 0.0 }
 0x5a6   : > { %11772 = vmatpush3.bf16.msra.mxu0 %v12278_v44  ;;  %11815 = vmatprep.subr.bf16.mxu1 %v18180_v14  ;;  %v6459_v27 = vadd.f32 %v6447_v52, %v6357_v57  ;;  %v18534_v44 = vmax.f32 %v18533_v56, 0.0  ;;  %v18537_v52 = vld [vmem:[#allocation36_spill] sm:$0xff]  ;;  %v5734_v3 = vmul.f32 %v18509_v7, %v17272_v24 }
 0x5a7   : > { %11845 = vmatprep.subr.bf16.mxu0 %v18180_v14  ;;  %v6662_v0 = vadd.f32 %v6650_v30, %v6560_v12  ;;  %v18538_v19 = vmax.f32 %v18537_v52, 0.0  ;;  %v18539_v30 = vld [vmem:[#allocation22_spill] sm:$0xff]  ;;  %v18555_v52 = vld [vmem:[#allocation28_spill] sm:$0xff] }
 0x5a8   : > { %11702 = vmatmul.mubr.bf16.gmra.mrb[72].mxu0 %v18526_v38  ;;  %v6561_v6 = vadd.f32 %v6549_v47, %v6459_v27  ;;  %v5820_v23 = vpop.permute.xlu1 %5819  ;;  %v18540_v57 = vmax.f32 %v18539_v30, 0.0  ;;  %v18541_v38 = vld [vmem:[#allocation18_spill] sm:$0xff] }
 0x5a9   : > { %11705 = vmatprep.mubr.msk.bf16.mxu0 %vm12487_vm0, %v18180_v14  ;;  %11816 = vmatpush3.bf16.msra.mxu1 %v12279_v28  ;;  %v5718_v29 = vpop.permute.xlu0 %5717  ;;  %v6679_v61 = vadd.f32 %v17084_v36, %v6662_v0  ;;  %v18542_v27 = vmax.f32 %v18541_v38, 0.0  ;;  %v18557_v38 = vld [vmem:[#allocation24_spill] sm:$0xff]  ;;  %v5837_v24 = vmul.f32 %v18508_v4, %v5820_v23 }
 0x5aa   : > { %11873 = vmatprep.subr.bf16.mxu1 %v18180_v14  ;;  %v6663_v60 = vadd.f32 %v6651_v21, %v6561_v6  ;;  %v7833_v47 = vpack.c.bf16 %v18540_v57, %v18538_v19  ;;  %v18543_v21 = vld [vmem:[#allocation29_spill] sm:$0xff]  ;;  %v18556_v19 = vmax.f32 %v18555_v52, 0.0  ;;  %v5735_v39 = vmul.f32 %v18509_v7, %v5718_v29  ;;  %v18567_v52 = vld [vmem:[#allocation40_spill] sm:$0xff] }
 0x5ab   : > { %v6691_v37 = vmax.f32 %v6679_v61, 0.0  ;;  %v18544_v0 = vmax.f32 %v18543_v21, 0.0  ;;  %v18559_v21 = vld [vmem:[#allocation73_spill] sm:$0xff] }
 0x5ac   : > { %11746 = vmatmul.mubr.bf16.gmra.mrb[72].mxu1 %v7647_v15  ;;  %v6680_v18 = vadd.f32 %v17084_v36, %v6663_v60  ;;  %v5922_v5 = vpop.permute.xlu1 %5921  ;;  %v18547_v15 = vld [vmem:[#allocation53_spill] sm:$0xff] }
 0x5ad   : > { %11749 = vmatprep.mubr.msk.bf16.mxu1 %vm12487_vm0, %v18180_v14  ;;  %v5917_v25 = vpop.permute.xlu0 %5916  ;;  %v7459_v46 = vpack.c.bf16 %v6691_v37, %v18534_v44  ;;  %v8023_v9 = vpack.c.bf16 %v18544_v0, %v18542_v27  ;;  %v18548_v6 = vmax.f32 %v18547_v15, 0.0  ;;  %v18558_v27 = vmax.f32 %v18557_v38, 0.0 }
 0x5ae   : > { %v6692_v51 = vmax.f32 %v6680_v18, 0.0  ;;  %v18549_v18 = vld [vmem:[#allocation14_spill] sm:$0xff]  ;;  %v18560_v0 = vmax.f32 %v18559_v21, 0.0  ;;  %v18569_v21 = vld [vmem:[#allocation15_spill] sm:$0xff] }
 0x5af   : > { %v7834_v60 = vpack.c.bf16 %v18548_v6, %v18546_v17  ;;  %v18550_v37 = vmax.f32 %v18549_v18, 0.0  ;;  %v5939_v6 = vmul.f32 %v16818_v16, %v5922_v5 }
 0x5b0   : > { %11706 = vmatmul.mubr.bf16.gmra.mrb[76].mxu0 %v18531_v49  ;;  %v7649_v42 = vpack.c.bf16 %v6692_v51, %v18536_v54  ;;  %v6024_v53 = vpop.permute.xlu1 %6023  ;;  %v18553_v54 = vld [vmem:[#allocation48_spill] sm:$0xff] }
 0x5b1   : > { %11709 = vmatprep.mubr.msk.bf16.mxu0 %vm12487_vm0, %v18180_v14  ;;  %v6019_v59 = vpop.permute.xlu0 %6018  ;;  %v6041_v7 = vmul.f32 %v17007_v62, %v6024_v53 }
 0x5b2   : > { %v6040_v17 = vmul.f32 %v17007_v62, %v6019_v59 }
 0x5b4   : > { %11750 = vmatmul.mubr.bf16.gmra.mrb[76].mxu1 %v18532_v1  ;;  %v6126_v12 = vpop.permute.xlu1 %6125  ;;  %v18551_v1 = vld [vmem:[#allocation11_spill] sm:$0xff] }
 0x5b5   : > { %11753 = vmatprep.mubr.msk.bf16.mxu1 %vm12487_vm0, %v18180_v14  ;;  %v6121_v28 = vpop.permute.xlu0 %6120  ;;  %v18552_v51 = vmax.f32 %v18551_v1, 0.0  ;;  %v6143_v5 = vmul.f32 %v17018_v41, %v6126_v12 }
 0x5b7   : > { %v8024_v56 = vpack.c.bf16 %v18552_v51, %v18550_v37  ;;  %v18561_v37 = vld [vmem:[#allocation21_spill] sm:$0xff]  ;;  %v18563_v51 = vld [vmem:[#allocation59_spill] sm:$0xff] }
 0x5b8   : > { %11710 = vmatmul.mubr.bf16.gmra.mrb[80].mxu0 %v7459_v46  ;;  %v6228_v61 = vpop.permute.xlu1 %6227  ;;  %v5836_v46 = vmul.f32 %v18508_v4, %v5815_v20  ;;  %v18562_v1 = vmax.f32 %v18561_v37, 0.0  ;;  %v5849_v4 = vadd.f32 %v5837_v24, %v5735_v39 }
 0x5b9   : > { %11773 = vmatprep.mubr.msk.bf16.mxu0 %vm12487_vm0, %v18180_v14  ;;  %v6223_v10 = vpop.permute.xlu0 %6222  ;;  %v6245_v53 = vmul.f32 %v17032_v31, %v6228_v61 }
 0x5ba   : > { %v5848_v20 = vadd.f32 %v5836_v46, %v5734_v3  ;;  %v6244_v23 = vmul.f32 %v17032_v31, %v6223_v10  ;;  %v18565_v3 = vld [vmem:[#allocation71_spill] sm:$0xff] }
 0x5bc   : > { %11754 = vmatmul.mubr.bf16.gmra.mrb[80].mxu1 %v7649_v42  ;;  %v6330_v44 = vpop.permute.xlu1 %6329  ;;  %v18554_v42 = vmax.f32 %v18553_v54, 0.0 }
 0x5bd   : > { %11817 = vmatprep.mubr.msk.bf16.mxu1 %vm12487_vm0, %v18180_v14  ;;  %v6325_v49 = vpop.permute.xlu0 %6324 }
 0x5be   : > { %v7835_v30 = vpack.c.bf16 %v18556_v19, %v18554_v42  ;;  %v18566_v42 = vmax.f32 %v18565_v3, 0.0  ;;  %v18568_v19 = vmax.f32 %v18567_v52, 0.0  ;;  %v12286_v3 = vld [vmem:[%s18043_s3 + $0x58] sm:$0xff]   ;;  %v12289_v52 = vld [vmem:[%s18043_s3 + $0x20] sm:$0xff]  }
 0x5c0   : > { %11774 = vmatmul.mubr.bf16.vlgmr.msra.gmra.mrb[84].mxu0 %v7833_v47  ;;  %v5938_v47 = vmul.f32 %v16818_v16, %v5917_v25  ;;  %v6432_v15 = vpop.permute.xlu1 %6431  ;;  %v5951_v16 = vadd.f32 %v5939_v6, %v5849_v4 }
 0x5c1   : > { %11777 = vmatprep.mubr.msk.bf16.mxu0 %vm12487_vm0, %v18180_v14  ;;  %v6427_v57 = vpop.permute.xlu0 %6426  ;;  %v6449_v61 = vmul.f32 %v17056_v26, %v6432_v15  ;;  %11846 = vmatpush3.bf16.msra.mxu0 %v12280_v8 }
 0x5c2   : > { %v5950_v25 = vadd.f32 %v5938_v47, %v5848_v20  ;;  %v6053_v62 = vadd.f32 %v6041_v7, %v5951_v16  ;;  %v6448_v47 = vmul.f32 %v17056_v26, %v6427_v57  ;;  %11847 = vmatprep.subr.bf16.mxu0 %v18180_v14 }
 0x5c4   : > { %11818 = vmatmul.mubr.bf16.vlgmr.msra.gmra.mrb[84].mxu1 %v8023_v9  ;;  %v8025_v9 = vpack.c.bf16 %v18560_v0, %v18558_v27  ;;  %v6052_v29 = vadd.f32 %v6040_v17, %v5950_v25  ;;  %v6534_v46 = vpop.permute.xlu1 %6533  ;;  %v6155_v12 = vadd.f32 %v6143_v5, %v6053_v62  ;;  %v18570_v0 = vmax.f32 %v18569_v21, 0.0  ;;  %v12291_v62 = vld [vmem:[%s18043_s3 + $0x68] sm:$0xff]  }
 0x5c5   : > { %11821 = vmatprep.mubr.msk.bf16.mxu1 %vm12487_vm0, %v18180_v14  ;;  %v6529_v18 = vpop.permute.xlu0 %6528  ;;  %v6551_v25 = vmul.f32 %v17065_v48, %v6534_v46  ;;  %11848 = vmatpush3.bf16.msra.mxu0 %v12282_v11  ;;  %v12285_v46 = vld [vmem:[%s18043_s3 + $0x10] sm:$0xff]  }
 0x5c6   : > { %v6550_v27 = vmul.f32 %v17065_v48, %v6529_v18  ;;  %v6257_v31 = vadd.f32 %v6245_v53, %v6155_v12  ;;  %11849 = vmatprep.subr.bf16.mxu0 %v18180_v14  ;;  %v12292_v53 = vld [vmem:[%s18043_s3 + $0x30] sm:$0xff]  }
 0x5c7   : > { %v18581_v11 = vld [vmem:[#allocation62_spill] sm:$0xff] }
 0x5c8   : > { %11778 = vmatmul.mubr.bf16.gmra.mrb[88].mxu0 %v7834_v60  ;;  %v6142_v60 = vmul.f32 %v17018_v41, %v6121_v28  ;;  %v6346_v28 = vmul.f32 %v17045_v22, %v6325_v49  ;;  %v6347_v49 = vmul.f32 %v17045_v22, %v6330_v44  ;;  %v6636_v22 = vpop.permute.xlu1 %6635  ;;  %v18571_v44 = vld [vmem:[#allocation30_spill] sm:$0xff] }
 0x5c9   : > { %11781 = vmatprep.mubr.msk.bf16.mxu0 %vm12487_vm0, %v18180_v14  ;;  %v6631_v41 = vpop.permute.xlu0 %6630  ;;  %v6653_v15 = vmul.f32 %v17076_v40, %v6636_v22 }
 0x5ca   : > { %v6154_v59 = vadd.f32 %v6142_v60, %v6052_v29  ;;  %v6652_v20 = vmul.f32 %v17076_v40, %v6631_v41  ;;  %v6359_v6 = vadd.f32 %v6347_v49, %v6257_v31  ;;  %v12295_v41 = vld [vmem:[%s18043_s3 + $0x78] sm:$0xff]   ;;  %v18575_v49 = vld [vmem:[#allocation13_spill] sm:$0xff] }
 0x5cc   : > { %11822 = vmatmul.mubr.bf16.gmra.mrb[88].mxu1 %v8024_v56  ;;  %v18564_v56 = vmax.f32 %v18563_v51, 0.0  ;;  %v6256_v10 = vadd.f32 %v6244_v23, %v6154_v59  ;;  %v6461_v26 = vadd.f32 %v6449_v61, %v6359_v6  ;;  %v18573_v51 = vld [vmem:[#allocation32_spill] sm:$0xff] }
 0x5cd   : > { %11825 = vmatprep.mubr.msk.bf16.mxu1 %vm12487_vm0, %v18180_v14 }
 0x5ce   : > { %v7836_v54 = vpack.c.bf16 %v18564_v56, %v18562_v1  ;;  %v6358_v38 = vadd.f32 %v6346_v28, %v6256_v10  ;;  %v18574_v56 = vmax.f32 %v18573_v51, 0.0  ;;  %v6563_v4 = vadd.f32 %v6551_v25, %v6461_v26  ;;  %v12284_v28 = vld [vmem:[%s18043_s3 + $0x50] sm:$0xff]  }
 0x5cf   : > { %11850 = vmatpush3.bf16.msra.mxu0 %v12284_v28  ;;  %v12293_v10 = vld [vmem:[%s18043_s3 + $0x70] sm:$0xff]  }
 0x5d0   : > { %11782 = vmatmul.mubr.bf16.gmra.mrb[92].mxu0 %v7835_v30  ;;  %v8026_v30 = vpack.c.bf16 %v18568_v19, %v18566_v42  ;;  %v6460_v57 = vadd.f32 %v6448_v47, %v6358_v38  ;;  %v6665_v48 = vadd.f32 %v6653_v15, %v6563_v4  ;;  %11851 = vmatprep.subr.bf16.mxu0 %v18180_v14  ;;  %v12287_v42 = vld [vmem:[%s18043_s3 + $0x18] sm:$0xff]   ;;  %v12288_v19 = vld [vmem:[%s18043_s3 + $0x60] sm:$0xff]  }
 0x5d1   : > { %11785 = vmatprep.mubr.msk.bf16.mxu0 %vm12487_vm0, %v18180_v14  ;;  %v12294_v47 = vld [vmem:[%s18043_s3 + $0x38] sm:$0xff]  }
 0x5d2   : > { %v6562_v60 = vadd.f32 %v6550_v27, %v6460_v57  ;;  %v6682_v40 = vadd.f32 %v17084_v36, %v6665_v48  ;;  %v18579_v4 = vld [vmem:[#allocation35_spill] sm:$0xff] }
 0x5d3   : > { %11852 = vmatpush3.bf16.msra.mxu0 %v12286_v3  ;;  %v18582_v3 = vld [vmem:[#allocation47_spill] sm:$0xff] }
 0x5d4   : > { %11826 = vmatmul.mubr.bf16.gmra.mrb[92].mxu1 %v8025_v9  ;;  %v7837_v9 = vpack.c.bf16 %v5627_v55, %v18570_v0  ;;  %v18572_v55 = vld [vmem:[#allocation17_spill] sm:$0xff]  ;;  %v6664_v1 = vadd.f32 %v6652_v20, %v6562_v60  ;;  %v6694_v34 = vmax.f32 %v6682_v40, 0.0  ;;  %11853 = vmatprep.subr.bf16.mxu0 %v18180_v14  ;;  %v18576_v0 = vld [vmem:[#allocation27_spill] sm:$0xff] }
 0x5d5   : > { %11829 = vmatprep.mubr.msk.bf16.mxu1 %vm12487_vm0, %v18180_v14 }
 0x5d6   : > { %v6681_v7 = vadd.f32 %v17084_v36, %v6664_v1  ;;  %v8029_v23 = vpack.c.bf16 %v6694_v34, %v6690_v13  ;;  %v12283_v13 = vld [vmem:[%s18043_s3 + $0x8] sm:$0xff]  }
 0x5d7   : > { %11854 = vmatpush3.bf16.msra.mxu0 %v12288_v19 }
 0x5d8   : > { %11786 = vmatmul.mubr.bf16.gmra.mrb[96].mxu0 %v7836_v54  ;;  %v8027_v54 = vpack.c.bf16 %v5628_v33, %v18574_v56  ;;  %v6693_v29 = vmax.f32 %v6681_v7, 0.0  ;;  %11855 = vmatprep.subr.bf16.mxu0 %v18180_v14 }
 0x5d9   : > { %11789 = vmatprep.mubr.msk.bf16.mxu0 %vm12487_vm0, %v18180_v14 }
 0x5da   : > { %v7839_v33 = vpack.c.bf16 %v6693_v29, %v6689_v63  ;;  %v12281_v63 = vld [vmem:[%s18043_s3] sm:$0xff]  }
 0x5db   : > { %11874 = vmatpush3.bf16.msra.mxu1 %v12281_v63  ;;  %11856 = vmatpush3.bf16.msra.mxu0 %v12291_v62  ;;  %v18580_v29 = vld [vmem:[#allocation52_spill] sm:$0xff] }
 0x5dc   : > { %11830 = vmatmul.mubr.bf16.gmra.mrb[96].mxu1 %v8026_v30  ;;  %11875 = vmatprep.subr.bf16.mxu1 %v18180_v14  ;;  %v12290_v30 = vld [vmem:[%s18043_s3 + $0x28] sm:$0xff]  }
 0x5dd   : > { %11833 = vmatprep.mubr.msk.bf16.mxu1 %vm12487_vm0, %v18180_v14  ;;  %11857 = vmatprep.subr.bf16.mxu0 %v18180_v14 }
 0x5de   : > { %v7211_v24 = vpop.f32.mrb[44].mxu0 }
 0x5df   : > { %v7242_v39 = vadd.f32 %v7211_v24, %v18571_v44  ;;  %v11615_v17 = vpop.f32.mrb[45].mxu0  ;;  %11876 = vmatpush3.bf16.msra.mxu1 %v12283_v13  ;;  %11858 = vmatpush3.bf16.msra.mxu0 %v12293_v10 }
 0x5e0   : > { %11790 = vmatmul.mubr.bf16.gmra.mrb[100].mxu0 %v7837_v9  ;;  %v7214_v58 = vpop.f32.mrb[46].mxu0  ;;  %11877 = vmatprep.subr.bf16.mxu1 %v18180_v14  ;;  %v18577_v17 = vld [vmem:[#allocation25_spill] sm:$0xff] }
 0x5e1   : > { %v7243_v18 = vadd.f32 %v7214_v58, %v18572_v55  ;;  %v11616_v37 = vpop.f32.mrb[47].mxu0  ;;  %11793 = vmatprep.mubr.msk.bf16.mxu0 %vm12487_vm0, %v18180_v14  ;;  %11859 = vmatprep.subr.bf16.mxu0 %v18180_v14  ;;  %v18578_v58 = vld [vmem:[#allocation57_spill] sm:$0xff] }
 0x5e3   : > { %11878 = vmatpush3.bf16.msra.mxu1 %v12285_v46  ;;  %11860 = vmatpush3.bf16.msra.mxu0 %v12295_v41 }
 0x5e4   : > { %11834 = vmatmul.mubr.bf16.gmra.mrb[100].mxu1 %v8027_v54  ;;  %11879 = vmatprep.subr.bf16.mxu1 %v18180_v14 }
 0x5e5   : > { %11837 = vmatprep.mubr.msk.bf16.mxu1 %vm12487_vm0, %v18180_v14  ;;  %11901 = vmatprep.subr.bf16.mxu0 %v18180_v14 }
 0x5e7   : > { %11880 = vmatpush3.bf16.msra.mxu1 %v12287_v42 }
 0x5e8   : > { %11794 = vmatmul.mubr.bf16.gmra.mrb[104].mxu0 %v17103_v45  ;;  %11881 = vmatprep.subr.bf16.mxu1 %v18180_v14 }
 0x5e9   : > { %11797 = vmatprep.mubr.msk.bf16.mxu0 %vm12487_vm0, %v18180_v14 }
 0x5eb   : > { %11882 = vmatpush3.bf16.msra.mxu1 %v12289_v52 }
 0x5ec   : > { %11838 = vmatmul.mubr.bf16.gmra.mrb[104].mxu1 %v17116_v2  ;;  %11883 = vmatprep.subr.bf16.mxu1 %v18180_v14 }
 0x5ed   : > { %11841 = vmatprep.mubr.msk.bf16.mxu1 %vm12487_vm0, %v18180_v14 }
 0x5ef   : > { %11884 = vmatpush3.bf16.msra.mxu1 %v12290_v30 }
 0x5f0   : > { %11798 = vmatmul.mubr.bf16.gmra.mrb[108].mxu0 %v7839_v33  ;;  %11885 = vmatprep.subr.bf16.mxu1 %v18180_v14 }
 0x5f1   : > { %11861 = vmatprep.mubr.msk.bf16.mxu0 %vm12487_vm0, %v18180_v14 }
 0x5f2   : > { %v7401_v45 = vpop.f32.mrb[44].mxu1 }
 0x5f3   : > { %v17409_v16 = vadd.f32 %v7401_v45, %v7242_v39  ;;  %v11659_v36 = vpop.f32.mrb[45].mxu1  ;;  %11886 = vmatpush3.bf16.msra.mxu1 %v12292_v53 }
 0x5f4   : > { %11842 = vmatmul.mubr.bf16.gmra.mrb[108].mxu1 %v8029_v23  ;;  %v7404_v2 = vpop.f32.mrb[46].mxu1  ;;  %11887 = vmatprep.subr.bf16.mxu1 %v18180_v14 }
 0x5f5   : > { %v17411_v5 = vadd.f32 %v7404_v2, %v7243_v18  ;;  %v11660_v59 = vpop.f32.mrb[47].mxu1  ;;  %11889 = vmatprep.mubr.msk.bf16.mxu1 %vm12487_vm0, %v18180_v14 }
 0x5f7   : > { %11888 = vmatpush3.bf16.msra.mxu1 %v12294_v47 }
 0x5f8   : > { %11929 = vmatprep.subr.bf16.mxu1 %v18180_v14 }
 0x627   : > { %v7219_v12 = vpop.f32.mrb[48].mxu0 }
 0x628   : > { %v7244_v38 = vadd.f32 %v7219_v12, %v18575_v49  ;;  %v11619_v27 = vpop.f32.mrb[49].mxu0 }
 0x629   : > { %v7222_v21 = vpop.f32.mrb[50].mxu0 }
 0x62a   : > { %v7245_v9 = vadd.f32 %v7222_v21, %v18576_v0  ;;  %v11620_v31 = vpop.f32.mrb[51].mxu0 }
 0x633   : > { %v7409_v61 = vpop.f32.mrb[48].mxu1 }
 0x634   : > { %v17481_v57 = vadd.f32 %v7409_v61, %v7244_v38  ;;  %v11663_v20 = vpop.f32.mrb[49].mxu1 }
 0x635   : > { %v7412_v24 = vpop.f32.mrb[50].mxu1 }
 0x636   : > { %v17483_v22 = vadd.f32 %v7412_v24, %v7245_v9  ;;  %v11664_v44 = vpop.f32.mrb[51].mxu1 }
 0x653   : > { %v7227_v39 = vpop.f32.mrb[52].mxu0 }
 0x654   : > { %v7246_v6 = vadd.f32 %v7227_v39, %v18577_v17  ;;  %v11623_v25 = vpop.f32.mrb[53].mxu0 }
 0x655   : > { %v7230_v60 = vpop.f32.mrb[54].mxu0 }
 0x656   : > { %v7247_v55 = vadd.f32 %v7230_v60, %v18578_v58  ;;  %v11624_v18 = vpop.f32.mrb[55].mxu0 }
 0x657   : > { %v7417_v37 = vpop.f32.mrb[52].mxu1 }
 0x658   : > { %v17487_v26 = vadd.f32 %v7417_v37, %v7246_v6  ;;  %v11667_v15 = vpop.f32.mrb[53].mxu1 }
 0x659   : > { %v7420_v1 = vpop.f32.mrb[54].mxu1 }
 0x65a   : > { %v17489_v51 = vadd.f32 %v7420_v1, %v7247_v55  ;;  %v11668_v56 = vpop.f32.mrb[55].mxu1 }
 0x65b   : > { %v7559_v54 = vpop.f32.mrb[56].mxu0 }
 0x65c   : > { %v7614_v48 = vadd.f32 %v7559_v54, %v18579_v4  ;;  %v11687_v7 = vpop.f32.mrb[57].mxu0 }
 0x65d   : > { %v7562_v40 = vpop.f32.mrb[58].mxu0 }
 0x65e   : > { %v7615_v34 = vadd.f32 %v7562_v40, %v18580_v29  ;;  %v11688_v33 = vpop.f32.mrb[59].mxu0 }
 0x65f   : > { %v7749_v45 = vpop.f32.mrb[56].mxu1 }
 0x660   : > { %v17493_v23 = vadd.f32 %v7749_v45, %v7614_v48  ;;  %v11731_v36 = vpop.f32.mrb[57].mxu1 }
 0x661   : > { %v7752_v2 = vpop.f32.mrb[58].mxu1 }
 0x662   : > { %v17495_v59 = vadd.f32 %v7752_v2, %v7615_v34  ;;  %v11732_v8 = vpop.f32.mrb[59].mxu1 }
 0x663   : > { %v7567_v63 = vpop.f32.mrb[60].mxu0 }
 0x664   : > { %v7616_v13 = vadd.f32 %v7567_v63, %v18581_v11  ;;  %v11691_v28 = vpop.f32.mrb[61].mxu0 }
 0x665   : > { %v7570_v46 = vpop.f32.mrb[62].mxu0 }
 0x666   : > { %v7617_v42 = vadd.f32 %v7570_v46, %v18582_v3  ;;  %v11692_v52 = vpop.f32.mrb[63].mxu0 }
 0x667   : > { %v7757_v19 = vpop.f32.mrb[60].mxu1 }
 0x668   : > { %v17499_v30 = vadd.f32 %v7757_v19, %v7616_v13  ;;  %v11735_v62 = vpop.f32.mrb[61].mxu1 }
 0x669   : > { %v7760_v53 = vpop.f32.mrb[62].mxu1 }
 0x66a   : > { %v17501_v10 = vadd.f32 %v7760_v53, %v7617_v42  ;;  %v11736_v47 = vpop.f32.mrb[63].mxu1 }
 0x66b   : > { %v7575_v41 = vpop.f32.mrb[64].mxu0 }
 0x66c   : > { %v7618_v12 = vadd.f32 %v7575_v41, %v16947_v43  ;;  %v11695_v49 = vpop.f32.mrb[65].mxu0 }
 0x66d   : > { %v7578_v38 = vpop.f32.mrb[66].mxu0 }
 0x66e   : > { %v7619_v27 = vadd.f32 %v7578_v38, %v16965_v35  ;;  %v11696_v21 = vpop.f32.mrb[67].mxu0 }
 0x66f   : > { %v7765_v0 = vpop.f32.mrb[64].mxu1 }
 0x670   : > { %v17505_v9 = vadd.f32 %v7765_v0, %v7618_v12  ;;  %v11739_v31 = vpop.f32.mrb[65].mxu1 }
 0x671   : > { %v7768_v61 = vpop.f32.mrb[66].mxu1 }
 0x672   : > { %v17507_v20 = vadd.f32 %v7768_v61, %v7619_v27  ;;  %v11740_v24 = vpop.f32.mrb[67].mxu1 }
 0x673   : > { %v7583_v44 = vpop.f32.mrb[68].mxu0 }
 0x674   : > { %v7620_v39 = vadd.f32 %v7583_v44, %v17247_v50  ;;  %v11699_v17 = vpop.f32.mrb[69].mxu0 }
 0x675   : > { %v7586_v6 = vpop.f32.mrb[70].mxu0 }
 0x676   : > { %v7621_v43 = vadd.f32 %v7586_v6, %v17262_v32  ;;  %v11700_v25 = vpop.f32.mrb[71].mxu0 }
 0x677   : > { %v7773_v60 = vpop.f32.mrb[68].mxu1 }
 0x678   : > { %v17511_v58 = vadd.f32 %v7773_v60, %v7620_v39  ;;  %v11743_v35 = vpop.f32.mrb[69].mxu1  ;;  %v17539_v60 = vld [vmem:[%s18050_s10 + $0x1] ss:$0 sm:$0xff] }
 0x679   : > { %v7776_v55 = vpop.f32.mrb[70].mxu1 }
 0x67a   : > { %v17513_v18 = vadd.f32 %v7776_v55, %v7621_v43  ;;  %v11744_v37 = vpop.f32.mrb[71].mxu1 }
 0x67b   : > { %v7591_v15 = vpop.f32.mrb[72].mxu0 }
 0x67c   : > { %v7622_v1 = vadd.f32 %v7591_v15, %v17409_v16  ;;  %v11703_v56 = vpop.f32.mrb[73].mxu0 }
 0x67d   : > { %v7594_v54 = vpop.f32.mrb[74].mxu0 }
 0x67e   : > { %v7623_v50 = vadd.f32 %v7594_v54, %v17411_v5  ;;  %v11704_v4 = vpop.f32.mrb[75].mxu0 }
 0x67f   : > { %v7781_v48 = vpop.f32.mrb[72].mxu1 }
 0x680   : > { %v17517_v7 = vadd.f32 %v7781_v48, %v7622_v1  ;;  %v11747_v32 = vpop.f32.mrb[73].mxu1 }
 0x681   : > { %v7784_v40 = vpop.f32.mrb[74].mxu1 }
 0x682   : > { %v17519_v29 = vadd.f32 %v7784_v40, %v7623_v50  ;;  %v11748_v34 = vpop.f32.mrb[75].mxu1 }
 0x683   : > { %v7599_v33 = vpop.f32.mrb[76].mxu0 }
 0x684   : > { %v7624_v45 = vadd.f32 %v7599_v33, %v17481_v57  ;;  %v11707_v36 = vpop.f32.mrb[77].mxu0 }
 0x685   : > { %v7602_v2 = vpop.f32.mrb[78].mxu0  ;;  %v12296_v36 = vld [vmem:[%s18043_s3 + $0xc0] sm:$0xff]  }
 0x686   : > { %v7625_v16 = vadd.f32 %v7602_v2, %v17483_v22  ;;  %v11708_v8 = vpop.f32.mrb[79].mxu0 }
 0x687   : > { %v7789_v63 = vpop.f32.mrb[76].mxu1 }
 0x688   : > { %v17523_v11 = vadd.f32 %v7789_v63, %v7624_v45  ;;  %v11751_v5 = vpop.f32.mrb[77].mxu1 }
 0x689   : > { %v7792_v13 = vpop.f32.mrb[78].mxu1 }
 0x68a   : > { %v17525_v28 = vadd.f32 %v7792_v13, %v7625_v16  ;;  %v11752_v46 = vpop.f32.mrb[79].mxu1 }
 0x68b   : > { %v7607_v3 = vpop.f32.mrb[80].mxu0  ;;  %v12297_v46 = vld [vmem:[%s18043_s3 + $0x80] sm:$0xff]  }
 0x68c   : > { %v7626_v42 = vadd.f32 %v7607_v3, %v17487_v26  ;;  %v11711_v52 = vpop.f32.mrb[81].mxu0 }
 0x68d   : > { %v7610_v19 = vpop.f32.mrb[82].mxu0 }
 0x68e   : > { %v7627_v57 = vadd.f32 %v7610_v19, %v17489_v51  ;;  %v11712_v62 = vpop.f32.mrb[83].mxu0  ;;  %v12298_v19 = vld [vmem:[%s18043_s3 + $0xc8] sm:$0xff]  }
 0x68f   : > { %v7797_v53 = vpop.f32.mrb[80].mxu1 }
 0x690   : > { %v17529_v47 = vadd.f32 %v7797_v53, %v7626_v42  ;;  %v11755_v22 = vpop.f32.mrb[81].mxu1 }
 0x691   : > { %v7800_v41 = vpop.f32.mrb[82].mxu1  ;;  %v12299_v22 = vld [vmem:[%s18043_s3 + $0x88] sm:$0xff]  }
 0x692   : > { %v17531_v12 = vadd.f32 %v7800_v41, %v7627_v57  ;;  %v11756_v49 = vpop.f32.mrb[83].mxu1 }
 0x693   : > { %v7939_v38 = vpop.f32.mrb[84].mxu0 }
 0x694   : > { %v7994_v27 = vadd.f32 %v7939_v38, %v17493_v23  ;;  %v11775_v21 = vpop.f32.mrb[85].mxu0 }
 0x695   : > { %v7942_v0 = vpop.f32.mrb[86].mxu0 }
 0x696   : > { %v7995_v26 = vadd.f32 %v7942_v0, %v17495_v59  ;;  %v11776_v31 = vpop.f32.mrb[87].mxu0  ;;  %v12300_v0 = vld [vmem:[%s18043_s3 + $0xd0] sm:$0xff]  }
 0x697   : > { %v8129_v61 = vpop.f32.mrb[84].mxu1 }
 0x698   : > { %v8184_v24 = vadd.f32 %v8129_v61, %v7994_v27  ;;  %v11819_v51 = vpop.f32.mrb[85].mxu1 }
 0x699   : > { %v8132_v44 = vpop.f32.mrb[86].mxu1 }
 0x69a   : > { %v8185_v39 = vadd.f32 %v8132_v44, %v7995_v26  ;;  %v11820_v17 = vpop.f32.mrb[87].mxu1  ;;  %v8203_v37 = vadd.f32 %v17539_v60, %v8184_v24 }
 0x69b   : > { %v7947_v6 = vpop.f32.mrb[88].mxu0 }
 0x69c   : > { %v7996_v43 = vadd.f32 %v7947_v6, %v17499_v30  ;;  %v11779_v25 = vpop.f32.mrb[89].mxu0  ;;  %v8204_v54 = vadd.f32 %v17539_v60, %v8185_v39  ;;  %v8217_v32 = vmax.f32 %v8203_v37, 0.0 }
 0x69d   : > { %v7950_v23 = vpop.f32.mrb[90].mxu0 }
 0x69e   : > { %v7997_v35 = vadd.f32 %v7950_v23, %v17501_v10  ;;  %v11780_v59 = vpop.f32.mrb[91].mxu0  ;;  %v8218_v2 = vmax.f32 %v8204_v54, 0.0  ;;  %v12304_v54 = vld [vmem:[%s18043_s3 + $0xe0] sm:$0xff]  }
 0x69f   : > { %v8137_v55 = vpop.f32.mrb[88].mxu1  ;;  %v12303_v59 = vld [vmem:[%s18043_s3 + $0x98] sm:$0xff]  }
 0x6a0   : > { %v8186_v15 = vadd.f32 %v8137_v55, %v7996_v43  ;;  %v11823_v1 = vpop.f32.mrb[89].mxu1 }
 0x6a1   : > { %v8140_v56 = vpop.f32.mrb[90].mxu1 }
 0x6a2   : > { %v8205_v30 = vadd.f32 %v17539_v60, %v8186_v15  ;;  %v8187_v50 = vadd.f32 %v8140_v56, %v7997_v35  ;;  %v11824_v4 = vpop.f32.mrb[91].mxu1 }
 0x6a3   : > { %v7955_v48 = vpop.f32.mrb[92].mxu0 }
 0x6a4   : > { %v8219_v40 = vmax.f32 %v8205_v30, 0.0  ;;  %v8206_v34 = vadd.f32 %v17539_v60, %v8187_v50  ;;  %v7998_v10 = vadd.f32 %v7955_v48, %v17505_v9  ;;  %v11783_v33 = vpop.f32.mrb[93].mxu0 }
 0x6a5   : > { %v7958_v45 = vpop.f32.mrb[94].mxu0 }
 0x6a6   : > { %v8251_v16 = vpack.c.bf16 %v8219_v40, %v8217_v32  ;;  %v8220_v8 = vmax.f32 %v8206_v34, 0.0  ;;  %v7999_v63 = vadd.f32 %v7958_v45, %v17507_v20  ;;  %v11784_v5 = vpop.f32.mrb[95].mxu0 }
 0x6a7   : > { %v8145_v13 = vpop.f32.mrb[92].mxu1 }
 0x6a8   : > { %v8277_v3 = vpack.c.bf16 %v8220_v8, %v8218_v2  ;;  %v8188_v42 = vadd.f32 %v8145_v13, %v7998_v10  ;;  %v11827_v9 = vpop.f32.mrb[93].mxu1  ;;  %11890 = vmatmul.mubr.bf16.vlgmr.msra.gmra.mrb[112].mxu1 %v8251_v16 }
 0x6a9   : > { %v8148_v52 = vpop.f32.mrb[94].mxu1  ;;  %11930 = vmatpush3.bf16.msra.mxu1 %v12296_v36  ;;  %11893 = vmatprep.mubr.msk.bf16.mxu1 %vm12487_vm0, %v18180_v14 }
 0x6aa   : > { %v8207_v20 = vadd.f32 %v17539_v60, %v8188_v42  ;;  %v8189_v57 = vadd.f32 %v8148_v52, %v7999_v63  ;;  %v11828_v62 = vpop.f32.mrb[95].mxu1  ;;  %11862 = vmatmul.mubr.bf16.vlgmr.msra.gmra.mrb[112].mxu0 %v8277_v3  ;;  %11931 = vmatprep.subr.bf16.mxu1 %v18180_v14  ;;  %v12308_v42 = vld [vmem:[%s18043_s3 + $0xf0] sm:$0xff]  }
 0x6ab   : > { %v7963_v53 = vpop.f32.mrb[96].mxu0  ;;  %11902 = vmatpush3.bf16.msra.mxu0 %v12297_v46  ;;  %11865 = vmatprep.mubr.msk.bf16.mxu0 %vm12487_vm0, %v18180_v14 }
 0x6ac   : > { %v8221_v41 = vmax.f32 %v8207_v20, 0.0  ;;  %v8208_v49 = vadd.f32 %v17539_v60, %v8189_v57  ;;  %v8000_v38 = vadd.f32 %v7963_v53, %v17511_v58  ;;  %v11787_v27 = vpop.f32.mrb[97].mxu0  ;;  %11903 = vmatprep.subr.bf16.mxu0 %v18180_v14  ;;  %v12301_v58 = vld [vmem:[%s18043_s3 + $0x90] sm:$0xff]  }
 0x6ad   : > { %v7966_v21 = vpop.f32.mrb[98].mxu0  ;;  %11932 = vmatpush3.bf16.msra.mxu1 %v12298_v19 }
 0x6ae   : > { %v17572_v26 = vpack.c.bf16 %v8221_v41, %v8219_v40  ;;  %v8222_v31 = vmax.f32 %v8208_v49, 0.0  ;;  %v8001_v61 = vadd.f32 %v7966_v21, %v17513_v18  ;;  %v11788_v24 = vpop.f32.mrb[99].mxu0  ;;  %11933 = vmatprep.subr.bf16.mxu1 %v18180_v14  ;;  %v12302_v18 = vld [vmem:[%s18043_s3 + $0xd8] sm:$0xff]  }
 0x6af   : > { %v8153_v51 = vpop.f32.mrb[96].mxu1  ;;  %11904 = vmatpush3.bf16.msra.mxu0 %v12299_v22 }
 0x6b0   : > { %v17579_v44 = vpack.c.bf16 %v8222_v31, %v8220_v8  ;;  %v8190_v39 = vadd.f32 %v8153_v51, %v8000_v38  ;;  %v11831_v17 = vpop.f32.mrb[97].mxu1  ;;  %11905 = vmatprep.subr.bf16.mxu0 %v18180_v14  ;;  %v12307_v8 = vld [vmem:[%s18043_s3 + $0xa8] sm:$0xff]  }
 0x6b1   : > { %v8156_v6 = vpop.f32.mrb[98].mxu1  ;;  %11934 = vmatpush3.bf16.msra.mxu1 %v12300_v0  ;;  %v12311_v0 = vld [vmem:[%s18043_s3 + $0xb8] sm:$0xff]  }
 0x6b2   : > { %v8209_v43 = vadd.f32 %v17539_v60, %v8190_v39  ;;  %v8191_v25 = vadd.f32 %v8156_v6, %v8001_v61  ;;  %v11832_v23 = vpop.f32.mrb[99].mxu1  ;;  %11935 = vmatprep.subr.bf16.mxu1 %v18180_v14 }
 0x6b3   : > { %v7971_v35 = vpop.f32.mrb[100].mxu0  ;;  %11906 = vmatpush3.bf16.msra.mxu0 %v12301_v58 }
 0x6b4   : > { %v8223_v55 = vmax.f32 %v8209_v43, 0.0  ;;  %v8210_v37 = vadd.f32 %v17539_v60, %v8191_v25  ;;  %v8002_v15 = vadd.f32 %v7971_v35, %v17517_v7  ;;  %v11791_v1 = vpop.f32.mrb[101].mxu0  ;;  %11907 = vmatprep.subr.bf16.mxu0 %v18180_v14  ;;  %v12305_v7 = vld [vmem:[%s18043_s3 + $0xa0] sm:$0xff]  }
 0x6b5   : > { %v7974_v56 = vpop.f32.mrb[102].mxu0  ;;  %11936 = vmatpush3.bf16.msra.mxu1 %v12302_v18 }
 0x6b6   : > { %v8224_v30 = vmax.f32 %v8210_v37, 0.0  ;;  %v8003_v50 = vadd.f32 %v7974_v56, %v17519_v29  ;;  %v11792_v4 = vpop.f32.mrb[103].mxu0  ;;  %v8252_v48 = vpack.c.bf16 %v8223_v55, %v8221_v41  ;;  %11937 = vmatprep.subr.bf16.mxu1 %v18180_v14  ;;  %v12306_v29 = vld [vmem:[%s18043_s3 + $0xe8] sm:$0xff]  }
 0x6b7   : > { %v8161_v32 = vpop.f32.mrb[100].mxu1  ;;  %11908 = vmatpush3.bf16.msra.mxu0 %v12303_v59  ;;  %v12317_v4 = vld [vmem:[%s18044_s4 + $0x68] sm:$0xff]  }
 0x6b8   : > { %v8192_v40 = vadd.f32 %v8161_v32, %v8002_v15  ;;  %v11835_v34 = vpop.f32.mrb[101].mxu1  ;;  %11894 = vmatmul.mubr.bf16.gmra.mrb[116].mxu1 %v8252_v48  ;;  %v8278_v10 = vpack.c.bf16 %v8224_v30, %v8222_v31  ;;  %11909 = vmatprep.subr.bf16.mxu0 %v18180_v14  ;;  %v12318_v48 = vld [vmem:[%s18044_s4 + $0x70] sm:$0xff]   ;;  %v12319_v32 = vld [vmem:[%s18044_s4 + $0x78] sm:$0xff]  }
 0x6b9   : > { %v8164_v33 = vpop.f32.mrb[102].mxu1  ;;  %11938 = vmatpush3.bf16.msra.mxu1 %v12304_v54  ;;  %11897 = vmatprep.mubr.msk.bf16.mxu1 %vm12487_vm0, %v18180_v14 }
 0x6ba   : > { %v8211_v45 = vadd.f32 %v17539_v60, %v8192_v40  ;;  %v8193_v36 = vadd.f32 %v8164_v33, %v8003_v50  ;;  %v11836_v2 = vpop.f32.mrb[103].mxu1  ;;  %11866 = vmatmul.mubr.bf16.gmra.mrb[116].mxu0 %v8278_v10  ;;  %11939 = vmatprep.subr.bf16.mxu1 %v18180_v14  ;;  %v12316_v50 = vld [vmem:[%s18044_s4 + $0x60] sm:$0xff]  }
 0x6bb   : > { %v7979_v16 = vpop.f32.mrb[104].mxu0  ;;  %11910 = vmatpush3.bf16.msra.mxu0 %v12305_v7  ;;  %11869 = vmatprep.mubr.msk.bf16.mxu0 %vm12487_vm0, %v18180_v14  ;;  %v17684_v7 = vld [vmem:[%s18044_s4] sm:$0xff]  }
 0x6bc   : > { %v8225_v63 = vmax.f32 %v8211_v45, 0.0  ;;  %v8212_v5 = vadd.f32 %v17539_v60, %v8193_v36  ;;  %v8004_v13 = vadd.f32 %v7979_v16, %v17523_v11  ;;  %v11795_v46 = vpop.f32.mrb[105].mxu0  ;;  %11911 = vmatprep.subr.bf16.mxu0 %v18180_v14  ;;  %v12309_v11 = vld [vmem:[%s18043_s3 + $0xb0] sm:$0xff]  }
 0x6bd   : > { %v7982_v3 = vpop.f32.mrb[106].mxu0  ;;  %11940 = vmatpush3.bf16.msra.mxu1 %v12306_v29  ;;  %v12339_v46 = vld [vmem:[%s18045_s5 + $0x58] sm:$0xff]  }
 0x6be   : > { %v8226_v9 = vmax.f32 %v8212_v5, 0.0  ;;  %v8005_v52 = vadd.f32 %v7982_v3, %v17525_v28  ;;  %v11796_v19 = vpop.f32.mrb[107].mxu0  ;;  %11941 = vmatprep.subr.bf16.mxu1 %v18180_v14  ;;  %v8515_v20 = vpack.c.bf16 %v8225_v63, %v8223_v55  ;;  %v12310_v28 = vld [vmem:[%s18043_s3 + $0xf8] sm:$0xff]   ;;  %v12337_v5 = vld [vmem:[%s18045_s5 + $0x48] sm:$0xff]  }
 0x6bf   : > { %v8169_v57 = vpop.f32.mrb[104].mxu1  ;;  %11912 = vmatpush3.bf16.msra.mxu0 %v12307_v8 }
 0x6c0   : > { %v8194_v62 = vadd.f32 %v8169_v57, %v8004_v13  ;;  %v11839_v53 = vpop.f32.mrb[105].mxu1  ;;  %11913 = vmatprep.subr.bf16.mxu0 %v18180_v14  ;;  %v8653_v22 = vpack.c.bf16 %v8226_v9, %v8224_v30  ;;  %v12315_v30 = vld [vmem:[%s18044_s4 + $0x58] sm:$0xff]   ;;  %v12338_v13 = vld [vmem:[%s18045_s5 + $0x50] sm:$0xff]  }
 0x6c1   : > { %v8172_v41 = vpop.f32.mrb[106].mxu1  ;;  %11942 = vmatpush3.bf16.msra.mxu1 %v12308_v42 }
 0x6c2   : > { %v8213_v49 = vadd.f32 %v17539_v60, %v8194_v62  ;;  %v8195_v38 = vadd.f32 %v8172_v41, %v8005_v52  ;;  %v11840_v27 = vpop.f32.mrb[107].mxu1  ;;  %11943 = vmatprep.subr.bf16.mxu1 %v18180_v14  ;;  %v12341_v41 = vld [vmem:[%s18045_s5 + $0x68] sm:$0xff]  }
 0x6c3   : > { %v7987_v21 = vpop.f32.mrb[108].mxu0  ;;  %11914 = vmatpush3.bf16.msra.mxu0 %v12309_v11  ;;  %v12340_v11 = vld [vmem:[%s18045_s5 + $0x60] sm:$0xff]  }
 0x6c4   : > { %v8227_v31 = vmax.f32 %v8213_v49, 0.0  ;;  %v8214_v61 = vadd.f32 %v17539_v60, %v8195_v38  ;;  %v8006_v24 = vadd.f32 %v7987_v21, %v17529_v47  ;;  %v11799_v51 = vpop.f32.mrb[109].mxu0  ;;  %11915 = vmatprep.subr.bf16.mxu0 %v18180_v14 }
 0x6c5   : > { %v7990_v58 = vpop.f32.mrb[110].mxu0  ;;  %11944 = vmatpush3.bf16.msra.mxu1 %v12310_v28 }
 0x6c6   : > { %v8228_v39 = vmax.f32 %v8214_v61, 0.0  ;;  %v8007_v17 = vadd.f32 %v7990_v58, %v17531_v12  ;;  %v11800_v6 = vpop.f32.mrb[111].mxu0  ;;  %v8253_v18 = vpack.c.bf16 %v8227_v31, %v8225_v63  ;;  %12017 = vmatprep.subr.bf16.mxu1 %v18180_v14  ;;  %v12336_v63 = vld [vmem:[%s18045_s5 + $0x40] sm:$0xff]  }
 0x6c7   : > { %v8177_v43 = vpop.f32.mrb[108].mxu1  ;;  %11916 = vmatpush3.bf16.msra.mxu0 %v12311_v0 }
 0x6c8   : > { %v8196_v25 = vadd.f32 %v8177_v43, %v8006_v24  ;;  %v11843_v23 = vpop.f32.mrb[109].mxu1  ;;  %11898 = vmatmul.mubr.bf16.gmra.mrb[120].mxu1 %v8253_v18  ;;  %v8279_v35 = vpack.c.bf16 %v8228_v39, %v8226_v9 }
 0x6c9   : > { %v8180_v59 = vpop.f32.mrb[110].mxu1  ;;  %11945 = vmatprep.mubr.msk.bf16.mxu1 %vm12487_vm0, %v18180_v14  ;;  %v11050_v23 = vld [vmem:[%s18050_s10 + $0x2] ss:$0 sm:$0xff] }
 0x6ca   : > { %v8215_v47 = vadd.f32 %v17539_v60, %v8196_v25  ;;  %v8197_v55 = vadd.f32 %v8180_v59, %v8007_v17  ;;  %v11844_v37 = vpop.f32.mrb[111].mxu1  ;;  %11870 = vmatmul.mubr.bf16.gmra.mrb[120].mxu0 %v8279_v35 }
 0x6cb   : > { %11917 = vmatprep.mubr.msk.bf16.mxu0 %vm12487_vm0, %v18180_v14 }
 0x6cc   : > { %v8229_v12 = vmax.f32 %v8215_v47, 0.0  ;;  %v8216_v15 = vadd.f32 %v17539_v60, %v8197_v55  ;;  %v12312_v60 = vld [vmem:[%s18044_s4 + $0x40] sm:$0xff]  }
 0x6cd   : > { %11957 = vmatprep.subr.bf16.mxu0 %v12312_v60 }
 0x6ce   : > { %v8230_v1 = vmax.f32 %v8216_v15, 0.0  ;;  %v8516_v56 = vpack.c.bf16 %v8229_v12, %v8227_v31 }
 0x6d0   : > { %11946 = vmatmul.mubr.bf16.vlgmr.msra.gmra.mrb[124].mxu1 %v17579_v44  ;;  %v8654_v54 = vpack.c.bf16 %v8230_v1, %v8228_v39  ;;  %v12314_v44 = vld [vmem:[%s18044_s4 + $0x50] sm:$0xff]  }
 0x6d1   : > { %11949 = vmatprep.mubr.msk.bf16.mxu1 %vm12487_vm0, %v18180_v14  ;;  %12018 = vmatpush3.bf16.msra.mxu1 %v12336_v63 }
 0x6d2   : > { %11918 = vmatmul.mubr.bf16.vlgmr.msra.gmra.mrb[124].mxu0 %v17572_v26  ;;  %v12313_v26 = vld [vmem:[%s18044_s4 + $0x48] sm:$0xff]   ;;  %12019 = vmatprep.subr.bf16.mxu1 %v18180_v14 }
 0x6d3   : > { %11921 = vmatprep.mubr.msk.bf16.mxu0 %vm12487_vm0, %v18180_v14  ;;  %11958 = vmatpush3.bf16.msra.mxu0 %v12312_v60 }
 0x6d4   : > { %11959 = vmatprep.subr.bf16.mxu0 %v12313_v26 }
 0x6d5   : > { %12020 = vmatpush3.bf16.msra.mxu1 %v12337_v5 }
 0x6d6   : > { %12021 = vmatprep.subr.bf16.mxu1 %v18180_v14 }
 0x6d7   : > { %11960 = vmatpush3.bf16.msra.mxu0 %v12313_v26 }
 0x6d8   : > { %11950 = vmatmul.mubr.bf16.gmra.mrb[128].mxu1 %v8653_v22  ;;  %11961 = vmatprep.subr.bf16.mxu0 %v12314_v44 }
 0x6d9   : > { %11953 = vmatprep.mubr.msk.bf16.mxu1 %vm12487_vm0, %v18180_v14  ;;  %12022 = vmatpush3.bf16.msra.mxu1 %v12338_v13 }
 0x6da   : > { %11922 = vmatmul.mubr.bf16.gmra.mrb[128].mxu0 %v8515_v20  ;;  %12023 = vmatprep.subr.bf16.mxu1 %v18180_v14 }
 0x6db   : > { %11925 = vmatprep.mubr.msk.bf16.mxu0 %vm12487_vm0, %v18180_v14  ;;  %11962 = vmatpush3.bf16.msra.mxu0 %v12314_v44 }
 0x6dc   : > { %11963 = vmatprep.subr.bf16.mxu0 %v12315_v30 }
 0x6dd   : > { %12024 = vmatpush3.bf16.msra.mxu1 %v12339_v46 }
 0x6de   : > { %12025 = vmatprep.subr.bf16.mxu1 %v18180_v14 }
 0x6df   : > { %11964 = vmatpush3.bf16.msra.mxu0 %v12315_v30 }
 0x6e0   : > { %11954 = vmatmul.mubr.bf16.gmra.mrb[132].mxu1 %v8654_v54  ;;  %11965 = vmatprep.subr.bf16.mxu0 %v12316_v50 }
 0x6e1   : > { %12033 = vmatprep.mubr.msk.bf16.mxu1 %vm12487_vm0, %v18180_v14  ;;  %12026 = vmatpush3.bf16.msra.mxu1 %v12340_v11 }
 0x6e2   : > { %11926 = vmatmul.mubr.bf16.gmra.mrb[132].mxu0 %v8516_v56  ;;  %12027 = vmatprep.subr.bf16.mxu1 %v18180_v14 }
 0x6e3   : > { %11966 = vmatpush3.bf16.msra.mxu0 %v12316_v50 }
 0x6e4   : > { %11967 = vmatprep.subr.bf16.mxu0 %v12317_v4 }
 0x6e5   : > { %12028 = vmatpush3.bf16.msra.mxu1 %v12341_v41 }
 0x6e6   : > { %12029 = vmatprep.subr.bf16.mxu1 %v18180_v14 }
 0x6e7   : > { %11968 = vmatpush3.bf16.msra.mxu0 %v12317_v4 }
 0x6e8   : > { %11969 = vmatprep.subr.bf16.mxu0 %v12318_v48 }
 0x6eb   : > { %11970 = vmatpush3.bf16.msra.mxu0 %v12318_v48 }
 0x6ec   : > { %11971 = vmatprep.subr.bf16.mxu0 %v12319_v32 }
 0x6ef   : > { %11972 = vmatpush3.bf16.msra.mxu0 %v12319_v32 }
 0x6f0   : > { %11977 = vmatprep.subr.bf16.mxu0 %v17684_v7 }
 0x77b   : > { %v8484_v40 = vpop.f32.mrb[112].mxu1 }
 0x77c   : > { %v11891_v34 = vpop.f32.mrb[113].mxu1 }
 0x77d   : > { %v8379_v10 = vpop.f32.mrb[112].mxu0  ;;  %v8487_v33 = vpop.f32.mrb[114].mxu1 }
 0x77e   : > { %v8485_v29 = vadd.f32 %v8484_v40, %v8379_v10  ;;  %v11863_v45 = vpop.f32.mrb[113].mxu0  ;;  %v11892_v36 = vpop.f32.mrb[115].mxu1 }
 0x77f   : > { %v8382_v2 = vpop.f32.mrb[114].mxu0 }
 0x780   : > { %v8488_v16 = vadd.f32 %v8487_v33, %v8382_v2  ;;  %v11864_v8 = vpop.f32.mrb[115].mxu0 }
 0x78b   : > { %v8492_v3 = vpop.f32.mrb[116].mxu1 }
 0x78c   : > { %v11895_v42 = vpop.f32.mrb[117].mxu1 }
 0x78d   : > { %v8387_v9 = vpop.f32.mrb[116].mxu0  ;;  %v8495_v52 = vpop.f32.mrb[118].mxu1 }
 0x78e   : > { %v8493_v19 = vadd.f32 %v8492_v3, %v8387_v9  ;;  %v11867_v20 = vpop.f32.mrb[117].mxu0  ;;  %v11896_v57 = vpop.f32.mrb[119].mxu1 }
 0x78f   : > { %v8390_v62 = vpop.f32.mrb[118].mxu0 }
 0x790   : > { %v8496_v53 = vadd.f32 %v8495_v52, %v8390_v62  ;;  %v11868_v22 = vpop.f32.mrb[119].mxu0 }
 0x79b   : > { %v8500_v28 = vpop.f32.mrb[120].mxu1 }
 0x79c   : > { %v11899_v49 = vpop.f32.mrb[121].mxu1 }
 0x79d   : > { %v8395_v38 = vpop.f32.mrb[120].mxu0  ;;  %v8503_v27 = vpop.f32.mrb[122].mxu1  ;;  %v12321_v49 = vld [vmem:[%s18044_s4 + $0x8] sm:$0xff]  }
 0x79e   : > { %v8501_v21 = vadd.f32 %v8500_v28, %v8395_v38  ;;  %v11871_v0 = vpop.f32.mrb[121].mxu0  ;;  %v11900_v31 = vpop.f32.mrb[123].mxu1 }
 0x79f   : > { %v8398_v61 = vpop.f32.mrb[122].mxu0  ;;  %v12324_v0 = vld [vmem:[%s18044_s4 + $0x20] sm:$0xff]   ;;  %v12326_v31 = vld [vmem:[%s18044_s4 + $0x30] sm:$0xff]  }
 0x7a0   : > { %v8504_v24 = vadd.f32 %v8503_v27, %v8398_v61  ;;  %v11872_v51 = vpop.f32.mrb[123].mxu0  ;;  %v12322_v27 = vld [vmem:[%s18044_s4 + $0x10] sm:$0xff]   ;;  %v12327_v61 = vld [vmem:[%s18044_s4 + $0x38] sm:$0xff]  }
 0x7a1   : > { %v12329_v51 = vld [vmem:[%s18044_s4 + $0x88] sm:$0xff]  }
 0x7a3   : > { %v8754_v58 = vpop.f32.mrb[124].mxu1 }
 0x7a4   : > { %v11947_v39 = vpop.f32.mrb[125].mxu1 }
 0x7a5   : > { %v8616_v17 = vpop.f32.mrb[124].mxu0  ;;  %v8757_v6 = vpop.f32.mrb[126].mxu1  ;;  %v12331_v39 = vld [vmem:[%s18044_s4 + $0x98] sm:$0xff]  }
 0x7a6   : > { %v8639_v18 = vadd.f32 %v8616_v17, %v8485_v29  ;;  %v11919_v43 = vpop.f32.mrb[125].mxu0  ;;  %v11948_v25 = vpop.f32.mrb[127].mxu1  ;;  %v12332_v17 = vld [vmem:[%s18044_s4 + $0xa0] sm:$0xff]  }
 0x7a7   : > { %v8619_v35 = vpop.f32.mrb[126].mxu0  ;;  %v12335_v43 = vld [vmem:[%s18044_s4 + $0xb8] sm:$0xff]   ;;  %v12342_v25 = vld [vmem:[%s18045_s5 + $0x70] sm:$0xff]  }
 0x7a8   : > { %v8777_v59 = vadd.f32 %v8754_v58, %v8639_v18  ;;  %v8640_v47 = vadd.f32 %v8619_v35, %v8488_v16  ;;  %v11920_v55 = vpop.f32.mrb[127].mxu0  ;;  %v12330_v58 = vld [vmem:[%s18044_s4 + $0x90] sm:$0xff]   ;;  %12030 = vmatpush3.bf16.msra.mxu1 %v12342_v25  ;;  %v11107_v35 = vld [vmem:[%s18050_s10 + $0x3] ss:$0 sm:$0xff] }
 0x7a9   : > { %v12334_v18 = vld [vmem:[%s18044_s4 + $0xb0] sm:$0xff]   ;;  %12031 = vmatprep.subr.bf16.mxu1 %v18180_v14 }
 0x7aa   : > { %v8788_v37 = vadd.f32 %v11050_v23, %v8777_v59  ;;  %v8778_v12 = vadd.f32 %v8757_v6, %v8640_v47  ;;  %v12333_v6 = vld [vmem:[%s18044_s4 + $0xa8] sm:$0xff]  }
 0x7ab   : > { %v8762_v15 = vpop.f32.mrb[128].mxu1 }
 0x7ac   : > { %v8789_v1 = vadd.f32 %v11050_v23, %v8778_v12  ;;  %v11951_v56 = vpop.f32.mrb[129].mxu1  ;;  %v8794_v26 = vmax.f32 %v8788_v37, 0.0 }
 0x7ad   : > { %v8624_v54 = vpop.f32.mrb[128].mxu0  ;;  %v8765_v60 = vpop.f32.mrb[130].mxu1 }
 0x7ae   : > { %v8795_v44 = vmax.f32 %v8789_v1, 0.0  ;;  %v8641_v30 = vadd.f32 %v8624_v54, %v8493_v19  ;;  %v11923_v50 = vpop.f32.mrb[129].mxu0  ;;  %v11952_v4 = vpop.f32.mrb[131].mxu1 }
 0x7af   : > { %v8627_v48 = vpop.f32.mrb[130].mxu0  ;;  %v12344_v50 = vld [vmem:[%s18045_s5] sm:$0xff]  }
 0x7b0   : > { %v8779_v32 = vadd.f32 %v8762_v15, %v8641_v30  ;;  %v8642_v40 = vadd.f32 %v8627_v48, %v8496_v53  ;;  %v11924_v34 = vpop.f32.mrb[131].mxu0  ;;  %v8810_v10 = vpack.c.bf16 %v8795_v44, %v8794_v26 }
 0x7b1   : > { %v12347_v34 = vld [vmem:[%s18045_s5 + $0x18] sm:$0xff]  }
 0x7b2   : > { %v8790_v33 = vadd.f32 %v11050_v23, %v8779_v32  ;;  %v8780_v29 = vadd.f32 %v8765_v60, %v8642_v40  ;;  %v12345_v32 = vld [vmem:[%s18045_s5 + $0x8] sm:$0xff]   ;;  %v12346_v40 = vld [vmem:[%s18045_s5 + $0x10] sm:$0xff]  }
 0x7b3   : > { %v8770_v45 = vpop.f32.mrb[132].mxu1 }
 0x7b4   : > { %v8796_v36 = vmax.f32 %v8790_v33, 0.0  ;;  %v8791_v2 = vadd.f32 %v11050_v23, %v8780_v29  ;;  %v11955_v16 = vpop.f32.mrb[133].mxu1  ;;  %v12349_v33 = vld [vmem:[%s18045_s5 + $0x28] sm:$0xff]   ;;  %v12350_v29 = vld [vmem:[%s18045_s5 + $0x30] sm:$0xff]  }
 0x7b5   : > { %v8632_v8 = vpop.f32.mrb[132].mxu0  ;;  %v8773_v63 = vpop.f32.mrb[134].mxu1  ;;  %v12354_v16 = vld [vmem:[%s18045_s5 + $0x90] sm:$0xff]  }
 0x7b6   : > { %v8797_v5 = vmax.f32 %v8791_v2, 0.0  ;;  %v8643_v13 = vadd.f32 %v8632_v8, %v8501_v21  ;;  %v11927_v46 = vpop.f32.mrb[133].mxu0  ;;  %v11956_v3 = vpop.f32.mrb[135].mxu1  ;;  %v8833_v42 = vpack.c.bf16 %v8796_v36, %v8795_v44  ;;  %v12323_v21 = vld [vmem:[%s18044_s4 + $0x18] sm:$0xff]   ;;  %v12353_v2 = vld [vmem:[%s18045_s5 + $0x88] sm:$0xff]  }
 0x7b7   : > { %v8635_v9 = vpop.f32.mrb[134].mxu0  ;;  %v12355_v8 = vld [vmem:[%s18045_s5 + $0x98] sm:$0xff]   ;;  %v12360_v3 = vld [vmem:[%s18046_s6] sm:$0xff]  }
 0x7b8   : > { %v8811_v52 = vpack.c.bf16 %v8797_v5, %v8796_v36  ;;  %v8781_v19 = vadd.f32 %v8770_v45, %v8643_v13  ;;  %v8644_v20 = vadd.f32 %v8635_v9, %v8504_v24  ;;  %v11928_v57 = vpop.f32.mrb[135].mxu0  ;;  %11973 = vmatprep.mubr.bf16.mxu0 %v8833_v42  ;;  %v12328_v24 = vld [vmem:[%s18044_s4 + $0x80] sm:$0xff]   ;;  %v12351_v45 = vld [vmem:[%s18045_s5 + $0x38] sm:$0xff]   ;;  %v12358_v13 = vld [vmem:[%s18045_s5 + $0xb0] sm:$0xff]  }
 0x7b9   : > { %v12352_v36 = vld [vmem:[%s18045_s5 + $0x80] sm:$0xff]   ;;  %v12359_v46 = vld [vmem:[%s18045_s5 + $0xb8] sm:$0xff]   ;;  %v12362_v9 = vld [vmem:[%s18046_s6 + $0x8] sm:$0xff]  }
 0x7ba   : > { %v8792_v11 = vadd.f32 %v11050_v23, %v8781_v19  ;;  %v8782_v62 = vadd.f32 %v8773_v63, %v8644_v20  ;;  %v12356_v63 = vld [vmem:[%s18045_s5 + $0xa0] sm:$0xff]   ;;  %v12364_v19 = vld [vmem:[%s18046_s6 + $0x10] sm:$0xff]   ;;  %v12366_v57 = vld [vmem:[%s18046_s6 + $0x18] sm:$0xff]  }
 0x7bb   : > { %v12361_v42 = vld [vmem:[%s18046_s6 + $0x40] sm:$0xff]   ;;  %v12365_v20 = vld [vmem:[%s18046_s6 + $0x50] sm:$0xff]  }
 0x7bc   : > { %v8798_v53 = vmax.f32 %v8792_v11, 0.0  ;;  %v8793_v22 = vadd.f32 %v11050_v23, %v8782_v62  ;;  %v12343_v23 = vld [vmem:[%s18045_s5 + $0x78] sm:$0xff]   ;;  %v12368_v62 = vld [vmem:[%s18046_s6 + $0x20] sm:$0xff]  }
 0x7bd   : > { %12032 = vmatpush3.bf16.msra.mxu1 %v12343_v23  ;;  %v12367_v11 = vld [vmem:[%s18046_s6 + $0x58] sm:$0xff]  }
 0x7be   : > { %v8834_v41 = vpack.c.bf16 %v8798_v53, %v8797_v5  ;;  %v8799_v28 = vmax.f32 %v8793_v22, 0.0  ;;  %12037 = vmatprep.subr.bf16.mxu1 %v18180_v14  ;;  %v12357_v5 = vld [vmem:[%s18045_s5 + $0xa8] sm:$0xff]  }
 0x7bf   : > { %v12370_v22 = vld [vmem:[%s18046_s6 + $0x28] sm:$0xff]  }
 0x7c0   : > { %v9052_v38 = vpack.c.bf16 %v8799_v28, %v8798_v53  ;;  %11974 = vmatmul.mubr.bf16.vlgmr.msra.gmra.mrb[136].mxu0 %v8834_v41  ;;  %v12369_v53 = vld [vmem:[%s18046_s6 + $0x60] sm:$0xff]   ;;  %v12371_v41 = vld [vmem:[%s18046_s6 + $0x68] sm:$0xff]   ;;  %v12372_v28 = vld [vmem:[%s18046_s6 + $0x30] sm:$0xff]  }
 0x7c1   : > { %11978 = vmatpush3.bf16.msra.mxu0 %v17684_v7  ;;  %11993 = vmatprep.mubr.bf16.mxu0 %v8810_v10  ;;  %v12325_v7 = vld [vmem:[%s18044_s4 + $0x28] sm:$0xff]   ;;  %v12348_v10 = vld [vmem:[%s18045_s5 + $0x20] sm:$0xff]  }
 0x7c2   : > { %11979 = vmatprep.subr.bf16.mxu0 %v12321_v49 }
 0x7c5   : > { %11980 = vmatpush3.bf16.msra.mxu0 %v12321_v49  ;;  %v12373_v49 = vld [vmem:[%s18046_s6 + $0x70] sm:$0xff]  }
 0x7c6   : > { %11981 = vmatprep.subr.bf16.mxu0 %v12322_v27 }
 0x7c9   : > { %11982 = vmatpush3.bf16.msra.mxu0 %v12322_v27  ;;  %v12375_v27 = vld [vmem:[%s18046_s6 + $0x78] sm:$0xff]  }
 0x7ca   : > { %11983 = vmatprep.subr.bf16.mxu0 %v12323_v21 }
 0x7cd   : > { %11984 = vmatpush3.bf16.msra.mxu0 %v12323_v21 }
 0x7ce   : > { %11985 = vmatprep.subr.bf16.mxu0 %v12324_v0 }
 0x7d1   : > { %11986 = vmatpush3.bf16.msra.mxu0 %v12324_v0 }
 0x7d2   : > { %11987 = vmatprep.subr.bf16.mxu0 %v12325_v7 }
 0x7d5   : > { %11988 = vmatpush3.bf16.msra.mxu0 %v12325_v7 }
 0x7d6   : > { %11989 = vmatprep.subr.bf16.mxu0 %v12326_v31 }
 0x7d9   : > { %11990 = vmatpush3.bf16.msra.mxu0 %v12326_v31 }
 0x7da   : > { %11991 = vmatprep.subr.bf16.mxu0 %v12327_v61 }
 0x7dd   : > { %11992 = vmatpush3.bf16.msra.mxu0 %v12327_v61 }
 0x7de   : > { %11997 = vmatprep.subr.bf16.mxu0 %v12328_v24 }
 0x7e0   : > { %11994 = vmatmul.mubr.bf16.vlgmr.msra.gmra.mrb[136].mxu0 %v8811_v52 }
 0x7e1   : > { %11998 = vmatpush3.bf16.msra.mxu0 %v12328_v24  ;;  %12013 = vmatprep.mubr.bf16.mxu0 %v8811_v52  ;;  %v12363_v52 = vld [vmem:[%s18046_s6 + $0x48] sm:$0xff]  }
 0x7e2   : > { %11999 = vmatprep.subr.bf16.mxu0 %v12329_v51 }
 0x7e5   : > { %12000 = vmatpush3.bf16.msra.mxu0 %v12329_v51 }
 0x7e6   : > { %12001 = vmatprep.subr.bf16.mxu0 %v12330_v58 }
 0x7e9   : > { %12002 = vmatpush3.bf16.msra.mxu0 %v12330_v58 }
 0x7ea   : > { %12003 = vmatprep.subr.bf16.mxu0 %v12331_v39 }
 0x7ed   : > { %12004 = vmatpush3.bf16.msra.mxu0 %v12331_v39 }
 0x7ee   : > { %12005 = vmatprep.subr.bf16.mxu0 %v12332_v17 }
 0x7f1   : > { %12006 = vmatpush3.bf16.msra.mxu0 %v12332_v17 }
 0x7f2   : > { %12007 = vmatprep.subr.bf16.mxu0 %v12333_v6 }
 0x7f5   : > { %12008 = vmatpush3.bf16.msra.mxu0 %v12333_v6 }
 0x7f6   : > { %12009 = vmatprep.subr.bf16.mxu0 %v12334_v18 }
 0x7f9   : > { %12010 = vmatpush3.bf16.msra.mxu0 %v12334_v18  ;;  %v11164_v18 = vld [vmem:[%s18050_s10 + $0x4] ss:$0 sm:$0xff] }
 0x7fa   : > { %12011 = vmatprep.subr.bf16.mxu0 %v12335_v43 }
 0x7fd   : > { %12012 = vmatpush3.bf16.msra.mxu0 %v12335_v43 }
 0x7fe   : > { %12077 = vmatprep.subr.bf16.mxu0 %v18180_v14 }
 0x800   : > { %12014 = vmatmul.mubr.bf16.vlgmr.msra.gmra.mrb[136].mxu0 %v9052_v38  ;;  %v12374_v38 = vld [vmem:[%s18046_s6 + $0x38] sm:$0xff]  }
 0x801   : > { %12093 = vmatprep.mubr.msk.bf16.mxu0 %vm12487_vm0, %v18180_v14  ;;  %12078 = vmatpush3.bf16.msra.mxu0 %v12361_v42 }
 0x802   : > { %12079 = vmatprep.subr.bf16.mxu0 %v18180_v14 }
 0x805   : > { %12080 = vmatpush3.bf16.msra.mxu0 %v12363_v52  ;;  %v12390_v52 = vld [vmem:[%s18048_s8 + $0x30] sm:$0xff]  }
 0x806   : > { %12081 = vmatprep.subr.bf16.mxu0 %v18180_v14 }
 0x809   : > { %12082 = vmatpush3.bf16.msra.mxu0 %v12365_v20  ;;  %v12392_v20 = vld [vmem:[%s18049_s9] sm:$0xff]  }
 0x80a   : > { %12083 = vmatprep.subr.bf16.mxu0 %v18180_v14 }
 0x80d   : > { %12084 = vmatpush3.bf16.msra.mxu0 %v12367_v11  ;;  %v12394_v11 = vld [vmem:[%s18049_s9 + $0x10] sm:$0xff]  }
 0x80e   : > { %12085 = vmatprep.subr.bf16.mxu0 %v18180_v14 }
 0x811   : > { %12086 = vmatpush3.bf16.msra.mxu0 %v12369_v53  ;;  %v12396_v53 = vld [vmem:[%s18049_s9 + $0x20] sm:$0xff]  }
 0x812   : > { %12087 = vmatprep.subr.bf16.mxu0 %v18180_v14 }
 0x815   : > { %12088 = vmatpush3.bf16.msra.mxu0 %v12371_v41  ;;  %v11198_v41 = vld [vmem:[%s18050_s10 + $0x6] ss:$0 sm:$0xff] }
 0x816   : > { %12089 = vmatprep.subr.bf16.mxu0 %v18180_v14 }
 0x819   : > { %12090 = vmatpush3.bf16.msra.mxu0 %v12373_v49 }
 0x81a   : > { %12091 = vmatprep.subr.bf16.mxu0 %v18180_v14 }
 0x81d   : > { %12092 = vmatpush3.bf16.msra.mxu0 %v12375_v27 }
 0x81e   : > { %12117 = vmatprep.subr.bf16.mxu0 %v18180_v14 }
 0x8d3   : > { %v12015_v59 = vpop.f32.mrb[136].mxu0 }
 0x8d4   : > { %v9178_v47 = vadd.f32 %v12015_v59, %v11107_v35  ;;  %v9152_v55 = vpop.f32.mrb[137].mxu0 }
 0x8d5   : > { %v9176_v37 = vadd.f32 %v11107_v35, %v9152_v55  ;;  %v12016_v12 = vpop.f32.mrb[138].mxu0 }
 0x8d6   : > { %v9179_v15 = vadd.f32 %v12016_v12, %v11107_v35  ;;  %v9155_v1 = vpop.f32.mrb[139].mxu0  ;;  %v9182_v54 = vmax.f32 %v9178_v47, 0.0 }
 0x8d7   : > { %v9177_v56 = vadd.f32 %v11107_v35, %v9155_v1  ;;  %v9180_v26 = vmax.f32 %v9176_v37, 0.0  ;;  %v12376_v1 = vld [vmem:[%s18047_s7] sm:$0xff]  }
 0x8d8   : > { %v9183_v60 = vmax.f32 %v9179_v15, 0.0 }
 0x8d9   : > { %v9181_v44 = vmax.f32 %v9177_v56, 0.0 }
 0x8da   : > { %v9409_v30 = vpack.c.bf16 %v9183_v60, %v9182_v54  ;;  %v12378_v60 = vld [vmem:[%s18047_s7 + $0x10] sm:$0xff]  }
 0x8db   : > { %v9190_v4 = vpack.c.bf16 %v9181_v44, %v9180_v26  ;;  %v9210_v48 = vpack.c.bf16 %v9182_v54, %v9181_v44  ;;  %v12377_v54 = vld [vmem:[%s18047_s7 + $0x8] sm:$0xff]   ;;  %v12379_v26 = vld [vmem:[%s18047_s7 + $0x18] sm:$0xff]   ;;  %v12380_v44 = vld [vmem:[%s18047_s7 + $0x20] sm:$0xff]  }
 0x8dd   : > { %12034 = vmatmul.mubr.bf16.vlgmr.msra.gmra.mrb[136].mxu1 %v9210_v48  ;;  %v12384_v48 = vld [vmem:[%s18048_s8] sm:$0xff]  }
 0x8de   : > { %12038 = vmatpush3.bf16.msra.mxu1 %v12344_v50  ;;  %12053 = vmatprep.mubr.msk.bf16.mxu1 %vm12487_vm0, %v18180_v14  ;;  %v12382_v50 = vld [vmem:[%s18047_s7 + $0x30] sm:$0xff]  }
 0x8df   : > { %12039 = vmatprep.subr.bf16.mxu1 %v18180_v14 }
 0x8e2   : > { %12040 = vmatpush3.bf16.msra.mxu1 %v12345_v32  ;;  %v12385_v32 = vld [vmem:[%s18048_s8 + $0x8] sm:$0xff]  }
 0x8e3   : > { %12041 = vmatprep.subr.bf16.mxu1 %v18180_v14 }
 0x8e6   : > { %12042 = vmatpush3.bf16.msra.mxu1 %v12346_v40  ;;  %v12386_v40 = vld [vmem:[%s18048_s8 + $0x10] sm:$0xff]  }
 0x8e7   : > { %12043 = vmatprep.subr.bf16.mxu1 %v18180_v14 }
 0x8ea   : > { %12044 = vmatpush3.bf16.msra.mxu1 %v12347_v34  ;;  %v12387_v34 = vld [vmem:[%s18048_s8 + $0x18] sm:$0xff]  }
 0x8eb   : > { %12045 = vmatprep.subr.bf16.mxu1 %v18180_v14 }
 0x8ee   : > { %12046 = vmatpush3.bf16.msra.mxu1 %v12348_v10  ;;  %v12388_v10 = vld [vmem:[%s18048_s8 + $0x20] sm:$0xff]  }
 0x8ef   : > { %12047 = vmatprep.subr.bf16.mxu1 %v18180_v14 }
 0x8f2   : > { %12048 = vmatpush3.bf16.msra.mxu1 %v12349_v33  ;;  %v12389_v33 = vld [vmem:[%s18048_s8 + $0x28] sm:$0xff]  }
 0x8f3   : > { %12049 = vmatprep.subr.bf16.mxu1 %v18180_v14 }
 0x8f6   : > { %12050 = vmatpush3.bf16.msra.mxu1 %v12350_v29 }
 0x8f7   : > { %12051 = vmatprep.subr.bf16.mxu1 %v18180_v14 }
 0x8fa   : > { %12052 = vmatpush3.bf16.msra.mxu1 %v12351_v45 }
 0x8fb   : > { %12057 = vmatprep.subr.bf16.mxu1 %v18180_v14 }
 0x8fd   : > { %12054 = vmatmul.mubr.bf16.vlgmr.msra.gmra.mrb[140].mxu1 %v9190_v4  ;;  %v12383_v4 = vld [vmem:[%s18047_s7 + $0x38] sm:$0xff]  }
 0x8fe   : > { %12058 = vmatpush3.bf16.msra.mxu1 %v12352_v36  ;;  %12073 = vmatprep.mubr.msk.bf16.mxu1 %vm12487_vm0, %v18180_v14 }
 0x8ff   : > { %12059 = vmatprep.subr.bf16.mxu1 %v18180_v14 }
 0x902   : > { %12060 = vmatpush3.bf16.msra.mxu1 %v12353_v2  ;;  %v11197_v2 = vld [vmem:[%s18050_s10 + $0x5] ss:$0 sm:$0xff] }
 0x903   : > { %12061 = vmatprep.subr.bf16.mxu1 %v18180_v14 }
 0x906   : > { %12062 = vmatpush3.bf16.msra.mxu1 %v12354_v16 }
 0x907   : > { %12063 = vmatprep.subr.bf16.mxu1 %v18180_v14 }
 0x90a   : > { %12064 = vmatpush3.bf16.msra.mxu1 %v12355_v8 }
 0x90b   : > { %12065 = vmatprep.subr.bf16.mxu1 %v18180_v14 }
 0x90e   : > { %12066 = vmatpush3.bf16.msra.mxu1 %v12356_v63 }
 0x90f   : > { %12067 = vmatprep.subr.bf16.mxu1 %v18180_v14 }
 0x912   : > { %12068 = vmatpush3.bf16.msra.mxu1 %v12357_v5 }
 0x913   : > { %12069 = vmatprep.subr.bf16.mxu1 %v18180_v14 }
 0x916   : > { %12070 = vmatpush3.bf16.msra.mxu1 %v12358_v13 }
 0x917   : > { %12071 = vmatprep.subr.bf16.mxu1 %v18180_v14 }
 0x91a   : > { %12072 = vmatpush3.bf16.msra.mxu1 %v12359_v46 }
 0x91b   : > { %12097 = vmatprep.subr.bf16.mxu1 %v18180_v14 }
 0x91d   : > { %12074 = vmatmul.mubr.bf16.vlgmr.msra.gmra.mrb[144].mxu1 %v9409_v30  ;;  %v12381_v30 = vld [vmem:[%s18047_s7 + $0x28] sm:$0xff]  }
 0x91e   : > { %12113 = vmatprep.mubr.msk.bf16.mxu1 %vm12487_vm0, %v18180_v14  ;;  %12098 = vmatpush3.bf16.msra.mxu1 %v12360_v3 }
 0x91f   : > { %12099 = vmatprep.subr.bf16.mxu1 %v18180_v14 }
 0x922   : > { %12100 = vmatpush3.bf16.msra.mxu1 %v12362_v9 }
 0x923   : > { %12101 = vmatprep.subr.bf16.mxu1 %v18180_v14 }
 0x926   : > { %12102 = vmatpush3.bf16.msra.mxu1 %v12364_v19  ;;  %v12391_v19 = vld [vmem:[%s18048_s8 + $0x38] sm:$0xff]  }
 0x927   : > { %12103 = vmatprep.subr.bf16.mxu1 %v18180_v14 }
 0x92a   : > { %12104 = vmatpush3.bf16.msra.mxu1 %v12366_v57  ;;  %v12393_v57 = vld [vmem:[%s18049_s9 + $0x8] sm:$0xff]  }
 0x92b   : > { %12105 = vmatprep.subr.bf16.mxu1 %v18180_v14 }
 0x92e   : > { %12106 = vmatpush3.bf16.msra.mxu1 %v12368_v62  ;;  %v12395_v62 = vld [vmem:[%s18049_s9 + $0x18] sm:$0xff]  }
 0x92f   : > { %12107 = vmatprep.subr.bf16.mxu1 %v18180_v14 }
 0x932   : > { %12108 = vmatpush3.bf16.msra.mxu1 %v12370_v22  ;;  %v12397_v22 = vld [vmem:[%s18049_s9 + $0x28] sm:$0xff]  }
 0x933   : > { %12109 = vmatprep.subr.bf16.mxu1 %v18180_v14 }
 0x936   : > { %12110 = vmatpush3.bf16.msra.mxu1 %v12372_v28 }
 0x937   : > { %12111 = vmatprep.subr.bf16.mxu1 %v18180_v14 }
 0x93a   : > { %12112 = vmatpush3.bf16.msra.mxu1 %v12374_v38 }
 0x93b   : > { %12137 = vmatprep.subr.bf16.mxu1 %v18180_v14 }
 0x9b0   : > { %v9310_v21 = vpop.f32.mrb[136].mxu1 }
 0x9b1   : > { %v12035_v0 = vpop.f32.mrb[137].mxu1 }
 0x9b2   : > { %v9313_v7 = vpop.f32.mrb[138].mxu1 }
 0x9b3   : > { %v12036_v31 = vpop.f32.mrb[139].mxu1 }
 0x9b4   : > { %v12398_v31 = vld [vmem:[%s18049_s9 + $0x30] sm:$0xff]  }
 0x9d0   : > { %v9399_v61 = vpop.f32.mrb[140].mxu1 }
 0x9d1   : > { %v9400_v24 = vadd.f32 %v9399_v61, %v9310_v21  ;;  %v12055_v51 = vpop.f32.mrb[141].mxu1  ;;  %v12399_v61 = vld [vmem:[%s18049_s9 + $0x38] sm:$0xff]  }
 0x9d2   : > { %v9402_v58 = vpop.f32.mrb[142].mxu1 }
 0x9d3   : > { %v9403_v39 = vadd.f32 %v9402_v58, %v9313_v7  ;;  %v12056_v17 = vpop.f32.mrb[143].mxu1 }
 0x9f0   : > { %v9509_v6 = vpop.f32.mrb[144].mxu1 }
 0x9f1   : > { %v9516_v43 = vadd.f32 %v9509_v6, %v9400_v24  ;;  %v12075_v25 = vpop.f32.mrb[145].mxu1  ;;  %v11207_v24 = vld [vmem:[%s18050_s10 + $0x7] ss:$0 sm:$0xff] }
 0x9f2   : > { %v9512_v23 = vpop.f32.mrb[146].mxu1 }
 0x9f3   : > { %v9523_v35 = vadd.f32 %v11164_v18, %v9516_v43  ;;  %v9517_v59 = vadd.f32 %v9512_v23, %v9403_v39  ;;  %v12076_v47 = vpop.f32.mrb[147].mxu1 }
 0x9f5   : > { %v9525_v55 = vmax.f32 %v9523_v35, 0.0  ;;  %v9524_v37 = vadd.f32 %v11164_v18, %v9517_v59 }
 0x9f7   : > { %v9530_v12 = vpack.c.bf16 %v9525_v55, %v9525_v55  ;;  %v9526_v15 = vmax.f32 %v9524_v37, 0.0 }
 0x9f9   : > { %v9549_v56 = vpack.c.bf16 %v9526_v15, %v9526_v15  ;;  %12114 = vmatmul.mubr.bf16.vlgmr.msra.gmra.mrb[148].mxu1 %v9530_v12 }
 0x9fa   : > { %12153 = vmatprep.mubr.msk.bf16.mxu1 %vm12487_vm0, %v18180_v14  ;;  %12138 = vmatpush3.bf16.msra.mxu1 %v12384_v48 }
 0x9fb   : > { %12094 = vmatmul.mubr.bf16.vlgmr.msra.gmra.mrb[140].mxu0 %v9549_v56  ;;  %12139 = vmatprep.subr.bf16.mxu1 %v18180_v14 }
 0x9fc   : > { %12118 = vmatpush3.bf16.msra.mxu0 %v12376_v1  ;;  %12133 = vmatprep.mubr.msk.bf16.mxu0 %vm12487_vm0, %v18180_v14 }
 0x9fd   : > { %12119 = vmatprep.subr.bf16.mxu0 %v18180_v14 }
 0x9fe   : > { %12140 = vmatpush3.bf16.msra.mxu1 %v12385_v32 }
 0x9ff   : > { %12141 = vmatprep.subr.bf16.mxu1 %v18180_v14 }
 0xa00   : > { %12120 = vmatpush3.bf16.msra.mxu0 %v12377_v54 }
 0xa01   : > { %12121 = vmatprep.subr.bf16.mxu0 %v18180_v14 }
 0xa02   : > { %12142 = vmatpush3.bf16.msra.mxu1 %v12386_v40 }
 0xa03   : > { %12143 = vmatprep.subr.bf16.mxu1 %v18180_v14 }
 0xa04   : > { %12122 = vmatpush3.bf16.msra.mxu0 %v12378_v60 }
 0xa05   : > { %12123 = vmatprep.subr.bf16.mxu0 %v18180_v14 }
 0xa06   : > { %12144 = vmatpush3.bf16.msra.mxu1 %v12387_v34 }
 0xa07   : > { %12145 = vmatprep.subr.bf16.mxu1 %v18180_v14 }
 0xa08   : > { %12124 = vmatpush3.bf16.msra.mxu0 %v12379_v26 }
 0xa09   : > { %12125 = vmatprep.subr.bf16.mxu0 %v18180_v14 }
 0xa0a   : > { %12146 = vmatpush3.bf16.msra.mxu1 %v12388_v10 }
 0xa0b   : > { %12147 = vmatprep.subr.bf16.mxu1 %v18180_v14 }
 0xa0c   : > { %12126 = vmatpush3.bf16.msra.mxu0 %v12380_v44 }
 0xa0d   : > { %12127 = vmatprep.subr.bf16.mxu0 %v18180_v14 }
 0xa0e   : > { %12148 = vmatpush3.bf16.msra.mxu1 %v12389_v33 }
 0xa0f   : > { %12149 = vmatprep.subr.bf16.mxu1 %v18180_v14 }
 0xa10   : > { %12128 = vmatpush3.bf16.msra.mxu0 %v12381_v30 }
 0xa11   : > { %12129 = vmatprep.subr.bf16.mxu0 %v18180_v14 }
 0xa12   : > { %12150 = vmatpush3.bf16.msra.mxu1 %v12390_v52 }
 0xa13   : > { %12151 = vmatprep.subr.bf16.mxu1 %v18180_v14 }
 0xa14   : > { %12130 = vmatpush3.bf16.msra.mxu0 %v12382_v50 }
 0xa15   : > { %12131 = vmatprep.subr.bf16.mxu0 %v18180_v14 }
 0xa16   : > { %12152 = vmatpush3.bf16.msra.mxu1 %v12391_v19 }
 0xa18   : > { %12132 = vmatpush3.bf16.msra.mxu0 %v12383_v4 }
 0xa19   : > { %12157 = vmatprep.subr.bf16.mxu0 %v18180_v14 }
 0xacc   : > { %v9737_v29 = vpop.f32.mrb[148].mxu1 }
 0xacd   : > { %v12115_v45 = vpop.f32.mrb[149].mxu1 }
 0xace   : > { %v9649_v36 = vpop.f32.mrb[140].mxu0  ;;  %v9740_v16 = vpop.f32.mrb[150].mxu1 }
 0xacf   : > { %v9738_v8 = vadd.f32 %v9737_v29, %v9649_v36  ;;  %v12095_v63 = vpop.f32.mrb[141].mxu0  ;;  %v12116_v5 = vpop.f32.mrb[151].mxu1 }
 0xad0   : > { %v9652_v13 = vpop.f32.mrb[142].mxu0 }
 0xad1   : > { %v9748_v46 = vadd.f32 %v11197_v2, %v9738_v8  ;;  %v12096_v3 = vpop.f32.mrb[143].mxu0 }
 0xad3   : > { %v9749_v42 = vmax.f32 %v9748_v46, 0.0 }
 0xad5   : > { %v9750_v9 = vpack.c.bf16 %v9749_v42, %v9749_v42 }
 0xad7   : > { %12134 = vmatmul.mubr.bf16.vlgmr.msra.gmra.mrb[144].mxu0 %v9750_v9 }
 0xad8   : > { %12173 = vmatprep.mubr.msk.bf16.mxu0 %vm12487_vm0, %v18180_v14  ;;  %12158 = vmatpush3.bf16.msra.mxu0 %v12392_v20 }
 0xad9   : > { %12159 = vmatprep.subr.bf16.mxu0 %v18180_v14 }
 0xadc   : > { %12160 = vmatpush3.bf16.msra.mxu0 %v12393_v57 }
 0xadd   : > { %12161 = vmatprep.subr.bf16.mxu0 %v18180_v14 }
 0xae0   : > { %12162 = vmatpush3.bf16.msra.mxu0 %v12394_v11 }
 0xae1   : > { %12163 = vmatprep.subr.bf16.mxu0 %v18180_v14 }
 0xae4   : > { %12164 = vmatpush3.bf16.msra.mxu0 %v12395_v62 }
 0xae5   : > { %12165 = vmatprep.subr.bf16.mxu0 %v18180_v14 }
 0xae8   : > { %12166 = vmatpush3.bf16.msra.mxu0 %v12396_v53 }
 0xae9   : > { %12167 = vmatprep.subr.bf16.mxu0 %v18180_v14 }
 0xaec   : > { %12168 = vmatpush3.bf16.msra.mxu0 %v12397_v22 }
 0xaed   : > { %12169 = vmatprep.subr.bf16.mxu0 %v18180_v14 }
 0xaf0   : > { %12170 = vmatpush3.bf16.msra.mxu0 %v12398_v31 }
 0xaf1   : > { %12171 = vmatprep.subr.bf16.mxu0 %v18180_v14  ;;  %v11216_v14 = vld [vmem:[%s18050_s10 + $0x8] ss:$0 sm:$0xff] }
 0xaf4   : > { %12172 = vmatpush3.bf16.msra.mxu0 %v12399_v61 }
 0xbaa   : > { %v9854_v28 = vpop.f32.mrb[144].mxu0 }
 0xbab   : > { %v9855_v49 = vadd.f32 %v11198_v41, %v9854_v28  ;;  %v12135_v38 = vpop.f32.mrb[145].mxu0 }
 0xbac   : > { %v9857_v27 = vpop.f32.mrb[146].mxu0 }
 0xbad   : > { %v9860_v21 = vmax.f32 %v9855_v49, 0.0  ;;  %v12136_v0 = vpop.f32.mrb[147].mxu0 }
 0xbaf   : > { %v9861_v7 = vpack.c.bf16 %v9860_v21, %v9860_v21 }
 0xbb1   : > { %12154 = vmatmul.mubr.bf16.vlgmr.msra.gmra.mrb[152].mxu1 %v9861_v7 }
 0xc84   : > { %v9965_v51 = vpop.f32.mrb[152].mxu1 }
 0xc85   : > { %v9966_v58 = vadd.f32 %v11207_v24, %v9965_v51  ;;  %v12155_v39 = vpop.f32.mrb[153].mxu1 }
 0xc86   : > { %v9968_v17 = vpop.f32.mrb[154].mxu1 }
 0xc87   : > { %v9971_v6 = vmax.f32 %v9966_v58, 0.0  ;;  %v12156_v18 = vpop.f32.mrb[155].mxu1 }
 0xc89   : > { %v9972_v43 = vpack.c.bf16 %v9971_v6, %v9971_v6 }
 0xc8b   : > { %12174 = vmatmul.mubr.bf16.vlgmr.msra.gmra.mrb[148].mxu0 %v9972_v43 }
 0xd5e   : > { %v10076_v25 = vpop.f32.mrb[148].mxu0 }
 0xd5f   : > { %v10077_v23 = vadd.f32 %v11216_v14, %v10076_v25  ;;  %v12175_v35 = vpop.f32.mrb[149].mxu0 }
 0xd60   : > { %v10079_v59 = vpop.f32.mrb[150].mxu0 }
 0xd61   : > { %12400 = vtanh.f32 %v10077_v23  ;;  %v12176_v47 = vpop.f32.mrb[151].mxu0 }
 0xd6b   : > { %v12401_v55 = vpop.eup %12400 }
 0xd6c   : > { %10083 = vst [vmem:[%s1398_s14] sm:$0xff] %v12401_v55 }
 0xd6d PF: > { %p18_p9 = scmp.ge.s32.totalorder %s12565_s21, 4   ;;  %s18583_s17 = smov %s12479_s18 }
 0xd6e   : > { %s18584_s18 = smov %s12574_s24  ;;  %s18585_s19 = smov %s12565_s21 }
 0xd6f   :  { %20 = sbr.rel (!%p18_p9) target bundleno = 2 (0x2), region = 220 }

</bundles_post_ra>
